<compile_context>
chip_gen: v6e
topology: v6e:2x2x1
jax: 0.10.0
libtpu: 0.0.40
codegen_flags: <defaults>
</compile_context>

<pallas_src>
import jax
import jax.numpy as jnp
from jax.experimental import pallas as pl
from jax.experimental.pallas import tpu as pltpu

# ---------------- configuration (small synthetic shapes) ----------------
C_IN = 3          # image channels
H = W = 16        # spatial
N_PER = 4         # batch per domain
DIM_MLP = 32      # conv channels == dim_mlp (fc input width)
DIM = 16          # embedding dim
K_A = K_B = 32    # queue sizes
P = 8             # number of prototypes per domain
T_TEMP = 0.2
EPS_OT = 0.05
SINK_ITERS = 3
M_MOM = 0.999
BN_EPS = 1e-5
PATCH_PAD = 32    # im2col feature dim 27 zero-padded to a sublane multiple

N_TOTAL = 2 * N_PER
NHW = N_TOTAL * H * W


# ---------------- in-kernel helpers (pure jnp, traced inside kernels) ---------
def _dot_nt(a, b):
    # a @ b.T without materializing a transpose (MXU trans_b form).
    return jax.lax.dot_general(a, b, (((1,), (1,)), ((), ())),
                               preferred_element_type=jnp.float32)


def _dot_tn(a, b):
    # a.T @ b (MXU trans_a form).
    return jax.lax.dot_general(a, b, (((0,), (0,)), ((), ())),
                               preferred_element_type=jnp.float32)


def _rownorm(x):
    # F.normalize(x, dim=1) with the 1e-12 norm clamp, rsqrt on the EUP.
    ss = jnp.sum(x * x, axis=1, keepdims=True)
    return x * jax.lax.rsqrt(jnp.maximum(ss, 1e-24))


def _sinkhorn(sim, beta_row):
    # ProtoOT in "R = Q.T" space (sim is (K, P)).  Global-max subtraction and
    # the per-iteration /B + final *B cancel exactly in the normalizations.
    r = jnp.exp((sim - jnp.max(sim)) * (1.0 / EPS_OT))
    r = r / jnp.sum(r)
    for _ in range(SINK_ITERS):
        r = r / jnp.sum(r, axis=0, keepdims=True)   # Q /= sum_of_rows
        r = r * beta_row                            # Q *= beta.unsqueeze(1)
        r = r / jnp.sum(r, axis=1, keepdims=True)   # Q /= column sums
    return r


def _ce_label0(pos, neg):
    # mean_n [ logsumexp([pos_n, neg_n,:]) - pos_n ]   (labels == 0)
    m = jnp.maximum(pos, jnp.max(neg, axis=1, keepdims=True))
    lse = m + jnp.log(jnp.exp(pos - m) + jnp.sum(jnp.exp(neg - m), axis=1, keepdims=True))
    per = lse - pos
    return jnp.sum(per, axis=0, keepdims=True) * (1.0 / per.shape[0])     # (1, 1)


def _first_argmax_onehot(x):
    # one-hot (bool) of the first (lowest-index) argmax along the last axis.
    col = jax.lax.broadcasted_iota(jnp.int32, x.shape, 1)
    row_max = jnp.max(x, axis=1, keepdims=True)
    idx = jnp.min(jnp.where(x == row_max, col, x.shape[1]), axis=1, keepdims=True)
    return col == idx


# ---------------- fused encoder kernel (q-pass / k-pass on a 2-wide grid) -----
def _encoder_kernel(patches_ref, cw_ref, cb_ref, g_ref, b_ref, mask_ref, pool_ref,
                    w1_ref, b1_ref, w2_ref, b2_ref, out_ref):
    # conv3x3 as matmul; channel-major so NHW (=2048) is the 128-lane axis.
    conv = jnp.dot(cw_ref[...], patches_ref[...],
                   preferred_element_type=jnp.float32) + cb_ref[...]      # (32, NHW)

    # (Split)BatchNorm, training mode, biased variance.  `mask` marks split-0
    # columns; the q pass uses an all-ones mask (single split), the k pass uses
    # batch-parity splits (SplitBatchNorm with num_splits=2).
    mask = mask_ref[...]                                                  # (1, NHW)
    nhw = float(conv.shape[1])
    cnt0 = jnp.sum(mask)
    cnt1 = nhw - cnt0
    inv0 = 1.0 / jnp.maximum(cnt0, 1.0)
    inv1 = 1.0 / jnp.maximum(cnt1, 1.0)

    s_all = jnp.sum(conv, axis=1, keepdims=True)                          # (32, 1)
    s0 = jnp.sum(conv * mask, axis=1, keepdims=True)
    cc = conv * conv
    e_all = jnp.sum(cc, axis=1, keepdims=True)
    e0 = jnp.sum(cc * mask, axis=1, keepdims=True)
    mean0 = s0 * inv0
    mean1 = (s_all - s0) * inv1
    var0 = e0 * inv0 - mean0 * mean0
    var1 = (e_all - e0) * inv1 - mean1 * mean1

    # broadcast-select per split on the VPU (no padded (NHW,2) mask matmuls)
    mean_b = mask * mean0 + (1.0 - mask) * mean1                          # (32, NHW)
    var_b = mask * var0 + (1.0 - mask) * var1
    y = (conv - mean_b) * jax.lax.rsqrt(var_b + BN_EPS)
    y = jnp.maximum(y * g_ref[...] + b_ref[...], 0.0)                     # BN affine + ReLU

    # global average pool (trans-B contraction over NHW) + MLP head + L2 norm
    feat = _dot_nt(y, pool_ref[...])                                      # (32, N)
    h = jnp.maximum(jnp.dot(w1_ref[...], feat,
                            preferred_element_type=jnp.float32) + b1_ref[...], 0.0)
    z = jnp.dot(w2_ref[...], h, preferred_element_type=jnp.float32) + b2_ref[...]  # (DIM, N)
    ss = jnp.sum(z * z, axis=0, keepdims=True)
    out_ref[...] = z * jax.lax.rsqrt(jnp.maximum(ss, 1e-24))


# ---------------- single merged loss kernel (both domains, in + cross) --------
def _loss_kernel(q_ref, k_ref, queue_ref, protos_ref, beta_ref, own_nk_ref, own_kn_ref,
                 loss_in_ref, loss_cross_ref):
    inv_t = 1.0 / T_TEMP
    new_queues = []
    new_cents = []
    loss_in = jnp.zeros((1, 1), jnp.float32)

    # ---- in-domain losses + new centroids (both domains) ----
    for d in (0, 1):
        q = q_ref[d]                     # (N, D)
        k = k_ref[d]                     # (N, D)
        queue_old = queue_ref[d]         # (K, D)
        protos = protos_ref[d]           # (P, D)  old centroids
        beta = beta_ref[d]               # (1, P)
        own_nk = own_nk_ref[d]           # (N, K)  one-hot of im_id
        own_kn = own_kn_ref[d]           # (K, N)

        # dequeue-and-enqueue fused in-kernel: queue[:, im_id] = k.T
        occupied = jnp.sum(own_kn, axis=1, keepdims=True)                 # (K, 1)
        queue = queue_old * (1.0 - occupied) + jnp.dot(own_kn, k,
                                                       preferred_element_type=jnp.float32)
        new_queues.append(queue)

        # nearest queue feature (similarities row-normalized; own slot -> -1000)
        sim_feat = _rownorm(_dot_nt(k, queue))                            # (N, K)
        sim_feat = jnp.where(own_nk > 0.5, -1000.0, sim_feat)
        oh_nearest = _first_argmax_onehot(sim_feat)
        q_queue = _dot_nt(q, queue)                                       # (N, K)
        l_pos_nearest = jnp.sum(jnp.where(oh_nearest, q_queue, 0.0), axis=1, keepdims=True)

        # ProtoOT codes over queue x (old) prototypes
        sim_proto = _rownorm(_dot_nt(queue, protos))                      # (K, P)
        sim_code = _sinkhorn(sim_proto, beta)
        sel = jnp.dot(own_nk, sim_code, preferred_element_type=jnp.float32)   # sim_code[im_id]
        oh_mapped = _first_argmax_onehot(sel)                             # (N, P)

        l_all = _dot_nt(q, protos)                                        # (N, P)
        l_pos_proto = jnp.sum(jnp.where(oh_mapped, l_all, 0.0), axis=1, keepdims=True)
        l_pos_aug = jnp.sum(q * k, axis=1, keepdims=True)

        neg = jnp.where(oh_mapped, -1e30, l_all * inv_t)                  # mapped col excluded
        loss_in = loss_in + (_ce_label0(l_pos_aug * inv_t, neg)
                             + 0.5 * _ce_label0(l_pos_nearest * inv_t, neg)
                             + 0.1 * _ce_label0(l_pos_proto * inv_t, neg))

        # new centroids = F.normalize(sim_code.T @ queue, dim=1)  -> (P, D)
        new_cents.append(_rownorm(_dot_tn(sim_code, queue)))

    loss_in_ref[...] = loss_in

    # ---- cross-domain losses (use the other domain's UPDATED centroids) ----
    loss_cross = jnp.zeros((1, 1), jnp.float32)
    for d in (0, 1):
        q = q_ref[d]
        queue = new_queues[d]
        beta = beta_ref[d]
        own_nk = own_nk_ref[d]
        pc = new_cents[1 - d]                                             # (P, D)

        sim_cross = _rownorm(_dot_nt(queue, pc))                          # (K, P)
        code = _sinkhorn(sim_cross, beta)
        sel = jnp.dot(own_nk, code, preferred_element_type=jnp.float32)   # code[im_id]
        oh = _first_argmax_onehot(sel)

        l_raw = _dot_nt(q, pc)                                            # (N, P)
        l_pos = jnp.sum(jnp.where(oh, l_raw, 0.0), axis=1, keepdims=True) # raw dot (as in ref)
        l_neg = _rownorm(l_raw)                                           # normalized negatives
        neg = jnp.where(oh, -1e30, l_neg * inv_t)
        loss_cross = loss_cross + _ce_label0(l_pos * inv_t, neg)

    loss_cross_ref[...] = loss_cross


# ---------------- pallas_call wrappers ----------------------------------------
def _spec_i(shape):
    return pl.BlockSpec(shape, lambda i: (i, 0, 0))


def _fused_encoders(stacked, patches_q_t, patches_k_t):
    patches = jnp.stack([patches_q_t, patches_k_t])                # (2, PATCH_PAD, NHW)

    img_of_col = jnp.arange(NHW, dtype=jnp.int32) // (H * W)
    even = (img_of_col % 2 == 0).astype(jnp.float32)[None, :]      # parity split (k pass)
    ones = jnp.ones((1, NHW), jnp.float32)                         # single split (q pass)
    mask = jnp.stack([ones, even])                                 # (2, 1, NHW)
    pool = (jnp.arange(N_TOTAL, dtype=jnp.int32)[:, None] == img_of_col[None, :]
            ).astype(jnp.float32) / float(H * W)                   # (N_TOTAL, NHW)

    return pl.pallas_call(
        _encoder_kernel,
        out_shape=jax.ShapeDtypeStruct((2, DIM, N_TOTAL), jnp.float32),
        grid=(2,),
        in_specs=[
            _spec_i((None, PATCH_PAD, NHW)),       # im2col patches (transposed, padded)
            _spec_i((None, DIM_MLP, PATCH_PAD)),   # conv weight^T
            _spec_i((None, DIM_MLP, 1)),           # conv bias
            _spec_i((None, DIM_MLP, 1)),           # bn gamma
            _spec_i((None, DIM_MLP, 1)),           # bn beta
            _spec_i((None, 1, NHW)),               # split-0 column mask
            pl.BlockSpec((N_TOTAL, NHW), lambda i: (0, 0)),   # shared avg-pool matrix
            _spec_i((None, DIM_MLP, DIM_MLP)),     # fc1 W^T
            _spec_i((None, DIM_MLP, 1)),           # fc1 bias
            _spec_i((None, DIM, DIM_MLP)),         # fc2 W^T
            _spec_i((None, DIM, 1)),               # fc2 bias
        ],
        out_specs=_spec_i((None, DIM, N_TOTAL)),
        # "parallel" is near-free on v5e/v6e; on v7x switch to pltpu.CORE_PARALLEL
        # once per-step work clearly exceeds the ~0.35us grid-step overhead.
        compiler_params=pltpu.CompilerParams(dimension_semantics=("parallel",)),
    )(patches, stacked["cw_t"], stacked["cb_t"], stacked["gamma_t"], stacked["beta_t"],
      mask, pool, stacked["w1_t"], stacked["b1_t"], stacked["w2_t"], stacked["b2_t"])


def _fused_losses(q_dom, k_dom, queue_kd, protos_pd, beta, own_nk, own_kn):
    # Single block, single step: everything is at most (32, 32) f32.
    return pl.pallas_call(
        _loss_kernel,
        out_shape=(jax.ShapeDtypeStruct((1, 1), jnp.float32),
                   jax.ShapeDtypeStruct((1, 1), jnp.float32)),
    )(q_dom, k_dom, queue_kd, protos_pd, beta, own_nk, own_kn)


# ---------------- host-side glue -----------------------------------------------
def _make_patches_t(imgs_nchw):
    # im2col, zero-padded 27 -> PATCH_PAD, transposed so NHW is the lane axis.
    n = imgs_nchw.shape[0]
    x = jnp.transpose(imgs_nchw, (0, 2, 3, 1))                    # NHWC (tiny)
    xp = jnp.pad(x, ((0, 0), (1, 1), (1, 1), (0, 0)))
    cols = [xp[:, dh:dh + H, dw:dw + W, :] for dh in range(3) for dw in range(3)]
    p = jnp.concatenate(cols, axis=-1).reshape(n * H * W, 9 * C_IN)
    p = jnp.pad(p, ((0, 0), (0, PATCH_PAD - 9 * C_IN)))
    return p.T                                                    # (PATCH_PAD, NHW)


def _prep_params(p):
    # transpose / pad params into the channel-major layout the kernel expects
    cw = jnp.pad(p["conv_w"], ((0, PATCH_PAD - C_IN * 9), (0, 0)))
    return {
        "cw_t": cw.T,                # (DIM_MLP, PATCH_PAD)
        "cb_t": p["conv_b"].T,       # (DIM_MLP, 1)
        "gamma_t": p["bn_gamma"].T,
        "beta_t": p["bn_beta"].T,
        "w1_t": p["fc1_w"].T,        # (DIM_MLP, DIM_MLP)
        "b1_t": p["fc1_b"].T,
        "w2_t": p["fc2_w"].T,        # (DIM, DIM_MLP)
        "b2_t": p["fc2_b"].T,
    }


# ---------------- full UCDIR forward -------------------------------------------
def ucdir_forward(params_q, params_k, queues, cluster,
                  im_q_A, im_k_A, im_id_A, im_q_B, im_k_B, im_id_B, shuffle_key):
    n_a = im_q_A.shape[0]

    # momentum update of the key encoder (torch: no_grad)
    params_k = jax.tree_util.tree_map(
        lambda pk, pq: M_MOM * pk + (1.0 - M_MOM) * pq, params_k, params_q)

    im_q = jnp.concatenate([im_q_A, im_q_B], axis=0)
    im_k = jnp.concatenate([im_k_A, im_k_B], axis=0)
    idx_shuffle = jax.random.permutation(shuffle_key, im_k.shape[0])
    idx_unshuffle = jnp.argsort(idx_shuffle)

    patches_q_t = _make_patches_t(im_q)
    patches_k_t = _make_patches_t(im_k[idx_shuffle])

    # one fused pallas_call runs the q-encoder (pass 0) and key-encoder (pass 1)
    stacked = jax.tree_util.tree_map(lambda a, b: jnp.stack([a, b]),
                                     _prep_params(params_q), _prep_params(params_k))
    enc = _fused_encoders(stacked, patches_q_t, patches_k_t)      # (2, DIM, 2*N_PER)
    q_all = enc[0].T                                              # (2*N_PER, DIM)
    k_all = enc[1].T[idx_unshuffle]                               # batch-unshuffled keys

    q_dom = q_all.reshape(2, n_a, DIM)
    k_dom = k_all.reshape(2, n_a, DIM)
    queue_kd = jnp.stack([queues["A"].T, queues["B"].T])                           # (2, K, D)
    protos_pd = jnp.stack([cluster["centroids_A"], cluster["centroids_B"]])        # (2, P, D)
    beta = jnp.stack([cluster["dist_A"], cluster["dist_B"]])[:, None, :]           # (2, 1, P)
    imid = jnp.stack([im_id_A, im_id_B]).astype(jnp.int32)                         # (2, N)
    own_nk = (imid[:, :, None] ==
              jnp.arange(K_A, dtype=jnp.int32)[None, None, :]).astype(jnp.float32)  # (2, N, K)
    own_kn = jnp.swapaxes(own_nk, 1, 2)                                             # (2, K, N)

    # TODO(synk): queue_A/B, queue ptrs, BN running stats and the refreshed
    # centroids are stateful nn.Module buffers in PyTorch; here the enqueue and
    # centroid refresh happen inside the loss kernel (feeding the losses) but are
    # not written back to caller state.
    loss_in, loss_cross = _fused_losses(q_dom, k_dom, queue_kd, protos_pd,
                                        beta, own_nk, own_kn)
    return loss_in[0, 0], loss_cross[0, 0]


# ---------------- deterministic parameter / input construction ----------------
def make_params(key):
    ks = jax.random.split(key, 6)
    return {
        "conv_w": jax.random.normal(ks[0], (C_IN * 9, DIM_MLP), jnp.float32) * 0.1,
        "conv_b": jax.random.normal(ks[1], (1, DIM_MLP), jnp.float32) * 0.01,
        "bn_gamma": jnp.ones((1, DIM_MLP), jnp.float32),
        "bn_beta": jnp.zeros((1, DIM_MLP), jnp.float32),
        "fc1_w": jax.random.normal(ks[2], (DIM_MLP, DIM_MLP), jnp.float32) * 0.1,
        "fc1_b": jax.random.normal(ks[3], (1, DIM_MLP), jnp.float32) * 0.01,
        "fc2_w": jax.random.normal(ks[4], (DIM_MLP, DIM), jnp.float32) * 0.1,
        "fc2_b": jax.random.normal(ks[5], (1, DIM), jnp.float32) * 0.01,
    }


if __name__ == "__main__":
    root = jax.random.PRNGKey(0)
    (k_par, k_qa, k_ka, k_qb, k_kb, k_queueA, k_queueB,
     k_cA, k_cB, k_dA, k_dB, k_shuf) = jax.random.split(root, 12)

    params_q = make_params(k_par)
    params_k = jax.tree_util.tree_map(lambda p: p, params_q)   # param_k copies param_q

    im_q_A = jax.random.normal(k_qa, (N_PER, C_IN, H, W), jnp.float32)
    im_k_A = jax.random.normal(k_ka, (N_PER, C_IN, H, W), jnp.float32)
    im_q_B = jax.random.normal(k_qb, (N_PER, C_IN, H, W), jnp.float32)
    im_k_B = jax.random.normal(k_kb, (N_PER, C_IN, H, W), jnp.float32)
    im_id_A = jnp.array([1, 5, 9, 13], jnp.int32)
    im_id_B = jnp.array([2, 6, 10, 14], jnp.int32)

    def col_norm(x):
        return x / jnp.maximum(jnp.sqrt(jnp.sum(x * x, axis=0, keepdims=True)), 1e-12)

    def row_norm(x):
        return x / jnp.maximum(jnp.sqrt(jnp.sum(x * x, axis=1, keepdims=True)), 1e-12)

    queues = {
        "A": col_norm(jax.random.normal(k_queueA, (DIM, K_A), jnp.float32)),
        "B": col_norm(jax.random.normal(k_queueB, (DIM, K_B), jnp.float32)),
    }
    dist_A = jnp.abs(jax.random.normal(k_dA, (P,), jnp.float32)) + 0.5
    dist_B = jnp.abs(jax.random.normal(k_dB, (P,), jnp.float32)) + 0.5
    cluster_result = {
        "centroids_A": row_norm(jax.random.normal(k_cA, (P, DIM), jnp.float32)),
        "centroids_B": row_norm(jax.random.normal(k_cB, (P, DIM), jnp.float32)),
        "dist_A": dist_A / jnp.sum(dist_A),
        "dist_B": dist_B / jnp.sum(dist_B),
    }

    fwd = jax.jit(ucdir_forward)
    loss_in, loss_cross = fwd(
        params_q, params_k, queues, cluster_result,
        im_q_A, im_k_A, im_id_A, im_q_B, im_k_B, im_id_B, k_shuf,
    )
    jax.block_until_ready((loss_in, loss_cross))
    print("KERNEL_OK")
</pallas_src>

<mosaic_0001>
module attributes {stable_mosaic.version = 11 : i64} {
  func.func @_encoder_kernel(%arg0: i32, %arg1: memref<1x32x2048xf32, #tpu.memory_space<vmem>>, %arg2: memref<1x32x32xf32, #tpu.memory_space<vmem>>, %arg3: memref<1x32x1xf32, #tpu.memory_space<vmem>>, %arg4: memref<1x32x1xf32, #tpu.memory_space<vmem>>, %arg5: memref<1x32x1xf32, #tpu.memory_space<vmem>>, %arg6: memref<1x1x2048xf32, #tpu.memory_space<vmem>>, %arg7: memref<8x2048xf32, #tpu.memory_space<vmem>>, %arg8: memref<1x32x32xf32, #tpu.memory_space<vmem>>, %arg9: memref<1x32x1xf32, #tpu.memory_space<vmem>>, %arg10: memref<1x16x32xf32, #tpu.memory_space<vmem>>, %arg11: memref<1x16x1xf32, #tpu.memory_space<vmem>>, %arg12: memref<1x16x8xf32, #tpu.memory_space<vmem>>) attributes {dimension_semantics = [#tpu.dimension_semantics<parallel>], iteration_bounds = array<i64: 2>, scalar_prefetch = 0 : i64, scratch_operands = 0 : i64, tpu.core_type = #tpu.core_type<tc>, window_params = [{transform_indices = @transform_0, window_bounds = array<i64: 1, 32, 2048>}, {transform_indices = @transform_1, window_bounds = array<i64: 1, 32, 32>}, {transform_indices = @transform_2, window_bounds = array<i64: 1, 32, 1>}, {transform_indices = @transform_3, window_bounds = array<i64: 1, 32, 1>}, {transform_indices = @transform_4, window_bounds = array<i64: 1, 32, 1>}, {transform_indices = @transform_5, window_bounds = array<i64: 1, 1, 2048>}, {pipeline_mode = #tpu.pipeline_mode<synchronous>, transform_indices = @transform_6, window_bounds = array<i64: 8, 2048>}, {transform_indices = @transform_7, window_bounds = array<i64: 1, 32, 32>}, {transform_indices = @transform_8, window_bounds = array<i64: 1, 32, 1>}, {transform_indices = @transform_9, window_bounds = array<i64: 1, 16, 32>}, {transform_indices = @transform_10, window_bounds = array<i64: 1, 16, 1>}, {transform_indices = @transform_11, window_bounds = array<i64: 1, 16, 8>}]} {
    %c0 = arith.constant 0 : index
    %c0_0 = arith.constant 0 : index
    %c0_1 = arith.constant 0 : index
    %0 = vector.load %arg2[%c0, %c0_0, %c0_1] : memref<1x32x32xf32, #tpu.memory_space<vmem>>, vector<1x32x32xf32>
    %1 = vector.shape_cast %0 : vector<1x32x32xf32> to vector<32x32xf32>
    %c0_2 = arith.constant 0 : index
    %c0_3 = arith.constant 0 : index
    %c0_4 = arith.constant 0 : index
    %2 = vector.load %arg1[%c0_2, %c0_3, %c0_4] : memref<1x32x2048xf32, #tpu.memory_space<vmem>>, vector<1x32x2048xf32>
    %3 = vector.shape_cast %2 : vector<1x32x2048xf32> to vector<32x2048xf32>
    %cst = arith.constant dense<0.000000e+00> : vector<32x2048xf32>
    %4 = tpu.matmul %1, %3, %cst {dimension_numbers = #tpu.dot_dimension_numbers<[1], [0], [0], [1], [0, 0, 1, 1], [], []>} : vector<32x32xf32>, vector<32x2048xf32>, vector<32x2048xf32> -> vector<32x2048xf32>
    %c0_5 = arith.constant 0 : index
    %c0_6 = arith.constant 0 : index
    %c0_7 = arith.constant 0 : index
    %5 = vector.load %arg3[%c0_5, %c0_6, %c0_7] : memref<1x32x1xf32, #tpu.memory_space<vmem>>, vector<1x32x1xf32>
    %6 = vector.shape_cast %5 : vector<1x32x1xf32> to vector<32x1xf32>
    %7 = vector.broadcast %6 : vector<32x1xf32> to vector<32x2048xf32>
    %8 = arith.addf %4, %7 : vector<32x2048xf32>
    %c0_8 = arith.constant 0 : index
    %c0_9 = arith.constant 0 : index
    %c0_10 = arith.constant 0 : index
    %9 = vector.load %arg6[%c0_8, %c0_9, %c0_10] : memref<1x1x2048xf32, #tpu.memory_space<vmem>>, vector<1x1x2048xf32>
    %10 = vector.shape_cast %9 : vector<1x1x2048xf32> to vector<1x2048xf32>
    %11 = vector.shape_cast %10 : vector<1x2048xf32> to vector<1x1x2048xf32>
    %cst_11 = arith.constant dense<0.000000e+00> : vector<1xf32>
    %12 = vector.multi_reduction <add>, %11, %cst_11 [1, 2] : vector<1x1x2048xf32> to vector<1xf32>
    %13 = vector.shape_cast %12 : vector<1xf32> to vector<1x1x1xf32>
    %14 = vector.extract %13[0, 0, 0] : f32 from vector<1x1x1xf32>
    %cst_12 = arith.constant 2.048000e+03 : f32
    %15 = arith.subf %cst_12, %14 : f32
    %cst_13 = arith.constant 1.000000e+00 : f32
    %16 = arith.maximumf %14, %cst_13 : f32
    %cst_14 = arith.constant 1.000000e+00 : f32
    %17 = arith.divf %cst_14, %16 : f32
    %cst_15 = arith.constant 1.000000e+00 : f32
    %18 = arith.maximumf %15, %cst_15 : f32
    %cst_16 = arith.constant 1.000000e+00 : f32
    %19 = arith.divf %cst_16, %18 : f32
    %cst_17 = arith.constant dense<0.000000e+00> : vector<32xf32>
    %20 = vector.multi_reduction <add>, %8, %cst_17 [1] : vector<32x2048xf32> to vector<32xf32>
    %21 = vector.shape_cast %20 : vector<32xf32> to vector<32x1xf32>
    %22 = vector.broadcast %10 : vector<1x2048xf32> to vector<32x2048xf32>
    %23 = arith.mulf %8, %22 : vector<32x2048xf32>
    %cst_18 = arith.constant dense<0.000000e+00> : vector<32xf32>
    %24 = vector.multi_reduction <add>, %23, %cst_18 [1] : vector<32x2048xf32> to vector<32xf32>
    %25 = vector.shape_cast %24 : vector<32xf32> to vector<32x1xf32>
    %26 = arith.mulf %8, %8 : vector<32x2048xf32>
    %cst_19 = arith.constant dense<0.000000e+00> : vector<32xf32>
    %27 = vector.multi_reduction <add>, %26, %cst_19 [1] : vector<32x2048xf32> to vector<32xf32>
    %28 = vector.shape_cast %27 : vector<32xf32> to vector<32x1xf32>
    %29 = vector.broadcast %10 : vector<1x2048xf32> to vector<32x2048xf32>
    %30 = arith.mulf %26, %29 : vector<32x2048xf32>
    %cst_20 = arith.constant dense<0.000000e+00> : vector<32xf32>
    %31 = vector.multi_reduction <add>, %30, %cst_20 [1] : vector<32x2048xf32> to vector<32xf32>
    %32 = vector.shape_cast %31 : vector<32xf32> to vector<32x1xf32>
    %33 = vector.broadcast %17 : f32 to vector<32x1xf32>
    %34 = arith.mulf %25, %33 : vector<32x1xf32>
    %35 = arith.subf %21, %25 : vector<32x1xf32>
    %36 = vector.broadcast %19 : f32 to vector<32x1xf32>
    %37 = arith.mulf %35, %36 : vector<32x1xf32>
    %38 = vector.broadcast %17 : f32 to vector<32x1xf32>
    %39 = arith.mulf %32, %38 : vector<32x1xf32>
    %40 = arith.mulf %34, %34 : vector<32x1xf32>
    %41 = arith.subf %39, %40 : vector<32x1xf32>
    %42 = arith.subf %28, %32 : vector<32x1xf32>
    %43 = vector.broadcast %19 : f32 to vector<32x1xf32>
    %44 = arith.mulf %42, %43 : vector<32x1xf32>
    %45 = arith.mulf %37, %37 : vector<32x1xf32>
    %46 = arith.subf %44, %45 : vector<32x1xf32>
    %47 = vector.broadcast %10 : vector<1x2048xf32> to vector<32x2048xf32>
    %48 = vector.broadcast %34 : vector<32x1xf32> to vector<32x2048xf32>
    %49 = arith.mulf %47, %48 : vector<32x2048xf32>
    %cst_21 = arith.constant 1.000000e+00 : f32
    %50 = vector.broadcast %cst_21 : f32 to vector<1x2048xf32>
    %51 = arith.subf %50, %10 : vector<1x2048xf32>
    %52 = vector.broadcast %51 : vector<1x2048xf32> to vector<32x2048xf32>
    %53 = vector.broadcast %37 : vector<32x1xf32> to vector<32x2048xf32>
    %54 = arith.mulf %52, %53 : vector<32x2048xf32>
    %55 = arith.addf %49, %54 : vector<32x2048xf32>
    %56 = vector.broadcast %10 : vector<1x2048xf32> to vector<32x2048xf32>
    %57 = vector.broadcast %41 : vector<32x1xf32> to vector<32x2048xf32>
    %58 = arith.mulf %56, %57 : vector<32x2048xf32>
    %cst_22 = arith.constant 1.000000e+00 : f32
    %59 = vector.broadcast %cst_22 : f32 to vector<1x2048xf32>
    %60 = arith.subf %59, %10 : vector<1x2048xf32>
    %61 = vector.broadcast %60 : vector<1x2048xf32> to vector<32x2048xf32>
    %62 = vector.broadcast %46 : vector<32x1xf32> to vector<32x2048xf32>
    %63 = arith.mulf %61, %62 : vector<32x2048xf32>
    %64 = arith.addf %58, %63 : vector<32x2048xf32>
    %65 = arith.subf %8, %55 : vector<32x2048xf32>
    %cst_23 = arith.constant 9.99999974E-6 : f32
    %66 = vector.broadcast %cst_23 : f32 to vector<32x2048xf32>
    %67 = arith.addf %64, %66 : vector<32x2048xf32>
    %68 = math.rsqrt %67 : vector<32x2048xf32>
    %69 = arith.mulf %65, %68 : vector<32x2048xf32>
    %c0_24 = arith.constant 0 : index
    %c0_25 = arith.constant 0 : index
    %c0_26 = arith.constant 0 : index
    %70 = vector.load %arg4[%c0_24, %c0_25, %c0_26] : memref<1x32x1xf32, #tpu.memory_space<vmem>>, vector<1x32x1xf32>
    %71 = vector.shape_cast %70 : vector<1x32x1xf32> to vector<32x1xf32>
    %72 = vector.broadcast %71 : vector<32x1xf32> to vector<32x2048xf32>
    %73 = arith.mulf %69, %72 : vector<32x2048xf32>
    %c0_27 = arith.constant 0 : index
    %c0_28 = arith.constant 0 : index
    %c0_29 = arith.constant 0 : index
    %74 = vector.load %arg5[%c0_27, %c0_28, %c0_29] : memref<1x32x1xf32, #tpu.memory_space<vmem>>, vector<1x32x1xf32>
    %75 = vector.shape_cast %74 : vector<1x32x1xf32> to vector<32x1xf32>
    %76 = vector.broadcast %75 : vector<32x1xf32> to vector<32x2048xf32>
    %77 = arith.addf %73, %76 : vector<32x2048xf32>
    %cst_30 = arith.constant 0.000000e+00 : f32
    %78 = vector.broadcast %cst_30 : f32 to vector<32x2048xf32>
    %79 = arith.maximumf %77, %78 : vector<32x2048xf32>
    %c0_31 = arith.constant 0 : index
    %c0_32 = arith.constant 0 : index
    %80 = vector.load %arg7[%c0_31, %c0_32] : memref<8x2048xf32, #tpu.memory_space<vmem>>, vector<8x2048xf32>
    %cst_33 = arith.constant dense<0.000000e+00> : vector<32x8xf32>
    %81 = tpu.matmul %79, %80, %cst_33 {dimension_numbers = #tpu.dot_dimension_numbers<[1], [1], [0], [0], [0, 0, 1, 0], [], []>} : vector<32x2048xf32>, vector<8x2048xf32>, vector<32x8xf32> -> vector<32x8xf32>
    %c0_34 = arith.constant 0 : index
    %c0_35 = arith.constant 0 : index
    %c0_36 = arith.constant 0 : index
    %82 = vector.load %arg8[%c0_34, %c0_35, %c0_36] : memref<1x32x32xf32, #tpu.memory_space<vmem>>, vector<1x32x32xf32>
    %83 = vector.shape_cast %82 : vector<1x32x32xf32> to vector<32x32xf32>
    %cst_37 = arith.constant dense<0.000000e+00> : vector<32x8xf32>
    %84 = tpu.matmul %83, %81, %cst_37 {dimension_numbers = #tpu.dot_dimension_numbers<[1], [0], [0], [1], [0, 0, 1, 1], [], []>} : vector<32x32xf32>, vector<32x8xf32>, vector<32x8xf32> -> vector<32x8xf32>
    %c0_38 = arith.constant 0 : index
    %c0_39 = arith.constant 0 : index
    %c0_40 = arith.constant 0 : index
    %85 = vector.load %arg9[%c0_38, %c0_39, %c0_40] : memref<1x32x1xf32, #tpu.memory_space<vmem>>, vector<1x32x1xf32>
    %86 = vector.shape_cast %85 : vector<1x32x1xf32> to vector<32x1xf32>
    %87 = vector.broadcast %86 : vector<32x1xf32> to vector<32x8xf32>
    %88 = arith.addf %84, %87 : vector<32x8xf32>
    %cst_41 = arith.constant 0.000000e+00 : f32
    %89 = vector.broadcast %cst_41 : f32 to vector<32x8xf32>
    %90 = arith.maximumf %88, %89 : vector<32x8xf32>
    %c0_42 = arith.constant 0 : index
    %c0_43 = arith.constant 0 : index
    %c0_44 = arith.constant 0 : index
    %91 = vector.load %arg10[%c0_42, %c0_43, %c0_44] : memref<1x16x32xf32, #tpu.memory_space<vmem>>, vector<1x16x32xf32>
    %92 = vector.shape_cast %91 : vector<1x16x32xf32> to vector<16x32xf32>
    %cst_45 = arith.constant dense<0.000000e+00> : vector<16x8xf32>
    %93 = tpu.matmul %92, %90, %cst_45 {dimension_numbers = #tpu.dot_dimension_numbers<[1], [0], [0], [1], [0, 0, 1, 1], [], []>} : vector<16x32xf32>, vector<32x8xf32>, vector<16x8xf32> -> vector<16x8xf32>
    %c0_46 = arith.constant 0 : index
    %c0_47 = arith.constant 0 : index
    %c0_48 = arith.constant 0 : index
    %94 = vector.load %arg11[%c0_46, %c0_47, %c0_48] : memref<1x16x1xf32, #tpu.memory_space<vmem>>, vector<1x16x1xf32>
    %95 = vector.shape_cast %94 : vector<1x16x1xf32> to vector<16x1xf32>
    %96 = vector.broadcast %95 : vector<16x1xf32> to vector<16x8xf32>
    %97 = arith.addf %93, %96 : vector<16x8xf32>
    %98 = arith.mulf %97, %97 : vector<16x8xf32>
    %cst_49 = arith.constant dense<0.000000e+00> : vector<8xf32>
    %99 = vector.multi_reduction <add>, %98, %cst_49 [0] : vector<16x8xf32> to vector<8xf32>
    %100 = vector.shape_cast %99 : vector<8xf32> to vector<1x8xf32>
    %cst_50 = arith.constant 1.000000e-24 : f32
    %101 = vector.broadcast %cst_50 : f32 to vector<1x8xf32>
    %102 = arith.maximumf %100, %101 : vector<1x8xf32>
    %103 = math.rsqrt %102 : vector<1x8xf32>
    %104 = vector.broadcast %103 : vector<1x8xf32> to vector<16x8xf32>
    %105 = arith.mulf %97, %104 : vector<16x8xf32>
    %c0_51 = arith.constant 0 : index
    %c0_52 = arith.constant 0 : index
    %c0_53 = arith.constant 0 : index
    %106 = vector.load %arg12[%c0_51, %c0_52, %c0_53] : memref<1x16x8xf32, #tpu.memory_space<vmem>>, vector<1x16x8xf32>
    %107 = vector.shape_cast %106 : vector<1x16x8xf32> to vector<16x8xf32>
    %108 = vector.shape_cast %105 : vector<16x8xf32> to vector<1x16x8xf32>
    tpu.vector_store %arg12[%c0_51, %c0_52, %c0_53], %108 {strides = array<i32>} : memref<1x16x8xf32, #tpu.memory_space<vmem>>, vector<1x16x8xf32>,
    return
  }
  func.func @transform_0(%arg0: i32) -> (i32, i32, i32) {
    %c0_i32 = arith.constant 0 : i32
    %c0_i32_0 = arith.constant 0 : i32
    %c0_i32_1 = arith.constant 0 : i32
    return %arg0, %c0_i32, %c0_i32_0 : i32, i32, i32
  }
  func.func @transform_1(%arg0: i32) -> (i32, i32, i32) {
    %c0_i32 = arith.constant 0 : i32
    %c0_i32_0 = arith.constant 0 : i32
    %c0_i32_1 = arith.constant 0 : i32
    return %arg0, %c0_i32, %c0_i32_0 : i32, i32, i32
  }
  func.func @transform_2(%arg0: i32) -> (i32, i32, i32) {
    %c0_i32 = arith.constant 0 : i32
    %c0_i32_0 = arith.constant 0 : i32
    %c0_i32_1 = arith.constant 0 : i32
    return %arg0, %c0_i32, %c0_i32_0 : i32, i32, i32
  }
  func.func @transform_3(%arg0: i32) -> (i32, i32, i32) {
    %c0_i32 = arith.constant 0 : i32
    %c0_i32_0 = arith.constant 0 : i32
    %c0_i32_1 = arith.constant 0 : i32
    return %arg0, %c0_i32, %c0_i32_0 : i32, i32, i32
  }
  func.func @transform_4(%arg0: i32) -> (i32, i32, i32) {
    %c0_i32 = arith.constant 0 : i32
    %c0_i32_0 = arith.constant 0 : i32
    %c0_i32_1 = arith.constant 0 : i32
    return %arg0, %c0_i32, %c0_i32_0 : i32, i32, i32
  }
  func.func @transform_5(%arg0: i32) -> (i32, i32, i32) {
    %c0_i32 = arith.constant 0 : i32
    %c0_i32_0 = arith.constant 0 : i32
    %c0_i32_1 = arith.constant 0 : i32
    return %arg0, %c0_i32, %c0_i32_0 : i32, i32, i32
  }
  func.func @transform_6(%arg0: i32) -> (i32, i32) {
    %c0_i32 = arith.constant 0 : i32
    %c0_i32_0 = arith.constant 0 : i32
    %c0_i32_1 = arith.constant 0 : i32
    return %c0_i32, %c0_i32_0 : i32, i32
  }
  func.func @transform_7(%arg0: i32) -> (i32, i32, i32) {
    %c0_i32 = arith.constant 0 : i32
    %c0_i32_0 = arith.constant 0 : i32
    %c0_i32_1 = arith.constant 0 : i32
    return %arg0, %c0_i32, %c0_i32_0 : i32, i32, i32
  }
  func.func @transform_8(%arg0: i32) -> (i32, i32, i32) {
    %c0_i32 = arith.constant 0 : i32
    %c0_i32_0 = arith.constant 0 : i32
    %c0_i32_1 = arith.constant 0 : i32
    return %arg0, %c0_i32, %c0_i32_0 : i32, i32, i32
  }
  func.func @transform_9(%arg0: i32) -> (i32, i32, i32) {
    %c0_i32 = arith.constant 0 : i32
    %c0_i32_0 = arith.constant 0 : i32
    %c0_i32_1 = arith.constant 0 : i32
    return %arg0, %c0_i32, %c0_i32_0 : i32, i32, i32
  }
  func.func @transform_10(%arg0: i32) -> (i32, i32, i32) {
    %c0_i32 = arith.constant 0 : i32
    %c0_i32_0 = arith.constant 0 : i32
    %c0_i32_1 = arith.constant 0 : i32
    return %arg0, %c0_i32, %c0_i32_0 : i32, i32, i32
  }
  func.func @transform_11(%arg0: i32) -> (i32, i32, i32) {
    %c0_i32 = arith.constant 0 : i32
    %c0_i32_0 = arith.constant 0 : i32
    %c0_i32_1 = arith.constant 0 : i32
    return %arg0, %c0_i32, %c0_i32_0 : i32, i32, i32
  }
}

module attributes {stable_mosaic.version = 11 : i64} {
  func.func @_loss_kernel(%arg0: memref<2x4x16xf32, #tpu.memory_space<vmem>>, %arg1: memref<2x4x16xf32, #tpu.memory_space<vmem>>, %arg2: memref<2x32x16xf32, #tpu.memory_space<vmem>>, %arg3: memref<2x8x16xf32, #tpu.memory_space<vmem>>, %arg4: memref<2x1x8xf32, #tpu.memory_space<vmem>>, %arg5: memref<2x4x32xf32, #tpu.memory_space<vmem>>, %arg6: memref<2x32x4xf32, #tpu.memory_space<vmem>>, %arg7: memref<1x1xf32, #tpu.memory_space<vmem>>, %arg8: memref<1x1xf32, #tpu.memory_space<vmem>>) attributes {dimension_semantics = [], scalar_prefetch = 0 : i64, scratch_operands = 0 : i64, tpu.core_type = #tpu.core_type<tc>} {
    %cst = arith.constant 0.000000e+00 : f32
    %0 = vector.broadcast %cst : f32 to vector<1x1xf32>
    %c0 = arith.constant 0 : index
    %c0_0 = arith.constant 0 : index
    %c0_1 = arith.constant 0 : index
    %1 = vector.load %arg0[%c0, %c0_0, %c0_1] : memref<2x4x16xf32, #tpu.memory_space<vmem>>, vector<1x4x16xf32>
    %2 = vector.shape_cast %1 : vector<1x4x16xf32> to vector<4x16xf32>
    %c0_2 = arith.constant 0 : index
    %c0_3 = arith.constant 0 : index
    %c0_4 = arith.constant 0 : index
    %3 = vector.load %arg1[%c0_2, %c0_3, %c0_4] : memref<2x4x16xf32, #tpu.memory_space<vmem>>, vector<1x4x16xf32>
    %4 = vector.shape_cast %3 : vector<1x4x16xf32> to vector<4x16xf32>
    %c0_5 = arith.constant 0 : index
    %c0_6 = arith.constant 0 : index
    %c0_7 = arith.constant 0 : index
    %5 = vector.load %arg2[%c0_5, %c0_6, %c0_7] : memref<2x32x16xf32, #tpu.memory_space<vmem>>, vector<1x32x16xf32>
    %6 = vector.shape_cast %5 : vector<1x32x16xf32> to vector<32x16xf32>
    %c0_8 = arith.constant 0 : index
    %c0_9 = arith.constant 0 : index
    %c0_10 = arith.constant 0 : index
    %7 = vector.load %arg3[%c0_8, %c0_9, %c0_10] : memref<2x8x16xf32, #tpu.memory_space<vmem>>, vector<1x8x16xf32>
    %8 = vector.shape_cast %7 : vector<1x8x16xf32> to vector<8x16xf32>
    %c0_11 = arith.constant 0 : index
    %c0_12 = arith.constant 0 : index
    %c0_13 = arith.constant 0 : index
    %9 = vector.load %arg4[%c0_11, %c0_12, %c0_13] : memref<2x1x8xf32, #tpu.memory_space<vmem>>, vector<1x1x8xf32>
    %10 = vector.shape_cast %9 : vector<1x1x8xf32> to vector<1x8xf32>
    %c0_14 = arith.constant 0 : index
    %c0_15 = arith.constant 0 : index
    %c0_16 = arith.constant 0 : index
    %11 = vector.load %arg5[%c0_14, %c0_15, %c0_16] : memref<2x4x32xf32, #tpu.memory_space<vmem>>, vector<1x4x32xf32>
    %12 = vector.shape_cast %11 : vector<1x4x32xf32> to vector<4x32xf32>
    %c0_17 = arith.constant 0 : index
    %c0_18 = arith.constant 0 : index
    %c0_19 = arith.constant 0 : index
    %13 = vector.load %arg6[%c0_17, %c0_18, %c0_19] : memref<2x32x4xf32, #tpu.memory_space<vmem>>, vector<1x32x4xf32>
    %14 = vector.shape_cast %13 : vector<1x32x4xf32> to vector<32x4xf32>
    %cst_20 = arith.constant dense<0.000000e+00> : vector<32xf32>
    %15 = vector.multi_reduction <add>, %14, %cst_20 [1] : vector<32x4xf32> to vector<32xf32>
    %16 = vector.shape_cast %15 : vector<32xf32> to vector<32x1xf32>
    %cst_21 = arith.constant 1.000000e+00 : f32
    %17 = vector.broadcast %cst_21 : f32 to vector<32x1xf32>
    %18 = arith.subf %17, %16 : vector<32x1xf32>
    %19 = vector.broadcast %18 : vector<32x1xf32> to vector<32x16xf32>
    %20 = arith.mulf %6, %19 : vector<32x16xf32>
    %cst_22 = arith.constant dense<0.000000e+00> : vector<32x16xf32>
    %21 = tpu.matmul %14, %4, %cst_22 {dimension_numbers = #tpu.dot_dimension_numbers<[1], [0], [0], [1], [0, 0, 1, 1], [], []>} : vector<32x4xf32>, vector<4x16xf32>, vector<32x16xf32> -> vector<32x16xf32>
    %22 = arith.addf %20, %21 : vector<32x16xf32>
    %cst_23 = arith.constant dense<0.000000e+00> : vector<4x32xf32>
    %23 = tpu.matmul %4, %22, %cst_23 {dimension_numbers = #tpu.dot_dimension_numbers<[1], [1], [0], [0], [0, 0, 1, 0], [], []>} : vector<4x16xf32>, vector<32x16xf32>, vector<4x32xf32> -> vector<4x32xf32>
    %24 = arith.mulf %23, %23 : vector<4x32xf32>
    %cst_24 = arith.constant dense<0.000000e+00> : vector<4xf32>
    %25 = vector.multi_reduction <add>, %24, %cst_24 [1] : vector<4x32xf32> to vector<4xf32>
    %26 = vector.shape_cast %25 : vector<4xf32> to vector<4x1xf32>
    %cst_25 = arith.constant 1.000000e-24 : f32
    %27 = vector.broadcast %cst_25 : f32 to vector<4x1xf32>
    %28 = arith.maximumf %26, %27 : vector<4x1xf32>
    %29 = math.rsqrt %28 : vector<4x1xf32>
    %30 = vector.broadcast %29 : vector<4x1xf32> to vector<4x32xf32>
    %31 = arith.mulf %23, %30 : vector<4x32xf32>
    %cst_26 = arith.constant 5.000000e-01 : f32
    %32 = vector.broadcast %cst_26 : f32 to vector<4x32xf32>
    %33 = arith.cmpf ogt, %12, %32 : vector<4x32xf32>
    %cst_27 = arith.constant -1.000000e+03 : f32
    %34 = vector.broadcast %cst_27 : f32 to vector<4x32xf32>
    %35 = arith.select %33, %34, %31 : vector<4x32xi1>, vector<4x32xf32>
    %36 = tpu.iota {dimensions = array<i32: 1>} : vector<4x32xi32>
    %cst_28 = arith.constant dense<0xFF800000> : vector<4xf32>
    %37 = vector.multi_reduction <maximumf>, %35, %cst_28 [1] : vector<4x32xf32> to vector<4xf32>
    %38 = vector.shape_cast %37 : vector<4xf32> to vector<4x1xf32>
    %39 = vector.broadcast %38 : vector<4x1xf32> to vector<4x32xf32>
    %40 = arith.cmpf oeq, %35, %39 : vector<4x32xf32>
    %c32_i32 = arith.constant 32 : i32
    %41 = vector.broadcast %c32_i32 : i32 to vector<4x32xi32>
    %42 = arith.select %40, %36, %41 : vector<4x32xi1>, vector<4x32xi32>
    %cst_29 = arith.constant dense<2147483647> : vector<4xi32>
    %43 = vector.multi_reduction <minsi>, %42, %cst_29 [1] : vector<4x32xi32> to vector<4xi32>
    %44 = vector.shape_cast %43 : vector<4xi32> to vector<4x1xi32>
    %45 = vector.broadcast %44 : vector<4x1xi32> to vector<4x32xi32>
    %46 = arith.cmpi eq, %36, %45 : vector<4x32xi32>
    %cst_30 = arith.constant dense<0.000000e+00> : vector<4x32xf32>
    %47 = tpu.matmul %2, %22, %cst_30 {dimension_numbers = #tpu.dot_dimension_numbers<[1], [1], [0], [0], [0, 0, 1, 0], [], []>} : vector<4x16xf32>, vector<32x16xf32>, vector<4x32xf32> -> vector<4x32xf32>
    %cst_31 = arith.constant 0.000000e+00 : f32
    %48 = vector.broadcast %cst_31 : f32 to vector<4x32xf32>
    %49 = arith.select %46, %47, %48 : vector<4x32xi1>, vector<4x32xf32>
    %cst_32 = arith.constant dense<0.000000e+00> : vector<4xf32>
    %50 = vector.multi_reduction <add>, %49, %cst_32 [1] : vector<4x32xf32> to vector<4xf32>
    %51 = vector.shape_cast %50 : vector<4xf32> to vector<4x1xf32>
    %cst_33 = arith.constant dense<0.000000e+00> : vector<32x8xf32>
    %52 = tpu.matmul %22, %8, %cst_33 {dimension_numbers = #tpu.dot_dimension_numbers<[1], [1], [0], [0], [0, 0, 1, 0], [], []>} : vector<32x16xf32>, vector<8x16xf32>, vector<32x8xf32> -> vector<32x8xf32>
    %53 = arith.mulf %52, %52 : vector<32x8xf32>
    %cst_34 = arith.constant dense<0.000000e+00> : vector<32xf32>
    %54 = vector.multi_reduction <add>, %53, %cst_34 [1] : vector<32x8xf32> to vector<32xf32>
    %55 = vector.shape_cast %54 : vector<32xf32> to vector<32x1xf32>
    %cst_35 = arith.constant 1.000000e-24 : f32
    %56 = vector.broadcast %cst_35 : f32 to vector<32x1xf32>
    %57 = arith.maximumf %55, %56 : vector<32x1xf32>
    %58 = math.rsqrt %57 : vector<32x1xf32>
    %59 = vector.broadcast %58 : vector<32x1xf32> to vector<32x8xf32>
    %60 = arith.mulf %52, %59 : vector<32x8xf32>
    %61 = vector.shape_cast %60 : vector<32x8xf32> to vector<1x32x8xf32>
    %cst_36 = arith.constant dense<0xFF800000> : vector<1xf32>
    %62 = vector.multi_reduction <maximumf>, %61, %cst_36 [1, 2] : vector<1x32x8xf32> to vector<1xf32>
    %63 = vector.shape_cast %62 : vector<1xf32> to vector<1x1x1xf32>
    %64 = vector.extract %63[0, 0, 0] : f32 from vector<1x1x1xf32>
    %65 = vector.broadcast %64 : f32 to vector<32x8xf32>
    %66 = arith.subf %60, %65 : vector<32x8xf32>
    %cst_37 = arith.constant 2.000000e+01 : f32
    %67 = vector.broadcast %cst_37 : f32 to vector<32x8xf32>
    %68 = arith.mulf %66, %67 : vector<32x8xf32>
    %69 = math.exp %68 : vector<32x8xf32>
    %70 = vector.shape_cast %69 : vector<32x8xf32> to vector<1x32x8xf32>
    %cst_38 = arith.constant dense<0.000000e+00> : vector<1xf32>
    %71 = vector.multi_reduction <add>, %70, %cst_38 [1, 2] : vector<1x32x8xf32> to vector<1xf32>
    %72 = vector.shape_cast %71 : vector<1xf32> to vector<1x1x1xf32>
    %73 = vector.extract %72[0, 0, 0] : f32 from vector<1x1x1xf32>
    %74 = vector.broadcast %73 : f32 to vector<32x8xf32>
    %75 = arith.divf %69, %74 : vector<32x8xf32>
    %cst_39 = arith.constant dense<0.000000e+00> : vector<8xf32>
    %76 = vector.multi_reduction <add>, %75, %cst_39 [0] : vector<32x8xf32> to vector<8xf32>
    %77 = vector.shape_cast %76 : vector<8xf32> to vector<1x8xf32>
    %78 = vector.broadcast %77 : vector<1x8xf32> to vector<32x8xf32>
    %79 = arith.divf %75, %78 : vector<32x8xf32>
    %80 = vector.broadcast %10 : vector<1x8xf32> to vector<32x8xf32>
    %81 = arith.mulf %79, %80 : vector<32x8xf32>
    %cst_40 = arith.constant dense<0.000000e+00> : vector<32xf32>
    %82 = vector.multi_reduction <add>, %81, %cst_40 [1] : vector<32x8xf32> to vector<32xf32>
    %83 = vector.shape_cast %82 : vector<32xf32> to vector<32x1xf32>
    %84 = vector.broadcast %83 : vector<32x1xf32> to vector<32x8xf32>
    %85 = arith.divf %81, %84 : vector<32x8xf32>
    %cst_41 = arith.constant dense<0.000000e+00> : vector<8xf32>
    %86 = vector.multi_reduction <add>, %85, %cst_41 [0] : vector<32x8xf32> to vector<8xf32>
    %87 = vector.shape_cast %86 : vector<8xf32> to vector<1x8xf32>
    %88 = vector.broadcast %87 : vector<1x8xf32> to vector<32x8xf32>
    %89 = arith.divf %85, %88 : vector<32x8xf32>
    %90 = vector.broadcast %10 : vector<1x8xf32> to vector<32x8xf32>
    %91 = arith.mulf %89, %90 : vector<32x8xf32>
    %cst_42 = arith.constant dense<0.000000e+00> : vector<32xf32>
    %92 = vector.multi_reduction <add>, %91, %cst_42 [1] : vector<32x8xf32> to vector<32xf32>
    %93 = vector.shape_cast %92 : vector<32xf32> to vector<32x1xf32>
    %94 = vector.broadcast %93 : vector<32x1xf32> to vector<32x8xf32>
    %95 = arith.divf %91, %94 : vector<32x8xf32>
    %cst_43 = arith.constant dense<0.000000e+00> : vector<8xf32>
    %96 = vector.multi_reduction <add>, %95, %cst_43 [0] : vector<32x8xf32> to vector<8xf32>
    %97 = vector.shape_cast %96 : vector<8xf32> to vector<1x8xf32>
    %98 = vector.broadcast %97 : vector<1x8xf32> to vector<32x8xf32>
    %99 = arith.divf %95, %98 : vector<32x8xf32>
    %100 = vector.broadcast %10 : vector<1x8xf32> to vector<32x8xf32>
    %101 = arith.mulf %99, %100 : vector<32x8xf32>
    %cst_44 = arith.constant dense<0.000000e+00> : vector<32xf32>
    %102 = vector.multi_reduction <add>, %101, %cst_44 [1] : vector<32x8xf32> to vector<32xf32>
    %103 = vector.shape_cast %102 : vector<32xf32> to vector<32x1xf32>
    %104 = vector.broadcast %103 : vector<32x1xf32> to vector<32x8xf32>
    %105 = arith.divf %101, %104 : vector<32x8xf32>
    %cst_45 = arith.constant dense<0.000000e+00> : vector<4x8xf32>
    %106 = tpu.matmul %12, %105, %cst_45 {dimension_numbers = #tpu.dot_dimension_numbers<[1], [0], [0], [1], [0, 0, 1, 1], [], []>} : vector<4x32xf32>, vector<32x8xf32>, vector<4x8xf32> -> vector<4x8xf32>
    %107 = tpu.iota {dimensions = array<i32: 1>} : vector<4x8xi32>
    %cst_46 = arith.constant dense<0xFF800000> : vector<4xf32>
    %108 = vector.multi_reduction <maximumf>, %106, %cst_46 [1] : vector<4x8xf32> to vector<4xf32>
    %109 = vector.shape_cast %108 : vector<4xf32> to vector<4x1xf32>
    %110 = vector.broadcast %109 : vector<4x1xf32> to vector<4x8xf32>
    %111 = arith.cmpf oeq, %106, %110 : vector<4x8xf32>
    %c8_i32 = arith.constant 8 : i32
    %112 = vector.broadcast %c8_i32 : i32 to vector<4x8xi32>
    %113 = arith.select %111, %107, %112 : vector<4x8xi1>, vector<4x8xi32>
    %cst_47 = arith.constant dense<2147483647> : vector<4xi32>
    %114 = vector.multi_reduction <minsi>, %113, %cst_47 [1] : vector<4x8xi32> to vector<4xi32>
    %115 = vector.shape_cast %114 : vector<4xi32> to vector<4x1xi32>
    %116 = vector.broadcast %115 : vector<4x1xi32> to vector<4x8xi32>
    %117 = arith.cmpi eq, %107, %116 : vector<4x8xi32>
    %cst_48 = arith.constant dense<0.000000e+00> : vector<4x8xf32>
    %118 = tpu.matmul %2, %8, %cst_48 {dimension_numbers = #tpu.dot_dimension_numbers<[1], [1], [0], [0], [0, 0, 1, 0], [], []>} : vector<4x16xf32>, vector<8x16xf32>, vector<4x8xf32> -> vector<4x8xf32>
    %cst_49 = arith.constant 0.000000e+00 : f32
    %119 = vector.broadcast %cst_49 : f32 to vector<4x8xf32>
    %120 = arith.select %117, %118, %119 : vector<4x8xi1>, vector<4x8xf32>
    %cst_50 = arith.constant dense<0.000000e+00> : vector<4xf32>
    %121 = vector.multi_reduction <add>, %120, %cst_50 [1] : vector<4x8xf32> to vector<4xf32>
    %122 = vector.shape_cast %121 : vector<4xf32> to vector<4x1xf32>
    %123 = arith.mulf %2, %4 : vector<4x16xf32>
    %cst_51 = arith.constant dense<0.000000e+00> : vector<4xf32>
    %124 = vector.multi_reduction <add>, %123, %cst_51 [1] : vector<4x16xf32> to vector<4xf32>
    %125 = vector.shape_cast %124 : vector<4xf32> to vector<4x1xf32>
    %cst_52 = arith.constant 5.000000e+00 : f32
    %126 = vector.broadcast %cst_52 : f32 to vector<4x8xf32>
    %127 = arith.mulf %118, %126 : vector<4x8xf32>
    %cst_53 = arith.constant -1.000000e+30 : f32
    %128 = vector.broadcast %cst_53 : f32 to vector<4x8xf32>
    %129 = arith.select %117, %128, %127 : vector<4x8xi1>, vector<4x8xf32>
    %cst_54 = arith.constant 5.000000e+00 : f32
    %130 = vector.broadcast %cst_54 : f32 to vector<4x1xf32>
    %131 = arith.mulf %125, %130 : vector<4x1xf32>
    %cst_55 = arith.constant dense<0xFF800000> : vector<4xf32>
    %132 = vector.multi_reduction <maximumf>, %129, %cst_55 [1] : vector<4x8xf32> to vector<4xf32>
    %133 = vector.shape_cast %132 : vector<4xf32> to vector<4x1xf32>
    %134 = arith.maximumf %131, %133 : vector<4x1xf32>
    %135 = arith.subf %131, %134 : vector<4x1xf32>
    %136 = math.exp %135 : vector<4x1xf32>
    %137 = vector.broadcast %134 : vector<4x1xf32> to vector<4x8xf32>
    %138 = arith.subf %129, %137 : vector<4x8xf32>
    %139 = math.exp %138 : vector<4x8xf32>
    %cst_56 = arith.constant dense<0.000000e+00> : vector<4xf32>
    %140 = vector.multi_reduction <add>, %139, %cst_56 [1] : vector<4x8xf32> to vector<4xf32>
    %141 = vector.shape_cast %140 : vector<4xf32> to vector<4x1xf32>
    %142 = arith.addf %136, %141 : vector<4x1xf32>
    %143 = math.log %142 : vector<4x1xf32>
    %144 = arith.addf %134, %143 : vector<4x1xf32>
    %145 = arith.subf %144, %131 : vector<4x1xf32>
    %cst_57 = arith.constant dense<0.000000e+00> : vector<1xf32>
    %146 = vector.multi_reduction <add>, %145, %cst_57 [0] : vector<4x1xf32> to vector<1xf32>
    %147 = vector.shape_cast %146 : vector<1xf32> to vector<1x1xf32>
    %cst_58 = arith.constant 2.500000e-01 : f32
    %148 = vector.broadcast %cst_58 : f32 to vector<1x1xf32>
    %149 = arith.mulf %147, %148 : vector<1x1xf32>
    %cst_59 = arith.constant 5.000000e+00 : f32
    %150 = vector.broadcast %cst_59 : f32 to vector<4x1xf32>
    %151 = arith.mulf %51, %150 : vector<4x1xf32>
    %cst_60 = arith.constant dense<0xFF800000> : vector<4xf32>
    %152 = vector.multi_reduction <maximumf>, %129, %cst_60 [1] : vector<4x8xf32> to vector<4xf32>
    %153 = vector.shape_cast %152 : vector<4xf32> to vector<4x1xf32>
    %154 = arith.maximumf %151, %153 : vector<4x1xf32>
    %155 = arith.subf %151, %154 : vector<4x1xf32>
    %156 = math.exp %155 : vector<4x1xf32>
    %157 = vector.broadcast %154 : vector<4x1xf32> to vector<4x8xf32>
    %158 = arith.subf %129, %157 : vector<4x8xf32>
    %159 = math.exp %158 : vector<4x8xf32>
    %cst_61 = arith.constant dense<0.000000e+00> : vector<4xf32>
    %160 = vector.multi_reduction <add>, %159, %cst_61 [1] : vector<4x8xf32> to vector<4xf32>
    %161 = vector.shape_cast %160 : vector<4xf32> to vector<4x1xf32>
    %162 = arith.addf %156, %161 : vector<4x1xf32>
    %163 = math.log %162 : vector<4x1xf32>
    %164 = arith.addf %154, %163 : vector<4x1xf32>
    %165 = arith.subf %164, %151 : vector<4x1xf32>
    %cst_62 = arith.constant dense<0.000000e+00> : vector<1xf32>
    %166 = vector.multi_reduction <add>, %165, %cst_62 [0] : vector<4x1xf32> to vector<1xf32>
    %167 = vector.shape_cast %166 : vector<1xf32> to vector<1x1xf32>
    %cst_63 = arith.constant 2.500000e-01 : f32
    %168 = vector.broadcast %cst_63 : f32 to vector<1x1xf32>
    %169 = arith.mulf %167, %168 : vector<1x1xf32>
    %cst_64 = arith.constant 5.000000e-01 : f32
    %170 = vector.broadcast %cst_64 : f32 to vector<1x1xf32>
    %171 = arith.mulf %170, %169 : vector<1x1xf32>
    %172 = arith.addf %149, %171 : vector<1x1xf32>
    %cst_65 = arith.constant 5.000000e+00 : f32
    %173 = vector.broadcast %cst_65 : f32 to vector<4x1xf32>
    %174 = arith.mulf %122, %173 : vector<4x1xf32>
    %cst_66 = arith.constant dense<0xFF800000> : vector<4xf32>
    %175 = vector.multi_reduction <maximumf>, %129, %cst_66 [1] : vector<4x8xf32> to vector<4xf32>
    %176 = vector.shape_cast %175 : vector<4xf32> to vector<4x1xf32>
    %177 = arith.maximumf %174, %176 : vector<4x1xf32>
    %178 = arith.subf %174, %177 : vector<4x1xf32>
    %179 = math.exp %178 : vector<4x1xf32>
    %180 = vector.broadcast %177 : vector<4x1xf32> to vector<4x8xf32>
    %181 = arith.subf %129, %180 : vector<4x8xf32>
    %182 = math.exp %181 : vector<4x8xf32>
    %cst_67 = arith.constant dense<0.000000e+00> : vector<4xf32>
    %183 = vector.multi_reduction <add>, %182, %cst_67 [1] : vector<4x8xf32> to vector<4xf32>
    %184 = vector.shape_cast %183 : vector<4xf32> to vector<4x1xf32>
    %185 = arith.addf %179, %184 : vector<4x1xf32>
    %186 = math.log %185 : vector<4x1xf32>
    %187 = arith.addf %177, %186 : vector<4x1xf32>
    %188 = arith.subf %187, %174 : vector<4x1xf32>
    %cst_68 = arith.constant dense<0.000000e+00> : vector<1xf32>
    %189 = vector.multi_reduction <add>, %188, %cst_68 [0] : vector<4x1xf32> to vector<1xf32>
    %190 = vector.shape_cast %189 : vector<1xf32> to vector<1x1xf32>
    %cst_69 = arith.constant 2.500000e-01 : f32
    %191 = vector.broadcast %cst_69 : f32 to vector<1x1xf32>
    %192 = arith.mulf %190, %191 : vector<1x1xf32>
    %cst_70 = arith.constant 1.000000e-01 : f32
    %193 = vector.broadcast %cst_70 : f32 to vector<1x1xf32>
    %194 = arith.mulf %193, %192 : vector<1x1xf32>
    %195 = arith.addf %172, %194 : vector<1x1xf32>
    %196 = arith.addf %0, %195 : vector<1x1xf32>
    %cst_71 = arith.constant dense<0.000000e+00> : vector<8x16xf32>
    %197 = tpu.matmul %105, %22, %cst_71 {dimension_numbers = #tpu.dot_dimension_numbers<[0], [0], [1], [1], [0, 1, 1, 1], [], []>} : vector<32x8xf32>, vector<32x16xf32>, vector<8x16xf32> -> vector<8x16xf32>
    %198 = arith.mulf %197, %197 : vector<8x16xf32>
    %cst_72 = arith.constant dense<0.000000e+00> : vector<8xf32>
    %199 = vector.multi_reduction <add>, %198, %cst_72 [1] : vector<8x16xf32> to vector<8xf32>
    %200 = vector.shape_cast %199 : vector<8xf32> to vector<8x1xf32>
    %cst_73 = arith.constant 1.000000e-24 : f32
    %201 = vector.broadcast %cst_73 : f32 to vector<8x1xf32>
    %202 = arith.maximumf %200, %201 : vector<8x1xf32>
    %203 = math.rsqrt %202 : vector<8x1xf32>
    %204 = vector.broadcast %203 : vector<8x1xf32> to vector<8x16xf32>
    %205 = arith.mulf %197, %204 : vector<8x16xf32>
    %c1 = arith.constant 1 : index
    %c0_74 = arith.constant 0 : index
    %c0_75 = arith.constant 0 : index
    %206 = vector.load %arg0[%c1, %c0_74, %c0_75] : memref<2x4x16xf32, #tpu.memory_space<vmem>>, vector<1x4x16xf32>
    %207 = vector.shape_cast %206 : vector<1x4x16xf32> to vector<4x16xf32>
    %c1_76 = arith.constant 1 : index
    %c0_77 = arith.constant 0 : index
    %c0_78 = arith.constant 0 : index
    %208 = vector.load %arg1[%c1_76, %c0_77, %c0_78] : memref<2x4x16xf32, #tpu.memory_space<vmem>>, vector<1x4x16xf32>
    %209 = vector.shape_cast %208 : vector<1x4x16xf32> to vector<4x16xf32>
    %c1_79 = arith.constant 1 : index
    %c0_80 = arith.constant 0 : index
    %c0_81 = arith.constant 0 : index
    %210 = vector.load %arg2[%c1_79, %c0_80, %c0_81] : memref<2x32x16xf32, #tpu.memory_space<vmem>>, vector<1x32x16xf32>
    %211 = vector.shape_cast %210 : vector<1x32x16xf32> to vector<32x16xf32>
    %c1_82 = arith.constant 1 : index
    %c0_83 = arith.constant 0 : index
    %c0_84 = arith.constant 0 : index
    %212 = vector.load %arg3[%c1_82, %c0_83, %c0_84] : memref<2x8x16xf32, #tpu.memory_space<vmem>>, vector<1x8x16xf32>
    %213 = vector.shape_cast %212 : vector<1x8x16xf32> to vector<8x16xf32>
    %c1_85 = arith.constant 1 : index
    %c0_86 = arith.constant 0 : index
    %c0_87 = arith.constant 0 : index
    %214 = vector.load %arg4[%c1_85, %c0_86, %c0_87] : memref<2x1x8xf32, #tpu.memory_space<vmem>>, vector<1x1x8xf32>
    %215 = vector.shape_cast %214 : vector<1x1x8xf32> to vector<1x8xf32>
    %c1_88 = arith.constant 1 : index
    %c0_89 = arith.constant 0 : index
    %c0_90 = arith.constant 0 : index
    %216 = vector.load %arg5[%c1_88, %c0_89, %c0_90] : memref<2x4x32xf32, #tpu.memory_space<vmem>>, vector<1x4x32xf32>
    %217 = vector.shape_cast %216 : vector<1x4x32xf32> to vector<4x32xf32>
    %c1_91 = arith.constant 1 : index
    %c0_92 = arith.constant 0 : index
    %c0_93 = arith.constant 0 : index
    %218 = vector.load %arg6[%c1_91, %c0_92, %c0_93] : memref<2x32x4xf32, #tpu.memory_space<vmem>>, vector<1x32x4xf32>
    %219 = vector.shape_cast %218 : vector<1x32x4xf32> to vector<32x4xf32>
    %cst_94 = arith.constant dense<0.000000e+00> : vector<32xf32>
    %220 = vector.multi_reduction <add>, %219, %cst_94 [1] : vector<32x4xf32> to vector<32xf32>
    %221 = vector.shape_cast %220 : vector<32xf32> to vector<32x1xf32>
    %cst_95 = arith.constant 1.000000e+00 : f32
    %222 = vector.broadcast %cst_95 : f32 to vector<32x1xf32>
    %223 = arith.subf %222, %221 : vector<32x1xf32>
    %224 = vector.broadcast %223 : vector<32x1xf32> to vector<32x16xf32>
    %225 = arith.mulf %211, %224 : vector<32x16xf32>
    %cst_96 = arith.constant dense<0.000000e+00> : vector<32x16xf32>
    %226 = tpu.matmul %219, %209, %cst_96 {dimension_numbers = #tpu.dot_dimension_numbers<[1], [0], [0], [1], [0, 0, 1, 1], [], []>} : vector<32x4xf32>, vector<4x16xf32>, vector<32x16xf32> -> vector<32x16xf32>
    %227 = arith.addf %225, %226 : vector<32x16xf32>
    %cst_97 = arith.constant dense<0.000000e+00> : vector<4x32xf32>
    %228 = tpu.matmul %209, %227, %cst_97 {dimension_numbers = #tpu.dot_dimension_numbers<[1], [1], [0], [0], [0, 0, 1, 0], [], []>} : vector<4x16xf32>, vector<32x16xf32>, vector<4x32xf32> -> vector<4x32xf32>
    %229 = arith.mulf %228, %228 : vector<4x32xf32>
    %cst_98 = arith.constant dense<0.000000e+00> : vector<4xf32>
    %230 = vector.multi_reduction <add>, %229, %cst_98 [1] : vector<4x32xf32> to vector<4xf32>
    %231 = vector.shape_cast %230 : vector<4xf32> to vector<4x1xf32>
    %cst_99 = arith.constant 1.000000e-24 : f32
    %232 = vector.broadcast %cst_99 : f32 to vector<4x1xf32>
    %233 = arith.maximumf %231, %232 : vector<4x1xf32>
    %234 = math.rsqrt %233 : vector<4x1xf32>
    %235 = vector.broadcast %234 : vector<4x1xf32> to vector<4x32xf32>
    %236 = arith.mulf %228, %235 : vector<4x32xf32>
    %cst_100 = arith.constant 5.000000e-01 : f32
    %237 = vector.broadcast %cst_100 : f32 to vector<4x32xf32>
    %238 = arith.cmpf ogt, %217, %237 : vector<4x32xf32>
    %cst_101 = arith.constant -1.000000e+03 : f32
    %239 = vector.broadcast %cst_101 : f32 to vector<4x32xf32>
    %240 = arith.select %238, %239, %236 : vector<4x32xi1>, vector<4x32xf32>
    %241 = tpu.iota {dimensions = array<i32: 1>} : vector<4x32xi32>
    %cst_102 = arith.constant dense<0xFF800000> : vector<4xf32>
    %242 = vector.multi_reduction <maximumf>, %240, %cst_102 [1] : vector<4x32xf32> to vector<4xf32>
    %243 = vector.shape_cast %242 : vector<4xf32> to vector<4x1xf32>
    %244 = vector.broadcast %243 : vector<4x1xf32> to vector<4x32xf32>
    %245 = arith.cmpf oeq, %240, %244 : vector<4x32xf32>
    %c32_i32_103 = arith.constant 32 : i32
    %246 = vector.broadcast %c32_i32_103 : i32 to vector<4x32xi32>
    %247 = arith.select %245, %241, %246 : vector<4x32xi1>, vector<4x32xi32>
    %cst_104 = arith.constant dense<2147483647> : vector<4xi32>
    %248 = vector.multi_reduction <minsi>, %247, %cst_104 [1] : vector<4x32xi32> to vector<4xi32>
    %249 = vector.shape_cast %248 : vector<4xi32> to vector<4x1xi32>
    %250 = vector.broadcast %249 : vector<4x1xi32> to vector<4x32xi32>
    %251 = arith.cmpi eq, %241, %250 : vector<4x32xi32>
    %cst_105 = arith.constant dense<0.000000e+00> : vector<4x32xf32>
    %252 = tpu.matmul %207, %227, %cst_105 {dimension_numbers = #tpu.dot_dimension_numbers<[1], [1], [0], [0], [0, 0, 1, 0], [], []>} : vector<4x16xf32>, vector<32x16xf32>, vector<4x32xf32> -> vector<4x32xf32>
    %cst_106 = arith.constant 0.000000e+00 : f32
    %253 = vector.broadcast %cst_106 : f32 to vector<4x32xf32>
    %254 = arith.select %251, %252, %253 : vector<4x32xi1>, vector<4x32xf32>
    %cst_107 = arith.constant dense<0.000000e+00> : vector<4xf32>
    %255 = vector.multi_reduction <add>, %254, %cst_107 [1] : vector<4x32xf32> to vector<4xf32>
    %256 = vector.shape_cast %255 : vector<4xf32> to vector<4x1xf32>
    %cst_108 = arith.constant dense<0.000000e+00> : vector<32x8xf32>
    %257 = tpu.matmul %227, %213, %cst_108 {dimension_numbers = #tpu.dot_dimension_numbers<[1], [1], [0], [0], [0, 0, 1, 0], [], []>} : vector<32x16xf32>, vector<8x16xf32>, vector<32x8xf32> -> vector<32x8xf32>
    %258 = arith.mulf %257, %257 : vector<32x8xf32>
    %cst_109 = arith.constant dense<0.000000e+00> : vector<32xf32>
    %259 = vector.multi_reduction <add>, %258, %cst_109 [1] : vector<32x8xf32> to vector<32xf32>
    %260 = vector.shape_cast %259 : vector<32xf32> to vector<32x1xf32>
    %cst_110 = arith.constant 1.000000e-24 : f32
    %261 = vector.broadcast %cst_110 : f32 to vector<32x1xf32>
    %262 = arith.maximumf %260, %261 : vector<32x1xf32>
    %263 = math.rsqrt %262 : vector<32x1xf32>
    %264 = vector.broadcast %263 : vector<32x1xf32> to vector<32x8xf32>
    %265 = arith.mulf %257, %264 : vector<32x8xf32>
    %266 = vector.shape_cast %265 : vector<32x8xf32> to vector<1x32x8xf32>
    %cst_111 = arith.constant dense<0xFF800000> : vector<1xf32>
    %267 = vector.multi_reduction <maximumf>, %266, %cst_111 [1, 2] : vector<1x32x8xf32> to vector<1xf32>
    %268 = vector.shape_cast %267 : vector<1xf32> to vector<1x1x1xf32>
    %269 = vector.extract %268[0, 0, 0] : f32 from vector<1x1x1xf32>
    %270 = vector.broadcast %269 : f32 to vector<32x8xf32>
    %271 = arith.subf %265, %270 : vector<32x8xf32>
    %cst_112 = arith.constant 2.000000e+01 : f32
    %272 = vector.broadcast %cst_112 : f32 to vector<32x8xf32>
    %273 = arith.mulf %271, %272 : vector<32x8xf32>
    %274 = math.exp %273 : vector<32x8xf32>
    %275 = vector.shape_cast %274 : vector<32x8xf32> to vector<1x32x8xf32>
    %cst_113 = arith.constant dense<0.000000e+00> : vector<1xf32>
    %276 = vector.multi_reduction <add>, %275, %cst_113 [1, 2] : vector<1x32x8xf32> to vector<1xf32>
    %277 = vector.shape_cast %276 : vector<1xf32> to vector<1x1x1xf32>
    %278 = vector.extract %277[0, 0, 0] : f32 from vector<1x1x1xf32>
    %279 = vector.broadcast %278 : f32 to vector<32x8xf32>
    %280 = arith.divf %274, %279 : vector<32x8xf32>
    %cst_114 = arith.constant dense<0.000000e+00> : vector<8xf32>
    %281 = vector.multi_reduction <add>, %280, %cst_114 [0] : vector<32x8xf32> to vector<8xf32>
    %282 = vector.shape_cast %281 : vector<8xf32> to vector<1x8xf32>
    %283 = vector.broadcast %282 : vector<1x8xf32> to vector<32x8xf32>
    %284 = arith.divf %280, %283 : vector<32x8xf32>
    %285 = vector.broadcast %215 : vector<1x8xf32> to vector<32x8xf32>
    %286 = arith.mulf %284, %285 : vector<32x8xf32>
    %cst_115 = arith.constant dense<0.000000e+00> : vector<32xf32>
    %287 = vector.multi_reduction <add>, %286, %cst_115 [1] : vector<32x8xf32> to vector<32xf32>
    %288 = vector.shape_cast %287 : vector<32xf32> to vector<32x1xf32>
    %289 = vector.broadcast %288 : vector<32x1xf32> to vector<32x8xf32>
    %290 = arith.divf %286, %289 : vector<32x8xf32>
    %cst_116 = arith.constant dense<0.000000e+00> : vector<8xf32>
    %291 = vector.multi_reduction <add>, %290, %cst_116 [0] : vector<32x8xf32> to vector<8xf32>
    %292 = vector.shape_cast %291 : vector<8xf32> to vector<1x8xf32>
    %293 = vector.broadcast %292 : vector<1x8xf32> to vector<32x8xf32>
    %294 = arith.divf %290, %293 : vector<32x8xf32>
    %295 = vector.broadcast %215 : vector<1x8xf32> to vector<32x8xf32>
    %296 = arith.mulf %294, %295 : vector<32x8xf32>
    %cst_117 = arith.constant dense<0.000000e+00> : vector<32xf32>
    %297 = vector.multi_reduction <add>, %296, %cst_117 [1] : vector<32x8xf32> to vector<32xf32>
    %298 = vector.shape_cast %297 : vector<32xf32> to vector<32x1xf32>
    %299 = vector.broadcast %298 : vector<32x1xf32> to vector<32x8xf32>
    %300 = arith.divf %296, %299 : vector<32x8xf32>
    %cst_118 = arith.constant dense<0.000000e+00> : vector<8xf32>
    %301 = vector.multi_reduction <add>, %300, %cst_118 [0] : vector<32x8xf32> to vector<8xf32>
    %302 = vector.shape_cast %301 : vector<8xf32> to vector<1x8xf32>
    %303 = vector.broadcast %302 : vector<1x8xf32> to vector<32x8xf32>
    %304 = arith.divf %300, %303 : vector<32x8xf32>
    %305 = vector.broadcast %215 : vector<1x8xf32> to vector<32x8xf32>
    %306 = arith.mulf %304, %305 : vector<32x8xf32>
    %cst_119 = arith.constant dense<0.000000e+00> : vector<32xf32>
    %307 = vector.multi_reduction <add>, %306, %cst_119 [1] : vector<32x8xf32> to vector<32xf32>
    %308 = vector.shape_cast %307 : vector<32xf32> to vector<32x1xf32>
    %309 = vector.broadcast %308 : vector<32x1xf32> to vector<32x8xf32>
    %310 = arith.divf %306, %309 : vector<32x8xf32>
    %cst_120 = arith.constant dense<0.000000e+00> : vector<4x8xf32>
    %311 = tpu.matmul %217, %310, %cst_120 {dimension_numbers = #tpu.dot_dimension_numbers<[1], [0], [0], [1], [0, 0, 1, 1], [], []>} : vector<4x32xf32>, vector<32x8xf32>, vector<4x8xf32> -> vector<4x8xf32>
    %312 = tpu.iota {dimensions = array<i32: 1>} : vector<4x8xi32>
    %cst_121 = arith.constant dense<0xFF800000> : vector<4xf32>
    %313 = vector.multi_reduction <maximumf>, %311, %cst_121 [1] : vector<4x8xf32> to vector<4xf32>
    %314 = vector.shape_cast %313 : vector<4xf32> to vector<4x1xf32>
    %315 = vector.broadcast %314 : vector<4x1xf32> to vector<4x8xf32>
    %316 = arith.cmpf oeq, %311, %315 : vector<4x8xf32>
    %c8_i32_122 = arith.constant 8 : i32
    %317 = vector.broadcast %c8_i32_122 : i32 to vector<4x8xi32>
    %318 = arith.select %316, %312, %317 : vector<4x8xi1>, vector<4x8xi32>
    %cst_123 = arith.constant dense<2147483647> : vector<4xi32>
    %319 = vector.multi_reduction <minsi>, %318, %cst_123 [1] : vector<4x8xi32> to vector<4xi32>
    %320 = vector.shape_cast %319 : vector<4xi32> to vector<4x1xi32>
    %321 = vector.broadcast %320 : vector<4x1xi32> to vector<4x8xi32>
    %322 = arith.cmpi eq, %312, %321 : vector<4x8xi32>
    %cst_124 = arith.constant dense<0.000000e+00> : vector<4x8xf32>
    %323 = tpu.matmul %207, %213, %cst_124 {dimension_numbers = #tpu.dot_dimension_numbers<[1], [1], [0], [0], [0, 0, 1, 0], [], []>} : vector<4x16xf32>, vector<8x16xf32>, vector<4x8xf32> -> vector<4x8xf32>
    %cst_125 = arith.constant 0.000000e+00 : f32
    %324 = vector.broadcast %cst_125 : f32 to vector<4x8xf32>
    %325 = arith.select %322, %323, %324 : vector<4x8xi1>, vector<4x8xf32>
    %cst_126 = arith.constant dense<0.000000e+00> : vector<4xf32>
    %326 = vector.multi_reduction <add>, %325, %cst_126 [1] : vector<4x8xf32> to vector<4xf32>
    %327 = vector.shape_cast %326 : vector<4xf32> to vector<4x1xf32>
    %328 = arith.mulf %207, %209 : vector<4x16xf32>
    %cst_127 = arith.constant dense<0.000000e+00> : vector<4xf32>
    %329 = vector.multi_reduction <add>, %328, %cst_127 [1] : vector<4x16xf32> to vector<4xf32>
    %330 = vector.shape_cast %329 : vector<4xf32> to vector<4x1xf32>
    %cst_128 = arith.constant 5.000000e+00 : f32
    %331 = vector.broadcast %cst_128 : f32 to vector<4x8xf32>
    %332 = arith.mulf %323, %331 : vector<4x8xf32>
    %cst_129 = arith.constant -1.000000e+30 : f32
    %333 = vector.broadcast %cst_129 : f32 to vector<4x8xf32>
    %334 = arith.select %322, %333, %332 : vector<4x8xi1>, vector<4x8xf32>
    %cst_130 = arith.constant 5.000000e+00 : f32
    %335 = vector.broadcast %cst_130 : f32 to vector<4x1xf32>
    %336 = arith.mulf %330, %335 : vector<4x1xf32>
    %cst_131 = arith.constant dense<0xFF800000> : vector<4xf32>
    %337 = vector.multi_reduction <maximumf>, %334, %cst_131 [1] : vector<4x8xf32> to vector<4xf32>
    %338 = vector.shape_cast %337 : vector<4xf32> to vector<4x1xf32>
    %339 = arith.maximumf %336, %338 : vector<4x1xf32>
    %340 = arith.subf %336, %339 : vector<4x1xf32>
    %341 = math.exp %340 : vector<4x1xf32>
    %342 = vector.broadcast %339 : vector<4x1xf32> to vector<4x8xf32>
    %343 = arith.subf %334, %342 : vector<4x8xf32>
    %344 = math.exp %343 : vector<4x8xf32>
    %cst_132 = arith.constant dense<0.000000e+00> : vector<4xf32>
    %345 = vector.multi_reduction <add>, %344, %cst_132 [1] : vector<4x8xf32> to vector<4xf32>
    %346 = vector.shape_cast %345 : vector<4xf32> to vector<4x1xf32>
    %347 = arith.addf %341, %346 : vector<4x1xf32>
    %348 = math.log %347 : vector<4x1xf32>
    %349 = arith.addf %339, %348 : vector<4x1xf32>
    %350 = arith.subf %349, %336 : vector<4x1xf32>
    %cst_133 = arith.constant dense<0.000000e+00> : vector<1xf32>
    %351 = vector.multi_reduction <add>, %350, %cst_133 [0] : vector<4x1xf32> to vector<1xf32>
    %352 = vector.shape_cast %351 : vector<1xf32> to vector<1x1xf32>
    %cst_134 = arith.constant 2.500000e-01 : f32
    %353 = vector.broadcast %cst_134 : f32 to vector<1x1xf32>
    %354 = arith.mulf %352, %353 : vector<1x1xf32>
    %cst_135 = arith.constant 5.000000e+00 : f32
    %355 = vector.broadcast %cst_135 : f32 to vector<4x1xf32>
    %356 = arith.mulf %256, %355 : vector<4x1xf32>
    %cst_136 = arith.constant dense<0xFF800000> : vector<4xf32>
    %357 = vector.multi_reduction <maximumf>, %334, %cst_136 [1] : vector<4x8xf32> to vector<4xf32>
    %358 = vector.shape_cast %357 : vector<4xf32> to vector<4x1xf32>
    %359 = arith.maximumf %356, %358 : vector<4x1xf32>
    %360 = arith.subf %356, %359 : vector<4x1xf32>
    %361 = math.exp %360 : vector<4x1xf32>
    %362 = vector.broadcast %359 : vector<4x1xf32> to vector<4x8xf32>
    %363 = arith.subf %334, %362 : vector<4x8xf32>
    %364 = math.exp %363 : vector<4x8xf32>
    %cst_137 = arith.constant dense<0.000000e+00> : vector<4xf32>
    %365 = vector.multi_reduction <add>, %364, %cst_137 [1] : vector<4x8xf32> to vector<4xf32>
    %366 = vector.shape_cast %365 : vector<4xf32> to vector<4x1xf32>
    %367 = arith.addf %361, %366 : vector<4x1xf32>
    %368 = math.log %367 : vector<4x1xf32>
    %369 = arith.addf %359, %368 : vector<4x1xf32>
    %370 = arith.subf %369, %356 : vector<4x1xf32>
    %cst_138 = arith.constant dense<0.000000e+00> : vector<1xf32>
    %371 = vector.multi_reduction <add>, %370, %cst_138 [0] : vector<4x1xf32> to vector<1xf32>
    %372 = vector.shape_cast %371 : vector<1xf32> to vector<1x1xf32>
    %cst_139 = arith.constant 2.500000e-01 : f32
    %373 = vector.broadcast %cst_139 : f32 to vector<1x1xf32>
    %374 = arith.mulf %372, %373 : vector<1x1xf32>
    %cst_140 = arith.constant 5.000000e-01 : f32
    %375 = vector.broadcast %cst_140 : f32 to vector<1x1xf32>
    %376 = arith.mulf %375, %374 : vector<1x1xf32>
    %377 = arith.addf %354, %376 : vector<1x1xf32>
    %cst_141 = arith.constant 5.000000e+00 : f32
    %378 = vector.broadcast %cst_141 : f32 to vector<4x1xf32>
    %379 = arith.mulf %327, %378 : vector<4x1xf32>
    %cst_142 = arith.constant dense<0xFF800000> : vector<4xf32>
    %380 = vector.multi_reduction <maximumf>, %334, %cst_142 [1] : vector<4x8xf32> to vector<4xf32>
    %381 = vector.shape_cast %380 : vector<4xf32> to vector<4x1xf32>
    %382 = arith.maximumf %379, %381 : vector<4x1xf32>
    %383 = arith.subf %379, %382 : vector<4x1xf32>
    %384 = math.exp %383 : vector<4x1xf32>
    %385 = vector.broadcast %382 : vector<4x1xf32> to vector<4x8xf32>
    %386 = arith.subf %334, %385 : vector<4x8xf32>
    %387 = math.exp %386 : vector<4x8xf32>
    %cst_143 = arith.constant dense<0.000000e+00> : vector<4xf32>
    %388 = vector.multi_reduction <add>, %387, %cst_143 [1] : vector<4x8xf32> to vector<4xf32>
    %389 = vector.shape_cast %388 : vector<4xf32> to vector<4x1xf32>
    %390 = arith.addf %384, %389 : vector<4x1xf32>
    %391 = math.log %390 : vector<4x1xf32>
    %392 = arith.addf %382, %391 : vector<4x1xf32>
    %393 = arith.subf %392, %379 : vector<4x1xf32>
    %cst_144 = arith.constant dense<0.000000e+00> : vector<1xf32>
    %394 = vector.multi_reduction <add>, %393, %cst_144 [0] : vector<4x1xf32> to vector<1xf32>
    %395 = vector.shape_cast %394 : vector<1xf32> to vector<1x1xf32>
    %cst_145 = arith.constant 2.500000e-01 : f32
    %396 = vector.broadcast %cst_145 : f32 to vector<1x1xf32>
    %397 = arith.mulf %395, %396 : vector<1x1xf32>
    %cst_146 = arith.constant 1.000000e-01 : f32
    %398 = vector.broadcast %cst_146 : f32 to vector<1x1xf32>
    %399 = arith.mulf %398, %397 : vector<1x1xf32>
    %400 = arith.addf %377, %399 : vector<1x1xf32>
    %401 = arith.addf %196, %400 : vector<1x1xf32>
    %cst_147 = arith.constant dense<0.000000e+00> : vector<8x16xf32>
    %402 = tpu.matmul %310, %227, %cst_147 {dimension_numbers = #tpu.dot_dimension_numbers<[0], [0], [1], [1], [0, 1, 1, 1], [], []>} : vector<32x8xf32>, vector<32x16xf32>, vector<8x16xf32> -> vector<8x16xf32>
    %403 = arith.mulf %402, %402 : vector<8x16xf32>
    %cst_148 = arith.constant dense<0.000000e+00> : vector<8xf32>
    %404 = vector.multi_reduction <add>, %403, %cst_148 [1] : vector<8x16xf32> to vector<8xf32>
    %405 = vector.shape_cast %404 : vector<8xf32> to vector<8x1xf32>
    %cst_149 = arith.constant 1.000000e-24 : f32
    %406 = vector.broadcast %cst_149 : f32 to vector<8x1xf32>
    %407 = arith.maximumf %405, %406 : vector<8x1xf32>
    %408 = math.rsqrt %407 : vector<8x1xf32>
    %409 = vector.broadcast %408 : vector<8x1xf32> to vector<8x16xf32>
    %410 = arith.mulf %402, %409 : vector<8x16xf32>
    %c0_150 = arith.constant 0 : index
    %c0_151 = arith.constant 0 : index
    %411 = vector.load %arg7[%c0_150, %c0_151] : memref<1x1xf32, #tpu.memory_space<vmem>>, vector<1x1xf32>
    tpu.vector_store %arg7[%c0_150, %c0_151], %401 {strides = array<i32>} : memref<1x1xf32, #tpu.memory_space<vmem>>, vector<1x1xf32>,
    %cst_152 = arith.constant 0.000000e+00 : f32
    %412 = vector.broadcast %cst_152 : f32 to vector<1x1xf32>
    %c0_153 = arith.constant 0 : index
    %c0_154 = arith.constant 0 : index
    %c0_155 = arith.constant 0 : index
    %413 = vector.load %arg0[%c0_153, %c0_154, %c0_155] : memref<2x4x16xf32, #tpu.memory_space<vmem>>, vector<1x4x16xf32>
    %414 = vector.shape_cast %413 : vector<1x4x16xf32> to vector<4x16xf32>
    %c0_156 = arith.constant 0 : index
    %c0_157 = arith.constant 0 : index
    %c0_158 = arith.constant 0 : index
    %415 = vector.load %arg4[%c0_156, %c0_157, %c0_158] : memref<2x1x8xf32, #tpu.memory_space<vmem>>, vector<1x1x8xf32>
    %416 = vector.shape_cast %415 : vector<1x1x8xf32> to vector<1x8xf32>
    %c0_159 = arith.constant 0 : index
    %c0_160 = arith.constant 0 : index
    %c0_161 = arith.constant 0 : index
    %417 = vector.load %arg5[%c0_159, %c0_160, %c0_161] : memref<2x4x32xf32, #tpu.memory_space<vmem>>, vector<1x4x32xf32>
    %418 = vector.shape_cast %417 : vector<1x4x32xf32> to vector<4x32xf32>
    %cst_162 = arith.constant dense<0.000000e+00> : vector<32x8xf32>
    %419 = tpu.matmul %22, %410, %cst_162 {dimension_numbers = #tpu.dot_dimension_numbers<[1], [1], [0], [0], [0, 0, 1, 0], [], []>} : vector<32x16xf32>, vector<8x16xf32>, vector<32x8xf32> -> vector<32x8xf32>
    %420 = arith.mulf %419, %419 : vector<32x8xf32>
    %cst_163 = arith.constant dense<0.000000e+00> : vector<32xf32>
    %421 = vector.multi_reduction <add>, %420, %cst_163 [1] : vector<32x8xf32> to vector<32xf32>
    %422 = vector.shape_cast %421 : vector<32xf32> to vector<32x1xf32>
    %cst_164 = arith.constant 1.000000e-24 : f32
    %423 = vector.broadcast %cst_164 : f32 to vector<32x1xf32>
    %424 = arith.maximumf %422, %423 : vector<32x1xf32>
    %425 = math.rsqrt %424 : vector<32x1xf32>
    %426 = vector.broadcast %425 : vector<32x1xf32> to vector<32x8xf32>
    %427 = arith.mulf %419, %426 : vector<32x8xf32>
    %428 = vector.shape_cast %427 : vector<32x8xf32> to vector<1x32x8xf32>
    %cst_165 = arith.constant dense<0xFF800000> : vector<1xf32>
    %429 = vector.multi_reduction <maximumf>, %428, %cst_165 [1, 2] : vector<1x32x8xf32> to vector<1xf32>
    %430 = vector.shape_cast %429 : vector<1xf32> to vector<1x1x1xf32>
    %431 = vector.extract %430[0, 0, 0] : f32 from vector<1x1x1xf32>
    %432 = vector.broadcast %431 : f32 to vector<32x8xf32>
    %433 = arith.subf %427, %432 : vector<32x8xf32>
    %cst_166 = arith.constant 2.000000e+01 : f32
    %434 = vector.broadcast %cst_166 : f32 to vector<32x8xf32>
    %435 = arith.mulf %433, %434 : vector<32x8xf32>
    %436 = math.exp %435 : vector<32x8xf32>
    %437 = vector.shape_cast %436 : vector<32x8xf32> to vector<1x32x8xf32>
    %cst_167 = arith.constant dense<0.000000e+00> : vector<1xf32>
    %438 = vector.multi_reduction <add>, %437, %cst_167 [1, 2] : vector<1x32x8xf32> to vector<1xf32>
    %439 = vector.shape_cast %438 : vector<1xf32> to vector<1x1x1xf32>
    %440 = vector.extract %439[0, 0, 0] : f32 from vector<1x1x1xf32>
    %441 = vector.broadcast %440 : f32 to vector<32x8xf32>
    %442 = arith.divf %436, %441 : vector<32x8xf32>
    %cst_168 = arith.constant dense<0.000000e+00> : vector<8xf32>
    %443 = vector.multi_reduction <add>, %442, %cst_168 [0] : vector<32x8xf32> to vector<8xf32>
    %444 = vector.shape_cast %443 : vector<8xf32> to vector<1x8xf32>
    %445 = vector.broadcast %444 : vector<1x8xf32> to vector<32x8xf32>
    %446 = arith.divf %442, %445 : vector<32x8xf32>
    %447 = vector.broadcast %416 : vector<1x8xf32> to vector<32x8xf32>
    %448 = arith.mulf %446, %447 : vector<32x8xf32>
    %cst_169 = arith.constant dense<0.000000e+00> : vector<32xf32>
    %449 = vector.multi_reduction <add>, %448, %cst_169 [1] : vector<32x8xf32> to vector<32xf32>
    %450 = vector.shape_cast %449 : vector<32xf32> to vector<32x1xf32>
    %451 = vector.broadcast %450 : vector<32x1xf32> to vector<32x8xf32>
    %452 = arith.divf %448, %451 : vector<32x8xf32>
    %cst_170 = arith.constant dense<0.000000e+00> : vector<8xf32>
    %453 = vector.multi_reduction <add>, %452, %cst_170 [0] : vector<32x8xf32> to vector<8xf32>
    %454 = vector.shape_cast %453 : vector<8xf32> to vector<1x8xf32>
    %455 = vector.broadcast %454 : vector<1x8xf32> to vector<32x8xf32>
    %456 = arith.divf %452, %455 : vector<32x8xf32>
    %457 = vector.broadcast %416 : vector<1x8xf32> to vector<32x8xf32>
    %458 = arith.mulf %456, %457 : vector<32x8xf32>
    %cst_171 = arith.constant dense<0.000000e+00> : vector<32xf32>
    %459 = vector.multi_reduction <add>, %458, %cst_171 [1] : vector<32x8xf32> to vector<32xf32>
    %460 = vector.shape_cast %459 : vector<32xf32> to vector<32x1xf32>
    %461 = vector.broadcast %460 : vector<32x1xf32> to vector<32x8xf32>
    %462 = arith.divf %458, %461 : vector<32x8xf32>
    %cst_172 = arith.constant dense<0.000000e+00> : vector<8xf32>
    %463 = vector.multi_reduction <add>, %462, %cst_172 [0] : vector<32x8xf32> to vector<8xf32>
    %464 = vector.shape_cast %463 : vector<8xf32> to vector<1x8xf32>
    %465 = vector.broadcast %464 : vector<1x8xf32> to vector<32x8xf32>
    %466 = arith.divf %462, %465 : vector<32x8xf32>
    %467 = vector.broadcast %416 : vector<1x8xf32> to vector<32x8xf32>
    %468 = arith.mulf %466, %467 : vector<32x8xf32>
    %cst_173 = arith.constant dense<0.000000e+00> : vector<32xf32>
    %469 = vector.multi_reduction <add>, %468, %cst_173 [1] : vector<32x8xf32> to vector<32xf32>
    %470 = vector.shape_cast %469 : vector<32xf32> to vector<32x1xf32>
    %471 = vector.broadcast %470 : vector<32x1xf32> to vector<32x8xf32>
    %472 = arith.divf %468, %471 : vector<32x8xf32>
    %cst_174 = arith.constant dense<0.000000e+00> : vector<4x8xf32>
    %473 = tpu.matmul %418, %472, %cst_174 {dimension_numbers = #tpu.dot_dimension_numbers<[1], [0], [0], [1], [0, 0, 1, 1], [], []>} : vector<4x32xf32>, vector<32x8xf32>, vector<4x8xf32> -> vector<4x8xf32>
    %474 = tpu.iota {dimensions = array<i32: 1>} : vector<4x8xi32>
    %cst_175 = arith.constant dense<0xFF800000> : vector<4xf32>
    %475 = vector.multi_reduction <maximumf>, %473, %cst_175 [1] : vector<4x8xf32> to vector<4xf32>
    %476 = vector.shape_cast %475 : vector<4xf32> to vector<4x1xf32>
    %477 = vector.broadcast %476 : vector<4x1xf32> to vector<4x8xf32>
    %478 = arith.cmpf oeq, %473, %477 : vector<4x8xf32>
    %c8_i32_176 = arith.constant 8 : i32
    %479 = vector.broadcast %c8_i32_176 : i32 to vector<4x8xi32>
    %480 = arith.select %478, %474, %479 : vector<4x8xi1>, vector<4x8xi32>
    %cst_177 = arith.constant dense<2147483647> : vector<4xi32>
    %481 = vector.multi_reduction <minsi>, %480, %cst_177 [1] : vector<4x8xi32> to vector<4xi32>
    %482 = vector.shape_cast %481 : vector<4xi32> to vector<4x1xi32>
    %483 = vector.broadcast %482 : vector<4x1xi32> to vector<4x8xi32>
    %484 = arith.cmpi eq, %474, %483 : vector<4x8xi32>
    %cst_178 = arith.constant dense<0.000000e+00> : vector<4x8xf32>
    %485 = tpu.matmul %414, %410, %cst_178 {dimension_numbers = #tpu.dot_dimension_numbers<[1], [1], [0], [0], [0, 0, 1, 0], [], []>} : vector<4x16xf32>, vector<8x16xf32>, vector<4x8xf32> -> vector<4x8xf32>
    %cst_179 = arith.constant 0.000000e+00 : f32
    %486 = vector.broadcast %cst_179 : f32 to vector<4x8xf32>
    %487 = arith.select %484, %485, %486 : vector<4x8xi1>, vector<4x8xf32>
    %cst_180 = arith.constant dense<0.000000e+00> : vector<4xf32>
    %488 = vector.multi_reduction <add>, %487, %cst_180 [1] : vector<4x8xf32> to vector<4xf32>
    %489 = vector.shape_cast %488 : vector<4xf32> to vector<4x1xf32>
    %490 = arith.mulf %485, %485 : vector<4x8xf32>
    %cst_181 = arith.constant dense<0.000000e+00> : vector<4xf32>
    %491 = vector.multi_reduction <add>, %490, %cst_181 [1] : vector<4x8xf32> to vector<4xf32>
    %492 = vector.shape_cast %491 : vector<4xf32> to vector<4x1xf32>
    %cst_182 = arith.constant 1.000000e-24 : f32
    %493 = vector.broadcast %cst_182 : f32 to vector<4x1xf32>
    %494 = arith.maximumf %492, %493 : vector<4x1xf32>
    %495 = math.rsqrt %494 : vector<4x1xf32>
    %496 = vector.broadcast %495 : vector<4x1xf32> to vector<4x8xf32>
    %497 = arith.mulf %485, %496 : vector<4x8xf32>
    %cst_183 = arith.constant 5.000000e+00 : f32
    %498 = vector.broadcast %cst_183 : f32 to vector<4x8xf32>
    %499 = arith.mulf %497, %498 : vector<4x8xf32>
    %cst_184 = arith.constant -1.000000e+30 : f32
    %500 = vector.broadcast %cst_184 : f32 to vector<4x8xf32>
    %501 = arith.select %484, %500, %499 : vector<4x8xi1>, vector<4x8xf32>
    %cst_185 = arith.constant 5.000000e+00 : f32
    %502 = vector.broadcast %cst_185 : f32 to vector<4x1xf32>
    %503 = arith.mulf %489, %502 : vector<4x1xf32>
    %cst_186 = arith.constant dense<0xFF800000> : vector<4xf32>
    %504 = vector.multi_reduction <maximumf>, %501, %cst_186 [1] : vector<4x8xf32> to vector<4xf32>
    %505 = vector.shape_cast %504 : vector<4xf32> to vector<4x1xf32>
    %506 = arith.maximumf %503, %505 : vector<4x1xf32>
    %507 = arith.subf %503, %506 : vector<4x1xf32>
    %508 = math.exp %507 : vector<4x1xf32>
    %509 = vector.broadcast %506 : vector<4x1xf32> to vector<4x8xf32>
    %510 = arith.subf %501, %509 : vector<4x8xf32>
    %511 = math.exp %510 : vector<4x8xf32>
    %cst_187 = arith.constant dense<0.000000e+00> : vector<4xf32>
    %512 = vector.multi_reduction <add>, %511, %cst_187 [1] : vector<4x8xf32> to vector<4xf32>
    %513 = vector.shape_cast %512 : vector<4xf32> to vector<4x1xf32>
    %514 = arith.addf %508, %513 : vector<4x1xf32>
    %515 = math.log %514 : vector<4x1xf32>
    %516 = arith.addf %506, %515 : vector<4x1xf32>
    %517 = arith.subf %516, %503 : vector<4x1xf32>
    %cst_188 = arith.constant dense<0.000000e+00> : vector<1xf32>
    %518 = vector.multi_reduction <add>, %517, %cst_188 [0] : vector<4x1xf32> to vector<1xf32>
    %519 = vector.shape_cast %518 : vector<1xf32> to vector<1x1xf32>
    %cst_189 = arith.constant 2.500000e-01 : f32
    %520 = vector.broadcast %cst_189 : f32 to vector<1x1xf32>
    %521 = arith.mulf %519, %520 : vector<1x1xf32>
    %522 = arith.addf %412, %521 : vector<1x1xf32>
    %c1_190 = arith.constant 1 : index
    %c0_191 = arith.constant 0 : index
    %c0_192 = arith.constant 0 : index
    %523 = vector.load %arg0[%c1_190, %c0_191, %c0_192] : memref<2x4x16xf32, #tpu.memory_space<vmem>>, vector<1x4x16xf32>
    %524 = vector.shape_cast %523 : vector<1x4x16xf32> to vector<4x16xf32>
    %c1_193 = arith.constant 1 : index
    %c0_194 = arith.constant 0 : index
    %c0_195 = arith.constant 0 : index
    %525 = vector.load %arg4[%c1_193, %c0_194, %c0_195] : memref<2x1x8xf32, #tpu.memory_space<vmem>>, vector<1x1x8xf32>
    %526 = vector.shape_cast %525 : vector<1x1x8xf32> to vector<1x8xf32>
    %c1_196 = arith.constant 1 : index
    %c0_197 = arith.constant 0 : index
    %c0_198 = arith.constant 0 : index
    %527 = vector.load %arg5[%c1_196, %c0_197, %c0_198] : memref<2x4x32xf32, #tpu.memory_space<vmem>>, vector<1x4x32xf32>
    %528 = vector.shape_cast %527 : vector<1x4x32xf32> to vector<4x32xf32>
    %cst_199 = arith.constant dense<0.000000e+00> : vector<32x8xf32>
    %529 = tpu.matmul %227, %205, %cst_199 {dimension_numbers = #tpu.dot_dimension_numbers<[1], [1], [0], [0], [0, 0, 1, 0], [], []>} : vector<32x16xf32>, vector<8x16xf32>, vector<32x8xf32> -> vector<32x8xf32>
    %530 = arith.mulf %529, %529 : vector<32x8xf32>
    %cst_200 = arith.constant dense<0.000000e+00> : vector<32xf32>
    %531 = vector.multi_reduction <add>, %530, %cst_200 [1] : vector<32x8xf32> to vector<32xf32>
    %532 = vector.shape_cast %531 : vector<32xf32> to vector<32x1xf32>
    %cst_201 = arith.constant 1.000000e-24 : f32
    %533 = vector.broadcast %cst_201 : f32 to vector<32x1xf32>
    %534 = arith.maximumf %532, %533 : vector<32x1xf32>
    %535 = math.rsqrt %534 : vector<32x1xf32>
    %536 = vector.broadcast %535 : vector<32x1xf32> to vector<32x8xf32>
    %537 = arith.mulf %529, %536 : vector<32x8xf32>
    %538 = vector.shape_cast %537 : vector<32x8xf32> to vector<1x32x8xf32>
    %cst_202 = arith.constant dense<0xFF800000> : vector<1xf32>
    %539 = vector.multi_reduction <maximumf>, %538, %cst_202 [1, 2] : vector<1x32x8xf32> to vector<1xf32>
    %540 = vector.shape_cast %539 : vector<1xf32> to vector<1x1x1xf32>
    %541 = vector.extract %540[0, 0, 0] : f32 from vector<1x1x1xf32>
    %542 = vector.broadcast %541 : f32 to vector<32x8xf32>
    %543 = arith.subf %537, %542 : vector<32x8xf32>
    %cst_203 = arith.constant 2.000000e+01 : f32
    %544 = vector.broadcast %cst_203 : f32 to vector<32x8xf32>
    %545 = arith.mulf %543, %544 : vector<32x8xf32>
    %546 = math.exp %545 : vector<32x8xf32>
    %547 = vector.shape_cast %546 : vector<32x8xf32> to vector<1x32x8xf32>
    %cst_204 = arith.constant dense<0.000000e+00> : vector<1xf32>
    %548 = vector.multi_reduction <add>, %547, %cst_204 [1, 2] : vector<1x32x8xf32> to vector<1xf32>
    %549 = vector.shape_cast %548 : vector<1xf32> to vector<1x1x1xf32>
    %550 = vector.extract %549[0, 0, 0] : f32 from vector<1x1x1xf32>
    %551 = vector.broadcast %550 : f32 to vector<32x8xf32>
    %552 = arith.divf %546, %551 : vector<32x8xf32>
    %cst_205 = arith.constant dense<0.000000e+00> : vector<8xf32>
    %553 = vector.multi_reduction <add>, %552, %cst_205 [0] : vector<32x8xf32> to vector<8xf32>
    %554 = vector.shape_cast %553 : vector<8xf32> to vector<1x8xf32>
    %555 = vector.broadcast %554 : vector<1x8xf32> to vector<32x8xf32>
    %556 = arith.divf %552, %555 : vector<32x8xf32>
    %557 = vector.broadcast %526 : vector<1x8xf32> to vector<32x8xf32>
    %558 = arith.mulf %556, %557 : vector<32x8xf32>
    %cst_206 = arith.constant dense<0.000000e+00> : vector<32xf32>
    %559 = vector.multi_reduction <add>, %558, %cst_206 [1] : vector<32x8xf32> to vector<32xf32>
    %560 = vector.shape_cast %559 : vector<32xf32> to vector<32x1xf32>
    %561 = vector.broadcast %560 : vector<32x1xf32> to vector<32x8xf32>
    %562 = arith.divf %558, %561 : vector<32x8xf32>
    %cst_207 = arith.constant dense<0.000000e+00> : vector<8xf32>
    %563 = vector.multi_reduction <add>, %562, %cst_207 [0] : vector<32x8xf32> to vector<8xf32>
    %564 = vector.shape_cast %563 : vector<8xf32> to vector<1x8xf32>
    %565 = vector.broadcast %564 : vector<1x8xf32> to vector<32x8xf32>
    %566 = arith.divf %562, %565 : vector<32x8xf32>
    %567 = vector.broadcast %526 : vector<1x8xf32> to vector<32x8xf32>
    %568 = arith.mulf %566, %567 : vector<32x8xf32>
    %cst_208 = arith.constant dense<0.000000e+00> : vector<32xf32>
    %569 = vector.multi_reduction <add>, %568, %cst_208 [1] : vector<32x8xf32> to vector<32xf32>
    %570 = vector.shape_cast %569 : vector<32xf32> to vector<32x1xf32>
    %571 = vector.broadcast %570 : vector<32x1xf32> to vector<32x8xf32>
    %572 = arith.divf %568, %571 : vector<32x8xf32>
    %cst_209 = arith.constant dense<0.000000e+00> : vector<8xf32>
    %573 = vector.multi_reduction <add>, %572, %cst_209 [0] : vector<32x8xf32> to vector<8xf32>
    %574 = vector.shape_cast %573 : vector<8xf32> to vector<1x8xf32>
    %575 = vector.broadcast %574 : vector<1x8xf32> to vector<32x8xf32>
    %576 = arith.divf %572, %575 : vector<32x8xf32>
    %577 = vector.broadcast %526 : vector<1x8xf32> to vector<32x8xf32>
    %578 = arith.mulf %576, %577 : vector<32x8xf32>
    %cst_210 = arith.constant dense<0.000000e+00> : vector<32xf32>
    %579 = vector.multi_reduction <add>, %578, %cst_210 [1] : vector<32x8xf32> to vector<32xf32>
    %580 = vector.shape_cast %579 : vector<32xf32> to vector<32x1xf32>
    %581 = vector.broadcast %580 : vector<32x1xf32> to vector<32x8xf32>
    %582 = arith.divf %578, %581 : vector<32x8xf32>
    %cst_211 = arith.constant dense<0.000000e+00> : vector<4x8xf32>
    %583 = tpu.matmul %528, %582, %cst_211 {dimension_numbers = #tpu.dot_dimension_numbers<[1], [0], [0], [1], [0, 0, 1, 1], [], []>} : vector<4x32xf32>, vector<32x8xf32>, vector<4x8xf32> -> vector<4x8xf32>
    %584 = tpu.iota {dimensions = array<i32: 1>} : vector<4x8xi32>
    %cst_212 = arith.constant dense<0xFF800000> : vector<4xf32>
    %585 = vector.multi_reduction <maximumf>, %583, %cst_212 [1] : vector<4x8xf32> to vector<4xf32>
    %586 = vector.shape_cast %585 : vector<4xf32> to vector<4x1xf32>
    %587 = vector.broadcast %586 : vector<4x1xf32> to vector<4x8xf32>
    %588 = arith.cmpf oeq, %583, %587 : vector<4x8xf32>
    %c8_i32_213 = arith.constant 8 : i32
    %589 = vector.broadcast %c8_i32_213 : i32 to vector<4x8xi32>
    %590 = arith.select %588, %584, %589 : vector<4x8xi1>, vector<4x8xi32>
    %cst_214 = arith.constant dense<2147483647> : vector<4xi32>
    %591 = vector.multi_reduction <minsi>, %590, %cst_214 [1] : vector<4x8xi32> to vector<4xi32>
    %592 = vector.shape_cast %591 : vector<4xi32> to vector<4x1xi32>
    %593 = vector.broadcast %592 : vector<4x1xi32> to vector<4x8xi32>
    %594 = arith.cmpi eq, %584, %593 : vector<4x8xi32>
    %cst_215 = arith.constant dense<0.000000e+00> : vector<4x8xf32>
    %595 = tpu.matmul %524, %205, %cst_215 {dimension_numbers = #tpu.dot_dimension_numbers<[1], [1], [0], [0], [0, 0, 1, 0], [], []>} : vector<4x16xf32>, vector<8x16xf32>, vector<4x8xf32> -> vector<4x8xf32>
    %cst_216 = arith.constant 0.000000e+00 : f32
    %596 = vector.broadcast %cst_216 : f32 to vector<4x8xf32>
    %597 = arith.select %594, %595, %596 : vector<4x8xi1>, vector<4x8xf32>
    %cst_217 = arith.constant dense<0.000000e+00> : vector<4xf32>
    %598 = vector.multi_reduction <add>, %597, %cst_217 [1] : vector<4x8xf32> to vector<4xf32>
    %599 = vector.shape_cast %598 : vector<4xf32> to vector<4x1xf32>
    %600 = arith.mulf %595, %595 : vector<4x8xf32>
    %cst_218 = arith.constant dense<0.000000e+00> : vector<4xf32>
    %601 = vector.multi_reduction <add>, %600, %cst_218 [1] : vector<4x8xf32> to vector<4xf32>
    %602 = vector.shape_cast %601 : vector<4xf32> to vector<4x1xf32>
    %cst_219 = arith.constant 1.000000e-24 : f32
    %603 = vector.broadcast %cst_219 : f32 to vector<4x1xf32>
    %604 = arith.maximumf %602, %603 : vector<4x1xf32>
    %605 = math.rsqrt %604 : vector<4x1xf32>
    %606 = vector.broadcast %605 : vector<4x1xf32> to vector<4x8xf32>
    %607 = arith.mulf %595, %606 : vector<4x8xf32>
    %cst_220 = arith.constant 5.000000e+00 : f32
    %608 = vector.broadcast %cst_220 : f32 to vector<4x8xf32>
    %609 = arith.mulf %607, %608 : vector<4x8xf32>
    %cst_221 = arith.constant -1.000000e+30 : f32
    %610 = vector.broadcast %cst_221 : f32 to vector<4x8xf32>
    %611 = arith.select %594, %610, %609 : vector<4x8xi1>, vector<4x8xf32>
    %cst_222 = arith.constant 5.000000e+00 : f32
    %612 = vector.broadcast %cst_222 : f32 to vector<4x1xf32>
    %613 = arith.mulf %599, %612 : vector<4x1xf32>
    %cst_223 = arith.constant dense<0xFF800000> : vector<4xf32>
    %614 = vector.multi_reduction <maximumf>, %611, %cst_223 [1] : vector<4x8xf32> to vector<4xf32>
    %615 = vector.shape_cast %614 : vector<4xf32> to vector<4x1xf32>
    %616 = arith.maximumf %613, %615 : vector<4x1xf32>
    %617 = arith.subf %613, %616 : vector<4x1xf32>
    %618 = math.exp %617 : vector<4x1xf32>
    %619 = vector.broadcast %616 : vector<4x1xf32> to vector<4x8xf32>
    %620 = arith.subf %611, %619 : vector<4x8xf32>
    %621 = math.exp %620 : vector<4x8xf32>
    %cst_224 = arith.constant dense<0.000000e+00> : vector<4xf32>
    %622 = vector.multi_reduction <add>, %621, %cst_224 [1] : vector<4x8xf32> to vector<4xf32>
    %623 = vector.shape_cast %622 : vector<4xf32> to vector<4x1xf32>
    %624 = arith.addf %618, %623 : vector<4x1xf32>
    %625 = math.log %624 : vector<4x1xf32>
    %626 = arith.addf %616, %625 : vector<4x1xf32>
    %627 = arith.subf %626, %613 : vector<4x1xf32>
    %cst_225 = arith.constant dense<0.000000e+00> : vector<1xf32>
    %628 = vector.multi_reduction <add>, %627, %cst_225 [0] : vector<4x1xf32> to vector<1xf32>
    %629 = vector.shape_cast %628 : vector<1xf32> to vector<1x1xf32>
    %cst_226 = arith.constant 2.500000e-01 : f32
    %630 = vector.broadcast %cst_226 : f32 to vector<1x1xf32>
    %631 = arith.mulf %629, %630 : vector<1x1xf32>
    %632 = arith.addf %522, %631 : vector<1x1xf32>
    %c0_227 = arith.constant 0 : index
    %c0_228 = arith.constant 0 : index
    %633 = vector.load %arg8[%c0_227, %c0_228] : memref<1x1xf32, #tpu.memory_space<vmem>>, vector<1x1xf32>
    tpu.vector_store %arg8[%c0_227, %c0_228], %632 {strides = array<i32>} : memref<1x1xf32, #tpu.memory_space<vmem>>, vector<1x1xf32>,
    return
  }
}

</mosaic_0001>

<bundles_post_ra>
// kernel: ucdir_forward.2
= control target key start
LH: loop header
LB: loop body
LE: loop exit
PB: predicated region body
PF: predicated region fallthrough
CT: control target
= control target key end

     0   :  { %s4427_s17 = smov 0   ;;  %s6912_s0 = inlined_call_operand.vmem [shape: f32[2,32,2048], index: 0, kind: input, shape index: {}]   ;;  %s6913_s1 = inlined_call_operand.vmem [shape: f32[2,32,32], index: 1, kind: input, shape index: {}]   ;;  %s6914_s2 = inlined_call_operand.vmem [shape: f32[2,32,1], index: 2, kind: input, shape index: {}]   ;;  %s6915_s3 = inlined_call_operand.vmem [shape: f32[2,32,1], index: 3, kind: input, shape index: {}]   ;;  %s6916_s4 = inlined_call_operand.vmem [shape: f32[2,32,1], index: 4, kind: input, shape index: {}]   ;;  %s6917_s5 = inlined_call_operand.vmem [shape: f32[2,1,2048], index: 5, kind: input, shape index: {}]   ;;  %s6918_s6 = inlined_call_operand.vmem [shape: f32[8,2048], index: 6, kind: input, shape index: {}]   ;;  %s6919_s7 = inlined_call_operand.vmem [shape: f32[2,32,32], index: 7, kind: input, shape index: {}]   ;;  %s6920_s8 = inlined_call_operand.vmem [shape: f32[2,32,1], index: 8, kind: input, shape index: {}]   ;;  %s6921_s9 = inlined_call_operand.vmem [shape: f32[2,16,32], index: 9, kind: input, shape index: {}]   ;;  %s6922_s10 = inlined_call_operand.vmem [shape: f32[2,16,1], index: 10, kind: input, shape index: {}]   ;;  %s6923_s11 = inlined_call_operand.vmem [shape: f32[2,16,8], index: 11, kind: output, shape index: {}]  }
   0x1 LB: > { %s4086_s18 = sadd.s32 4294967295, %s4362_s17   ;;  %p4090_p0 = scmp.ge.s32.totalorder %s4362_s17, 1  ;;  %s4362_s17 = sphi %s4427_s17, %s21_s17  }
   0x2   : > { %p426_p1 = scmp.lt.s32.totalorder %s4362_s17, 3 }
   0x4   : > { %p427_p2 = pnand %p4090_p0, %p426_p1 }
   0x6   : > { %430 = sbr.rel (%p427_p2) target bundleno = 1348 (0x544), region = 64 }
   0xb   : > { %p510_p3 = scmp.lt.s32.totalorder %s4086_s18, 1  ;;  %v4364_v0 = vmov 0.0   ;;  %v4365_v1 = vmov 0   ;;  %vm656_vm0 = vcmask 261120   ;;  %v1385_v24 = vlaneseq  ;;  %s4366_s25 = smov 1.0  }
   0xc   : > { %733 = vmatprep.mubr.f32.mxu0 %v4364_v0  ;;  %822 = vmatprep.mubr.f32.mxu1 %v4364_v0  ;;  %vm1465_vm1 = vcmask 1040384   ;;  %vm3907_vm2 = vcmask 64512  }
   0xd   : > { %s7455_s18 = smov (!%p510_p3, %s4086_s18), 1  ;;  %4218 = vset.pattern.permute.xlu0 %v4365_v1  ;;  %4219 = vset.pattern.permute.xlu1 %v4365_v1  ;;  %v4499_v30 = vshrl.u32 %v1385_v24, 7 }
   0xe   : > { %s4152_s19 = sshll.u32 %s7455_s18, 9  ;;  %s4449_s23 = sshll.u32 %s7455_s18, 5 }
   0xf   : > { %s4443_s22 = scalar_lea.vmem %s6912_s0, %s4152_s19  ;;  %s4464_s26 = scalar_lea.vmem %s6913_s1, %s4449_s23  ;;  %v4526_v38 = vsub.s32 0, %v4499_v30  ;;  %v4529_v39 = vsub.s32 1, %v4499_v30  ;;  %v4532_v40 = vsub.s32 2, %v4499_v30  ;;  %v4541_v43 = vsub.s32 3, %v4499_v30 }
  0x10   : > { %v617_v2 = vld [vmem:[%s4443_s22 + $0x188] sm:$0xff]  ;;  %v619_v3 = vld [vmem:[%s4443_s22 + $0x198] sm:$0xff]  ;;  %v616_v4 = vld [vmem:[%s4443_s22 + $0x180] sm:$0xff]  ;;  %s4504_s27 = sshll.u32 %s7455_s18, 4  ;;  %v4555_v48 = vsub.s32 4, %v4499_v30  ;;  %v4570_v54 = vsub.s32 5, %v4499_v30  ;;  %s4732_s14 = scalar_lea.vmem %s6914_s2, %s4449_s23 }
  0x11   : > { %693 = vmatprep.subr.mxu0 %v617_v2  ;;  %782 = vmatprep.subr.mxu1 %v619_v3  ;;  %v618_v5 = vld [vmem:[%s4443_s22 + $0x190] sm:$0xff]  ;;  %v601_v6 = vld [vmem:[%s4443_s22 + $0x108] sm:$0xff]  ;;  %v603_v7 = vld [vmem:[%s4443_s22 + $0x118] sm:$0xff]  ;;  %s4523_s30 = scalar_lea.vmem %s6917_s5, %s4504_s27  ;;  %7134 = vst [vmem:[#allocation2_spill] sm:$0xff] %v4526_v38  ;;  %v4582_v58 = vsub.s32 6, %v4499_v30  ;;  %v4598_v3 = vsub.s32 7, %v4499_v30  ;;  %s4758_s18 = scalar_lea.vmem %s6916_s4, %s4449_s23 }
  0x12   : > { %694 = vmatpush1.msra.mxu0 %v616_v4  ;;  %783 = vmatpush1.msra.mxu1 %v618_v5  ;;  %v600_v8 = vld [vmem:[%s4443_s22 + $0x100] sm:$0xff]  ;;  %v602_v9 = vld [vmem:[%s4443_s22 + $0x110] sm:$0xff]  ;;  %v585_v10 = vld [vmem:[%s4443_s22 + $0x88] sm:$0xff]  ;;  %7135 = vst [vmem:[#allocation3_spill] sm:$0xff] %v4529_v39  ;;  %s4771_s21 = scalar_lea.vmem %s6915_s3, %s4449_s23  ;;  %s548_s13 = scalar_lea.vmem %s6920_s8, %s4449_s23 }
  0x13   : > { %695 = vmatprep.subr.mxu0 %v601_v6  ;;  %784 = vmatprep.subr.mxu1 %v603_v7  ;;  %v587_v11 = vld [vmem:[%s4443_s22 + $0x98] sm:$0xff]  ;;  %v584_v12 = vld [vmem:[%s4443_s22 + $0x80] sm:$0xff]  ;;  %v586_v13 = vld [vmem:[%s4443_s22 + $0x90] sm:$0xff]  ;;  %7136 = vst [vmem:[#allocation4_spill] sm:$0xff] %v4532_v40  ;;  %s563_s12 = scalar_lea.vmem %s6923_s11, %s4504_s27 }
  0x14   : > { %696 = vmatpush1.msra.mxu0 %v600_v8  ;;  %785 = vmatpush1.msra.mxu1 %v602_v9  ;;  %v569_v14 = vld [vmem:[%s4443_s22 + $0x8] sm:$0xff]  ;;  %v571_v15 = vld [vmem:[%s4443_s22 + $0x18] sm:$0xff]  ;;  %v568_v16 = vld [vmem:[%s4443_s22] sm:$0xff]  ;;  %7137 = vst [vmem:[#allocation5_spill] sm:$0xff] %v4541_v43 }
  0x15   : > { %697 = vmatprep.subr.mxu0 %v585_v10  ;;  %786 = vmatprep.subr.mxu1 %v587_v11  ;;  %v570_v17 = vld [vmem:[%s4443_s22 + $0x10] sm:$0xff]  ;;  %v4471_v18 = vld [vmem:[%s4464_s26] sm:$0xff]  ;;  %v621_v19 = vld [vmem:[%s4443_s22 + $0x1a8] sm:$0xff]  ;;  %7141 = vst [vmem:[#allocation9_spill] sm:$0xff] %v4555_v48 }
  0x16   : > { %698 = vmatpush1.msra.mxu0 %v584_v12  ;;  %787 = vmatpush1.msra.mxu1 %v586_v13  ;;  %v623_v20 = vld [vmem:[%s4443_s22 + $0x1b8] sm:$0xff]  ;;  %v620_v21 = vld [vmem:[%s4443_s22 + $0x1a0] sm:$0xff]  ;;  %v622_v22 = vld [vmem:[%s4443_s22 + $0x1b0] sm:$0xff]  ;;  %7143 = vst [vmem:[#allocation11_spill] sm:$0xff] %v4570_v54 }
  0x17   : > { %699 = vmatprep.subr.mxu0 %v569_v14  ;;  %788 = vmatprep.subr.mxu1 %v571_v15  ;;  %v4484_v23 = vld [vmem:[%s4464_s26 + $0x8] sm:$0xff]  ;;  %v607_v26 = vld [vmem:[%s4443_s22 + $0x138] sm:$0xff]  ;;  %v604_v27 = vld [vmem:[%s4443_s22 + $0x120] sm:$0xff]  ;;  %7145 = vst [vmem:[#allocation13_spill] sm:$0xff] %v4582_v58 }
  0x18   : > { %700 = vmatpush1.msra.mxu0 %v568_v16  ;;  %789 = vmatpush1.msra.mxu1 %v570_v17  ;;  %v605_v25 = vld [vmem:[%s4443_s22 + $0x128] sm:$0xff]  ;;  %v606_v28 = vld [vmem:[%s4443_s22 + $0x130] sm:$0xff]  ;;  %v591_v32 = vld [vmem:[%s4443_s22 + $0xb8] sm:$0xff]  ;;  %7147 = vst [vmem:[#allocation15_spill] sm:$0xff] %v4598_v3 }
  0x19   : > { %4112 = vmatmul.mubr.msk.f32.vlgmr.msra.gmra.mxu0 %vm656_vm0, %v4471_v18  ;;  %4116 = vmatmul.mubr.msk.f32.vlgmr.msra.gmra.mxu1 %vm656_vm0, %v4471_v18  ;;  %v4497_v29 = vld [vmem:[%s4464_s26 + $0x10] sm:$0xff]  ;;  %v589_v31 = vld [vmem:[%s4443_s22 + $0xa8] sm:$0xff]  ;;  %v588_v33 = vld [vmem:[%s4443_s22 + $0xa0] sm:$0xff] }
  0x1a   : > { %739 = vmatprep.mubr.f32.mxu0 %v4364_v0  ;;  %828 = vmatprep.mubr.f32.mxu1 %v4364_v0  ;;  %v590_v34 = vld [vmem:[%s4443_s22 + $0xb0] sm:$0xff]  ;;  %v4515_v35 = vld [vmem:[%s4464_s26 + $0x18] sm:$0xff]  ;;  %v573_v36 = vld [vmem:[%s4443_s22 + $0x28] sm:$0xff] }
  0x1b   : > { %871 = vmatprep.subr.mxu0 %v621_v19  ;;  %960 = vmatprep.subr.mxu1 %v623_v20  ;;  %v575_v37 = vld [vmem:[%s4443_s22 + $0x38] sm:$0xff]  ;;  %v572_v41 = vld [vmem:[%s4443_s22 + $0x20] sm:$0xff]  ;;  %v574_v42 = vld [vmem:[%s4443_s22 + $0x30] sm:$0xff] }
  0x1c   : > { %872 = vmatpush1.msra.mxu0 %v620_v21  ;;  %961 = vmatpush1.msra.mxu1 %v622_v22  ;;  %v1381_v44 = vld [vmem:[%s4523_s30] sm:$0xff]  ;;  %v625_v49 = vld [vmem:[%s4443_s22 + $0x1c8] sm:$0xff]  ;;  %v627_v50 = vld [vmem:[%s4443_s22 + $0x1d8] sm:$0xff] }
  0x1d   : > { %4113 = vmatmul.mubr.msk.f32.gmra.mxu0 %vm656_vm0, %v4484_v23  ;;  %4117 = vmatmul.mubr.msk.f32.gmra.mxu1 %vm656_vm0, %v4484_v23  ;;  %v4546_v45 = vrot.slane %v1381_v44, %v4526_v38  ;;  %v4549_v46 = vrot.slane %v1381_v44, %v4529_v39  ;;  %v4552_v47 = vrot.slane %v1381_v44, %v4532_v40  ;;  %v624_v51 = vld [vmem:[%s4443_s22 + $0x1c0] sm:$0xff]  ;;  %v626_v52 = vld [vmem:[%s4443_s22 + $0x1d0] sm:$0xff]  ;;  %v609_v60 = vld [vmem:[%s4443_s22 + $0x148] sm:$0xff] }
  0x1e   : > { %745 = vmatprep.mubr.f32.mxu0 %v4364_v0  ;;  %834 = vmatprep.mubr.f32.mxu1 %v4364_v0  ;;  %v4567_v53 = vrot.slane %v1381_v44, %v4541_v43  ;;  %v4579_v57 = vrot.slane %v1381_v44, %v4555_v48  ;;  %v611_v61 = vld [vmem:[%s4443_s22 + $0x158] sm:$0xff]  ;;  %v608_v63 = vld [vmem:[%s4443_s22 + $0x140] sm:$0xff]  ;;  %v610_v1 = vld [vmem:[%s4443_s22 + $0x150] sm:$0xff]  ;;  %v4595_v2 = vrot.slane %v1381_v44, %v4570_v54 }
  0x1f   : > { %873 = vmatprep.subr.mxu0 %v605_v25  ;;  %962 = vmatprep.subr.mxu1 %v607_v26  ;;  %7138 = vst [vmem:[#allocation6_spill] sm:$0xff] %v4546_v45  ;;  %7139 = vst [vmem:[#allocation7_spill] sm:$0xff] %v4549_v46  ;;  %v1466_v55 = vsel %vm1465_vm1, %v4546_v45, 0.0  ;;  %v1467_v56 = vsel %vm1465_vm1, %v4549_v46, 0.0  ;;  %v1469_v59 = vsel %vm1465_vm1, %v4552_v47, 0.0  ;;  %v4605_v6 = vrot.slane %v1381_v44, %v4582_v58  ;;  %v593_v8 = vld [vmem:[%s4443_s22 + $0xc8] sm:$0xff] }
  0x20   : > { %874 = vmatpush1.msra.mxu0 %v604_v27  ;;  %963 = vmatpush1.msra.mxu1 %v606_v28  ;;  %7140 = vst [vmem:[#allocation8_spill] sm:$0xff] %v4552_v47  ;;  %7142 = vst [vmem:[#allocation10_spill] sm:$0xff] %v4567_v53  ;;  %v1468_v62 = vadd.f32 %v1467_v56, %v1466_v55  ;;  %v1471_v4 = vsel %vm1465_vm1, %v4567_v53, 0.0  ;;  %v1473_v7 = vsel %vm1465_vm1, %v4579_v57, 0.0  ;;  %v595_v9 = vld [vmem:[%s4443_s22 + $0xd8] sm:$0xff]  ;;  %v4612_v10 = vld [vmem:[%s4523_s30 + $0x8] sm:$0xff] }
  0x21   : > { %4114 = vmatmul.mubr.msk.f32.gmra.mxu0 %vm656_vm0, %v4497_v29  ;;  %4118 = vmatmul.mubr.msk.f32.gmra.mxu1 %vm656_vm0, %v4497_v29  ;;  %7144 = vst [vmem:[#allocation12_spill] sm:$0xff] %v4579_v57  ;;  %7146 = vst [vmem:[#allocation14_spill] sm:$0xff] %v4595_v2  ;;  %v592_v12 = vld [vmem:[%s4443_s22 + $0xc0] sm:$0xff]  ;;  %v594_v13 = vld [vmem:[%s4443_s22 + $0xd0] sm:$0xff]  ;;  %v4621_v14 = vrot.slane %v1381_v44, %v4598_v3  ;;  %v1475_v15 = vsel %vm1465_vm1, %v4595_v2, 0.0  ;;  %v4631_v20 = vrot.slane %v4612_v10, %v4526_v38 }
  0x22   : > { %751 = vmatprep.mubr.f32.mxu0 %v4364_v0  ;;  %840 = vmatprep.mubr.f32.mxu1 %v4364_v0  ;;  %v1470_v5 = vadd.f32 %v1469_v59, %v1468_v62  ;;  %7148 = vst [vmem:[#allocation16_spill] sm:$0xff] %v4605_v6  ;;  %v577_v17 = vld [vmem:[%s4443_s22 + $0x48] sm:$0xff]  ;;  %v579_v19 = vld [vmem:[%s4443_s22 + $0x58] sm:$0xff]  ;;  %v1477_v21 = vsel %vm1465_vm1, %v4605_v6, 0.0  ;;  %v576_v22 = vld [vmem:[%s4443_s22 + $0x40] sm:$0xff]  ;;  %v4643_v26 = vrot.slane %v4612_v10, %v4529_v39 }
  0x23   : > { %875 = vmatprep.subr.mxu0 %v589_v31  ;;  %964 = vmatprep.subr.mxu1 %v591_v32  ;;  %7149 = vst [vmem:[#allocation17_spill] sm:$0xff] %v4621_v14  ;;  %7150 = vst [vmem:[#allocation18_spill] sm:$0xff] %v4631_v20  ;;  %v578_v25 = vld [vmem:[%s4443_s22 + $0x50] sm:$0xff]  ;;  %v1479_v27 = vsel %vm1465_vm1, %v4621_v14, 0.0  ;;  %v4650_v30 = vrot.slane %v4612_v10, %v4532_v40  ;;  %v1481_v31 = vsel %vm1465_vm1, %v4631_v20, 0.0  ;;  %v629_v32 = vld [vmem:[%s4443_s22 + $0x1e8] sm:$0xff] }
  0x24   : > { %876 = vmatpush1.msra.mxu0 %v588_v33  ;;  %965 = vmatpush1.msra.mxu1 %v590_v34  ;;  %v1472_v11 = vadd.f32 %v1471_v4, %v1470_v5  ;;  %7151 = vst [vmem:[#allocation19_spill] sm:$0xff] %v4643_v26  ;;  %v631_v33 = vld [vmem:[%s4443_s22 + $0x1f8] sm:$0xff]  ;;  %v612_v56 = vld [vmem:[%s4443_s22 + $0x160] sm:$0xff]  ;;  %v614_v59 = vld [vmem:[%s4443_s22 + $0x170] sm:$0xff] }
  0x25   : > { %4115 = vmatmul.mubr.msk.f32.gmra.mxu0 %vm656_vm0, %v4515_v35  ;;  %4119 = vmatmul.mubr.msk.f32.gmra.mxu1 %vm656_vm0, %v4515_v35  ;;  %7152 = vst [vmem:[#allocation20_spill] sm:$0xff] %v4650_v30  ;;  %v597_v4 = vld [vmem:[%s4443_s22 + $0xe8] sm:$0xff]  ;;  %v599_v5 = vld [vmem:[%s4443_s22 + $0xf8] sm:$0xff] }
  0x26   : > { %877 = vmatprep.subr.mxu0 %v573_v36  ;;  %966 = vmatprep.subr.mxu1 %v575_v37  ;;  %v1474_v16 = vadd.f32 %v1473_v7, %v1472_v11  ;;  %v628_v36 = vld [vmem:[%s4443_s22 + $0x1e0] sm:$0xff]  ;;  %v630_v37 = vld [vmem:[%s4443_s22 + $0x1f0] sm:$0xff]  ;;  %v4709_v11 = vrot.slane %v4612_v10, %v4598_v3 }
  0x27   : > { %878 = vmatpush1.msra.mxu0 %v572_v41  ;;  %911 = vmatprep.mubr.f32.mxu0 %v4364_v0  ;;  %v4665_v41 = vrot.slane %v4612_v10, %v4541_v43 }
  0x28   : > { %967 = vmatpush1.msra.mxu1 %v574_v42  ;;  %1000 = vmatprep.mubr.f32.mxu1 %v4364_v0  ;;  %v1476_v24 = vadd.f32 %v1475_v15, %v1474_v16  ;;  %v1483_v42 = vsel %vm1465_vm1, %v4643_v26, 0.0  ;;  %7157 = vst [vmem:[#allocation25_spill] sm:$0xff] %v4709_v11  ;;  %v581_v15 = vld [vmem:[%s4443_s22 + $0x68] sm:$0xff]  ;;  %v583_v16 = vld [vmem:[%s4443_s22 + $0x78] sm:$0xff] }
  0x29   : > { %4120 = vmatmul.mubr.msk.f32.vlgmr.msra.gmra.mxu0 %vm656_vm0, %v4471_v18  ;;  %4124 = vmatmul.mubr.msk.f32.vlgmr.msra.gmra.mxu1 %vm656_vm0, %v4471_v18  ;;  %7153 = vst [vmem:[#allocation21_spill] sm:$0xff] %v4665_v41 }
  0x2a   : > { %917 = vmatprep.mubr.f32.mxu0 %v4364_v0  ;;  %1006 = vmatprep.mubr.f32.mxu1 %v4364_v0  ;;  %v1478_v28 = vadd.f32 %v1477_v21, %v1476_v24  ;;  %v1495_v21 = vsel %vm1465_vm1, %v4709_v11, 0.0 }
  0x2b   : > { %1049 = vmatprep.subr.mxu0 %v625_v49  ;;  %1138 = vmatprep.subr.mxu1 %v627_v50  ;;  %v4673_v49 = vrot.slane %v4612_v10, %v4555_v48  ;;  %v1485_v50 = vsel %vm1465_vm1, %v4650_v30, 0.0 }
  0x2c   : > { %1050 = vmatpush1.msra.mxu0 %v624_v51  ;;  %1139 = vmatpush1.msra.mxu1 %v626_v52  ;;  %v1480_v34 = vadd.f32 %v1479_v27, %v1478_v28  ;;  %v613_v51 = vld [vmem:[%s4443_s22 + $0x168] sm:$0xff]  ;;  %v615_v52 = vld [vmem:[%s4443_s22 + $0x178] sm:$0xff]  ;;  %v634_v28 = vld [vmem:[%s4732_s14 + $0x10] sm:$0xff] }
  0x2d   : > { %4121 = vmatmul.mubr.msk.f32.gmra.mxu0 %vm656_vm0, %v4484_v23  ;;  %4125 = vmatmul.mubr.msk.f32.gmra.mxu1 %vm656_vm0, %v4484_v23  ;;  %7154 = vst [vmem:[#allocation22_spill] sm:$0xff] %v4673_v49  ;;  %v633_v27 = vld [vmem:[%s4732_s14 + $0x8] sm:$0xff] }
  0x2e   : > { %923 = vmatprep.mubr.f32.mxu0 %v4364_v0  ;;  %1012 = vmatprep.mubr.f32.mxu1 %v4364_v0  ;;  %v1482_v44 = vadd.f32 %v1481_v31, %v1480_v34  ;;  %v632_v31 = vld [vmem:[%s4732_s14] sm:$0xff] }
  0x2f   : > { %1051 = vmatprep.subr.mxu0 %v609_v60  ;;  %1140 = vmatprep.subr.mxu1 %v611_v61  ;;  %v4687_v60 = vrot.slane %v4612_v10, %v4570_v54  ;;  %v1487_v61 = vsel %vm1465_vm1, %v4665_v41, 0.0 }
  0x30   : > { %1052 = vmatpush1.msra.mxu0 %v608_v63  ;;  %1141 = vmatpush1.msra.mxu1 %v610_v1  ;;  %v1484_v55 = vadd.f32 %v1483_v42, %v1482_v44  ;;  %v4695_v63 = vrot.slane %v4612_v10, %v4582_v58  ;;  %v1489_v1 = vsel %vm1465_vm1, %v4673_v49, 0.0 }
  0x31   : > { %4122 = vmatmul.mubr.msk.f32.gmra.mxu0 %vm656_vm0, %v4497_v29  ;;  %4126 = vmatmul.mubr.msk.f32.gmra.mxu1 %vm656_vm0, %v4497_v29  ;;  %7155 = vst [vmem:[#allocation23_spill] sm:$0xff] %v4687_v60 }
  0x32   : > { %929 = vmatprep.mubr.f32.mxu0 %v4364_v0  ;;  %1018 = vmatprep.mubr.f32.mxu1 %v4364_v0  ;;  %v1486_v62 = vadd.f32 %v1485_v50, %v1484_v55  ;;  %7156 = vst [vmem:[#allocation24_spill] sm:$0xff] %v4695_v63 }
  0x33   : > { %1053 = vmatprep.subr.mxu0 %v593_v8  ;;  %1142 = vmatprep.subr.mxu1 %v595_v9  ;;  %v596_v8 = vld [vmem:[%s4443_s22 + $0xe0] sm:$0xff]  ;;  %v598_v9 = vld [vmem:[%s4443_s22 + $0xf0] sm:$0xff] }
  0x34   : > { %1054 = vmatpush1.msra.mxu0 %v592_v12  ;;  %1143 = vmatpush1.msra.mxu1 %v594_v13  ;;  %v1488_v7 = vadd.f32 %v1487_v61, %v1486_v62  ;;  %v1491_v12 = vsel %vm1465_vm1, %v4687_v60, 0.0 }
  0x35   : > { %4123 = vmatmul.mubr.msk.f32.gmra.mxu0 %vm656_vm0, %v4515_v35  ;;  %4127 = vmatmul.mubr.msk.f32.gmra.mxu1 %vm656_vm0, %v4515_v35 }
  0x36   : > { %1055 = vmatprep.subr.mxu0 %v577_v17  ;;  %1144 = vmatprep.subr.mxu1 %v579_v19  ;;  %v1490_v13 = vadd.f32 %v1489_v1, %v1488_v7  ;;  %v1493_v17 = vsel %vm1465_vm1, %v4695_v63, 0.0  ;;  %v580_v19 = vld [vmem:[%s4443_s22 + $0x60] sm:$0xff] }
  0x37   : > { %1056 = vmatpush1.msra.mxu0 %v576_v22  ;;  %1089 = vmatprep.mubr.f32.mxu0 %v4364_v0  ;;  %v582_v22 = vld [vmem:[%s4443_s22 + $0x70] sm:$0xff] }
  0x38   : > { %1145 = vmatpush1.msra.mxu1 %v578_v25  ;;  %1178 = vmatprep.mubr.f32.mxu1 %v4364_v0  ;;  %v1492_v10 = vadd.f32 %v1491_v12, %v1490_v13 }
  0x39   : > { %4128 = vmatmul.mubr.msk.f32.vlgmr.msra.gmra.mxu0 %vm656_vm0, %v4471_v18  ;;  %4132 = vmatmul.mubr.msk.f32.vlgmr.msra.gmra.mxu1 %vm656_vm0, %v4471_v18 }
  0x3a   : > { %1095 = vmatprep.mubr.f32.mxu0 %v4364_v0  ;;  %1184 = vmatprep.mubr.f32.mxu1 %v4364_v0  ;;  %v1494_v24 = vadd.f32 %v1493_v17, %v1492_v10 }
  0x3b   : > { %1227 = vmatprep.subr.mxu0 %v629_v32  ;;  %1316 = vmatprep.subr.mxu1 %v631_v33 }
  0x3c   : > { %1228 = vmatpush1.msra.mxu0 %v628_v36  ;;  %1317 = vmatpush1.msra.mxu1 %v630_v37  ;;  %v1496_v25 = vadd.f32 %v1495_v21, %v1494_v24 }
  0x3d   : > { %4129 = vmatmul.mubr.msk.f32.gmra.mxu0 %vm656_vm0, %v4484_v23  ;;  %4133 = vmatmul.mubr.msk.f32.gmra.mxu1 %vm656_vm0, %v4484_v23 }
  0x3e   : > { %1101 = vmatprep.mubr.f32.mxu0 %v4364_v0  ;;  %1190 = vmatprep.mubr.f32.mxu1 %v4364_v0 }
  0x3f   : > { %1229 = vmatprep.subr.mxu0 %v613_v51  ;;  %1318 = vmatprep.subr.mxu1 %v615_v52 }
  0x40   : > { %1230 = vmatpush1.msra.mxu0 %v612_v56  ;;  %1319 = vmatpush1.msra.mxu1 %v614_v59 }
  0x41   : > { %4130 = vmatmul.mubr.msk.f32.gmra.mxu0 %vm656_vm0, %v4497_v29  ;;  %4134 = vmatmul.mubr.msk.f32.gmra.mxu1 %vm656_vm0, %v4497_v29 }
  0x42   : > { %1107 = vmatprep.mubr.f32.mxu0 %v4364_v0  ;;  %1196 = vmatprep.mubr.f32.mxu1 %v4364_v0 }
  0x43   : > { %1231 = vmatprep.subr.mxu0 %v597_v4  ;;  %1320 = vmatprep.subr.mxu1 %v599_v5 }
  0x44   : > { %1232 = vmatpush1.msra.mxu0 %v596_v8  ;;  %1321 = vmatpush1.msra.mxu1 %v598_v9 }
  0x45   : > { %4131 = vmatmul.mubr.msk.f32.gmra.mxu0 %vm656_vm0, %v4515_v35  ;;  %4135 = vmatmul.mubr.msk.f32.gmra.mxu1 %vm656_vm0, %v4515_v35 }
  0x46   : > { %1233 = vmatprep.subr.mxu0 %v581_v15  ;;  %1322 = vmatprep.subr.mxu1 %v583_v16 }
  0x47   : > { %1234 = vmatpush1.msra.mxu0 %v580_v19  ;;  %1267 = vmatprep.mubr.f32.mxu0 %v4364_v0 }
  0x48   : > { %1323 = vmatpush1.msra.mxu1 %v582_v22  ;;  %1356 = vmatprep.mubr.f32.mxu1 %v4364_v0 }
  0x49   : > { %4136 = vmatmul.mubr.msk.f32.vlgmr.msra.gmra.mxu0 %vm656_vm0, %v4471_v18  ;;  %4140 = vmatmul.mubr.msk.f32.vlgmr.msra.gmra.mxu1 %vm656_vm0, %v4471_v18  ;;  %v635_v18 = vld [vmem:[%s4732_s14 + $0x18] sm:$0xff] }
  0x4a   : > { %1497 = vadd.xlane.f32.xlu0 %v1496_v25  ;;  %1273 = vmatprep.mubr.f32.mxu0 %v4364_v0 }
  0x4b   : > { %1362 = vmatprep.mubr.f32.mxu1 %v4364_v0  ;;  %643 = vperm.xlu1 %4219, %v633_v27  }
  0x4d   : > { %4137 = vmatmul.mubr.msk.f32.gmra.mxu0 %vm656_vm0, %v4484_v23  ;;  %4141 = vmatmul.mubr.msk.f32.gmra.mxu1 %vm656_vm0, %v4484_v23  ;;  %v2833_v23 = vld [vmem:[%s4758_s18] sm:$0xff] }
  0x4e   : > { %1279 = vmatprep.mubr.f32.mxu0 %v4364_v0  ;;  %1368 = vmatprep.mubr.f32.mxu1 %v4364_v0 }
  0x4f   : > { %648 = vperm.xlu1 %4219, %v634_v28  }
  0x51   : > { %4138 = vmatmul.mubr.msk.f32.gmra.mxu0 %vm656_vm0, %v4497_v29  ;;  %4142 = vmatmul.mubr.msk.f32.gmra.mxu1 %vm656_vm0, %v4497_v29  ;;  %v2746_v29 = vld [vmem:[%s4771_s21 + $0x8] sm:$0xff] }
  0x52   : > { %1285 = vmatprep.mubr.f32.mxu0 %v4364_v0  ;;  %1374 = vmatprep.mubr.f32.mxu1 %v4364_v0  ;;  %v2745_v0 = vld [vmem:[%s4771_s21] sm:$0xff] }
  0x53   : > { %653 = vperm.xlu1 %4219, %v635_v18  }
  0x55   : > { %4139 = vmatmul.mubr.msk.f32.gmra.mxu0 %vm656_vm0, %v4515_v35  ;;  %4143 = vmatmul.mubr.msk.f32.gmra.mxu1 %vm656_vm0, %v4515_v35 }
  0x57   : > { %2839 = vperm.xlu1 %4219, %v2833_v23  }
  0x5b   : > { %2756 = vperm.xlu1 %4219, %v2746_v29  }
  0x60   : > { %638 = vperm.xlu0 %4218, %v632_v31  }
  0x64   : > { %2751 = vperm.xlu0 %4218, %v2745_v0  }
  0xc6   : > { %v4789_v61 = vpop.permute.xlu1 %643 }
  0xca   : > { %v4818_v18 = vpop.permute.xlu1 %648 }
  0xd3   : > { %v1498_v32 = vpop.xlane.xlu0 %1497 }
  0xd4   : > { %v1499_v33 = vrot.slane %v1498_v32, 4 }
  0xd6   : > { %v1500_v42 = vadd.f32 %v1499_v33, %v1498_v32 }
  0xd8   : > { %v1501_v1 = vrot.slane %v1500_v42, 2 }
  0xd9   : > { %v735_v34 = vpop.f32.mrf.mxu0  ;;  %v824_v36 = vpop.f32.mrf.mxu1 }
  0xda   : > { %v4810_v22 = vadd.f32 %v1501_v1, %v1500_v42 }
  0xdb   : > { %v4776_v37 = vpop.permute.xlu0 %638  ;;  %v737_v35 = vpop.f32.mrf.mxu0 }
  0xdc   : > { %v4779_v44 = vadd.f32 %v737_v35, %v4776_v37  ;;  %v826_v50 = vpop.f32.mrf.mxu1  ;;  %v4782_v51 = vadd.f32 %v735_v34, %v4776_v37  ;;  %v4785_v56 = vadd.f32 %v824_v36, %v4776_v37 }
  0xdd   : > { %v741_v52 = vpop.f32.mrf.mxu0  ;;  %v4796_v9 = vadd.f32 %v826_v50, %v4776_v37 }
  0xde   : > { %7158 = vst [vmem:[#allocation26_spill] sm:$0xff] %v4779_v44  ;;  %7159 = vst [vmem:[#allocation27_spill] sm:$0xff] %v4782_v51  ;;  %v830_v55 = vpop.f32.mrf.mxu1  ;;  %v1716_v59 = vmul.f32 %v4779_v44, %v4779_v44  ;;  %v1715_v5 = vmul.f32 %v4782_v51, %v4782_v51  ;;  %v1584_v7 = vmul.f32 %v4549_v46, %v4779_v44 }
  0xdf   : > { %7160 = vst [vmem:[#allocation28_spill] sm:$0xff] %v4785_v56  ;;  %v743_v62 = vpop.f32.mrf.mxu0  ;;  %7161 = vst [vmem:[#allocation29_spill] sm:$0xff] %v4796_v9  ;;  %v1583_v13 = vmul.f32 %v4546_v45, %v4782_v51  ;;  %v1717_v15 = vmul.f32 %v4785_v56, %v4785_v56  ;;  %v1515_v16 = vadd.f32 %v4779_v44, %v4782_v51 }
  0xe0   : > { %v832_v4 = vpop.f32.mrf.mxu1  ;;  %v1848_v17 = vmul.f32 %v1716_v59, %v4549_v46  ;;  %v4806_v19 = vadd.f32 %v743_v62, %v4789_v61  ;;  %v1847_v24 = vmul.f32 %v1715_v5, %v4546_v45  ;;  %v1585_v25 = vmul.f32 %v4552_v47, %v4785_v56 }
  0xe1   : > { %v747_v8 = vpop.f32.mrf.mxu0  ;;  %v1647_v27 = vadd.f32 %v1584_v7, %v1583_v13  ;;  %v4816_v28 = vadd.f32 %v741_v52, %v4789_v61  ;;  %v1779_v29 = vadd.f32 %v1716_v59, %v1715_v5  ;;  %v4821_v31 = vadd.f32 %v830_v55, %v4789_v61 }
  0xe2   : > { %v836_v12 = vpop.f32.mrf.mxu1  ;;  %7162 = vst [vmem:[#allocation30_spill] sm:$0xff] %v4806_v19  ;;  %v1849_v32 = vmul.f32 %v1717_v15, %v4552_v47  ;;  %v1911_v33 = vadd.f32 %v1848_v17, %v1847_v24  ;;  %v1516_v34 = vadd.f32 %v1515_v16, %v4785_v56  ;;  %v1718_v36 = vmul.f32 %v4796_v9, %v4796_v9 }
  0xe3   : > { %v749_v10 = vpop.f32.mrf.mxu0  ;;  %7163 = vst [vmem:[#allocation31_spill] sm:$0xff] %v4816_v28  ;;  %7164 = vst [vmem:[#allocation32_spill] sm:$0xff] %v4821_v31  ;;  %v1600_v42 = vmul.f32 %v4549_v46, %v4806_v19  ;;  %v1732_v50 = vmul.f32 %v4806_v19, %v4806_v19  ;;  %v4832_v52 = vadd.f32 %v832_v4, %v4789_v61 }
  0xe4   : > { %v4808_v21 = vpop.f32.mrf.mxu1  ;;  %v1586_v62 = vmul.f32 %v4567_v53, %v4796_v9  ;;  %v1648_v1 = vadd.f32 %v1647_v27, %v1585_v25  ;;  %v1731_v5 = vmul.f32 %v4816_v28, %v4816_v28  ;;  %v1532_v7 = vadd.f32 %v4806_v19, %v4816_v28 }
  0xe5   : > { %v753_v23 = vpop.f32.mrf.mxu0  ;;  %7165 = vst [vmem:[#allocation33_spill] sm:$0xff] %v4832_v52  ;;  %v1780_v16 = vadd.f32 %v1779_v29, %v1717_v15  ;;  %v1599_v17 = vmul.f32 %v4546_v45, %v4816_v28  ;;  %v1733_v4 = vmul.f32 %v4821_v31, %v4821_v31  ;;  %v4846_v24 = vadd.f32 %v747_v8, %v4818_v18  ;;  %v4857_v15 = vpop.permute.xlu1 %653 }
  0xe6   : > { %v842_v0 = vpop.f32.mrf.mxu1  ;;  %v4851_v25 = vadd.f32 %v1516_v34, %v4796_v9  ;;  %v1850_v27 = vmul.f32 %v1718_v36, %v4567_v53  ;;  %v1912_v56 = vadd.f32 %v1911_v33, %v1849_v32  ;;  %v4855_v19 = vadd.f32 %v749_v10, %v4818_v18 }
  0xe7   : > { %v755_v35 = vpop.f32.mrf.mxu0  ;;  %7166 = vst [vmem:[#allocation34_spill] sm:$0xff] %v4846_v24  ;;  %v1601_v28 = vmul.f32 %v4552_v47, %v4821_v31  ;;  %v1664_v8 = vadd.f32 %v1600_v42, %v1599_v17  ;;  %v1864_v51 = vmul.f32 %v1732_v50, %v4549_v46  ;;  %v1734_v34 = vmul.f32 %v4832_v52, %v4832_v52 }
  0xe8   : > { %v844_v55 = vpop.f32.mrf.mxu1  ;;  %7167 = vst [vmem:[#allocation35_spill] sm:$0xff] %v4855_v19  ;;  %v4868_v44 = vadd.f32 %v1648_v1, %v1586_v62  ;;  %v1863_v10 = vmul.f32 %v1731_v5, %v4546_v45  ;;  %v1796_v32 = vadd.f32 %v1732_v50, %v1731_v5  ;;  %v1533_v33 = vadd.f32 %v1532_v7, %v4821_v31 }
  0xe9   : > { %v913_v13 = vpop.f32.mrf.mxu0  ;;  %v4874_v48 = vadd.f32 %v1780_v16, %v1718_v36  ;;  %v1865_v42 = vmul.f32 %v1733_v4, %v4552_v47  ;;  %v1747_v17 = vmul.f32 %v4846_v24, %v4846_v24  ;;  %v4880_v3 = vadd.f32 %v753_v23, %v4857_v15 }
  0xea   : > { %v4848_v59 = vpop.f32.mrf.mxu1  ;;  %v4884_v62 = vadd.f32 %v1912_v56, %v1850_v27  ;;  %v1602_v50 = vmul.f32 %v4567_v53, %v4832_v52  ;;  %v4889_v1 = vadd.f32 %v836_v12, %v4818_v18  ;;  %v1748_v36 = vmul.f32 %v4855_v19, %v4855_v19 }
  0xeb   : > { %v4859_v29 = vpop.f32.mrf.mxu0  ;;  %7168 = vst [vmem:[#allocation36_spill] sm:$0xff] %v4880_v3  ;;  %v1928_v7 = vadd.f32 %v1864_v51, %v1863_v10  ;;  %v1665_v16 = vadd.f32 %v1664_v8, %v1601_v28  ;;  %v1866_v23 = vmul.f32 %v1734_v34, %v4567_v53  ;;  %v4897_v31 = vadd.f32 %v842_v0, %v4857_v15 }
  0xec   : > { %v4866_v9 = vpop.f32.mrf.mxu1  ;;  %7169 = vst [vmem:[#allocation37_spill] sm:$0xff] %v4889_v1  ;;  %v4902_v27 = vadd.f32 %v1533_v33, %v4832_v52  ;;  %v1797_v40 = vadd.f32 %v1796_v32, %v1733_v4  ;;  %v1615_v12 = vmul.f32 %v4546_v45, %v4846_v24  ;;  %v1616_v38 = vmul.f32 %v4549_v46, %v4855_v19 }
  0xed   : > { %v4872_v58 = vpop.f32.mrf.mxu0  ;;  %7170 = vst [vmem:[#allocation38_spill] sm:$0xff] %v4897_v31  ;;  %v1879_v51 = vmul.f32 %v1747_v17, %v4546_v45  ;;  %v1763_v28 = vmul.f32 %v4880_v3, %v4880_v3  ;;  %v4915_v0 = vmul.f32 %v4897_v31, %v4897_v31  ;;  %v4918_v8 = vadd.f32 %v755_v35, %v4857_v15 }
  0xee   : > { %v4882_v54 = vpop.f32.mrf.mxu1  ;;  %v1617_v4 = vmul.f32 %v4552_v47, %v4889_v1  ;;  %v1749_v10 = vmul.f32 %v4889_v1, %v4889_v1  ;;  %v1880_v32 = vmul.f32 %v1748_v36, %v4549_v46  ;;  %v4926_v33 = vadd.f32 %v844_v55, %v4857_v15 }
  0xef   : > { %v4893_v5 = vpop.f32.mrf.mxu0  ;;  %7171 = vst [vmem:[#allocation39_spill] sm:$0xff] %v4918_v8  ;;  %v4930_v39 = vadd.f32 %v1665_v16, %v1602_v50  ;;  %v1929_v11 = vadd.f32 %v1928_v7, %v1865_v42  ;;  %v4934_v35 = vadd.f32 %v4808_v21, %v4818_v18  ;;  %v1764_v63 = vmul.f32 %v4918_v8, %v4918_v8 }
  0xf0   : > { %v4899_v56 = vpop.f32.mrf.mxu1  ;;  %7172 = vst [vmem:[#allocation40_spill] sm:$0xff] %v4926_v33  ;;  %v1549_v49 = vadd.f32 %v4855_v19, %v4846_v24  ;;  %v1681_v41 = vadd.f32 %v1616_v38, %v1615_v12  ;;  %v1813_v55 = vadd.f32 %v1748_v36, %v1747_v17  ;;  %v4943_v30 = vadd.f32 %v913_v13, %v4776_v37 }
  0xf1   : > { %v4908_v43 = vpop.f32.mrf.mxu0  ;;  %7173 = vst [vmem:[#allocation41_spill] sm:$0xff] %v4934_v35  ;;  %v1895_v50 = vmul.f32 %v1763_v28, %v4546_v45  ;;  %v1897_v42 = vmul.f32 %v4915_v0, %v4552_v47  ;;  %v1896_v21 = vmul.f32 %v1764_v63, %v4549_v46  ;;  %v4951_v7 = vmul.f32 %v4926_v33, %v4926_v33 }
  0xf2   : > { %v4938_v60 = vpop.f32.mrf.mxu1  ;;  %7175 = vst [vmem:[#allocation43_spill] sm:$0xff] %v4943_v30  ;;  %v4953_v16 = vadd.f32 %v1797_v40, %v1734_v34  ;;  %v1881_v24 = vmul.f32 %v1749_v10, %v4552_v47  ;;  %v1945_v38 = vadd.f32 %v1880_v32, %v1879_v51  ;;  %v1632_v13 = vmul.f32 %v4549_v46, %v4918_v8 }
  0xf3   : > { %v4928_v52 = vpop.f32.mrf.mxu0  ;;  %7174 = vst [vmem:[#allocation42_spill] sm:$0xff] %v4938_v60  ;;  %v4960_v36 = vadd.f32 %v1929_v11, %v1866_v23  ;;  %v1618_v12 = vmul.f32 %v4567_v53, %v4934_v35  ;;  %v1750_v19 = vmul.f32 %v4934_v35, %v4934_v35  ;;  %v1962_v26 = vadd.f32 %v1896_v21, %v1895_v50 }
  0xf4   : > { %v4966_v20 = vpop.f32.mrf.mxu1  ;;  %v1550_v40 = vadd.f32 %v1549_v49, %v4889_v1  ;;  %v1682_v34 = vadd.f32 %v1681_v41, %v1617_v4  ;;  %v1631_v51 = vmul.f32 %v4546_v45, %v4880_v3  ;;  %v1719_v32 = vmul.f32 %v4943_v30, %v4943_v30 }
  0xf5   : > { %v4958_v17 = vpop.f32.mrf.mxu0  ;;  %v1814_v11 = vadd.f32 %v1813_v55, %v1749_v10  ;;  %v1898_v23 = vmul.f32 %v4951_v7, %v4567_v53  ;;  %v1963_v46 = vadd.f32 %v1962_v26, %v1897_v42  ;;  %v4977_v60 = vadd.f32 %v4859_v29, %v4776_v37 }
  0xf6   : > { %v1946_v50 = vadd.f32 %v1945_v38, %v1881_v24  ;;  %v1633_v49 = vmul.f32 %v4552_v47, %v4897_v31  ;;  %v1566_v41 = vadd.f32 %v4918_v8, %v4880_v3  ;;  %v1698_v4 = vadd.f32 %v1632_v13, %v1631_v51  ;;  %v4992_v24 = vpop.f32.mrf.mxu1 }
  0xf7   : > { %7176 = vst [vmem:[#allocation44_spill] sm:$0xff] %v4977_v60  ;;  %v4983_v21 = vpop.f32.mrf.mxu0  ;;  %v1882_v10 = vmul.f32 %v1750_v19, %v4567_v53  ;;  %v4986_v55 = vadd.f32 %v1963_v46, %v1898_v23  ;;  %v1518_v26 = vadd.f32 %v4851_v25, %v4943_v30  ;;  %v1587_v29 = vmul.f32 %v4579_v57, %v4943_v30 }
  0xf8   : > { %v4995_v42 = vadd.f32 %v1550_v40, %v4934_v35  ;;  %v1830_v38 = vadd.f32 %v1764_v63, %v1763_v28  ;;  %v1851_v13 = vmul.f32 %v1719_v32, %v4579_v57  ;;  %v5000_v51 = vadd.f32 %v4872_v58, %v4789_v61 }
  0xf9   : > { %v5002_v46 = vadd.f32 %v1682_v34, %v1618_v12  ;;  %v5004_v23 = vadd.f32 %v1814_v11, %v1750_v19  ;;  %v5008_v25 = vadd.f32 %v4848_v59, %v4776_v37  ;;  %v1720_v3 = vmul.f32 %v4977_v60, %v4977_v60  ;;  %v5019_v12 = vpop.f32.mrf.mxu0 }
  0xfa   : > { %7177 = vst [vmem:[#allocation45_spill] sm:$0xff] %v5000_v51  ;;  %v5012_v40 = vadd.f32 %v1946_v50, %v1882_v10  ;;  %v1567_v63 = vadd.f32 %v1566_v41, %v4897_v31  ;;  %v1699_v28 = vadd.f32 %v1698_v4, %v1633_v49  ;;  %v5017_v58 = vadd.f32 %v4866_v9, %v4776_v37  ;;  %v5026_v50 = vpop.f32.mrf.mxu1 }
  0xfb   : > { %7178 = vst [vmem:[#allocation46_spill] sm:$0xff] %v5008_v25  ;;  %v1650_v19 = vadd.f32 %v4868_v44, %v1587_v29  ;;  %v1782_v34 = vadd.f32 %v4874_v48, %v1719_v32  ;;  %v1519_v59 = vadd.f32 %v1518_v26, %v4977_v60  ;;  %v1588_v11 = vmul.f32 %v4595_v2, %v4977_v60 }
  0xfc   : > { %7179 = vst [vmem:[#allocation47_spill] sm:$0xff] %v5017_v58  ;;  %v1634_v49 = vmul.f32 %v4567_v53, %v4926_v33  ;;  %v1831_v41 = vadd.f32 %v1830_v38, %v4915_v0  ;;  %v1914_v9 = vadd.f32 %v4884_v62, %v1851_v13  ;;  %v1603_v4 = vmul.f32 %v4579_v57, %v5000_v51  ;;  %v5052_v38 = vpop.f32.mrf.mxu0  ;;  %v5057_v1 = vpop.f32.mrf.mxu1 }
  0xfd   : > { %v1721_v48 = vmul.f32 %v5008_v25, %v5008_v25  ;;  %v1852_v44 = vmul.f32 %v1720_v3, %v4595_v2  ;;  %v1735_v32 = vmul.f32 %v5000_v51, %v5000_v51  ;;  %v5041_v10 = vadd.f32 %v4893_v5, %v4789_v61 }
  0xfe   : > { %v5044_v26 = vadd.f32 %v1567_v63, %v4926_v33  ;;  %v5046_v0 = vadd.f32 %v1699_v28, %v1634_v49  ;;  %v1589_v62 = vmul.f32 %v4605_v6, %v5008_v25  ;;  %v1722_v29 = vmul.f32 %v5017_v58, %v5017_v58 }
  0xff   : > { %7180 = vst [vmem:[#allocation48_spill] sm:$0xff] %v5041_v10  ;;  %v1651_v13 = vadd.f32 %v1650_v19, %v1588_v11  ;;  %v1783_v31 = vadd.f32 %v1782_v34, %v1720_v3  ;;  %v1520_v8 = vadd.f32 %v1519_v59, %v5008_v25  ;;  %v1535_v5 = vadd.f32 %v4902_v27, %v5000_v51  ;;  %v5091_v51 = vpop.f32.mrf.mxu1 }
 0x100   : > { %v1667_v63 = vadd.f32 %v4930_v39, %v1603_v4  ;;  %v5062_v28 = vadd.f32 %v4882_v54, %v4789_v61  ;;  %v1604_v49 = vmul.f32 %v4595_v2, %v5041_v10  ;;  %v5068_v19 = vadd.f32 %v4908_v43, %v4818_v18  ;;  %v5084_v4 = vpop.f32.mrf.mxu0 }
 0x101   : > { %v5071_v3 = vadd.f32 %v1831_v41, %v4951_v7  ;;  %v1853_v27 = vmul.f32 %v1721_v48, %v4605_v6  ;;  %v1915_v34 = vadd.f32 %v1914_v9, %v1852_v44  ;;  %v1867_v59 = vmul.f32 %v1735_v32, %v4579_v57 }
 0x102   : > { %7181 = vst [vmem:[#allocation49_spill] sm:$0xff] %v5062_v28  ;;  %7182 = vst [vmem:[#allocation50_spill] sm:$0xff] %v5068_v19  ;;  %v1590_v39 = vmul.f32 %v4621_v14, %v5017_v58  ;;  %v1799_v54 = vadd.f32 %v4953_v16, %v1735_v32  ;;  %v1736_v11 = vmul.f32 %v5041_v10, %v5041_v10 }
 0x103   : > { %v5082_v43 = vadd.f32 %v4899_v56, %v4789_v61  ;;  %v5087_v7 = vadd.f32 %v1520_v8, %v5017_v58  ;;  %v1652_v41 = vadd.f32 %v1651_v13, %v1589_v62  ;;  %v1854_v9 = vmul.f32 %v1722_v29, %v4621_v14 }
 0x104   : > { %v1536_v44 = vadd.f32 %v1535_v5, %v5041_v10  ;;  %v1784_v16 = vadd.f32 %v1783_v31, %v1721_v48  ;;  %v1605_v32 = vmul.f32 %v4605_v6, %v5062_v28  ;;  %v1668_v33 = vadd.f32 %v1667_v63, %v1604_v49  ;;  %v5110_v49 = vpop.f32.mrf.mxu0 }
 0x105   : > { %7183 = vst [vmem:[#allocation51_spill] sm:$0xff] %v5082_v43  ;;  %v1751_v56 = vmul.f32 %v5068_v19, %v5068_v19  ;;  %v1916_v35 = vadd.f32 %v1915_v34, %v1853_v27  ;;  %v1931_v25 = vadd.f32 %v4960_v36, %v1867_v59  ;;  %v1737_v8 = vmul.f32 %v5062_v28, %v5062_v28  ;;  %v5121_v59 = vpop.f32.mrf.mxu1 }
 0x106   : > { %v7184_v62 = vrot.slane %v4810_v22, 1  ;;  %v1800_v5 = vadd.f32 %v1799_v54, %v1736_v11  ;;  %v1868_v31 = vmul.f32 %v1736_v11, %v4595_v2  ;;  %v1738_v48 = vmul.f32 %v5082_v43, %v5082_v43 }
 0x107   : > { %v5108_v63 = vadd.f32 %v4928_v52, %v4818_v18  ;;  %v5112_v36 = vadd.f32 %v1652_v41, %v1590_v39  ;;  %v1537_v27 = vadd.f32 %v1536_v44, %v5062_v28  ;;  %v1619_v34 = vmul.f32 %v4579_v57, %v5068_v19  ;;  %v7187_v39 = vld [vmem:[#allocation42_spill] sm:$0xff] }
 0x108   : > { %v1504_v13 = vadd.f32 %v7184_v62, %v4810_v22  ;;  %v5119_v22 = vadd.f32 %v4958_v17, %v4857_v15  ;;  %v5123_v54 = vadd.f32 %v1784_v16, %v1722_v29  ;;  %v1669_v52 = vadd.f32 %v1668_v33, %v1605_v32  ;;  %v5142_v32 = vpop.f32.mrf.mxu0 }
 0x109   : > { %7185 = vst [vmem:[#allocation52_spill] sm:$0xff] %v5108_v63  ;;  %v1883_v11 = vmul.f32 %v1751_v56, %v4579_v57  ;;  %v5128_v41 = vadd.f32 %v7187_v39, %v4818_v18  ;;  %v5130_v44 = vadd.f32 %v1916_v35, %v1854_v9  ;;  %v1869_v62 = vmul.f32 %v1737_v8, %v4605_v6 }
 0x10a   : > { %4201 = vpush %v1504_v13  ;;  %7186 = vst [vmem:[#allocation53_spill] sm:$0xff] %v5119_v22  ;;  %v1606_v13 = vmul.f32 %v4621_v14, %v5082_v43  ;;  %v1752_v17 = vmul.f32 %v5108_v63, %v5108_v63  ;;  %v1932_v28 = vadd.f32 %v1931_v25, %v1868_v31 }
 0x10b   : > { %7188 = vst [vmem:[#allocation42_spill] sm:$0xff] %v5128_v41  ;;  %v1801_v29 = vadd.f32 %v1800_v5, %v1737_v8  ;;  %v1870_v33 = vmul.f32 %v1738_v48, %v4621_v14  ;;  %v5140_v16 = vadd.f32 %v4992_v24, %v4857_v15  ;;  %v5145_v35 = vadd.f32 %v1537_v27, %v5082_v43  ;;  %v5152_v8 = vpop.f32.mrf.mxu1 }
 0x10c   : > { %v1552_v9 = vadd.f32 %v4995_v42, %v5068_v19  ;;  %v1684_v39 = vadd.f32 %v5002_v46, %v1619_v34  ;;  %v1767_v25 = vmul.f32 %v5119_v22, %v5119_v22  ;;  %v5154_v5 = vadd.f32 %v1669_v52, %v1606_v13 }
 0x10d   : > { %7189 = vst [vmem:[#allocation54_spill] sm:$0xff] %v5140_v16  ;;  %v1816_v24 = vadd.f32 %v5004_v23, %v1751_v56  ;;  %v1948_v31 = vadd.f32 %v5012_v40, %v1883_v11  ;;  %v1753_v27 = vmul.f32 %v5128_v41, %v5128_v41  ;;  %v1620_v43 = vmul.f32 %v4595_v2, %v5108_v63  ;;  %v5176_v56 = vpop.f32.mrf.mxu0 }
 0x10e   : > { %v1884_v42 = vmul.f32 %v1752_v17, %v4595_v2  ;;  %v1899_v46 = vmul.f32 %v1767_v25, %v4579_v57  ;;  %v5166_v34 = vadd.f32 %v4983_v21, %v4857_v15  ;;  %v5168_v52 = vadd.f32 %v1801_v29, %v1738_v48  ;;  %v5185_v48 = vpop.f32.mrf.mxu1 }
 0x10f   : > { %v1933_v13 = vadd.f32 %v1932_v28, %v1869_v62  ;;  %v1769_v23 = vmul.f32 %v5140_v16, %v5140_v16  ;;  %v5174_v40 = vadd.f32 %v5026_v50, %v4857_v15  ;;  %v1621_v11 = vmul.f32 %v4605_v6, %v5128_v41 }
 0x110   : > { %7190 = vst [vmem:[#allocation55_spill] sm:$0xff] %v5166_v34  ;;  %v1569_v19 = vadd.f32 %v5044_v26, %v5119_v22  ;;  %v1635_v21 = vmul.f32 %v4579_v57, %v5119_v22  ;;  %v1965_v28 = vadd.f32 %v4986_v55, %v1899_v46  ;;  %v1885_v62 = vmul.f32 %v1753_v27, %v4605_v6 }
 0x111   : > { %7191 = vst [vmem:[#allocation56_spill] sm:$0xff] %v5174_v40  ;;  %v1553_v50 = vadd.f32 %v1552_v9, %v5108_v63  ;;  %v5191_v29 = vadd.f32 %v4966_v20, %v4818_v18  ;;  %v1768_v10 = vmul.f32 %v5166_v34, %v5166_v34  ;;  %v1685_v30 = vadd.f32 %v1684_v39, %v1620_v43  ;;  %v5207_v63 = vpop.f32.mrf.mxu0 }
 0x112   : > { %v1817_v26 = vadd.f32 %v1816_v24, %v1752_v17  ;;  %v1949_v58 = vadd.f32 %v1948_v31, %v1884_v42  ;;  %v5197_v22 = vmul.f32 %v5174_v40, %v5174_v40  ;;  %v5199_v55 = vadd.f32 %v1933_v13, %v1870_v33  ;;  %v5214_v24 = vpop.f32.mrf.mxu1 }
 0x113   : > { %7192 = vst [vmem:[#allocation57_spill] sm:$0xff] %v5191_v29  ;;  %v1901_v46 = vmul.f32 %v1769_v23, %v4605_v6  ;;  %v1900_v9 = vmul.f32 %v1768_v10, %v4595_v2  ;;  %v5205_v20 = vadd.f32 %v5019_v12, %v4776_v37  ;;  %v1701_v43 = vadd.f32 %v5046_v0, %v1635_v21 }
 0x114   : > { %v1833_v17 = vadd.f32 %v5071_v3, %v1767_v25  ;;  %v1570_v39 = vadd.f32 %v1569_v19, %v5166_v34  ;;  %v1636_v33 = vmul.f32 %v4595_v2, %v5166_v34  ;;  %v1554_v31 = vadd.f32 %v1553_v50, %v5128_v41  ;;  %v5231_v41 = vpop.f32.mrf.mxu0 }
 0x115   : > { %7193 = vst [vmem:[#allocation58_spill] sm:$0xff] %v5205_v20  ;;  %v1622_v42 = vmul.f32 %v4621_v14, %v5191_v29  ;;  %v1754_v12 = vmul.f32 %v5191_v29, %v5191_v29  ;;  %v1966_v13 = vadd.f32 %v1965_v28, %v1900_v9  ;;  %v1686_v60 = vadd.f32 %v1685_v30, %v1621_v11  ;;  %v5236_v28 = vpop.f32.mrf.mxu1 }
 0x116   : > { %v1818_v0 = vadd.f32 %v1817_v26, %v1753_v27  ;;  %v1950_v21 = vadd.f32 %v1949_v58, %v1885_v62  ;;  %v1902_v19 = vmul.f32 %v5197_v22, %v4621_v14  ;;  %v1522_v25 = vadd.f32 %v5087_v7, %v5205_v20  ;;  %v7195_v26 = vld [vmem:[#allocation18_spill] sm:$0xff] }
 0x117   : > { %v1967_v3 = vadd.f32 %v1966_v13, %v1901_v46  ;;  %v1723_v50 = vmul.f32 %v5205_v20, %v5205_v20  ;;  %v5229_v34 = vadd.f32 %v5052_v38, %v4776_v37  ;;  %v1637_v30 = vmul.f32 %v4605_v6, %v5140_v16 }
 0x118   : > { %v1702_v58 = vadd.f32 %v1701_v43, %v1636_v33  ;;  %v1834_v27 = vadd.f32 %v1833_v17, %v1768_v10  ;;  %v1571_v11 = vadd.f32 %v1570_v39, %v5140_v16  ;;  %v1886_v7 = vmul.f32 %v1754_v12, %v4621_v14 }
 0x119   : > { %7194 = vst [vmem:[#allocation59_spill] sm:$0xff] %v5229_v34  ;;  %v5239_v62 = vadd.f32 %v1967_v3, %v1902_v19  ;;  %v1591_v46 = vmul.f32 %v7195_v26, %v5205_v20  ;;  %v5245_v38 = vadd.f32 %v5057_v1, %v4776_v37  ;;  %v1555_v9 = vadd.f32 %v1554_v31, %v5191_v29  ;;  %v5262_v19 = vpop.f32.mrf.mxu0  ;;  %v7198_v3 = vld [vmem:[#allocation19_spill] sm:$0xff] }
 0x11a   : > { %v5248_v13 = vadd.f32 %v1686_v60, %v1622_v42  ;;  %v5250_v10 = vadd.f32 %v1818_v0, %v1754_v12  ;;  %v5254_v43 = vadd.f32 %v5084_v4, %v4789_v61  ;;  %v5256_v17 = vadd.f32 %v1950_v21, %v1886_v7  ;;  %v5267_v4 = vpop.f32.mrf.mxu1 }
 0x11b   : > { %7196 = vst [vmem:[#allocation60_spill] sm:$0xff] %v5245_v38  ;;  %v1855_v39 = vmul.f32 %v1723_v50, %v7195_v26  ;;  %v1523_v33 = vadd.f32 %v1522_v25, %v5229_v34  ;;  %v1724_v1 = vmul.f32 %v5229_v34, %v5229_v34  ;;  %v1572_v60 = vadd.f32 %v1571_v11, %v5174_v40 }
 0x11c   : > { %7197 = vst [vmem:[#allocation61_spill] sm:$0xff] %v5254_v43  ;;  %v1638_v31 = vmul.f32 %v4621_v14, %v5174_v40  ;;  %v1703_v42 = vadd.f32 %v1702_v58, %v1637_v30  ;;  %v1835_v12 = vadd.f32 %v1834_v27, %v1769_v23  ;;  %v1654_v0 = vadd.f32 %v5112_v36, %v1591_v46  ;;  %v7200_v30 = vld [vmem:[#allocation20_spill] sm:$0xff] }
 0x11d   : > { %v5272_v21 = vmul.f32 %v5245_v38, %v5245_v38  ;;  %v1592_v25 = vmul.f32 %v7198_v3, %v5229_v34  ;;  %v5278_v7 = vadd.f32 %v5091_v51, %v4776_v37  ;;  %v1786_v11 = vadd.f32 %v5123_v54, %v1723_v50  ;;  %v5296_v50 = vpop.f32.mrf.mxu0 }
 0x11e   : > { %v5283_v23 = vmul.f32 %v7200_v30, %v5245_v38  ;;  %v1739_v36 = vmul.f32 %v5254_v43, %v5254_v43  ;;  %v5289_v58 = vadd.f32 %v5110_v49, %v4789_v61  ;;  %v1918_v27 = vadd.f32 %v5130_v44, %v1855_v39  ;;  %v5310_v39 = vpop.f32.mrf.mxu1 }
 0x11f   : > { %7199 = vst [vmem:[#allocation62_spill] sm:$0xff] %v5278_v7  ;;  %v1856_v46 = vmul.f32 %v1724_v1, %v7198_v3  ;;  %v1524_v51 = vadd.f32 %v1523_v33, %v5245_v38  ;;  %v1539_v54 = vadd.f32 %v5145_v35, %v5254_v43  ;;  %v5298_v20 = vadd.f32 %v1703_v42, %v1638_v31 }
 0x120   : > { %7201 = vst [vmem:[#allocation63_spill] sm:$0xff] %v5289_v58  ;;  %v1607_v34 = vmul.f32 %v7195_v26, %v5254_v43  ;;  %v5304_v49 = vadd.f32 %v5121_v59, %v4789_v61  ;;  %v5308_v44 = vadd.f32 %v5142_v32, %v4818_v18  ;;  %v5313_v33 = vadd.f32 %v1835_v12, %v5197_v22 }
 0x121   : > { %v5317_v35 = vmul.f32 %v5272_v21, %v7200_v30  ;;  %v5319_v31 = vadd.f32 %v1654_v0, %v1592_v25  ;;  %v5323_v42 = vmul.f32 %v5278_v7, %v5278_v7  ;;  %v5325_v59 = vadd.f32 %v1786_v11, %v1724_v1  ;;  %v7205_v25 = vld [vmem:[#allocation21_spill] sm:$0xff]  ;;  %v5344_v11 = vpop.f32.mrf.mxu0 }
 0x122   : > { %7202 = vst [vmem:[#allocation64_spill] sm:$0xff] %v5304_v49  ;;  %7203 = vst [vmem:[#allocation65_spill] sm:$0xff] %v5308_v44  ;;  %v1871_v32 = vmul.f32 %v1739_v36, %v7195_v26  ;;  %v1740_v43 = vmul.f32 %v5289_v58, %v5289_v58  ;;  %v5332_v22 = vadd.f32 %v5152_v8, %v4789_v61 }
 0x123   : > { %v5334_v12 = vadd.f32 %v1918_v27, %v1856_v46  ;;  %v5337_v0 = vadd.f32 %v1524_v51, %v5278_v7  ;;  %v5341_v38 = vmul.f32 %v7205_v25, %v5278_v7  ;;  %v1540_v1 = vadd.f32 %v1539_v54, %v5289_v58  ;;  %v5355_v46 = vpop.f32.mrf.mxu1 }
 0x124   : > { %7204 = vst [vmem:[#allocation66_spill] sm:$0xff] %v5332_v22  ;;  %v1671_v16 = vadd.f32 %v5154_v5, %v1607_v34  ;;  %v5349_v40 = vmul.f32 %v5304_v49, %v5304_v49  ;;  %v1608_v8 = vmul.f32 %v7198_v3, %v5289_v58  ;;  %v1755_v27 = vmul.f32 %v5308_v44, %v5308_v44 }
 0x125   : > { %v5359_v51 = vmul.f32 %v5323_v42, %v7205_v25  ;;  %v1803_v54 = vadd.f32 %v5168_v52, %v1739_v36  ;;  %v1556_v5 = vadd.f32 %v1555_v9, %v5308_v44  ;;  %v5365_v34 = vadd.f32 %v5176_v56, %v4818_v18  ;;  %v1277_v36 = vpop.f32.mrf.mxu0  ;;  %v1364_v2 = vpop.f32.mrf.mxu1 }
 0x126   : > { %v1935_v7 = vadd.f32 %v5199_v55, %v1871_v32  ;;  %v1872_v58 = vmul.f32 %v1740_v43, %v7198_v3  ;;  %v5371_v29 = vmul.f32 %v5332_v22, %v5332_v22  ;;  %v5375_v6 = vadd.f32 %v5207_v63, %v4857_v15 }
 0x127   : > { %7206 = vst [vmem:[#allocation67_spill] sm:$0xff] %v5365_v34  ;;  %v5379_v52 = vmul.f32 %v7200_v30, %v5304_v49  ;;  %v1541_v9 = vadd.f32 %v1540_v1, %v5304_v49  ;;  %v5384_v56 = vmul.f32 %v7205_v25, %v5332_v22  ;;  %v1623_v55 = vmul.f32 %v7195_v26, %v5308_v44 }
 0x128   : > { %7207 = vst [vmem:[#allocation68_spill] sm:$0xff] %v5375_v6  ;;  %v5390_v32 = vmul.f32 %v5349_v40, %v7200_v30  ;;  %v5392_v63 = vadd.f32 %v1671_v16, %v1608_v8  ;;  %v1887_v57 = vmul.f32 %v1755_v27, %v7195_v26  ;;  %v1573_v14 = vadd.f32 %v1572_v60, %v5375_v6 }
 0x129   : > { %v1557_v1 = vadd.f32 %v1556_v5, %v5365_v34  ;;  %v1756_v49 = vmul.f32 %v5365_v34, %v5365_v34  ;;  %v1771_v44 = vmul.f32 %v5375_v6, %v5375_v6  ;;  %v5403_v47 = vadd.f32 %v5231_v41, %v4857_v15 }
 0x12a   : > { %v5405_v45 = vadd.f32 %v1803_v54, %v1740_v43  ;;  %v5407_v16 = vadd.f32 %v1935_v7, %v1872_v58  ;;  %v5411_v60 = vmul.f32 %v5371_v29, %v7205_v25  ;;  %v5415_v8 = vadd.f32 %v5185_v48, %v4818_v18  ;;  %v1281_v7 = vpop.f32.mrf.mxu0 }
 0x12b   : > { %7208 = vst [vmem:[#allocation69_spill] sm:$0xff] %v5403_v47  ;;  %v5418_v5 = vadd.f32 %v1541_v9, %v5332_v22  ;;  %v1688_v53 = vadd.f32 %v5248_v13, %v1623_v55  ;;  %v5423_v41 = vadd.f32 %v5214_v24, %v4818_v18  ;;  %v1903_v43 = vmul.f32 %v1771_v44, %v7195_v26  ;;  %v5432_v22 = vpop.f32.mrf.mxu1 }
 0x12c   : > { %7209 = vst [vmem:[#allocation70_spill] sm:$0xff] %v5415_v8  ;;  %v1820_v58 = vadd.f32 %v5250_v10, %v1755_v27  ;;  %v1624_v54 = vmul.f32 %v7198_v3, %v5365_v34  ;;  %v1574_v48 = vadd.f32 %v1573_v14, %v5403_v47  ;;  %v1772_v9 = vmul.f32 %v5403_v47, %v5403_v47 }
 0x12d   : > { %7210 = vst [vmem:[#allocation71_spill] sm:$0xff] %v5423_v41  ;;  %v1952_v13 = vadd.f32 %v5256_v17, %v1887_v57  ;;  %v1888_v24 = vmul.f32 %v1756_v49, %v7198_v3  ;;  %v1558_v55 = vadd.f32 %v1557_v1, %v5415_v8  ;;  %v1969_v25 = vadd.f32 %v5239_v62, %v1903_v43  ;;  %v1283_v1 = vpop.f32.mrf.mxu0 }
 0x12e   : > { %v1639_v10 = vmul.f32 %v7195_v26, %v5375_v6  ;;  %v5442_v27 = vadd.f32 %v5236_v28, %v4857_v15  ;;  %v1904_v14 = vmul.f32 %v1772_v9, %v7198_v3  ;;  %v5447_v34 = vadd.f32 %v5267_v4, %v4857_v15 }
 0x12f   : > { %v5451_v57 = vmul.f32 %v7200_v30, %v5415_v8  ;;  %v5455_v62 = vmul.f32 %v5415_v8, %v5415_v8  ;;  %v1837_v17 = vadd.f32 %v5313_v33, %v1771_v44  ;;  %v5460_v28 = vadd.f32 %v5262_v19, %v4776_v37  ;;  %v1370_v30 = vpop.f32.mrf.mxu1 }
 0x130   : > { %7211 = vst [vmem:[#allocation72_spill] sm:$0xff] %v5442_v27  ;;  %7212 = vst [vmem:[#allocation73_spill] sm:$0xff] %v5447_v34  ;;  %v5462_v43 = vadd.f32 %v1688_v53, %v1624_v54  ;;  %v5466_v4 = vmul.f32 %v5423_v41, %v5423_v41  ;;  %v5468_v6 = vadd.f32 %v1969_v25, %v1904_v14  ;;  %v7218_v54 = vld [vmem:[#allocation22_spill] sm:$0xff] }
 0x131   : > { %7213 = vst [vmem:[#allocation74_spill] sm:$0xff] %v5451_v57  ;;  %7214 = vst [vmem:[#allocation75_spill] sm:$0xff] %v5460_v28  ;;  %v1575_v26 = vadd.f32 %v1574_v48, %v5442_v27  ;;  %v1821_v8 = vadd.f32 %v1820_v58, %v1756_v49  ;;  %v5471_v57 = vadd.f32 %v1952_v13, %v1888_v24  ;;  %v1287_v13 = vpop.f32.mrf.mxu0 }
 0x132   : > { %7215 = vst [vmem:[#allocation76_spill] sm:$0xff] %v5468_v6  ;;  %v5474_v44 = vadd.f32 %v1558_v55, %v5423_v41  ;;  %v5478_v19 = vadd.f32 %v5296_v50, %v4776_v37  ;;  %v5481_v53 = vadd.f32 %v5298_v20, %v1639_v10  ;;  %v5485_v33 = vmul.f32 %v5442_v27, %v5442_v27  ;;  %v1372_v10 = vpop.f32.mrf.mxu1 }
 0x133   : > { %v5489_v25 = vmul.f32 %v5447_v34, %v5447_v34  ;;  %v5492_v49 = vadd.f32 %v1281_v7, %v4818_v18  ;;  %v5494_v58 = vadd.f32 %v1837_v17, %v1772_v9  ;;  %v1595_v50 = vmul.f32 %v7218_v54, %v5460_v28 }
 0x134   : > { %7216 = vst [vmem:[#allocation77_spill] sm:$0xff] %v5478_v19  ;;  %v1727_v20 = vmul.f32 %v5460_v28, %v5460_v28  ;;  %v1526_v48 = vadd.f32 %v5337_v0, %v5460_v28  ;;  %v1576_v24 = vadd.f32 %v1575_v26, %v5447_v34  ;;  %v5505_v55 = vadd.f32 %v5310_v39, %v4776_v37  ;;  %v1289_v28 = vpop.f32.mrf.mxu0 }
 0x135   : > { %7217 = vst [vmem:[#allocation78_spill] sm:$0xff] %v5492_v49  ;;  %v5509_v7 = vadd.f32 %v5355_v46, %v4776_v37  ;;  %v5513_v9 = vadd.f32 %v5344_v11, %v4789_v61  ;;  %v5516_v14 = vadd.f32 %v1364_v2, %v4789_v61  ;;  %v5519_v0 = vadd.f32 %v1277_v36, %v4789_v61 }
 0x136   : > { %7219 = vst [vmem:[#allocation79_spill] sm:$0xff] %v5505_v55  ;;  %v1527_v26 = vadd.f32 %v1526_v48, %v5478_v19  ;;  %v1656_v39 = vadd.f32 %v5319_v31, %v5283_v23  ;;  %v5526_v37 = vmul.f32 %v5492_v49, %v5492_v49  ;;  %v5529_v46 = vadd.f32 %v1370_v30, %v4818_v18  ;;  %v7227_v23 = vld [vmem:[#allocation23_spill] sm:$0xff] }
 0x137   : > { %7220 = vst [vmem:[#allocation80_spill] sm:$0xff] %v5509_v7  ;;  %7221 = vst [vmem:[#allocation81_spill] sm:$0xff] %v5513_v9  ;;  %v5532_v11 = vadd.f32 %v1283_v1, %v4818_v18  ;;  %v1728_v2 = vmul.f32 %v5478_v19, %v5478_v19  ;;  %v5537_v36 = vadd.f32 %v1372_v10, %v4818_v18 }
 0x138   : > { %7222 = vst [vmem:[#allocation82_spill] sm:$0xff] %v5516_v14  ;;  %7223 = vst [vmem:[#allocation83_spill] sm:$0xff] %v5519_v0  ;;  %v1528_v17 = vadd.f32 %v1527_v26, %v5505_v55  ;;  %v1596_v31 = vmul.f32 %v7227_v23, %v5478_v19  ;;  %v1657_v48 = vadd.f32 %v1656_v39, %v5341_v38  ;;  %v7229_v26 = vld [vmem:[#allocation24_spill] sm:$0xff]  ;;  %v7230_v19 = vld [vmem:[#allocation25_spill] sm:$0xff] }
 0x139   : > { %7224 = vst [vmem:[#allocation84_spill] sm:$0xff] %v5529_v46  ;;  %7225 = vst [vmem:[#allocation85_spill] sm:$0xff] %v5532_v11  ;;  %v5544_v30 = vadd.f32 %v1287_v13, %v4857_v15  ;;  %v1788_v1 = vadd.f32 %v5325_v59, %v5272_v21  ;;  %v1859_v34 = vmul.f32 %v1727_v20, %v7218_v54 }
 0x13a   : > { %7226 = vst [vmem:[#allocation86_spill] sm:$0xff] %v5537_v36  ;;  %v1920_v18 = vadd.f32 %v5334_v12, %v5317_v35  ;;  %v1529_v10 = vadd.f32 %v1528_v17, %v5509_v7  ;;  %v1597_v6 = vmul.f32 %v7229_v26, %v5505_v55  ;;  %v1598_v38 = vmul.f32 %v7230_v19, %v5509_v7 }
 0x13b   : > { %7228 = vst [vmem:[#allocation87_spill] sm:$0xff] %v5544_v30  ;;  %v1658_v39 = vadd.f32 %v1657_v48, %v1595_v50  ;;  %s4202_s22 = spop %4201  ;;  %v5557_v13 = vadd.f32 %v1289_v28, %v4857_v15  ;;  %v1789_v21 = vadd.f32 %v1788_v1, %v5323_v42  ;;  %v1860_v59 = vmul.f32 %v1728_v2, %v7227_v23 }
 0x13c   : > { %v1921_v27 = vadd.f32 %v1920_v18, %v5359_v51  ;;  %s1506_s24 = ssub.f32 2048.0, %s4202_s22  ;;  %s1507_s26 = smax.f32 %s4366_s25, %s4202_s22  ;;  %1530 = vadd.xlane.f32.xlu1 %v1529_v10  ;;  %v1729_v12 = vmul.f32 %v5505_v55, %v5505_v55  ;;  %v5566_v50 = vmul.f32 %v5532_v11, %v5532_v11  ;;  %v1822_v28 = vadd.f32 %v1821_v8, %v5455_v62  ;;  %v1376_v8 = vpop.f32.mrf.mxu1 }
 0x13d   : > { %7231 = vst [vmem:[#allocation88_spill] sm:$0xff] %v5557_v13  ;;  %v1659_v35 = vadd.f32 %v1658_v39, %v1596_v31  ;;  %v1790_v17 = vadd.f32 %v1789_v21, %v1727_v20  ;;  %v1543_v48 = vadd.f32 %v5418_v5, %v5513_v9  ;;  %v1508_v51 = vstv %s1507_s26  ;;  %s558_s22 = scalar_lea.vmem %s6922_s10, %s4504_s27  ;;  %s553_s26 = scalar_lea.vmem %s6921_s9, %s4504_s27 }
 0x13e   : > { %v1922_v42 = vadd.f32 %v1921_v27, %v1859_v34  ;;  %s1511_s28 = smax.f32 %s4366_s25, %s1506_s24  ;;  %v1823_v18 = vadd.f32 %v1822_v28, %v5466_v4  ;;  %v1577_v31 = vadd.f32 %v1576_v24, %v5544_v30  ;;  %4220 = vrcp.f32 %v1508_v51  ;;  %s6885_s24 = scalar_lea.vmem %s6919_s7, %s4449_s23 }
 0x13f   : > { %v1660_v1 = vadd.f32 %v1659_v35, %v1597_v6  ;;  %v1730_v10 = vmul.f32 %v5509_v7, %v5509_v7  ;;  %v1791_v39 = vadd.f32 %v1790_v17, %v1728_v2  ;;  %v1512_v11 = vstv %s1511_s28 }
 0x140   : > { %v1923_v55 = vadd.f32 %v1922_v42, %v1860_v59  ;;  %v1861_v34 = vmul.f32 %v1729_v12, %v7229_v26  ;;  %v1824_v5 = vadd.f32 %v1823_v18, %v5526_v37  ;;  %4222 = vrcp.f32 %v1512_v11 }
 0x141   : > { %v1661_v20 = vadd.f32 %v1660_v1, %v1598_v38  ;;  %v1611_v6 = vmul.f32 %v7218_v54, %v5513_v9  ;;  %v5581_v27 = vadd.f32 %v5432_v22, %v4789_v61  ;;  %v1792_v24 = vadd.f32 %v1791_v39, %v1729_v12 }
 0x142   : > { %v1544_v21 = vadd.f32 %v1543_v48, %v5519_v0  ;;  %v1924_v2 = vadd.f32 %v1923_v55, %v1861_v34  ;;  %v5586_v38 = vmul.f32 %v5529_v46, %v5529_v46  ;;  %v1825_v59 = vadd.f32 %v1824_v5, %v5566_v50  ;;  %v1378_v48 = vpop.f32.mrf.mxu1 }
 0x143   : > { %7232 = vst [vmem:[#allocation89_spill] sm:$0xff] %v5581_v27  ;;  %1662 = vadd.xlane.f32.xlu0 %v1661_v20  ;;  %v1578_v11 = vadd.f32 %v1577_v31, %v5557_v13  ;;  %v1743_v35 = vmul.f32 %v5513_v9, %v5513_v9  ;;  %v5593_v28 = vadd.f32 %v1376_v8, %v4857_v15 }
 0x144   : > { %v1793_v61 = vadd.f32 %v1792_v24, %v1730_v10  ;;  %v1673_v22 = vadd.f32 %v5392_v63, %v5379_v52  ;;  %v5599_v55 = vmul.f32 %v5544_v30, %v5544_v30  ;;  %v1862_v12 = vmul.f32 %v1730_v10, %v7230_v19 }
 0x145   : > { %7233 = vst [vmem:[#allocation90_spill] sm:$0xff] %v5593_v28  ;;  %v5604_v17 = vmul.f32 %v5537_v36, %v5537_v36  ;;  %v1826_v42 = vadd.f32 %v1825_v59, %v5586_v38  ;;  %v1545_v51 = vadd.f32 %v1544_v21, %v5516_v14  ;;  %v1612_v1 = vmul.f32 %v7227_v23, %v5519_v0 }
 0x146   : > { %1794 = vadd.xlane.f32.xlu1 %v1793_v61  ;;  %v1674_v52 = vadd.f32 %v1673_v22, %v5384_v56  ;;  %v1839_v63 = vadd.f32 %v5494_v58, %v5485_v33  ;;  %v1925_v18 = vadd.f32 %v1924_v2, %v1862_v12  ;;  %v1579_v10 = vadd.f32 %v1578_v11, %v5593_v28 }
 0x147   : > { %v1827_v31 = vadd.f32 %v1826_v42, %v5604_v17  ;;  %v1805_v39 = vadd.f32 %v5405_v45, %v5349_v40  ;;  %v5619_v20 = vmul.f32 %v5557_v13, %v5557_v13  ;;  %v1744_v56 = vmul.f32 %v5519_v0, %v5519_v0 }
 0x148   : > { %v1675_v8 = vadd.f32 %v1674_v52, %v1611_v6  ;;  %v1840_v34 = vadd.f32 %v1839_v63, %v5489_v25  ;;  %v5625_v58 = vadd.f32 %v1378_v48, %v4857_v15  ;;  %v1875_v24 = vmul.f32 %v1743_v35, %v7218_v54  ;;  %v7235_v63 = vld [vmem:[#allocation74_spill] sm:$0xff] }
 0x149   : > { %1828 = vadd.xlane.f32.xlu0 %v1827_v31  ;;  %v1806_v5 = vadd.f32 %v1805_v39, %v5371_v29  ;;  %v1937_v45 = vadd.f32 %v5407_v16, %v5390_v32  ;;  %v1640_v40 = vmul.f32 %v7198_v3, %v5403_v47  ;;  %v1613_v6 = vmul.f32 %v7229_v26, %v5516_v14  ;;  %v7236_v31 = vld [vmem:[#allocation20_spill] sm:$0xff]  ;;  %v7237_v39 = vld [vmem:[#allocation21_spill] sm:$0xff] }
 0x14a   : > { %7234 = vst [vmem:[#allocation91_spill] sm:$0xff] %v5625_v58  ;;  %1926 = vadd.xlane.f32.xlu1 %v1925_v18  ;;  %v1676_v21 = vadd.f32 %v1675_v8, %v1612_v1  ;;  %v1841_v2 = vadd.f32 %v1840_v34, %v5599_v55  ;;  %v1546_v15 = vadd.f32 %v1545_v51, %v5581_v27 }
 0x14b   : > { %v1580_v59 = vadd.f32 %v1579_v10, %v5625_v58  ;;  %v1807_v29 = vadd.f32 %v1806_v5, %v1743_v35  ;;  %v1938_v11 = vadd.f32 %v1937_v45, %v5411_v60  ;;  %v4221_v61 = vpop.eup %4220  ;;  %v1777_v32 = vmul.f32 %v5593_v28, %v5593_v28 }
 0x14c   : > { %v1677_v22 = vadd.f32 %v1676_v21, %v1613_v6  ;;  %v1842_v16 = vadd.f32 %v1841_v2, %v5619_v20  ;;  %v1876_v12 = vmul.f32 %v1744_v56, %v7227_v23  ;;  %v1614_v42 = vmul.f32 %v7230_v19, %v5581_v27  ;;  %4203 = vpush %v4221_v61  ;;  %v7239_v61 = vld [vmem:[#allocation85_spill] sm:$0xff] }
 0x14d   : > { %1581 = vadd.xlane.f32.xlu0 %v1580_v59  ;;  %v1808_v48 = vadd.f32 %v1807_v29, %v1744_v56  ;;  %v1939_v51 = vadd.f32 %v1938_v11, %v1875_v24  ;;  %v4223_v1 = vpop.eup %4222  ;;  %v1778_v60 = vmul.f32 %v5625_v58, %v5625_v58  ;;  %v1745_v52 = vmul.f32 %v5516_v14, %v5516_v14  ;;  %v7238_v59 = vld [vmem:[#allocation72_spill] sm:$0xff] }
 0x14e   : > { %1547 = vadd.xlane.f32.xlu1 %v1546_v15  ;;  %v1843_v35 = vadd.f32 %v1842_v16, %v1777_v32  ;;  %v1690_v18 = vadd.f32 %v5462_v43, %v7235_v63  ;;  %v1889_v10 = vmul.f32 %v5455_v62, %v7236_v31  ;;  %v1626_v8 = vmul.f32 %v7237_v39, %v5423_v41 }
 0x14f   : > { %v1627_v34 = vmul.f32 %v7218_v54, %v5492_v49  ;;  %v1560_v56 = vadd.f32 %v5474_v44, %v5492_v49  ;;  %4205 = vpush %v4223_v1  ;;  %v1678_v5 = vadd.f32 %v1677_v22, %v1614_v42  ;;  %v1809_v45 = vadd.f32 %v1808_v48, %v1745_v52  ;;  %v7240_v48 = vld [vmem:[#allocation76_spill] sm:$0xff] }
 0x150   : > { %v1844_v24 = vadd.f32 %v1843_v35, %v1778_v60  ;;  %v1940_v6 = vadd.f32 %v1939_v51, %v1876_v12  ;;  %v1890_v43 = vmul.f32 %v5466_v4, %v7237_v39  ;;  %v1706_v21 = vadd.f32 %v5481_v53, %v1640_v40 }
 0x151   : > { %v1746_v62 = vmul.f32 %v5581_v27, %v5581_v27  ;;  %v1877_v2 = vmul.f32 %v1745_v52, %v7229_v26  ;;  %v1691_v15 = vadd.f32 %v1690_v18, %v1626_v8  ;;  %v1954_v44 = vadd.f32 %v5471_v57, %v1889_v10 }
 0x152   : > { %1679 = vadd.xlane.f32.xlu1 %v1678_v5  ;;  %1845 = vadd.xlane.f32.xlu0 %v1844_v24  ;;  %v1641_v29 = vmul.f32 %v7236_v31, %v7238_v59  ;;  %v1905_v11 = vmul.f32 %v5485_v33, %v7236_v31  ;;  %v1561_v4 = vadd.f32 %v1560_v56, %v7239_v61  ;;  %v7241_v33 = vld [vmem:[#allocation73_spill] sm:$0xff] }
 0x153   : > { %v1628_v53 = vmul.f32 %v7227_v23, %v7239_v61  ;;  %v1810_v40 = vadd.f32 %v1809_v45, %v1746_v62  ;;  %v1941_v22 = vadd.f32 %v1940_v6, %v1877_v2  ;;  %v1692_v16 = vadd.f32 %v1691_v15, %v1627_v34  ;;  %v7269_v61 = vld [vmem:[#allocation17_spill] sm:$0xff] }
 0x154   : > { %v1891_v12 = vmul.f32 %v5526_v37, %v7218_v54  ;;  %v1906_v57 = vmul.f32 %v5489_v25, %v7237_v39  ;;  %v1907_v42 = vmul.f32 %v5599_v55, %v7218_v54  ;;  %v1971_v51 = vadd.f32 %v7240_v48, %v1905_v11  ;;  %v2835_v48 = vld [vmem:[%s4758_s18 + $0x10] sm:$0xff] }
 0x155   : > { %v1642_v1 = vmul.f32 %v7237_v39, %v7241_v33  ;;  %v1878_v35 = vmul.f32 %v1746_v62, %v7230_v19  ;;  %v1955_v52 = vadd.f32 %v1954_v44, %v1890_v43  ;;  %v1707_v63 = vadd.f32 %v1706_v21, %v1641_v29 }
 0x156   : > { %1811 = vadd.xlane.f32.xlu1 %v1810_v40  ;;  %v1643_v18 = vmul.f32 %v7218_v54, %v5544_v30  ;;  %v1562_v37 = vadd.f32 %v1561_v4, %v5529_v46  ;;  %v1908_v25 = vmul.f32 %v5619_v20, %v7227_v23  ;;  %v1972_v10 = vadd.f32 %v1971_v51, %v1906_v57  ;;  %v2834_v57 = vld [vmem:[%s4758_s18 + $0x8] sm:$0xff]  ;;  %v2836_v51 = vld [vmem:[%s4758_s18 + $0x18] sm:$0xff] }
 0x157   : > { %v1942_v55 = vadd.f32 %v1941_v22, %v1878_v35  ;;  %v1693_v8 = vadd.f32 %v1692_v16, %v1628_v53  ;;  %v1892_v34 = vmul.f32 %v5566_v50, %v7227_v23  ;;  %v1956_v56 = vadd.f32 %v1955_v52, %v1891_v12  ;;  %v2988_v35 = vld [vmem:[%s6918_s6 + $0x18] sm:$0xff]  ;;  %v3685_v52 = vld [vmem:[%s548_s13] sm:$0xff] }
 0x158   : > { %v1973_v5 = vadd.f32 %v1972_v10, %v1907_v42  ;;  %v1629_v24 = vmul.f32 %v7229_v26, %v5529_v46  ;;  %v1708_v45 = vadd.f32 %v1707_v63, %v1642_v1  ;;  %v1563_v6 = vadd.f32 %v1562_v37, %v5537_v36  ;;  %v2986_v1 = vld [vmem:[%s6918_s6 + $0x8] sm:$0xff]  ;;  %3116 = vmatprep.subr.mxu1 %v2988_v35  ;;  %v2985_v63 = vld [vmem:[%s6918_s6] sm:$0xff]  ;;  %v2747_v37 = vld [vmem:[%s4771_s21 + $0x10] sm:$0xff] }
 0x159   : > { %v1909_v43 = vmul.f32 %v1777_v32, %v7229_v26  ;;  %v1957_v20 = vadd.f32 %v1956_v56, %v1892_v34  ;;  %v1644_v2 = vmul.f32 %v7227_v23, %v5557_v13  ;;  %v1910_v50 = vmul.f32 %v1778_v60, %v7230_v19  ;;  %3031 = vmatprep.subr.mxu0 %v2986_v1  ;;  %v2748_v10 = vld [vmem:[%s4771_s21 + $0x18] sm:$0xff]  ;;  %v2990_v34 = vld [vmem:[%s6918_s6 + $0x28] sm:$0xff]  ;;  %v7268_v46 = vld [vmem:[#allocation14_spill] sm:$0xff] }
 0x15a   : > { %1943 = vadd.xlane.f32.xlu1 %v1942_v55  ;;  %v1974_v21 = vadd.f32 %v1973_v5, %v1908_v25  ;;  %v1694_v62 = vadd.f32 %v1693_v8, %v1629_v24  ;;  %v1709_v15 = vadd.f32 %v1708_v45, %v1643_v18  ;;  %v1630_v29 = vmul.f32 %v7230_v19, %v5537_v36  ;;  %v2987_v18 = vld [vmem:[%s6918_s6 + $0x10] sm:$0xff]  ;;  %v3813_v25 = vld [vmem:[%s558_s22 + $0x8] sm:$0xff]  ;;  %v3688_v55 = vld [vmem:[%s548_s13 + $0x18] sm:$0xff]  ;;  %v5738_v24 = vpop.permute.xlu1 %2839 }
 0x15b   : > { %v1893_v11 = vmul.f32 %v5586_v38, %v7229_v26  ;;  %v1894_v22 = vmul.f32 %v5604_v17, %v7230_v19  ;;  %v1645_v60 = vmul.f32 %v7229_v26, %v5593_v28  ;;  %v1646_v38 = vmul.f32 %v7230_v19, %v5625_v58  ;;  %v3687_v17 = vld [vmem:[%s548_s13 + $0x10] sm:$0xff]  ;;  %3032 = vmatpush1.xpose.msra.mxu0 %v2985_v63  ;;  %v3686_v8 = vld [vmem:[%s548_s13 + $0x8] sm:$0xff]  ;;  %v2992_v56 = vld [vmem:[%s6918_s6 + $0x38] sm:$0xff] }
 0x15c   : > { %v1975_v44 = vadd.f32 %v1974_v21, %v1909_v43  ;;  %v1695_v4 = vadd.f32 %v1694_v62, %v1630_v29  ;;  %v1710_v40 = vadd.f32 %v1709_v15, %v1644_v2  ;;  %3117 = vmatpush1.xpose.msra.mxu1 %v2987_v18  ;;  %v3812_v5 = vld [vmem:[%s558_s22] sm:$0xff]  ;;  %3201 = vmatprep.subr.mxu0 %v2990_v34  ;;  %v7245_v15 = vld [vmem:[#allocation3_spill] sm:$0xff]  ;;  %v7255_v35 = vld [vmem:[#allocation9_spill] sm:$0xff] }
 0x15d   : > { %v1958_v53 = vadd.f32 %v1957_v20, %v1893_v11  ;;  %3286 = vmatprep.subr.mxu1 %v2992_v56  ;;  %7242 = vst [vmem:[#allocation74_spill] sm:$0xff] %v5738_v24  ;;  %v4354_v21 = vld [vmem:[%s4523_s30] sm:$0xff]  ;;  %v4355_v11 = vld [vmem:[%s4523_s30 + $0x8] sm:$0xff]  ;;  %v7257_v63 = vld [vmem:[#allocation13_spill] sm:$0xff] }
 0x15e   : > { %1564 = vadd.xlane.f32.xlu1 %v1563_v6  ;;  %v1976_v32 = vadd.f32 %v1975_v44, %v1910_v50  ;;  %v1711_v12 = vadd.f32 %v1710_v40, %v1645_v60  ;;  %v5740_v45 = vpop.permute.xlu1 %2756  ;;  %v5742_v6 = vpop.permute.xlu0 %2751  ;;  %v2085_v62 = vsub.f32 1.0, %v4354_v21  ;;  %v7263_v56 = vld [vmem:[#allocation7_spill] sm:$0xff]  ;;  %v7266_v28 = vld [vmem:[#allocation8_spill] sm:$0xff] }
 0x15f   : > { %v1959_v16 = vadd.f32 %v1958_v53, %v1894_v22  ;;  %7243 = vst [vmem:[#allocation76_spill] sm:$0xff] %v5740_v45  ;;  %7244 = vst [vmem:[#allocation92_spill] sm:$0xff] %v5742_v6  ;;  %v7249_v22 = vld [vmem:[#allocation5_spill] sm:$0xff] }
 0x160   : > { %v1712_v42 = vadd.f32 %v1711_v12, %v1646_v38  ;;  %v5746_v50 = vrot.slane %v2085_v62, %v7245_v15  ;;  %v5762_v60 = vrot.slane %v2085_v62, %v7249_v22  ;;  %v5782_v18 = vrot.slane %v2085_v62, %v7257_v63 }
 0x162   : > { %1696 = vadd.xlane.f32.xlu1 %v1695_v4 }
 0x166   : > { %1960 = vadd.xlane.f32.xlu1 %v1959_v16  ;;  %v7250_v16 = vld [vmem:[#allocation2_spill] sm:$0xff] }
 0x167   : > { %v5765_v12 = vrot.slane %v2085_v62, %v7250_v16 }
 0x168   : > { %2844 = vperm.xlu0 %4218, %v2834_v57   ;;  %v7251_v57 = vld [vmem:[#allocation4_spill] sm:$0xff] }
 0x169   : > { %v5768_v38 = vrot.slane %v2085_v62, %v7251_v57  ;;  %7258 = vst [vmem:[#allocation4_spill] sm:$0xff] %v5782_v18 }
 0x16a   : > { %1713 = vadd.xlane.f32.xlu1 %v1712_v42  ;;  %v7252_v42 = vld [vmem:[#allocation11_spill] sm:$0xff] }
 0x16c   : > { %2849 = vperm.xlu0 %4218, %v2835_v48   ;;  %v5771_v48 = vrot.slane %v2085_v62, %v7252_v42 }
 0x170   : > { %2854 = vperm.xlu0 %4218, %v2836_v51  }
 0x174   : > { %3701 = vperm.xlu0 %4218, %v3687_v17   ;;  %v7253_v17 = vld [vmem:[#allocation15_spill] sm:$0xff] }
 0x175   : > { %v5776_v1 = vrot.slane %v2085_v62, %v7253_v17 }
 0x177   : > { %7254 = vst [vmem:[#allocation5_spill] sm:$0xff] %v5776_v1 }
 0x178   : > { %3691 = vperm.xlu0 %4218, %v3685_v52   ;;  %v5779_v52 = vrot.slane %v2085_v62, %v7255_v35 }
 0x17a   : > { %7256 = vst [vmem:[#allocation2_spill] sm:$0xff] %v5779_v52 }
 0x17b   : > { %2761 = vperm.xlu1 %4219, %v2747_v37  }
 0x17c   : > { %3821 = vperm.xlu0 %4218, %v3813_v25  }
 0x17d   : > { %s4204_s21 = spop %4203 }
 0x17e   : > { %v5748_v44 = vstv %s4204_s21 }
 0x180   : > { %s4206_s13 = spop %4205 }
 0x181   : > { %v5750_v29 = vstv %s4206_s13 }
 0x19f   : > { %1977 = vadd.xlane.f32.xlu1 %v1976_v32  ;;  %v5753_v32 = vsub.f32 1.0, %v4355_v11 }
 0x1a1   : > { %7246 = vst [vmem:[#allocation3_spill] sm:$0xff] %v5753_v32  ;;  %v5786_v37 = vrot.slane %v5753_v32, %v7245_v15  ;;  %v5790_v25 = vrot.slane %v5753_v32, %v7249_v22 }
 0x1a3   : > { %7259 = vst [vmem:[#allocation95_spill] sm:$0xff] %v5786_v37  ;;  %7260 = vst [vmem:[#allocation96_spill] sm:$0xff] %v5790_v25  ;;  %v7287_v37 = vld [vmem:[#allocation33_spill] sm:$0xff] }
 0x1b0   : > { %2766 = vperm.xlu1 %4219, %v2748_v10   ;;  %v5794_v10 = vrot.slane %v5753_v32, %v7250_v16  ;;  %v7265_v16 = vld [vmem:[#allocation6_spill] sm:$0xff] }
 0x1b2   : > { %7261 = vst [vmem:[#allocation97_spill] sm:$0xff] %v5794_v10 }
 0x1b4   : > { %3706 = vperm.xlu1 %4219, %v3688_v55   ;;  %v5798_v55 = vrot.slane %v5753_v32, %v7251_v57  ;;  %v7277_v32 = vld [vmem:[#allocation28_spill] sm:$0xff] }
 0x1b6   : > { %7262 = vst [vmem:[#allocation98_spill] sm:$0xff] %v5798_v55 }
 0x1b8   : > { %3696 = vperm.xlu1 %4219, %v3686_v8  }
 0x1bc   : > { %3816 = vperm.xlu1 %4219, %v3812_v5  }
 0x1c5   : > { %v1531_v43 = vpop.xlane.xlu1 %1530 }
 0x1cc   : > { %v1663_v20 = vpop.xlane.xlu0 %1662 }
 0x1cd   : > { %v1984_v2 = vsub.f32 %v1531_v43, %v1663_v20  ;;  %v5756_v4 = vmul.f32 %v5748_v44, %v1663_v20 }
 0x1cf   : > { %7247 = vst [vmem:[#allocation93_spill] sm:$0xff] %v5756_v4  ;;  %v5759_v53 = vmul.f32 %v5750_v29, %v1984_v2  ;;  %v1795_v40 = vpop.xlane.xlu1 %1794  ;;  %v1997_v8 = vmul.f32 %v5756_v4, %v5756_v4  ;;  %v2022_v5 = vmul.f32 %v5756_v4, %v7263_v56  ;;  %v7264_v2 = vld [vmem:[#allocation10_spill] sm:$0xff]  ;;  %v2021_v57 = vmul.f32 %v5756_v4, %v7265_v16 }
 0x1d0   : > { %v2024_v15 = vmul.f32 %v5756_v4, %v7264_v2  ;;  %v2023_v30 = vmul.f32 %v5756_v4, %v7266_v28  ;;  %v2028_v14 = vmul.f32 %v5756_v4, %v7269_v61 }
 0x1d1   : > { %7248 = vst [vmem:[#allocation94_spill] sm:$0xff] %v5759_v53  ;;  %v2170_v51 = vmul.f32 %v5746_v50, %v5759_v53  ;;  %v2172_v43 = vmul.f32 %v5762_v60, %v5759_v53  ;;  %v2169_v21 = vmul.f32 %v5765_v12, %v5759_v53  ;;  %v2171_v11 = vmul.f32 %v5768_v38, %v5759_v53 }
 0x1d2   : > { %v2174_v58 = vmul.f32 %v5771_v48, %v5759_v53  ;;  %v2176_v9 = vmul.f32 %v5776_v1, %v5759_v53  ;;  %v2173_v0 = vmul.f32 %v5779_v52, %v5759_v53  ;;  %v5919_v10 = vmul.f32 %v5782_v18, %v5759_v53 }
 0x1d3   : > { %v1927_v34 = vpop.xlane.xlu1 %1926  ;;  %v5813_v22 = vadd.f32 %v2170_v51, %v2022_v5  ;;  %v2026_v51 = vmul.f32 %v5756_v4, %v7268_v46  ;;  %v5828_v49 = vadd.f32 %v2172_v43, %v2024_v15  ;;  %v5830_v36 = vadd.f32 %v2169_v21, %v2021_v57  ;;  %v7272_v21 = vld [vmem:[#allocation26_spill] sm:$0xff]  ;;  %v7274_v15 = vld [vmem:[#allocation29_spill] sm:$0xff] }
 0x1d4   : > { %v1993_v62 = vmul.f32 %v5748_v44, %v1927_v34  ;;  %v2005_v20 = vsub.f32 %v1795_v40, %v1927_v34  ;;  %v2013_v40 = vmul.f32 %v5759_v53, %v5759_v53  ;;  %v5868_v47 = vadd.f32 %v2176_v9, %v2028_v14 }
 0x1d5   : > { %v5850_v7 = vadd.f32 %v2174_v58, %v2026_v51  ;;  %v7275_v51 = vld [vmem:[#allocation27_spill] sm:$0xff] }
 0x1d6   : > { %v5823_v34 = vsub.f32 %v1993_v62, %v1997_v8  ;;  %v2009_v13 = vmul.f32 %v2005_v20, %v5750_v29  ;;  %v5838_v8 = vadd.f32 %v2171_v11, %v2023_v30  ;;  %v7271_v62 = vld [vmem:[#allocation12_spill] sm:$0xff]  ;;  %7276 = vst [vmem:[#allocation8_spill] sm:$0xff] %v5868_v47 }
 0x1d7   : > { %v1548_v5 = vpop.xlane.xlu1 %1547  ;;  %v2025_v20 = vmul.f32 %v5756_v4, %v7271_v62  ;;  %7273 = vst [vmem:[#allocation6_spill] sm:$0xff] %v5850_v7 }
 0x1d8   : > { %7267 = vst [vmem:[#allocation7_spill] sm:$0xff] %v5823_v34  ;;  %v5836_v27 = vsub.f32 %v2009_v13, %v2013_v40  ;;  %v2298_v43 = vmul.f32 %v5823_v34, %v7263_v56  ;;  %v2300_v57 = vmul.f32 %v5823_v34, %v7264_v2  ;;  %v2297_v58 = vmul.f32 %v5823_v34, %v7265_v16 }
 0x1d9   : > { %v2299_v54 = vmul.f32 %v5823_v34, %v7266_v28  ;;  %v2301_v31 = vmul.f32 %v5823_v34, %v7271_v62 }
 0x1da   : > { %7270 = vst [vmem:[#allocation10_spill] sm:$0xff] %v5836_v27  ;;  %v2362_v30 = vmul.f32 %v5746_v50, %v5836_v27  ;;  %v2364_v13 = vmul.f32 %v5762_v60, %v5836_v27  ;;  %v2361_v11 = vmul.f32 %v5765_v12, %v5836_v27  ;;  %v2363_v40 = vmul.f32 %v5768_v38, %v5836_v27 }
 0x1db   : > { %v1680_v59 = vpop.xlane.xlu1 %1679  ;;  %v2366_v26 = vmul.f32 %v5771_v48, %v5836_v27 }
 0x1dc   : > { %v1985_v35 = vsub.f32 %v1548_v5, %v1680_v59  ;;  %v2426_v33 = vadd.f32 %v2362_v30, %v2298_v43  ;;  %v2428_v19 = vadd.f32 %v2364_v13, %v2300_v57  ;;  %v2425_v17 = vadd.f32 %v2361_v11, %v2297_v58 }
 0x1dd   : > { %v2427_v23 = vadd.f32 %v2363_v40, %v2299_v54  ;;  %v5875_v41 = vmul.f32 %v5748_v44, %v1680_v59  ;;  %v2368_v30 = vmul.f32 %v5776_v1, %v5836_v27  ;;  %v2302_v59 = vmul.f32 %v5823_v34, %v7268_v46  ;;  %v7283_v40 = vld [vmem:[#allocation16_spill] sm:$0xff] }
 0x1de   : > { %v5878_v63 = vmul.f32 %v5750_v29, %v1985_v35  ;;  %v2554_v55 = vadd.f32 1e-05, %v2426_v33  ;;  %v2556_v5 = vadd.f32 1e-05, %v2428_v19  ;;  %v2553_v57 = vadd.f32 1e-05, %v2425_v17 }
 0x1df   : > { %7278 = vst [vmem:[#allocation14_spill] sm:$0xff] %v5875_v41  ;;  %v1812_v43 = vpop.xlane.xlu1 %1811  ;;  %v2555_v9 = vadd.f32 1e-05, %v2427_v23  ;;  %v2304_v23 = vmul.f32 %v5823_v34, %v7269_v61  ;;  %v5894_v17 = vadd.f32 %v2173_v0, %v2025_v20  ;;  %v2430_v11 = vadd.f32 %v2366_v26, %v2302_v59 }
 0x1e0   : > { %7279 = vst [vmem:[#allocation26_spill] sm:$0xff] %v5878_v63  ;;  %4224 = vrsqrt.f32 %v2554_v55  ;;  %v2186_v13 = vmul.f32 %v5746_v50, %v5878_v63  ;;  %v2188_v19 = vmul.f32 %v5762_v60, %v5878_v63  ;;  %v2038_v55 = vmul.f32 %v5875_v41, %v7263_v56 }
 0x1e1   : > { %4226 = vrsqrt.f32 %v2556_v5  ;;  %7282 = vst [vmem:[#allocation29_spill] sm:$0xff] %v5894_v17  ;;  %v5900_v58 = vmul.f32 %v5756_v4, %v7283_v40  ;;  %v2040_v5 = vmul.f32 %v5875_v41, %v7264_v2  ;;  %v2185_v33 = vmul.f32 %v5765_v12, %v5878_v63 }
 0x1e2   : > { %4228 = vrsqrt.f32 %v2553_v57  ;;  %v2432_v42 = vadd.f32 %v2368_v30, %v2304_v23  ;;  %v1998_v0 = vmul.f32 %v5875_v41, %v5875_v41  ;;  %v5909_v26 = vadd.f32 %v2186_v13, %v2038_v55 }
 0x1e3   : > { %v1944_v54 = vpop.xlane.xlu1 %1943  ;;  %4230 = vrsqrt.f32 %v2555_v9  ;;  %v5911_v59 = vadd.f32 %v2188_v19, %v2040_v5  ;;  %v2037_v9 = vmul.f32 %v5875_v41, %v7265_v16  ;;  %v2014_v30 = vmul.f32 %v5878_v63, %v5878_v63 }
 0x1e4   : > { %v1994_v20 = vmul.f32 %v5748_v44, %v1944_v54  ;;  %v2006_v57 = vsub.f32 %v1812_v43, %v1944_v54  ;;  %v2365_v54 = vmul.f32 %v5779_v52, %v5836_v27  ;;  %v2039_v55 = vmul.f32 %v5875_v41, %v7266_v28 }
 0x1e5   : > { %v5928_v19 = vadd.f32 %v2185_v33, %v2037_v9  ;;  %v2187_v5 = vmul.f32 %v5768_v38, %v5878_v63  ;;  %v5942_v3 = vadd.f32 1e-05, %v2432_v42 }
 0x1e6   : > { %v5923_v23 = vsub.f32 %v1994_v20, %v1998_v0  ;;  %v2010_v43 = vmul.f32 %v2006_v57, %v5750_v29  ;;  %v7286_v0 = vld [vmem:[#allocation30_spill] sm:$0xff]  ;;  %v5940_v57 = vadd.f32 1e-05, %v2430_v11 }
 0x1e7   : > { %v1565_v13 = vpop.xlane.xlu1 %1564  ;;  %v5962_v53 = vadd.f32 %v2187_v5, %v2039_v55 }
 0x1e8   : > { %v5936_v4 = vsub.f32 %v2010_v43, %v2014_v30  ;;  %v2314_v33 = vmul.f32 %v5923_v23, %v7263_v56  ;;  %v2316_v9 = vmul.f32 %v5923_v23, %v7264_v2  ;;  %v2367_v30 = vmul.f32 %v5782_v18, %v5836_v27 }
 0x1e9   : > { %v2313_v52 = vmul.f32 %v5923_v23, %v7265_v16  ;;  %v2315_v27 = vmul.f32 %v5923_v23, %v7266_v28  ;;  %v2303_v18 = vmul.f32 %v5823_v34, %v7283_v40  ;;  %v7290_v34 = vsub.f32 %v7272_v21, %v5813_v22 }
 0x1ea   : > { %7285 = vst [vmem:[#allocation27_spill] sm:$0xff] %v5936_v4  ;;  %v2378_v43 = vmul.f32 %v5746_v50, %v5936_v4  ;;  %v2380_v11 = vmul.f32 %v5762_v60, %v5936_v4  ;;  %v2377_v42 = vmul.f32 %v5765_v12, %v5936_v4  ;;  %v2379_v39 = vmul.f32 %v5768_v38, %v5936_v4 }
 0x1eb   : > { %v1697_v20 = vpop.xlane.xlu1 %1696  ;;  %v2429_v4 = vadd.f32 %v2365_v54, %v2301_v31  ;;  %v2431_v7 = vadd.f32 %v2367_v30, %v2303_v18  ;;  %v7292_v22 = vsub.f32 %v7275_v51, %v5830_v36 }
 0x1ec   : > { %v5969_v62 = vmul.f32 %v5748_v44, %v1697_v20  ;;  %v1986_v1 = vsub.f32 %v1565_v13, %v1697_v20  ;;  %v2442_v61 = vadd.f32 %v2378_v43, %v2314_v33  ;;  %v2444_v17 = vadd.f32 %v2380_v11, %v2316_v9  ;;  %v1829_v20 = vpop.xlane.xlu0 %1828 }
 0x1ed   : > { %v4225_v25 = vpop.eup %4224  ;;  %v2441_v47 = vadd.f32 %v2377_v42, %v2313_v52  ;;  %v2443_v35 = vadd.f32 %v2379_v39, %v2315_v27  ;;  %v7291_v27 = vsub.f32 %v7274_v15, %v5828_v49  ;;  %v7293_v49 = vsub.f32 %v7277_v32, %v5838_v8  ;;  %v7296_v42 = vld [vmem:[#allocation31_spill] sm:$0xff] }
 0x1ee   : > { %7288 = vst [vmem:[#allocation28_spill] sm:$0xff] %v5969_v62  ;;  %v4227_v14 = vpop.eup %4226  ;;  %v5972_v55 = vmul.f32 %v5750_v29, %v1986_v1  ;;  %v1999_v5 = vmul.f32 %v5969_v62, %v5969_v62  ;;  %v2682_v40 = vmul.f32 %v4225_v25, %v7290_v34  ;;  %v2570_v45 = vadd.f32 1e-05, %v2442_v61 }
 0x1ef   : > { %v4229_v13 = vpop.eup %4228  ;;  %v1961_v33 = vpop.xlane.xlu1 %1960  ;;  %v2684_v31 = vmul.f32 %v4227_v14, %v7291_v27  ;;  %v2572_v39 = vadd.f32 1e-05, %v2444_v17  ;;  %v2569_v52 = vadd.f32 1e-05, %v2441_v47  ;;  %v2571_v18 = vadd.f32 1e-05, %v2443_v35 }
 0x1f0   : > { %7289 = vst [vmem:[#allocation30_spill] sm:$0xff] %v5972_v55  ;;  %v4231_v1 = vpop.eup %4230  ;;  %v2015_v54 = vmul.f32 %v5972_v55, %v5972_v55  ;;  %v1995_v9 = vmul.f32 %v5748_v44, %v1961_v33  ;;  %v2007_v30 = vsub.f32 %v1829_v20, %v1961_v33  ;;  %v2770_v25 = vmul.f32 %v5742_v6, %v2682_v40  ;;  %v2989_v27 = vld [vmem:[%s6918_s6 + $0x20] sm:$0xff] }
 0x1f1   : > { %v2772_v61 = vmul.f32 %v5742_v6, %v2684_v31  ;;  %v2681_v34 = vmul.f32 %v4229_v13, %v7292_v22  ;;  %v2683_v47 = vmul.f32 %v4231_v1, %v7293_v49  ;;  %4232 = vrsqrt.f32 %v2570_v45 }
 0x1f2   : > { %v5993_v21 = vsub.f32 %v1995_v9, %v1999_v5  ;;  %v2011_v15 = vmul.f32 %v2007_v30, %v5750_v29  ;;  %v2858_v14 = vadd.f32 %v5738_v24, %v2770_v25  ;;  %4234 = vrsqrt.f32 %v2572_v39  ;;  %v7298_v9 = vld [vmem:[#allocation46_spill] sm:$0xff] }
 0x1f3   : > { %v2860_v35 = vadd.f32 %v5738_v24, %v2772_v61  ;;  %v2769_v17 = vmul.f32 %v5742_v6, %v2681_v34  ;;  %v2771_v40 = vmul.f32 %v5742_v6, %v2683_v47  ;;  %4236 = vrsqrt.f32 %v2569_v52  ;;  %v2991_v52 = vld [vmem:[%s6918_s6 + $0x30] sm:$0xff]  ;;  %v1714_v1 = vpop.xlane.xlu1 %1713  ;;  %v2996_v61 = vld [vmem:[%s6918_s6 + $0x58] sm:$0xff] }
 0x1f4   : > { %7294 = vst [vmem:[#allocation33_spill] sm:$0xff] %v5993_v21  ;;  %v6000_v36 = vsub.f32 %v2011_v15, %v2015_v54  ;;  %v2922_v51 = vmax.f32 %v2858_v14, 0.0  ;;  %v2557_v32 = vadd.f32 1e-05, %v2429_v4  ;;  %v6004_v45 = vadd.f32 %v5919_v10, %v5900_v58 }
 0x1f5   : > { %v2924_v8 = vmax.f32 %v2860_v35, 0.0  ;;  %v2857_v43 = vadd.f32 %v5738_v24, %v2769_v17  ;;  %v2859_v11 = vadd.f32 %v5738_v24, %v2771_v40  ;;  %4238 = vrsqrt.f32 %v2571_v18  ;;  %v2994_v18 = vld [vmem:[%s6918_s6 + $0x48] sm:$0xff] }
 0x1f6   : > { %7295 = vst [vmem:[#allocation99_spill] sm:$0xff] %v6000_v36  ;;  %3065 = vmatprep.mubr.f32.mxu0 %v2922_v51  ;;  %v2505_v5 = vsub.f32 %v7296_v42, %v5928_v19  ;;  %4240 = vrsqrt.f32 %v5940_v57  ;;  %v2559_v13 = vadd.f32 1e-05, %v2431_v7  ;;  %v2190_v4 = vmul.f32 %v5771_v48, %v5878_v63  ;;  %v1582_v19 = vpop.xlane.xlu0 %1581  ;;  %v7297_v57 = vld [vmem:[#allocation32_spill] sm:$0xff] }
 0x1f7   : > { %3150 = vmatprep.mubr.f32.mxu1 %v2924_v8  ;;  %v2921_v20 = vmax.f32 %v2857_v43, 0.0  ;;  %v2923_v10 = vmax.f32 %v2859_v11, 0.0  ;;  %v2330_v58 = vmul.f32 %v5993_v21, %v7263_v56  ;;  %v2394_v33 = vmul.f32 %v5746_v50, %v6000_v36 }
 0x1f8   : > { %v2507_v7 = vsub.f32 %v7297_v57, %v5962_v53  ;;  %v2332_v31 = vmul.f32 %v5993_v21, %v7264_v2  ;;  %v2396_v39 = vmul.f32 %v5762_v60, %v6000_v36  ;;  %4242 = vrsqrt.f32 %v5942_v3 }
 0x1f9   : > { %3066 = vmatmul.mubr.f32.vlgmr.msra.gmra.mxu0 %v2921_v20  ;;  %3151 = vmatmul.mubr.f32.vlgmr.msra.gmra.mxu1 %v2923_v10  ;;  %v2458_v54 = vadd.f32 %v2394_v33, %v2330_v58  ;;  %4244 = vrsqrt.f32 %v2557_v32  ;;  %v2495_v30 = vsub.f32 %v7298_v9, %v6004_v45  ;;  %v2042_v25 = vmul.f32 %v5875_v41, %v7268_v46 }
 0x1fa   : > { %v2202_v3 = vmul.f32 %v5746_v50, %v5972_v55  ;;  %v2460_v22 = vadd.f32 %v2396_v39, %v2332_v31  ;;  %3202 = vmatpush1.xpose.msra.mxu0 %v2989_v27  ;;  %4246 = vrsqrt.f32 %v2559_v13  ;;  %v6044_v34 = vmul.f32 %v5923_v23, %v7268_v46  ;;  %3287 = vmatpush1.xpose.msra.mxu1 %v2991_v52  ;;  %v6060_v42 = vpop.xlane.xlu0 %1845 }
 0x1fb   : > { %v2586_v49 = vadd.f32 1e-05, %v2458_v54  ;;  %v2329_v47 = vmul.f32 %v5993_v21, %v7265_v16  ;;  %v2393_v15 = vmul.f32 %v5765_v12, %v6000_v36  ;;  %v6050_v14 = vadd.f32 %v2190_v4, %v2042_v25  ;;  %3371 = vmatprep.subr.mxu0 %v2994_v18  ;;  %3456 = vmatprep.subr.mxu1 %v2996_v61 }
 0x1fc   : > { %v1987_v35 = vsub.f32 %v1582_v19, %v1714_v1  ;;  %v2054_v17 = vmul.f32 %v5969_v62, %v7263_v56  ;;  %v2204_v40 = vmul.f32 %v5762_v60, %v5972_v55  ;;  %v2588_v51 = vadd.f32 1e-05, %v2460_v22 }
 0x1fd   : > { %4248 = vrsqrt.f32 %v2586_v49  ;;  %v2457_v32 = vadd.f32 %v2393_v15, %v2329_v47  ;;  %v2331_v8 = vmul.f32 %v5993_v21, %v7266_v28  ;;  %v2395_v43 = vmul.f32 %v5768_v38, %v6000_v36  ;;  %v7304_v15 = vld [vmem:[#allocation35_spill] sm:$0xff] }
 0x1fe   : > { %v4233_v11 = vpop.eup %4232  ;;  %v6062_v13 = vadd.f32 %v2202_v3, %v2054_v17  ;;  %v2056_v4 = vmul.f32 %v5969_v62, %v7264_v2  ;;  %4250 = vrsqrt.f32 %v2588_v51  ;;  %v2201_v20 = vmul.f32 %v5765_v12, %v5972_v55  ;;  %v6083_v49 = vpop.permute.xlu0 %2844 }
 0x1ff   : > { %v4235_v10 = vpop.eup %4234  ;;  %v6069_v58 = vmul.f32 %v5748_v44, %v1714_v1  ;;  %v7300_v33 = vsub.f32 %v7286_v0, %v5909_v26  ;;  %v2585_v19 = vadd.f32 1e-05, %v2457_v32  ;;  %v2459_v31 = vadd.f32 %v2395_v43, %v2331_v8  ;;  %v7303_v1 = vld [vmem:[#allocation76_spill] sm:$0xff]  ;;  %v7305_v8 = vld [vmem:[#allocation41_spill] sm:$0xff] }
 0x200   : > { %v4237_v39 = vpop.eup %4236  ;;  %v6075_v52 = vmul.f32 %v5750_v29, %v1987_v35  ;;  %v7302_v18 = vsub.f32 %v7287_v37, %v5911_v59  ;;  %v2268_v25 = vadd.f32 %v2204_v40, %v2056_v4  ;;  %v2053_v61 = vmul.f32 %v5969_v62, %v7265_v16 }
 0x201   : > { %7299 = vst [vmem:[#allocation31_spill] sm:$0xff] %v6069_v58  ;;  %v2698_v27 = vmul.f32 %v4233_v11, %v7300_v33  ;;  %v2697_v22 = vmul.f32 %v4237_v39, %v2505_v5  ;;  %4252 = vrsqrt.f32 %v2585_v19  ;;  %v2587_v26 = vadd.f32 1e-05, %v2459_v31 }
 0x202   : > { %7301 = vst [vmem:[#allocation32_spill] sm:$0xff] %v6075_v52  ;;  %v2700_v54 = vmul.f32 %v4235_v10, %v7302_v18  ;;  %v4239_v0 = vpop.eup %4238  ;;  %v2522_v35 = vsub.f32 %v7304_v15, %v6062_v13  ;;  %v6088_v17 = vadd.f32 %v2201_v20, %v2053_v61  ;;  %v2055_v37 = vmul.f32 %v5969_v62, %v7266_v28 }
 0x203   : > { %v2786_v3 = vmul.f32 %v7303_v1, %v2698_v27  ;;  %v4241_v59 = vpop.eup %4240  ;;  %v2785_v5 = vmul.f32 %v7303_v1, %v2697_v22  ;;  %v2699_v51 = vmul.f32 %v4239_v0, %v2507_v7  ;;  %4254 = vrsqrt.f32 %v2587_v26 }
 0x204   : > { %v2788_v47 = vmul.f32 %v7303_v1, %v2700_v54  ;;  %v2524_v43 = vsub.f32 %v7305_v8, %v2268_v25  ;;  %v2203_v11 = vmul.f32 %v5768_v38, %v5972_v55  ;;  %v2218_v13 = vmul.f32 %v5746_v50, %v6075_v52  ;;  %v7306_v25 = vld [vmem:[#allocation34_spill] sm:$0xff]  ;;  %v7311_v8 = vld [vmem:[#allocation27_spill] sm:$0xff] }
 0x205   : > { %v2874_v40 = vadd.f32 %v6083_v49, %v2786_v3  ;;  %v4243_v4 = vpop.eup %4242  ;;  %v2873_v10 = vadd.f32 %v6083_v49, %v2785_v5  ;;  %v2787_v33 = vmul.f32 %v7303_v1, %v2699_v51  ;;  %v2220_v53 = vmul.f32 %v5762_v60, %v6075_v52  ;;  %v7308_v5 = vld [vmem:[#allocation44_spill] sm:$0xff]  ;;  %v7309_v51 = vld [vmem:[#allocation6_spill] sm:$0xff] }
 0x206   : > { %v2876_v32 = vadd.f32 %v6083_v49, %v2788_v47  ;;  %v4245_v57 = vpop.eup %4244  ;;  %v2070_v27 = vmul.f32 %v6069_v58, %v7263_v56  ;;  %v2217_v19 = vmul.f32 %v5765_v12, %v6075_v52  ;;  %v2219_v31 = vmul.f32 %v5768_v38, %v6075_v52 }
 0x207   : > { %v2938_v20 = vmax.f32 %v2874_v40, 0.0  ;;  %v4247_v39 = vpop.eup %4246  ;;  %v2937_v18 = vmax.f32 %v2873_v10, 0.0  ;;  %v2875_v54 = vadd.f32 %v6083_v49, %v2787_v33  ;;  %v2521_v61 = vsub.f32 %v7306_v25, %v6088_v17  ;;  %v7314_v33 = vld [vmem:[#allocation47_spill] sm:$0xff] }
 0x208   : > { %v2940_v7 = vmax.f32 %v2876_v32, 0.0  ;;  %v2072_v3 = vmul.f32 %v6069_v58, %v7264_v2  ;;  %v2267_v22 = vadd.f32 %v2203_v11, %v2055_v37  ;;  %v6118_v26 = vadd.f32 %v2218_v13, %v2070_v27  ;;  %v7317_v25 = vld [vmem:[#allocation43_spill] sm:$0xff] }
 0x209   : > { %3070 = vmatprep.mubr.f32.mxu0 %v2938_v20  ;;  %v2069_v0 = vmul.f32 %v6069_v58, %v7265_v16  ;;  %v2071_v47 = vmul.f32 %v6069_v58, %v7266_v28  ;;  %v2939_v15 = vmax.f32 %v2875_v54, 0.0  ;;  %v7310_v17 = vsub.f32 %v7308_v5, %v7309_v51 }
 0x20a   : > { %3155 = vmatprep.mubr.f32.mxu1 %v2940_v7  ;;  %3071 = vmatmul.mubr.f32.gmra.mxu0 %v2937_v18  ;;  %v6124_v40 = vadd.f32 %v2220_v53, %v2072_v3  ;;  %v2382_v20 = vmul.f32 %v5771_v48, %v7311_v8  ;;  %v4249_v37 = vpop.eup %4248  ;;  %v6133_v11 = vmul.f32 %v6069_v58, %v6069_v58  ;;  %v7315_v7 = vld [vmem:[#allocation8_spill] sm:$0xff]  ;;  %v7318_v3 = vld [vmem:[#allocation29_spill] sm:$0xff] }
 0x20b   : > { %v2686_v32 = vmul.f32 %v4241_v59, %v7310_v17  ;;  %v6135_v13 = vadd.f32 %v2217_v19, %v2069_v0  ;;  %v6137_v10 = vadd.f32 %v2219_v31, %v2071_v47  ;;  %v7316_v53 = vsub.f32 %v7314_v33, %v7315_v7  ;;  %v4251_v18 = vpop.eup %4250  ;;  %3156 = vmatmul.mubr.f32.gmra.mxu1 %v2939_v15  ;;  %v6150_v0 = vpop.permute.xlu1 %2761  ;;  %v7320_v47 = vld [vmem:[#allocation37_spill] sm:$0xff] }
 0x20c   : > { %7307 = vst [vmem:[#allocation46_spill] sm:$0xff] %v6124_v40  ;;  %v2714_v54 = vmul.f32 %v4249_v37, %v2522_v35  ;;  %v6144_v59 = vmul.f32 %v6075_v52, %v6075_v52  ;;  %v7319_v5 = vsub.f32 %v7317_v25, %v7318_v3  ;;  %v2446_v19 = vadd.f32 %v2382_v20, %v6044_v34  ;;  %v7354_v37 = vld [vmem:[#allocation7_spill] sm:$0xff] }
 0x20d   : > { %7312 = vst [vmem:[#allocation76_spill] sm:$0xff] %v6135_v13  ;;  %7313 = vst [vmem:[#allocation35_spill] sm:$0xff] %v6137_v10  ;;  %v2688_v27 = vmul.f32 %v4243_v4, %v7316_v53  ;;  %v2716_v31 = vmul.f32 %v4251_v18, %v2524_v43  ;;  %v2523_v17 = vsub.f32 %v7320_v47, %v2267_v22  ;;  %v7321_v4 = vld [vmem:[#allocation39_spill] sm:$0xff]  ;;  %v6162_v53 = vpop.permute.xlu0 %2849  ;;  %v7326_v47 = vld [vmem:[#allocation5_spill] sm:$0xff] }
 0x20e   : > { %v2685_v51 = vmul.f32 %v4245_v57, %v7319_v5  ;;  %v2687_v35 = vmul.f32 %v4247_v39, %v2495_v30  ;;  %v2802_v15 = vmul.f32 %v6150_v0, %v2714_v54  ;;  %v2774_v57 = vmul.f32 %v5742_v6, %v2686_v32  ;;  %v4253_v20 = vpop.eup %4252 }
 0x20f   : > { %v2574_v34 = vadd.f32 1e-05, %v2446_v19  ;;  %v2804_v43 = vmul.f32 %v6150_v0, %v2716_v31  ;;  %v2776_v9 = vmul.f32 %v5742_v6, %v2688_v27  ;;  %v2713_v39 = vmul.f32 %v4253_v20, %v2521_v61  ;;  %v7325_v19 = vld [vmem:[#allocation17_spill] sm:$0xff] }
 0x210   : > { %v2890_v30 = vadd.f32 %v6162_v53, %v2802_v15  ;;  %v2773_v54 = vmul.f32 %v5742_v6, %v2685_v51  ;;  %v4255_v32 = vpop.eup %4254  ;;  %v2775_v5 = vmul.f32 %v5742_v6, %v2687_v35  ;;  %v2320_v31 = vmul.f32 %v5923_v23, %v7325_v19 }
 0x211   : > { %4256 = vrsqrt.f32 %v2574_v34  ;;  %v2892_v3 = vadd.f32 %v6162_v53, %v2804_v43  ;;  %v2384_v18 = vmul.f32 %v7326_v47, %v7311_v8  ;;  %v2801_v27 = vmul.f32 %v6150_v0, %v2713_v39  ;;  %v7329_v34 = vld [vmem:[#allocation48_spill] sm:$0xff] }
 0x212   : > { %v2954_v45 = vmax.f32 %v2890_v30, 0.0  ;;  %v2715_v7 = vmul.f32 %v4255_v32, %v2523_v17  ;;  %v6180_v61 = vadd.f32 %v5738_v24, %v2774_v57  ;;  %v6183_v15 = vadd.f32 %v5738_v24, %v2776_v9  ;;  %v7330_v30 = vld [vmem:[#allocation12_spill] sm:$0xff]  ;;  %v7331_v17 = vld [vmem:[#allocation2_spill] sm:$0xff] }
 0x213   : > { %v2956_v51 = vmax.f32 %v2892_v3, 0.0  ;;  %v2510_v35 = vsub.f32 %v7329_v34, %v6050_v14  ;;  %v2448_v20 = vadd.f32 %v2384_v18, %v2320_v31  ;;  %v2889_v43 = vadd.f32 %v6162_v53, %v2801_v27 }
 0x214   : > { %7327 = vst [vmem:[#allocation41_spill] sm:$0xff] %v6180_v61  ;;  %7328 = vst [vmem:[#allocation34_spill] sm:$0xff] %v6183_v15  ;;  %3075 = vmatprep.mubr.f32.mxu0 %v2954_v45  ;;  %v2803_v33 = vmul.f32 %v6150_v0, %v2715_v7  ;;  %v2317_v39 = vmul.f32 %v5923_v23, %v7330_v30  ;;  %v2381_v57 = vmul.f32 %v7331_v17, %v7311_v8 }
 0x215   : > { %3160 = vmatprep.mubr.f32.mxu1 %v2956_v51  ;;  %v6194_v32 = vadd.f32 %v5738_v24, %v2773_v54  ;;  %v6197_v9 = vadd.f32 %v5738_v24, %v2775_v5  ;;  %v2044_v14 = vmul.f32 %v5875_v41, %v7325_v19  ;;  %v2576_v18 = vadd.f32 1e-05, %v2448_v20  ;;  %v7334_v51 = vld [vmem:[#allocation16_spill] sm:$0xff] }
 0x216   : > { %v2953_v45 = vmax.f32 %v2889_v43, 0.0  ;;  %v2891_v7 = vadd.f32 %v6162_v53, %v2803_v33  ;;  %v2445_v31 = vadd.f32 %v2381_v57, %v2317_v39  ;;  %v2192_v27 = vmul.f32 %v7326_v47, %v5878_v63  ;;  %v7335_v5 = vld [vmem:[#allocation4_spill] sm:$0xff] }
 0x217   : > { %7332 = vst [vmem:[#allocation44_spill] sm:$0xff] %v6194_v32  ;;  %7333 = vst [vmem:[#allocation6_spill] sm:$0xff] %v6197_v9  ;;  %4258 = vrsqrt.f32 %v2576_v18  ;;  %v2319_v54 = vmul.f32 %v5923_v23, %v7334_v51  ;;  %v2383_v34 = vmul.f32 %v7335_v5, %v7311_v8  ;;  %v2189_v20 = vmul.f32 %v7331_v17, %v5878_v63  ;;  %v7352_v9 = vld [vmem:[#allocation93_spill] sm:$0xff] }
 0x218   : > { %3076 = vmatmul.mubr.f32.gmra.mxu0 %v2953_v45  ;;  %v2955_v24 = vmax.f32 %v2891_v7, 0.0  ;;  %v2573_v43 = vadd.f32 1e-05, %v2445_v31  ;;  %v2191_v33 = vmul.f32 %v7335_v5, %v5878_v63  ;;  %v2334_v18 = vmul.f32 %v5993_v21, %v7268_v46 }
 0x219   : > { %v2447_v57 = vadd.f32 %v2383_v34, %v2319_v54  ;;  %v2398_v3 = vmul.f32 %v5771_v48, %v6000_v36  ;;  %v2041_v7 = vmul.f32 %v5875_v41, %v7330_v30  ;;  %v2043_v31 = vmul.f32 %v5875_v41, %v7334_v51 }
 0x21a   : > { %3161 = vmatmul.mubr.f32.gmra.mxu1 %v2955_v24  ;;  %4260 = vrsqrt.f32 %v2573_v43  ;;  %v2256_v61 = vadd.f32 %v2192_v27, %v2044_v14  ;;  %v2400_v54 = vmul.f32 %v7326_v47, %v6000_v36  ;;  %v2206_v24 = vmul.f32 %v5771_v48, %v5972_v55 }
 0x21b   : > { %v2575_v6 = vadd.f32 1e-05, %v2447_v57  ;;  %v2462_v39 = vadd.f32 %v2398_v3, %v2334_v18  ;;  %v2253_v34 = vadd.f32 %v2189_v20, %v2041_v7  ;;  %v6225_v15 = vadd.f32 %v2191_v33, %v2043_v31 }
 0x21c   : > { %v2336_v45 = vmul.f32 %v5993_v21, %v7325_v19  ;;  %v2208_v10 = vmul.f32 %v7326_v47, %v5972_v55  ;;  %v2205_v14 = vmul.f32 %v7331_v17, %v5972_v55  ;;  %v2397_v3 = vmul.f32 %v7331_v17, %v6000_v36 }
 0x21d   : > { %v2590_v43 = vadd.f32 1e-05, %v2462_v39  ;;  %4262 = vrsqrt.f32 %v2575_v6  ;;  %v2333_v33 = vmul.f32 %v5993_v21, %v7330_v30  ;;  %v2058_v57 = vmul.f32 %v5969_v62, %v7268_v46 }
 0x21e   : > { %v4257_v32 = vpop.eup %4256  ;;  %v2464_v20 = vadd.f32 %v2400_v54, %v2336_v45  ;;  %v2060_v39 = vmul.f32 %v5969_v62, %v7325_v19  ;;  %v2057_v18 = vmul.f32 %v5969_v62, %v7330_v30  ;;  %v2207_v6 = vmul.f32 %v7335_v5, %v5972_v55  ;;  %v7336_v45 = vld [vmem:[#allocation51_spill] sm:$0xff] }
 0x21f   : > { %v2702_v27 = vmul.f32 %v4257_v32, %v2510_v35  ;;  %4264 = vrsqrt.f32 %v2590_v43  ;;  %v2461_v31 = vadd.f32 %v2397_v3, %v2333_v33  ;;  %v2399_v35 = vmul.f32 %v7335_v5, %v6000_v36 }
 0x220   : > { %v2512_v54 = vsub.f32 %v7336_v45, %v2256_v61  ;;  %v2270_v43 = vadd.f32 %v2206_v24, %v2058_v57  ;;  %v2335_v25 = vmul.f32 %v5993_v21, %v7334_v51  ;;  %v6254_v13 = vadd.f32 %v2208_v10, %v2060_v39  ;;  %v7339_v10 = vld [vmem:[#allocation49_spill] sm:$0xff]  ;;  %v7340_v45 = vld [vmem:[#allocation52_spill] sm:$0xff] }
 0x221   : > { %v2790_v7 = vmul.f32 %v7303_v1, %v2702_v27  ;;  %v2592_v22 = vadd.f32 1e-05, %v2464_v20  ;;  %v6256_v63 = vadd.f32 %v2205_v14, %v2057_v18  ;;  %v2059_v3 = vmul.f32 %v5969_v62, %v7334_v51  ;;  %v7337_v27 = vld [vmem:[#allocation45_spill] sm:$0xff] }
 0x222   : > { %v2509_v33 = vsub.f32 %v7337_v27, %v2253_v34  ;;  %v2463_v55 = vadd.f32 %v2399_v35, %v2335_v25  ;;  %v2222_v32 = vmul.f32 %v5771_v48, %v6075_v52  ;;  %v2224_v61 = vmul.f32 %v7326_v47, %v6075_v52 }
 0x223   : > { %v6266_v57 = vadd.f32 %v6083_v49, %v2790_v7  ;;  %v2511_v14 = vsub.f32 %v7339_v10, %v6225_v15  ;;  %v2589_v20 = vadd.f32 1e-05, %v2461_v31  ;;  %v6270_v39 = vadd.f32 %v2207_v6, %v2059_v3  ;;  %v7341_v7 = vld [vmem:[#allocation57_spill] sm:$0xff]  ;;  %v7342_v15 = vld [vmem:[#allocation50_spill] sm:$0xff] }
 0x224   : > { %v4259_v24 = vpop.eup %4258  ;;  %v2074_v25 = vmul.f32 %v6069_v58, %v7268_v46  ;;  %v2076_v34 = vmul.f32 %v6069_v58, %v7325_v19  ;;  %v2221_v35 = vmul.f32 %v7331_v17, %v6075_v52  ;;  %v2526_v27 = vsub.f32 %v7340_v45, %v2270_v43  ;;  %v7344_v43 = vld [vmem:[#allocation42_spill] sm:$0xff] }
 0x225   : > { %7338 = vst [vmem:[#allocation27_spill] sm:$0xff] %v6266_v57  ;;  %v2704_v18 = vmul.f32 %v4259_v24, %v2512_v54  ;;  %4266 = vrsqrt.f32 %v2592_v22  ;;  %v2591_v54 = vadd.f32 1e-05, %v2463_v55  ;;  %v2073_v10 = vmul.f32 %v6069_v58, %v7330_v30  ;;  %v7348_v45 = vld [vmem:[#allocation10_spill] sm:$0xff] }
 0x226   : > { %v6283_v3 = vadd.f32 %v2222_v32, %v2074_v25  ;;  %v6285_v24 = vadd.f32 %v2224_v61, %v2076_v34  ;;  %4268 = vrsqrt.f32 %v2589_v20  ;;  %v2223_v22 = vmul.f32 %v7335_v5, %v6075_v52  ;;  %v7346_v61 = vld [vmem:[#allocation94_spill] sm:$0xff]  ;;  %v7347_v25 = vld [vmem:[#allocation95_spill] sm:$0xff] }
 0x227   : > { %v4261_v6 = vpop.eup %4260  ;;  %v2792_v31 = vmul.f32 %v7303_v1, %v2704_v18  ;;  %v6295_v32 = vadd.f32 %v2221_v35, %v2073_v10  ;;  %v2178_v34 = vmul.f32 %v7347_v25, %v7346_v61  ;;  %v2075_v20 = vmul.f32 %v6069_v58, %v7334_v51  ;;  %v7349_v18 = vld [vmem:[#allocation55_spill] sm:$0xff] }
 0x228   : > { %7343 = vst [vmem:[#allocation47_spill] sm:$0xff] %v6285_v24  ;;  %v1978_v62 = vpop.xlane.xlu1 %1977  ;;  %v2701_v55 = vmul.f32 %v4261_v6, %v2509_v33  ;;  %v2370_v57 = vmul.f32 %v7347_v25, %v7348_v45  ;;  %4270 = vrsqrt.f32 %v2591_v54  ;;  %v7351_v10 = vld [vmem:[#allocation19_spill] sm:$0xff] }
 0x229   : > { %7345 = vst [vmem:[#allocation8_spill] sm:$0xff] %v6295_v32  ;;  %v1996_v21 = vmul.f32 %v5748_v44, %v1978_v62  ;;  %v2008_v36 = vsub.f32 %v6060_v42, %v1978_v62  ;;  %v2030_v40 = vmul.f32 %v7352_v9, %v7351_v10  ;;  %v6315_v58 = vadd.f32 %v2223_v22, %v2075_v20 }
 0x22a   : > { %v4263_v52 = vpop.eup %4262  ;;  %v2306_v54 = vmul.f32 %v7354_v37, %v7351_v10  ;;  %v6320_v41 = vadd.f32 %v6083_v49, %v2792_v31  ;;  %v2789_v33 = vmul.f32 %v7303_v1, %v2701_v55 }
 0x22b   : > { %v6312_v62 = vsub.f32 %v1996_v21, %v6133_v11  ;;  %v2012_v42 = vmul.f32 %v2008_v36, %v5750_v29  ;;  %7353 = vst [vmem:[#allocation43_spill] sm:$0xff] %v6315_v58  ;;  %v6325_v35 = vadd.f32 %v2178_v34, %v2030_v40  ;;  %v2703_v11 = vmul.f32 %v4263_v52, %v2511_v14  ;;  %v7358_v14 = vld [vmem:[#allocation21_spill] sm:$0xff] }
 0x22c   : > { %v4265_v44 = vpop.eup %4264  ;;  %7355 = vst [vmem:[#allocation29_spill] sm:$0xff] %v6320_v41  ;;  %v2434_v36 = vadd.f32 %v2370_v57, %v2306_v54  ;;  %v6358_v32 = vadd.f32 %v6083_v49, %v2789_v33  ;;  %v2308_v33 = vmul.f32 %v7354_v37, %v7358_v14 }
 0x22d   : > { %v6328_v21 = vsub.f32 %v2012_v42, %v6144_v59  ;;  %v2718_v29 = vmul.f32 %v4265_v44, %v2526_v27  ;;  %v2346_v22 = vmul.f32 %v6312_v62, %v7263_v56  ;;  %v2348_v31 = vmul.f32 %v6312_v62, %v7264_v2  ;;  %v7359_v27 = vld [vmem:[#allocation96_spill] sm:$0xff]  ;;  %v7360_v2 = vld [vmem:[#allocation59_spill] sm:$0xff] }
 0x22e   : > { %v2345_v55 = vmul.f32 %v6312_v62, %v7265_v16  ;;  %v2347_v20 = vmul.f32 %v6312_v62, %v7266_v28  ;;  %v2032_v28 = vmul.f32 %v7352_v9, %v7358_v14  ;;  %v2498_v24 = vsub.f32 %v7360_v2, %v6325_v35 }
 0x22f   : > { %v2410_v40 = vmul.f32 %v5746_v50, %v6328_v21  ;;  %v2412_v52 = vmul.f32 %v5762_v60, %v6328_v21  ;;  %v2409_v59 = vmul.f32 %v5765_v12, %v6328_v21  ;;  %v2411_v56 = vmul.f32 %v5768_v38, %v6328_v21 }
 0x230   : > { %v2180_v50 = vmul.f32 %v7359_v27, %v7346_v61  ;;  %v2791_v12 = vmul.f32 %v7303_v1, %v2703_v11  ;;  %v2806_v38 = vmul.f32 %v6150_v0, %v2718_v29  ;;  %v2562_v41 = vadd.f32 1e-05, %v2434_v36 }
 0x231   : > { %v2474_v34 = vadd.f32 %v2410_v40, %v2346_v22  ;;  %v2476_v44 = vadd.f32 %v2412_v52, %v2348_v31  ;;  %v2473_v60 = vadd.f32 %v2409_v59, %v2345_v55  ;;  %v2475_v42 = vadd.f32 %v2411_v56, %v2347_v20 }
 0x232   : > { %v4267_v54 = vpop.eup %4266  ;;  %v2350_v31 = vmul.f32 %v6312_v62, %v7268_v46  ;;  %v2414_v11 = vmul.f32 %v5771_v48, %v6328_v21  ;;  %v6364_v55 = vadd.f32 %v2180_v50, %v2032_v28  ;;  %v2352_v29 = vmul.f32 %v6312_v62, %v7325_v19 }
 0x233   : > { %v2602_v16 = vadd.f32 1e-05, %v2474_v34  ;;  %v2604_v58 = vadd.f32 1e-05, %v2476_v44  ;;  %v2601_v57 = vadd.f32 1e-05, %v2473_v60  ;;  %v4269_v6 = vpop.eup %4268  ;;  %v2416_v36 = vmul.f32 %v7326_v47, %v6328_v21 }
 0x234   : > { %v2603_v22 = vadd.f32 1e-05, %v2475_v42  ;;  %v6373_v20 = vadd.f32 %v6083_v49, %v2791_v12  ;;  %v6376_v46 = vadd.f32 %v6162_v53, %v2806_v38  ;;  %v2478_v48 = vadd.f32 %v2414_v11, %v2350_v31 }
 0x235   : > { %4272 = vrsqrt.f32 %v2602_v16  ;;  %v4271_v40 = vpop.eup %4270  ;;  %v7361_v52 = vsub.f32 %v7341_v7, %v6254_v13  ;;  %v7362_v47 = vsub.f32 %v7342_v15, %v6256_v63  ;;  %v2480_v56 = vadd.f32 %v2416_v36, %v2352_v29 }
 0x236   : > { %4274 = vrsqrt.f32 %v2604_v58  ;;  %v2606_v58 = vadd.f32 1e-05, %v2478_v48  ;;  %v2349_v16 = vmul.f32 %v6312_v62, %v7330_v30  ;;  %v2413_v28 = vmul.f32 %v7331_v17, %v6328_v21 }
 0x237   : > { %4276 = vrsqrt.f32 %v2601_v57  ;;  %v2720_v19 = vmul.f32 %v4267_v54, %v7361_v52  ;;  %v2717_v59 = vmul.f32 %v4269_v6, %v7362_v47  ;;  %v2608_v50 = vadd.f32 1e-05, %v2480_v56  ;;  %v7367_v52 = vld [vmem:[#allocation98_spill] sm:$0xff] }
 0x238   : > { %4278 = vrsqrt.f32 %v2603_v22  ;;  %v2351_v57 = vmul.f32 %v6312_v62, %v7334_v51  ;;  %v2415_v13 = vmul.f32 %v7335_v5, %v6328_v21  ;;  %v2477_v7 = vadd.f32 %v2413_v28, %v2349_v16  ;;  %v7363_v51 = vld [vmem:[#allocation18_spill] sm:$0xff] }
 0x239   : > { %4280 = vrsqrt.f32 %v2562_v41  ;;  %v2372_v15 = vmul.f32 %v7359_v27, %v7348_v45  ;;  %v2808_v30 = vmul.f32 %v6150_v0, %v2720_v19  ;;  %v2805_v6 = vmul.f32 %v6150_v0, %v2717_v59  ;;  %v7364_v41 = vld [vmem:[#allocation97_spill] sm:$0xff] }
 0x23a   : > { %4282 = vrsqrt.f32 %v2606_v58  ;;  %v2479_v17 = vadd.f32 %v2415_v13, %v2351_v57  ;;  %v2605_v34 = vadd.f32 1e-05, %v2477_v7  ;;  %v2305_v60 = vmul.f32 %v7354_v37, %v7363_v51 }
 0x23b   : > { %4284 = vrsqrt.f32 %v2608_v50  ;;  %v2436_v44 = vadd.f32 %v2372_v15, %v2308_v33  ;;  %v2369_v5 = vmul.f32 %v7364_v41, %v7348_v45  ;;  %v7365_v12 = vsub.f32 %v7344_v43, %v6270_v39  ;;  %v7366_v33 = vld [vmem:[#allocation20_spill] sm:$0xff] }
 0x23c   : > { %v2607_v22 = vadd.f32 1e-05, %v2479_v17  ;;  %4286 = vrsqrt.f32 %v2605_v34  ;;  %v2177_v11 = vmul.f32 %v7364_v41, %v7346_v61  ;;  %v6409_v36 = vadd.f32 %v6162_v53, %v2808_v30 }
 0x23d   : > { %v2719_v38 = vmul.f32 %v4271_v40, %v7365_v12  ;;  %v2564_v31 = vadd.f32 1e-05, %v2436_v44  ;;  %v2433_v29 = vadd.f32 %v2369_v5, %v2305_v60  ;;  %v2307_v48 = vmul.f32 %v7354_v37, %v7366_v33  ;;  %v6438_v60 = vpop.permute.xlu1 %2766  ;;  %v7370_v5 = vld [vmem:[#allocation40_spill] sm:$0xff]  ;;  %v7371_v12 = vld [vmem:[#allocation46_spill] sm:$0xff] }
 0x23e   : > { %4288 = vrsqrt.f32 %v2607_v22  ;;  %v2371_v19 = vmul.f32 %v7367_v52, %v7348_v45  ;;  %v6416_v39 = vadd.f32 %v6162_v53, %v2805_v6  ;;  %v2029_v43 = vmul.f32 %v7352_v9, %v7363_v51  ;;  %v7369_v6 = vld [vmem:[#allocation14_spill] sm:$0xff] }
 0x23f   : > { %4290 = vrsqrt.f32 %v2564_v31  ;;  %v2561_v40 = vadd.f32 1e-05, %v2433_v29  ;;  %v6421_v47 = vmul.f32 %v6150_v0, %v2719_v38  ;;  %v2322_v56 = vmul.f32 %v5923_v23, %v7351_v10  ;;  %v7373_v31 = vld [vmem:[#allocation26_spill] sm:$0xff] }
 0x240   : > { %v2435_v59 = vadd.f32 %v2371_v19, %v2307_v48  ;;  %v2386_v58 = vmul.f32 %v7347_v25, %v7311_v8  ;;  %v6427_v28 = vadd.f32 %v2177_v11, %v2029_v43  ;;  %v2031_v50 = vmul.f32 %v7352_v9, %v7366_v33  ;;  %v7374_v19 = vld [vmem:[#allocation36_spill] sm:$0xff] }
 0x241   : > { %4292 = vrsqrt.f32 %v2561_v40  ;;  %v2179_v57 = vmul.f32 %v7367_v52, %v7346_v61  ;;  %v7368_v7 = vsub.f32 %v7321_v4, %v6118_v26  ;;  %v2046_v17 = vmul.f32 %v7369_v6, %v7351_v10  ;;  %v7375_v43 = vld [vmem:[#allocation76_spill] sm:$0xff] }
 0x242   : > { %v4273_v16 = vpop.eup %4272  ;;  %v2563_v30 = vadd.f32 1e-05, %v2435_v59  ;;  %v2450_v34 = vadd.f32 %v2386_v58, %v2322_v56  ;;  %v7372_v38 = vsub.f32 %v7370_v5, %v7371_v12  ;;  %v2194_v11 = vmul.f32 %v7347_v25, %v7373_v31  ;;  %v7378_v5 = vld [vmem:[#allocation35_spill] sm:$0xff] }
 0x243   : > { %v4275_v13 = vpop.eup %4274  ;;  %v2730_v15 = vmul.f32 %v4273_v16, %v7368_v7  ;;  %v2324_v29 = vmul.f32 %v5923_v23, %v7358_v14  ;;  %v2388_v26 = vmul.f32 %v7359_v27, %v7311_v8  ;;  %v7376_v40 = vsub.f32 %v7374_v19, %v7375_v43  ;;  %v6453_v16 = vpop.permute.xlu0 %2854  ;;  %v7377_v7 = vld [vmem:[#allocation38_spill] sm:$0xff] }
 0x244   : > { %v4277_v44 = vpop.eup %4276  ;;  %v2732_v22 = vmul.f32 %v4275_v13, %v7372_v38  ;;  %4294 = vrsqrt.f32 %v2563_v30  ;;  %v2578_v56 = vadd.f32 1e-05, %v2450_v34  ;;  %v7379_v12 = vsub.f32 %v7377_v7, %v7378_v5  ;;  %v7385_v5 = vld [vmem:[#allocation92_spill] sm:$0xff] }
 0x245   : > { %v4279_v4 = vpop.eup %4278  ;;  %v2818_v48 = vmul.f32 %v6438_v60, %v2730_v15  ;;  %v2729_v59 = vmul.f32 %v4277_v44, %v7376_v40  ;;  %v2196_v54 = vmul.f32 %v7359_v27, %v7373_v31  ;;  %v2452_v42 = vadd.f32 %v2388_v26, %v2324_v29 }
 0x246   : > { %v4281_v58 = vpop.eup %4280  ;;  %v2820_v13 = vmul.f32 %v6438_v60, %v2732_v22  ;;  %v2731_v38 = vmul.f32 %v4279_v4, %v7379_v12  ;;  %4296 = vrsqrt.f32 %v2578_v56  ;;  %v7380_v4 = vsub.f32 %v7349_v18, %v6283_v3  ;;  %v7381_v18 = vld [vmem:[#allocation56_spill] sm:$0xff] }
 0x247   : > { %v4283_v15 = vpop.eup %4282  ;;  %v2906_v63 = vadd.f32 %v6453_v16, %v2818_v48  ;;  %v2817_v44 = vmul.f32 %v6438_v60, %v2729_v59  ;;  %v2690_v30 = vmul.f32 %v4281_v58, %v2498_v24  ;;  %v2580_v29 = vadd.f32 1e-05, %v2452_v42 }
 0x248   : > { %v4285_v34 = vpop.eup %4284  ;;  %v2908_v22 = vadd.f32 %v6453_v16, %v2820_v13  ;;  %v2819_v19 = vmul.f32 %v6438_v60, %v2731_v38  ;;  %v2734_v43 = vmul.f32 %v4283_v15, %v7380_v4  ;;  %v6472_v40 = vadd.f32 %v2179_v57, %v2031_v50  ;;  %v7384_v50 = vld [vmem:[#allocation62_spill] sm:$0xff] }
 0x249   : > { %v2970_v26 = vmax.f32 %v2906_v63, 0.0  ;;  %v2905_v48 = vadd.f32 %v6453_v16, %v2817_v44  ;;  %v6474_v59 = vadd.f32 %v2194_v11, %v2046_v17  ;;  %v2048_v2 = vmul.f32 %v7369_v6, %v7358_v14  ;;  %v4287_v56 = vpop.eup %4286  ;;  %v7382_v63 = vld [vmem:[#allocation47_spill] sm:$0xff] }
 0x24a   : > { %v2972_v35 = vmax.f32 %v2908_v22, 0.0  ;;  %v2907_v24 = vadd.f32 %v6453_v16, %v2819_v19  ;;  %4298 = vrsqrt.f32 %v2580_v29  ;;  %v2960_v3 = vmax.f32 %v6409_v36, 0.0  ;;  %v7386_v22 = vld [vmem:[#allocation53_spill] sm:$0xff]  ;;  %v7390_v29 = vld [vmem:[#allocation43_spill] sm:$0xff] }
 0x24b   : > { %3080 = vmatprep.mubr.f32.mxu0 %v2970_v26  ;;  %v2969_v58 = vmax.f32 %v2905_v48, 0.0  ;;  %v7383_v42 = vsub.f32 %v7381_v18, %v7382_v63  ;;  %v2500_v57 = vsub.f32 %v7384_v50, %v6364_v55  ;;  %v4289_v17 = vpop.eup %4288  ;;  %v2822_v7 = vmul.f32 %v6438_v60, %v2734_v43  ;;  %v7389_v55 = vld [vmem:[#allocation54_spill] sm:$0xff]  ;;  %v7396_v18 = vld [vmem:[#allocation63_spill] sm:$0xff] }
 0x24c   : > { %3165 = vmatprep.mubr.f32.mxu1 %v2972_v35  ;;  %v2971_v11 = vmax.f32 %v2907_v24, 0.0  ;;  %v2778_v12 = vmul.f32 %v7385_v5, %v2690_v30  ;;  %v6487_v38 = vadd.f32 %v2196_v54, %v2048_v2  ;;  %v4291_v15 = vpop.eup %4290  ;;  %v6491_v44 = vadd.f32 %v6162_v53, %v6421_v47  ;;  %v7392_v43 = vld [vmem:[#allocation58_spill] sm:$0xff]  ;;  %v7393_v54 = vld [vmem:[#allocation41_spill] sm:$0xff]  ;;  %v7395_v47 = vld [vmem:[#allocation60_spill] sm:$0xff] }
 0x24d   : > { %v2736_v13 = vmul.f32 %v4285_v34, %v7383_v42  ;;  %3081 = vmatmul.mubr.f32.gmra.mxu0 %v2969_v58  ;;  %v7387_v34 = vld [vmem:[#allocation8_spill] sm:$0xff]  ;;  %v7391_v26 = vsub.f32 %v7389_v55, %v7390_v29  ;;  %v2497_v35 = vsub.f32 %v7392_v43, %v6427_v28  ;;  %v7394_v30 = vmax.f32 %v7393_v54, 0.0  ;;  %v7397_v42 = vld [vmem:[#allocation34_spill] sm:$0xff] }
 0x24e   : > { %v7388_v19 = vsub.f32 %v7386_v22, %v7387_v34  ;;  %3166 = vmatmul.mubr.f32.gmra.mxu1 %v2971_v11  ;;  %v2692_v2 = vmul.f32 %v4291_v15, %v2500_v57  ;;  %v2499_v58 = vsub.f32 %v7395_v47, %v6472_v40  ;;  %v4293_v63 = vpop.eup %4292  ;;  %v7398_v50 = vmax.f32 %v7397_v42, 0.0  ;;  %v7399_v15 = vld [vmem:[#allocation74_spill] sm:$0xff]  ;;  %v7401_v55 = vld [vmem:[#allocation44_spill] sm:$0xff]  ;;  %v7405_v42 = vld [vmem:[#allocation27_spill] sm:$0xff] }
 0x24f   : > { %v2735_v48 = vmul.f32 %v4289_v17, %v7391_v26  ;;  %3235 = vmatprep.mubr.f32.mxu0 %v7394_v30  ;;  %v2824_v17 = vmul.f32 %v6438_v60, %v2736_v13  ;;  %v2193_v28 = vmul.f32 %v7364_v41, %v7373_v31  ;;  %v2321_v11 = vmul.f32 %v5923_v23, %v7363_v51  ;;  %v7400_v13 = vld [vmem:[#allocation66_spill] sm:$0xff] }
 0x250   : > { %v2733_v4 = vmul.f32 %v4287_v56, %v7388_v19  ;;  %v2514_v56 = vsub.f32 %v7396_v18, %v6474_v59  ;;  %3320 = vmatprep.mubr.f32.mxu1 %v7398_v50  ;;  %v2385_v57 = vmul.f32 %v7364_v41, %v7311_v8  ;;  %v2910_v40 = vadd.f32 %v6453_v16, %v2822_v7  ;;  %v2993_v59 = vld [vmem:[%s6918_s6 + $0x40] sm:$0xff]  ;;  %v2995_v7 = vld [vmem:[%s6918_s6 + $0x50] sm:$0xff] }
 0x251   : > { %v6522_v22 = vadd.f32 %v7399_v15, %v2778_v12  ;;  %v2516_v34 = vsub.f32 %v7400_v13, %v6487_v38  ;;  %v2045_v19 = vmul.f32 %v7369_v6, %v7363_v51  ;;  %v7402_v29 = vmax.f32 %v7401_v55, 0.0  ;;  %v2998_v38 = vld [vmem:[%s6918_s6 + $0x68] sm:$0xff]  ;;  %v4295_v30 = vpop.eup %4294  ;;  %v7403_v47 = vld [vmem:[#allocation6_spill] sm:$0xff] }
 0x252   : > { %v2821_v26 = vmul.f32 %v6438_v60, %v2733_v4  ;;  %v2823_v43 = vmul.f32 %v6438_v60, %v2735_v48  ;;  %v2780_v12 = vmul.f32 %v7385_v5, %v2692_v2  ;;  %v2449_v54 = vadd.f32 %v2385_v57, %v2321_v11  ;;  %v3000_v2 = vld [vmem:[%s6918_s6 + $0x78] sm:$0xff] }
 0x253   : > { %3236 = vmatmul.mubr.f32.vlgmr.msra.gmra.mxu0 %v7402_v29  ;;  %v7404_v18 = vmax.f32 %v7403_v47, 0.0  ;;  %v7406_v50 = vmax.f32 %v7405_v42, 0.0  ;;  %v2959_v13 = vmax.f32 %v6491_v44, 0.0  ;;  %v2689_v55 = vmul.f32 %v4293_v63, %v2497_v35  ;;  %v7407_v11 = vld [vmem:[#allocation29_spill] sm:$0xff]  ;;  %v4297_v63 = vpop.eup %4296 }
 0x254   : > { %v2323_v4 = vmul.f32 %v5923_v23, %v7366_v33  ;;  %v2387_v48 = vmul.f32 %v7367_v52, %v7311_v8  ;;  %v7408_v57 = vmax.f32 %v7407_v11, 0.0  ;;  %v2912_v29 = vadd.f32 %v6453_v16, %v2824_v17  ;;  %3372 = vmatpush1.xpose.msra.mxu0 %v2993_v59 }
 0x255   : > { %3321 = vmatmul.mubr.f32.vlgmr.msra.gmra.mxu1 %v7404_v18  ;;  %3240 = vmatprep.mubr.f32.mxu0 %v7406_v50  ;;  %v6554_v47 = vadd.f32 %v2193_v28, %v2045_v19  ;;  %v2577_v44 = vadd.f32 1e-05, %v2449_v54  ;;  %v2195_v35 = vmul.f32 %v7367_v52, %v7373_v31  ;;  %v2930_v18 = vmax.f32 %v6522_v22, 0.0 }
 0x256   : > { %3325 = vmatprep.mubr.f32.mxu1 %v7408_v57  ;;  %3457 = vmatpush1.xpose.msra.mxu1 %v2995_v7  ;;  %v2691_v42 = vmul.f32 %v4295_v30, %v2499_v58  ;;  %v2047_v50 = vmul.f32 %v7369_v6, %v7366_v33  ;;  %v2451_v24 = vadd.f32 %v2387_v48, %v2323_v4  ;;  %v7409_v11 = vmax.f32 %v6358_v32, 0.0  ;;  %v7413_v30 = vld [vmem:[#allocation99_spill] sm:$0xff] }
 0x257   : > { %3541 = vmatprep.subr.mxu0 %v2998_v38  ;;  %v2909_v17 = vadd.f32 %v6453_v16, %v2821_v26  ;;  %v2911_v28 = vadd.f32 %v6453_v16, %v2823_v43  ;;  %v2706_v59 = vmul.f32 %v4297_v63, %v2514_v56  ;;  %4300 = vrsqrt.f32 %v2577_v44  ;;  %3626 = vmatprep.subr.mxu1 %v3000_v2  ;;  %v4299_v38 = vpop.eup %4298  ;;  %v7412_v43 = vld [vmem:[#allocation33_spill] sm:$0xff] }
 0x258   : > { %3241 = vmatmul.mubr.f32.gmra.mxu0 %v7409_v11  ;;  %v7410_v19 = vmax.f32 %v6373_v20, 0.0  ;;  %v7411_v58 = vmax.f32 %v6376_v46, 0.0  ;;  %v2974_v22 = vmax.f32 %v2910_v40, 0.0  ;;  %v2868_v7 = vadd.f32 %v7399_v15, %v2780_v12 }
 0x259   : > { %v2777_v54 = vmul.f32 %v7385_v5, %v2689_v55  ;;  %v2579_v32 = vadd.f32 1e-05, %v2451_v24  ;;  %v2976_v26 = vmax.f32 %v2912_v29, 0.0  ;;  %v6573_v56 = vadd.f32 %v2195_v35, %v2047_v50  ;;  %v7415_v55 = vld [vmem:[#allocation61_spill] sm:$0xff]  ;;  %v7416_v35 = vld [vmem:[#allocation30_spill] sm:$0xff] }
 0x25a   : > { %3326 = vmatmul.mubr.f32.gmra.mxu1 %v7410_v19  ;;  %3245 = vmatprep.mubr.f32.mxu0 %v7411_v58  ;;  %v2338_v20 = vmul.f32 %v7412_v43, %v7351_v10  ;;  %v2402_v46 = vmul.f32 %v7347_v25, %v7413_v30  ;;  %v2779_v40 = vmul.f32 %v7385_v5, %v2691_v42  ;;  %v7414_v24 = vmax.f32 %v6416_v39, 0.0  ;;  %v7417_v39 = vld [vmem:[#allocation28_spill] sm:$0xff] }
 0x25b   : > { %3330 = vmatprep.mubr.f32.mxu1 %v2960_v3  ;;  %v2794_v12 = vmul.f32 %v7303_v1, %v2706_v59  ;;  %v2708_v4 = vmul.f32 %v4299_v38, %v2516_v34  ;;  %4302 = vrsqrt.f32 %v2579_v32  ;;  %v2973_v36 = vmax.f32 %v2909_v17, 0.0 }
 0x25c   : > { %3246 = vmatmul.mubr.f32.gmra.mxu0 %v7414_v24  ;;  %v2975_v3 = vmax.f32 %v2911_v28, 0.0  ;;  %v2513_v48 = vsub.f32 %v7415_v55, %v6554_v47  ;;  %v2466_v2 = vadd.f32 %v2402_v46, %v2338_v20  ;;  %v2932_v57 = vmax.f32 %v2868_v7, 0.0  ;;  %v7418_v28 = vld [vmem:[#allocation64_spill] sm:$0xff]  ;;  %v2997_v24 = vld [vmem:[%s6918_s6 + $0x60] sm:$0xff] }
 0x25d   : > { %3250 = vmatprep.mubr.f32.mxu0 %v2974_v22  ;;  %v2865_v29 = vadd.f32 %v7399_v15, %v2777_v54  ;;  %v2796_v44 = vmul.f32 %v7303_v1, %v2708_v4  ;;  %v2210_v34 = vmul.f32 %v7347_v25, %v7416_v35  ;;  %v2062_v63 = vmul.f32 %v7417_v39, %v7351_v10 }
 0x25e   : > { %3331 = vmatmul.mubr.f32.gmra.mxu1 %v2959_v13  ;;  %v2594_v42 = vadd.f32 1e-05, %v2466_v2  ;;  %v2340_v50 = vmul.f32 %v7412_v43, %v7358_v14  ;;  %v2404_v13 = vmul.f32 %v7359_v27, %v7413_v30  ;;  %v2867_v47 = vadd.f32 %v7399_v15, %v2779_v40  ;;  %v2999_v2 = vld [vmem:[%s6918_s6 + $0x70] sm:$0xff] }
 0x25f   : > { %3335 = vmatprep.mubr.f32.mxu1 %v2976_v26  ;;  %v2882_v11 = vadd.f32 %v6083_v49, %v2794_v12  ;;  %v2884_v17 = vadd.f32 %v6083_v49, %v2796_v44  ;;  %v2515_v59 = vsub.f32 %v7418_v28, %v6573_v56  ;;  %v2337_v58 = vmul.f32 %v7412_v43, %v7363_v51 }
 0x260   : > { %3251 = vmatmul.mubr.f32.gmra.mxu0 %v2973_v36  ;;  %4304 = vrsqrt.f32 %v2594_v42  ;;  %v2468_v19 = vadd.f32 %v2404_v13, %v2340_v50  ;;  %v2401_v22 = vmul.f32 %v7364_v41, %v7413_v30  ;;  %v2929_v7 = vmax.f32 %v2865_v29, 0.0  ;;  %v7419_v29 = vld [vmem:[#allocation67_spill] sm:$0xff] }
 0x261   : > { %3405 = vmatprep.mubr.f32.mxu0 %v2930_v18  ;;  %v6604_v54 = vadd.f32 %v2210_v34, %v2062_v63  ;;  %v2064_v32 = vmul.f32 %v7417_v39, %v7358_v14  ;;  %v2212_v38 = vmul.f32 %v7359_v27, %v7416_v35  ;;  %v2339_v20 = vmul.f32 %v7412_v43, %v7366_v33 }
 0x262   : > { %3336 = vmatmul.mubr.f32.gmra.mxu1 %v2975_v3  ;;  %v2596_v26 = vadd.f32 1e-05, %v2468_v19  ;;  %v2465_v56 = vadd.f32 %v2401_v22, %v2337_v58  ;;  %v2403_v46 = vmul.f32 %v7367_v52, %v7413_v30  ;;  %v2931_v40 = vmax.f32 %v2867_v47, 0.0 }
 0x263   : > { %3490 = vmatprep.mubr.f32.mxu1 %v2932_v57  ;;  %v2946_v18 = vmax.f32 %v2882_v11, 0.0  ;;  %v2948_v12 = vmax.f32 %v2884_v17, 0.0  ;;  %v2354_v4 = vmul.f32 %v6312_v62, %v7351_v10  ;;  %v2418_v55 = vmul.f32 %v7347_v25, %v6328_v21 }
 0x264   : > { %3406 = vmatmul.mubr.f32.vlgmr.msra.gmra.mxu0 %v2929_v7  ;;  %4306 = vrsqrt.f32 %v2596_v26  ;;  %v2593_v36 = vadd.f32 1e-05, %v2465_v56  ;;  %v2467_v3 = vadd.f32 %v2403_v46, %v2339_v20  ;;  %v4301_v57 = vpop.eup %4300  ;;  %v2530_v44 = vsub.f32 %v7419_v29, %v6604_v54 }
 0x265   : > { %3410 = vmatprep.mubr.f32.mxu0 %v2946_v18  ;;  %v2276_v34 = vadd.f32 %v2212_v38, %v2064_v32  ;;  %v2209_v63 = vmul.f32 %v7364_v41, %v7416_v35  ;;  %v2705_v42 = vmul.f32 %v4301_v57, %v2513_v48  ;;  %v2482_v13 = vadd.f32 %v2418_v55, %v2354_v4  ;;  %v7420_v32 = vld [vmem:[#allocation32_spill] sm:$0xff] }
 0x266   : > { %3491 = vmatmul.mubr.f32.vlgmr.msra.gmra.mxu1 %v2931_v40  ;;  %4308 = vrsqrt.f32 %v2593_v36  ;;  %v2595_v50 = vadd.f32 1e-05, %v2467_v3  ;;  %3542 = vmatpush1.xpose.msra.mxu0 %v2997_v24  ;;  %v2061_v47 = vmul.f32 %v7417_v39, %v7363_v51  ;;  %v2211_v11 = vmul.f32 %v7367_v52, %v7416_v35  ;;  %v7422_v36 = vld [vmem:[#allocation71_spill] sm:$0xff] }
 0x267   : > { %3495 = vmatprep.mubr.f32.mxu1 %v2948_v12  ;;  %v2356_v17 = vmul.f32 %v6312_v62, %v7358_v14  ;;  %v2420_v28 = vmul.f32 %v7359_v27, %v6328_v21  ;;  %3627 = vmatpush1.xpose.msra.mxu1 %v2999_v2  ;;  %v2793_v48 = vmul.f32 %v7303_v1, %v2705_v42  ;;  %v2610_v22 = vadd.f32 1e-05, %v2482_v13  ;;  %v7421_v12 = vld [vmem:[#allocation31_spill] sm:$0xff] }
 0x268   : > { %v4303_v19 = vpop.eup %4302  ;;  %v2063_v58 = vmul.f32 %v7417_v39, %v7366_v33  ;;  %4310 = vrsqrt.f32 %v2595_v50  ;;  %v2273_v54 = vadd.f32 %v2209_v63, %v2061_v47  ;;  %v2226_v38 = vmul.f32 %v7347_v25, %v7420_v32 }
 0x269   : > { %v2707_v7 = vmul.f32 %v4303_v19, %v2515_v59  ;;  %v2484_v26 = vadd.f32 %v2420_v28, %v2356_v17  ;;  %v2881_v56 = vadd.f32 %v6083_v49, %v2793_v48  ;;  %4312 = vrsqrt.f32 %v2610_v22  ;;  %v7425_v28 = vld [vmem:[#allocation11_spill] sm:$0xff] }
 0x26a   : > { %v2353_v20 = vmul.f32 %v6312_v62, %v7363_v51  ;;  %v2417_v46 = vmul.f32 %v7364_v41, %v6328_v21  ;;  %v2275_v18 = vadd.f32 %v2211_v11, %v2063_v58  ;;  %v2078_v59 = vmul.f32 %v7421_v12, %v7351_v10  ;;  %v7424_v11 = vld [vmem:[#allocation70_spill] sm:$0xff]  ;;  %v7426_v19 = vld [vmem:[#allocation3_spill] sm:$0xff] }
 0x26b   : > { %v2795_v40 = vmul.f32 %v7303_v1, %v2707_v7  ;;  %v2612_v4 = vadd.f32 1e-05, %v2484_v26  ;;  %v2945_v24 = vmax.f32 %v2881_v56, 0.0  ;;  %v2532_v25 = vsub.f32 %v7422_v36, %v2276_v34  ;;  %v7428_v56 = vld [vmem:[#allocation15_spill] sm:$0xff] }
 0x26c   : > { %v2228_v3 = vmul.f32 %v7359_v27, %v7420_v32  ;;  %v2481_v55 = vadd.f32 %v2417_v46, %v2353_v20  ;;  %v2290_v29 = vadd.f32 %v2226_v38, %v2078_v59  ;;  %v2080_v63 = vmul.f32 %v7421_v12, %v7358_v14  ;;  %v7423_v27 = vld [vmem:[#allocation65_spill] sm:$0xff]  ;;  %v7427_v38 = vld [vmem:[#allocation23_spill] sm:$0xff] }
 0x26d   : > { %v4305_v2 = vpop.eup %4304  ;;  %v2883_v57 = vadd.f32 %v6083_v49, %v2795_v40  ;;  %4314 = vrsqrt.f32 %v2612_v4  ;;  %3411 = vmatmul.mubr.f32.gmra.mxu0 %v2945_v24  ;;  %v2355_v10 = vmul.f32 %v6312_v62, %v7366_v33  ;;  %v2419_v34 = vmul.f32 %v7367_v52, %v6328_v21 }
 0x26e   : > { %v2722_v42 = vmul.f32 %v4305_v2, %v2530_v44  ;;  %v2609_v50 = vadd.f32 1e-05, %v2481_v55  ;;  %v2529_v47 = vsub.f32 %v7423_v27, %v2273_v54  ;;  %v2531_v17 = vsub.f32 %v7424_v11, %v2275_v18  ;;  %v7429_v18 = vld [vmem:[#allocation69_spill] sm:$0xff] }
 0x26f   : > { %v2947_v13 = vmax.f32 %v2883_v57, 0.0  ;;  %v6663_v48 = vrot.slane %v7426_v19, %v7425_v28  ;;  %v2292_v58 = vadd.f32 %v2228_v3, %v2080_v63  ;;  %v2483_v44 = vadd.f32 %v2419_v34, %v2355_v10  ;;  %v7430_v3 = vld [vmem:[#allocation25_spill] sm:$0xff] }
 0x270   : > { %v2810_v14 = vmul.f32 %v6150_v0, %v2722_v42  ;;  %4316 = vrsqrt.f32 %v2609_v50  ;;  %v2225_v7 = vmul.f32 %v7364_v41, %v7420_v32  ;;  %v2310_v26 = vmul.f32 %v7354_v37, %v7427_v38  ;;  %v7431_v50 = vld [vmem:[#allocation73_spill] sm:$0xff] }
 0x271   : > { %v4307_v22 = vpop.eup %4306  ;;  %3496 = vmatmul.mubr.f32.gmra.mxu1 %v2947_v13  ;;  %v2374_v54 = vmul.f32 %v6663_v48, %v7348_v45  ;;  %v6674_v20 = vrot.slane %v7426_v19, %v7428_v56  ;;  %v2546_v59 = vsub.f32 %v7429_v18, %v2290_v29  ;;  %v2611_v4 = vadd.f32 1e-05, %v2483_v44 }
 0x272   : > { %v2898_v46 = vadd.f32 %v6162_v53, %v2810_v14  ;;  %v2724_v40 = vmul.f32 %v4307_v22, %v2532_v25  ;;  %v2077_v41 = vmul.f32 %v7421_v12, %v7363_v51  ;;  %v2312_v55 = vmul.f32 %v7354_v37, %v7430_v3  ;;  %v7432_v22 = vld [vmem:[#allocation9_spill] sm:$0xff] }
 0x273   : > { %v4309_v24 = vpop.eup %4308  ;;  %v2438_v36 = vadd.f32 %v2374_v54, %v2310_v26  ;;  %v2376_v2 = vmul.f32 %v6674_v20, %v7348_v45  ;;  %4318 = vrsqrt.f32 %v2611_v4  ;;  %v2548_v29 = vsub.f32 %v7431_v50, %v2292_v58  ;;  %v7435_v50 = vld [vmem:[#allocation13_spill] sm:$0xff] }
 0x274   : > { %v2962_v57 = vmax.f32 %v2898_v46, 0.0  ;;  %v2812_v63 = vmul.f32 %v6150_v0, %v2724_v40  ;;  %v2721_v42 = vmul.f32 %v4309_v24, %v2529_v47  ;;  %v2289_v10 = vadd.f32 %v2225_v7, %v2077_v41 }
 0x275   : > { %v4311_v25 = vpop.eup %4310  ;;  %v2566_v34 = vadd.f32 1e-05, %v2438_v36  ;;  %v2440_v13 = vadd.f32 %v2376_v2, %v2312_v55  ;;  %v2227_v28 = vmul.f32 %v7367_v52, %v7420_v32  ;;  %v2079_v47 = vmul.f32 %v7421_v12, %v7366_v33  ;;  %v7433_v52 = vld [vmem:[#allocation22_spill] sm:$0xff] }
 0x276   : > { %3415 = vmatprep.mubr.f32.mxu0 %v2962_v57  ;;  %v2900_v51 = vadd.f32 %v6162_v53, %v2812_v63  ;;  %v2809_v27 = vmul.f32 %v6150_v0, %v2721_v42  ;;  %v2723_v11 = vmul.f32 %v4311_v25, %v2531_v17  ;;  %v4313_v14 = vpop.eup %4312  ;;  %v6694_v58 = vrot.slane %v7426_v19, %v7432_v22  ;;  %v7434_v42 = vld [vmem:[#allocation68_spill] sm:$0xff] }
 0x277   : > { %4320 = vrsqrt.f32 %v2566_v34  ;;  %v2568_v44 = vadd.f32 1e-05, %v2440_v13  ;;  %v2738_v56 = vmul.f32 %v4313_v14, %v2546_v59  ;;  %v2182_v17 = vmul.f32 %v6663_v48, %v7346_v61  ;;  %v7437_v22 = vld [vmem:[#allocation72_spill] sm:$0xff] }
 0x278   : > { %v2964_v7 = vmax.f32 %v2900_v51, 0.0  ;;  %v2897_v26 = vadd.f32 %v6162_v53, %v2809_v27  ;;  %v2811_v54 = vmul.f32 %v6150_v0, %v2723_v11  ;;  %v2309_v46 = vmul.f32 %v7354_v37, %v7433_v52 }
 0x279   : > { %4322 = vrsqrt.f32 %v2568_v44  ;;  %v2373_v33 = vmul.f32 %v6694_v58, %v7348_v45  ;;  %v2826_v24 = vmul.f32 %v6438_v60, %v2738_v56  ;;  %v2291_v41 = vadd.f32 %v2227_v28, %v2079_v47  ;;  %v7436_v47 = vld [vmem:[#allocation24_spill] sm:$0xff] }
 0x27a   : > { %v4315_v40 = vpop.eup %4314  ;;  %3500 = vmatprep.mubr.f32.mxu1 %v2964_v7  ;;  %v2961_v18 = vmax.f32 %v2897_v26, 0.0  ;;  %v2899_v4 = vadd.f32 %v6162_v53, %v2811_v54  ;;  %v2034_v59 = vmul.f32 %v7352_v9, %v7427_v38  ;;  %v2184_v55 = vmul.f32 %v6674_v20, %v7346_v61 }
 0x27b   : > { %v2740_v36 = vmul.f32 %v4315_v40, %v2548_v29  ;;  %v2437_v2 = vadd.f32 %v2373_v33, %v2309_v46  ;;  %v2914_v63 = vadd.f32 %v6453_v16, %v2826_v24  ;;  %v2545_v25 = vsub.f32 %v7434_v42, %v2289_v10  ;;  %v7438_v40 = vld [vmem:[#allocation77_spill] sm:$0xff] }
 0x27c   : > { %3416 = vmatmul.mubr.f32.gmra.mxu0 %v2961_v18  ;;  %v2963_v57 = vmax.f32 %v2899_v4, 0.0  ;;  %v6714_v34 = vrot.slane %v7426_v19, %v7435_v50  ;;  %v2246_v51 = vadd.f32 %v2182_v17, %v2034_v59  ;;  %v2036_v27 = vmul.f32 %v7352_v9, %v7430_v3  ;;  %v7439_v59 = vld [vmem:[#allocation80_spill] sm:$0xff] }
 0x27d   : > { %v4317_v13 = vpop.eup %4316  ;;  %v2828_v29 = vmul.f32 %v6438_v60, %v2740_v36  ;;  %v2565_v11 = vadd.f32 1e-05, %v2437_v2  ;;  %v2978_v28 = vmax.f32 %v2914_v63, 0.0  ;;  %v2311_v44 = vmul.f32 %v7354_v37, %v7436_v47 }
 0x27e   : > { %3501 = vmatmul.mubr.f32.gmra.mxu1 %v2963_v57  ;;  %v2737_v14 = vmul.f32 %v4317_v13, %v2545_v25  ;;  %v2375_v10 = vmul.f32 %v6714_v34, %v7348_v45  ;;  %v2547_v7 = vsub.f32 %v7437_v22, %v2291_v41  ;;  %v2248_v26 = vadd.f32 %v2184_v55, %v2036_v27 }
 0x27f   : > { %v2916_v19 = vadd.f32 %v6453_v16, %v2828_v29  ;;  %4324 = vrsqrt.f32 %v2565_v11  ;;  %3420 = vmatprep.mubr.f32.mxu0 %v2978_v28  ;;  %v2326_v17 = vmul.f32 %v5923_v23, %v7427_v38  ;;  %v2390_v46 = vmul.f32 %v6663_v48, %v7311_v8 }
 0x280   : > { %v2825_v54 = vmul.f32 %v6438_v60, %v2737_v14  ;;  %v2439_v56 = vadd.f32 %v2375_v10, %v2311_v44  ;;  %v4319_v37 = vpop.eup %4318  ;;  %v2502_v45 = vsub.f32 %v7438_v40, %v2246_v51  ;;  %v2181_v18 = vmul.f32 %v6694_v58, %v7346_v61 }
 0x281   : > { %v2980_v33 = vmax.f32 %v2916_v19, 0.0  ;;  %v2739_v24 = vmul.f32 %v4319_v37, %v2547_v7  ;;  %v2454_v36 = vadd.f32 %v2390_v46, %v2326_v17  ;;  %v2504_v55 = vsub.f32 %v7439_v59, %v2248_v26 }
 0x282   : > { %v2913_v4 = vadd.f32 %v6453_v16, %v2825_v54  ;;  %v2567_v41 = vadd.f32 1e-05, %v2439_v56  ;;  %v2033_v2 = vmul.f32 %v7352_v9, %v7433_v52  ;;  %v2328_v57 = vmul.f32 %v5923_v23, %v7430_v3 }
 0x283   : > { %3505 = vmatprep.mubr.f32.mxu1 %v2980_v33  ;;  %v2392_v63 = vmul.f32 %v6674_v20, %v7311_v8  ;;  %v2827_v50 = vmul.f32 %v6438_v60, %v2739_v24  ;;  %v2582_v13 = vadd.f32 1e-05, %v2454_v36  ;;  %v2183_v27 = vmul.f32 %v6714_v34, %v7346_v61  ;;  %v7440_v33 = vld [vmem:[#allocation75_spill] sm:$0xff] }
 0x284   : > { %v4321_v42 = vpop.eup %4320  ;;  %v2977_v25 = vmax.f32 %v2913_v4, 0.0  ;;  %4326 = vrsqrt.f32 %v2567_v41  ;;  %v2245_v51 = vadd.f32 %v2181_v18, %v2033_v2  ;;  %v2198_v44 = vmul.f32 %v6663_v48, %v7373_v31 }
 0x285   : > { %v2694_v29 = vmul.f32 %v4321_v42, %v2502_v45  ;;  %v2456_v11 = vadd.f32 %v2392_v63, %v2328_v57  ;;  %v2915_v14 = vadd.f32 %v6453_v16, %v2827_v50  ;;  %4328 = vrsqrt.f32 %v2582_v13 }
 0x286   : > { %v4323_v28 = vpop.eup %4322  ;;  %3421 = vmatmul.mubr.f32.gmra.mxu0 %v2977_v25  ;;  %v2325_v10 = vmul.f32 %v5923_v23, %v7433_v52  ;;  %v2389_v26 = vmul.f32 %v6694_v58, %v7311_v8  ;;  %v2035_v54 = vmul.f32 %v7352_v9, %v7436_v47  ;;  %v2050_v56 = vmul.f32 %v7369_v6, %v7427_v38 }
 0x287   : > { %v2782_v19 = vmul.f32 %v7385_v5, %v2694_v29  ;;  %v2696_v22 = vmul.f32 %v4323_v28, %v2504_v55  ;;  %v2584_v7 = vadd.f32 1e-05, %v2456_v11  ;;  %v2979_v61 = vmax.f32 %v2915_v14, 0.0  ;;  %v7441_v14 = vld [vmem:[#allocation79_spill] sm:$0xff] }
 0x288   : > { %v2453_v37 = vadd.f32 %v2389_v26, %v2325_v10  ;;  %v2501_v40 = vsub.f32 %v7440_v33, %v2245_v51  ;;  %v2247_v45 = vadd.f32 %v2183_v27, %v2035_v54  ;;  %v2327_v18 = vmul.f32 %v5923_v23, %v7436_v47 }
 0x289   : > { %v2870_v17 = vadd.f32 %v7399_v15, %v2782_v19  ;;  %v2784_v46 = vmul.f32 %v7385_v5, %v2696_v22  ;;  %4330 = vrsqrt.f32 %v2584_v7  ;;  %3506 = vmatmul.mubr.f32.gmra.mxu1 %v2979_v61  ;;  %v2391_v4 = vmul.f32 %v6714_v34, %v7311_v8 }
 0x28a   : > { %v2262_v41 = vadd.f32 %v2198_v44, %v2050_v56  ;;  %v2581_v36 = vadd.f32 1e-05, %v2453_v37  ;;  %v2200_v55 = vmul.f32 %v6674_v20, %v7373_v31  ;;  %v2197_v2 = vmul.f32 %v6694_v58, %v7373_v31  ;;  %v7442_v56 = vld [vmem:[#allocation83_spill] sm:$0xff] }
 0x28b   : > { %v2934_v9 = vmax.f32 %v2870_v17, 0.0  ;;  %v2872_v24 = vadd.f32 %v7399_v15, %v2784_v46  ;;  %v2455_v57 = vadd.f32 %v2391_v4, %v2327_v18  ;;  %v2342_v63 = vmul.f32 %v7412_v43, %v7427_v38 }
 0x28c   : > { %v4325_v59 = vpop.eup %4324  ;;  %4332 = vrsqrt.f32 %v2581_v36  ;;  %v2406_v8 = vmul.f32 %v6663_v48, %v7413_v30  ;;  %v2052_v25 = vmul.f32 %v7369_v6, %v7430_v3  ;;  %v2049_v50 = vmul.f32 %v7369_v6, %v7433_v52 }
 0x28d   : > { %3575 = vmatprep.mubr.f32.mxu0 %v2934_v9  ;;  %v2936_v23 = vmax.f32 %v2872_v24, 0.0  ;;  %v2693_v42 = vmul.f32 %v4325_v59, %v2501_v40  ;;  %v2199_v13 = vmul.f32 %v6714_v34, %v7373_v31  ;;  %v2583_v29 = vadd.f32 1e-05, %v2455_v57  ;;  %v7444_v59 = vld [vmem:[#allocation81_spill] sm:$0xff] }
 0x28e   : > { %v2470_v27 = vadd.f32 %v2406_v8, %v2342_v63  ;;  %v2344_v11 = vmul.f32 %v7412_v43, %v7430_v3  ;;  %v2408_v28 = vmul.f32 %v6674_v20, %v7413_v30  ;;  %v2503_v44 = vsub.f32 %v7441_v14, %v2247_v45 }
 0x28f   : > { %3660 = vmatprep.mubr.f32.mxu1 %v2936_v23  ;;  %v2781_v51 = vmul.f32 %v7385_v5, %v2693_v42  ;;  %v2264_v10 = vadd.f32 %v2200_v55, %v2052_v25  ;;  %v2261_v19 = vadd.f32 %v2197_v2, %v2049_v50  ;;  %4334 = vrsqrt.f32 %v2583_v29  ;;  %v7445_v25 = vld [vmem:[#allocation82_spill] sm:$0xff] }
 0x290   : > { %v2051_v31 = vmul.f32 %v7369_v6, %v7436_v47  ;;  %v2598_v26 = vadd.f32 1e-05, %v2470_v27  ;;  %v2472_v61 = vadd.f32 %v2408_v28, %v2344_v11  ;;  %v2518_v17 = vsub.f32 %v7442_v56, %v2262_v41  ;;  %v7443_v6 = vld [vmem:[#allocation89_spill] sm:$0xff] }
 0x291   : > { %v4327_v22 = vpop.eup %4326  ;;  %v2869_v7 = vadd.f32 %v7399_v15, %v2781_v51  ;;  %v2341_v46 = vmul.f32 %v7412_v43, %v7433_v52  ;;  %v2405_v37 = vmul.f32 %v6694_v58, %v7413_v30  ;;  %v2520_v24 = vsub.f32 %v7443_v6, %v2264_v10 }
 0x292   : > { %v2695_v54 = vmul.f32 %v4327_v22, %v2503_v44  ;;  %v4329_v33 = vpop.eup %4328  ;;  %v2263_v45 = vadd.f32 %v2199_v13, %v2051_v31  ;;  %4336 = vrsqrt.f32 %v2598_v26  ;;  %v2600_v18 = vadd.f32 1e-05, %v2472_v61 }
 0x293   : > { %v2933_v40 = vmax.f32 %v2869_v7, 0.0  ;;  %v2710_v9 = vmul.f32 %v4329_v33, %v2518_v17  ;;  %v2469_v36 = vadd.f32 %v2405_v37, %v2341_v46  ;;  %v2517_v41 = vsub.f32 %v7444_v59, %v2261_v19 }
 0x294   : > { %v2783_v4 = vmul.f32 %v7385_v5, %v2695_v54  ;;  %v2214_v55 = vmul.f32 %v6663_v48, %v7416_v35  ;;  %4338 = vrsqrt.f32 %v2600_v18  ;;  %v2343_v2 = vmul.f32 %v7412_v43, %v7436_v47 }
 0x295   : > { %3576 = vmatmul.mubr.f32.vlgmr.msra.gmra.mxu0 %v2933_v40  ;;  %v2798_v23 = vmul.f32 %v7303_v1, %v2710_v9  ;;  %v2597_v5 = vadd.f32 1e-05, %v2469_v36  ;;  %v2407_v42 = vmul.f32 %v6714_v34, %v7413_v30  ;;  %v2519_v50 = vsub.f32 %v7445_v25, %v2263_v45  ;;  %v7446_v40 = vld [vmem:[#allocation85_spill] sm:$0xff] }
 0x296   : > { %v4331_v57 = vpop.eup %4330  ;;  %v2871_v63 = vadd.f32 %v7399_v15, %v2783_v4  ;;  %v2066_v13 = vmul.f32 %v7417_v39, %v7427_v38  ;;  %v2216_v29 = vmul.f32 %v6674_v20, %v7416_v35  ;;  %v2068_v30 = vmul.f32 %v7417_v39, %v7430_v3 }
 0x297   : > { %v2712_v8 = vmul.f32 %v4331_v57, %v2520_v24  ;;  %v2886_v43 = vadd.f32 %v6083_v49, %v2798_v23  ;;  %4340 = vrsqrt.f32 %v2597_v5  ;;  %v2471_v15 = vadd.f32 %v2407_v42, %v2343_v2  ;;  %v7447_v57 = vld [vmem:[#allocation86_spill] sm:$0xff] }
 0x298   : > { %v2935_v51 = vmax.f32 %v2871_v63, 0.0  ;;  %v2278_v11 = vadd.f32 %v2214_v55, %v2066_v13  ;;  %v2213_v28 = vmul.f32 %v6694_v58, %v7416_v35  ;;  %v2358_v19 = vmul.f32 %v6312_v62, %v7427_v38  ;;  %v7448_v13 = vld [vmem:[#allocation78_spill] sm:$0xff] }
 0x299   : > { %v2800_v27 = vmul.f32 %v7303_v1, %v2712_v8  ;;  %v4333_v14 = vpop.eup %4332  ;;  %v2950_v44 = vmax.f32 %v2886_v43, 0.0  ;;  %v2599_v10 = vadd.f32 1e-05, %v2471_v15  ;;  %v2422_v22 = vmul.f32 %v6663_v48, %v6328_v21 }
 0x29a   : > { %3661 = vmatmul.mubr.f32.vlgmr.msra.gmra.mxu1 %v2935_v51  ;;  %v2709_v31 = vmul.f32 %v4333_v14, %v2517_v41  ;;  %v2280_v26 = vadd.f32 %v2216_v29, %v2068_v30  ;;  %v2065_v61 = vmul.f32 %v7417_v39, %v7433_v52  ;;  %v2360_v56 = vmul.f32 %v6312_v62, %v7430_v3 }
 0x29b   : > { %v2888_v7 = vadd.f32 %v6083_v49, %v2800_v27  ;;  %3580 = vmatprep.mubr.f32.mxu0 %v2950_v44  ;;  %4342 = vrsqrt.f32 %v2599_v10  ;;  %v2486_v54 = vadd.f32 %v2422_v22, %v2358_v19  ;;  %v2424_v17 = vmul.f32 %v6674_v20, %v6328_v21 }
 0x29c   : > { %v4335_v46 = vpop.eup %4334  ;;  %v2797_v33 = vmul.f32 %v7303_v1, %v2709_v31  ;;  %v2534_v45 = vsub.f32 %v7446_v40, %v2278_v11  ;;  %v2277_v4 = vadd.f32 %v2213_v28, %v2065_v61  ;;  %v2215_v36 = vmul.f32 %v6714_v34, %v7416_v35 }
 0x29d   : > { %v2952_v37 = vmax.f32 %v2888_v7, 0.0  ;;  %v2711_v18 = vmul.f32 %v4335_v46, %v2519_v50  ;;  %v2614_v9 = vadd.f32 1e-05, %v2486_v54  ;;  %v2488_v6 = vadd.f32 %v2424_v17, %v2360_v56  ;;  %v7449_v7 = vld [vmem:[#allocation84_spill] sm:$0xff] }
 0x29e   : > { %v2885_v24 = vadd.f32 %v6083_v49, %v2797_v33  ;;  %v2357_v59 = vmul.f32 %v6312_v62, %v7433_v52  ;;  %v2421_v41 = vmul.f32 %v6694_v58, %v6328_v21  ;;  %v2536_v63 = vsub.f32 %v7447_v57, %v2280_v26  ;;  %v7452_v57 = vld [vmem:[#allocation87_spill] sm:$0xff] }
 0x29f   : > { %3665 = vmatprep.mubr.f32.mxu1 %v2952_v37  ;;  %v4337_v55 = vpop.eup %4336  ;;  %v2799_v2 = vmul.f32 %v7303_v1, %v2711_v18  ;;  %4344 = vrsqrt.f32 %v2614_v9  ;;  %v2616_v23 = vadd.f32 1e-05, %v2488_v6  ;;  %v2067_v8 = vmul.f32 %v7417_v39, %v7436_v47 }
 0x2a0   : > { %v2949_v5 = vmax.f32 %v2885_v24, 0.0  ;;  %v2726_v42 = vmul.f32 %v4337_v55, %v2534_v45  ;;  %v2485_v25 = vadd.f32 %v2421_v41, %v2357_v59  ;;  %v2533_v29 = vsub.f32 %v7448_v13, %v2277_v4  ;;  %v7451_v24 = vld [vmem:[#allocation91_spill] sm:$0xff] }
 0x2a1   : > { %v4339_v35 = vpop.eup %4338  ;;  %v2887_v50 = vadd.f32 %v6083_v49, %v2799_v2  ;;  %4346 = vrsqrt.f32 %v2616_v23  ;;  %v2279_v43 = vadd.f32 %v2215_v36, %v2067_v8  ;;  %v2230_v11 = vmul.f32 %v6663_v48, %v7420_v32 }
 0x2a2   : > { %3581 = vmatmul.mubr.f32.gmra.mxu0 %v2949_v5  ;;  %v2814_v51 = vmul.f32 %v6150_v0, %v2726_v42  ;;  %v2728_v1 = vmul.f32 %v4339_v35, %v2536_v63  ;;  %v2613_v15 = vadd.f32 1e-05, %v2485_v25  ;;  %v2359_v39 = vmul.f32 %v6312_v62, %v7436_v47 }
 0x2a3   : > { %v2951_v27 = vmax.f32 %v2887_v50, 0.0  ;;  %v2423_v30 = vmul.f32 %v6714_v34, %v6328_v21  ;;  %v2082_v10 = vmul.f32 %v7421_v12, %v7427_v38  ;;  %v2232_v48 = vmul.f32 %v6674_v20, %v7420_v32  ;;  %v7453_v50 = vld [vmem:[#allocation90_spill] sm:$0xff] }
 0x2a4   : > { %v4341_v49 = vpop.eup %4340  ;;  %v2902_v28 = vadd.f32 %v6162_v53, %v2814_v51  ;;  %v2816_v14 = vmul.f32 %v6150_v0, %v2728_v1  ;;  %4348 = vrsqrt.f32 %v2613_v15  ;;  %v2535_v21 = vsub.f32 %v7449_v7, %v2279_v43 }
 0x2a5   : > { %3666 = vmatmul.mubr.f32.gmra.mxu1 %v2951_v27  ;;  %v2725_v44 = vmul.f32 %v4341_v49, %v2533_v29  ;;  %v2487_v19 = vadd.f32 %v2423_v30, %v2359_v39  ;;  %v2294_v26 = vadd.f32 %v2230_v11, %v2082_v10  ;;  %v2084_v61 = vmul.f32 %v7421_v12, %v7430_v3  ;;  %v7450_v3 = vld [vmem:[#allocation88_spill] sm:$0xff] }
 0x2a6   : > { %v2966_v22 = vmax.f32 %v2902_v28, 0.0  ;;  %v2904_v62 = vadd.f32 %v6162_v53, %v2816_v14  ;;  %v2229_v38 = vmul.f32 %v6694_v58, %v7420_v32  ;;  %v2081_v33 = vmul.f32 %v7421_v12, %v7433_v52 }
 0x2a7   : > { %v2813_v31 = vmul.f32 %v6150_v0, %v2725_v44  ;;  %v2615_v54 = vadd.f32 1e-05, %v2487_v19  ;;  %v2296_v37 = vadd.f32 %v2232_v48, %v2084_v61  ;;  %v2550_v18 = vsub.f32 %v7450_v3, %v2294_v26 }
 0x2a8   : > { %v4343_v56 = vpop.eup %4342  ;;  %3585 = vmatprep.mubr.f32.mxu0 %v2966_v22  ;;  %v2968_v17 = vmax.f32 %v2904_v62, 0.0  ;;  %v2293_v9 = vadd.f32 %v2229_v38, %v2081_v33  ;;  %v2231_v59 = vmul.f32 %v6714_v34, %v7420_v32 }
 0x2a9   : > { %v2901_v20 = vadd.f32 %v6162_v53, %v2813_v31  ;;  %v2727_v46 = vmul.f32 %v4343_v56, %v2535_v21  ;;  %4350 = vrsqrt.f32 %v2615_v54  ;;  %v2552_v36 = vsub.f32 %v7451_v24, %v2296_v37 }
 0x2aa   : > { %3670 = vmatprep.mubr.f32.mxu1 %v2968_v17  ;;  %v2549_v63 = vsub.f32 %v7452_v57, %v2293_v9 }
 0x2ab   : > { %v2965_v40 = vmax.f32 %v2901_v20, 0.0  ;;  %v2815_v45 = vmul.f32 %v6150_v0, %v2727_v46  ;;  %v2083_v0 = vmul.f32 %v7421_v12, %v7436_v47 }
 0x2ac   : > { %v4345_v4 = vpop.eup %4344 }
 0x2ad   : > { %3586 = vmatmul.mubr.f32.gmra.mxu0 %v2965_v40  ;;  %v2903_v6 = vadd.f32 %v6162_v53, %v2815_v45  ;;  %v2742_v58 = vmul.f32 %v4345_v4, %v2550_v18  ;;  %v2295_v42 = vadd.f32 %v2231_v59, %v2083_v0 }
 0x2ae   : > { %v4347_v41 = vpop.eup %4346 }
 0x2af   : > { %v2967_v55 = vmax.f32 %v2903_v6, 0.0  ;;  %v2830_v52 = vmul.f32 %v6438_v60, %v2742_v58  ;;  %v2744_v2 = vmul.f32 %v4347_v41, %v2552_v36  ;;  %v2551_v13 = vsub.f32 %v7453_v50, %v2295_v42 }
 0x2b1   : > { %v4349_v23 = vpop.eup %4348  ;;  %3671 = vmatmul.mubr.f32.gmra.mxu1 %v2967_v55  ;;  %v2918_v53 = vadd.f32 %v6453_v16, %v2830_v52  ;;  %v2832_v5 = vmul.f32 %v6438_v60, %v2744_v2 }
 0x2b2   : > { %v2741_v8 = vmul.f32 %v4349_v23, %v2549_v63 }
 0x2b3   : > { %v2982_v25 = vmax.f32 %v2918_v53, 0.0  ;;  %v2920_v32 = vadd.f32 %v6453_v16, %v2832_v5 }
 0x2b4   : > { %v2829_v34 = vmul.f32 %v6438_v60, %v2741_v8 }
 0x2b5   : > { %3590 = vmatprep.mubr.f32.mxu0 %v2982_v25  ;;  %v2984_v35 = vmax.f32 %v2920_v32, 0.0 }
 0x2b6   : > { %v4351_v12 = vpop.eup %4350  ;;  %v2917_v47 = vadd.f32 %v6453_v16, %v2829_v34 }
 0x2b7   : > { %3675 = vmatprep.mubr.f32.mxu1 %v2984_v35  ;;  %v2743_v29 = vmul.f32 %v4351_v12, %v2551_v13 }
 0x2b8   : > { %v2981_v51 = vmax.f32 %v2917_v47, 0.0 }
 0x2b9   : > { %v2831_v1 = vmul.f32 %v6438_v60, %v2743_v29  ;;  %v3067_v15 = vpop.f32.mrf.mxu0  ;;  %v3152_v27 = vpop.f32.mrf.mxu1 }
 0x2ba   : > { %3591 = vmatmul.mubr.f32.gmra.mxu0 %v2981_v51  ;;  %v3153_v11 = vadd.f32 %v3152_v27, %v3067_v15 }
 0x2bb   : > { %v2919_v43 = vadd.f32 %v6453_v16, %v2831_v1  ;;  %v3069_v30 = vpop.f32.mrf.mxu0  ;;  %v3154_v49 = vpop.f32.mrf.mxu1  ;;  %v3681_v16 = vld [vmem:[%s6885_s24] sm:$0xff] }
 0x2bc   : > { %4184 = vmatprep.mubr.msk.f32.mxu0 %vm656_vm0, %v3681_v16 }
 0x2bd   : > { %v2983_v39 = vmax.f32 %v2919_v43, 0.0 }
 0x2bf   : > { %3676 = vmatmul.mubr.f32.gmra.mxu1 %v2983_v39 }
 0x2ca   : > { %v3072_v28 = vpop.f32.mrf.mxu0 }
 0x2cb   : > { %v3157_v14 = vpop.f32.mrf.mxu1 }
 0x2cc   : > { %v3074_v44 = vpop.f32.mrf.mxu0  ;;  %v3158_v10 = vadd.f32 %v3157_v14, %v3072_v28 }
 0x2cd   : > { %v3159_v48 = vpop.f32.mrf.mxu1 }
 0x2d8   : > { %v3077_v19 = vpop.f32.mrf.mxu0 }
 0x2da   : > { %v3162_v22 = vpop.f32.mrf.mxu1  ;;  %v3079_v62 = vpop.f32.mrf.mxu0 }
 0x2db   : > { %v3163_v60 = vadd.f32 %v3162_v22, %v3077_v19 }
 0x2dc   : > { %v3164_v7 = vpop.f32.mrf.mxu1 }
 0x30d   : > { %v3082_v21 = vpop.f32.mrf.mxu0 }
 0x30e   : > { %v3167_v31 = vpop.f32.mrf.mxu1 }
 0x30f   : > { %v3168_v26 = vadd.f32 %v3167_v31, %v3082_v21  ;;  %v3084_v61 = vpop.f32.mrf.mxu0 }
 0x310   : > { %v3169_v54 = vpop.f32.mrf.mxu1 }
 0x313   : > { %v3237_v56 = vpop.f32.mrf.mxu0 }
 0x314   : > { %v3238_v17 = vadd.f32 %v3237_v56, %v3153_v11 }
 0x315   : > { %v3322_v38 = vpop.f32.mrf.mxu1  ;;  %v3239_v20 = vpop.f32.mrf.mxu0 }
 0x316   : > { %v3323_v46 = vadd.f32 %v3322_v38, %v3238_v17 }
 0x317   : > { %v3324_v37 = vpop.f32.mrf.mxu1 }
 0x318   : > { %v3242_v33 = vpop.f32.mrf.mxu0 }
 0x319   : > { %v3243_v40 = vadd.f32 %v3242_v33, %v3158_v10 }
 0x31a   : > { %v3327_v45 = vpop.f32.mrf.mxu1  ;;  %v3244_v3 = vpop.f32.mrf.mxu0 }
 0x31b   : > { %v3328_v18 = vadd.f32 %v3327_v45, %v3243_v40  ;;  %v3682_v45 = vld [vmem:[%s6885_s24 + $0x8] sm:$0xff]  ;;  %v3683_v3 = vld [vmem:[%s6885_s24 + $0x10] sm:$0xff] }
 0x31c   : > { %v3329_v4 = vpop.f32.mrf.mxu1  ;;  %v3247_v9 = vpop.f32.mrf.mxu0 }
 0x31d   : > { %v3248_v6 = vadd.f32 %v3247_v9, %v3163_v60  ;;  %v3810_v4 = vld [vmem:[%s553_s26] sm:$0xff]  ;;  %v3707_v9 = vpop.permute.xlu1 %3706 }
 0x31e   : > { %v3332_v58 = vpop.f32.mrf.mxu1  ;;  %v3249_v24 = vpop.f32.mrf.mxu0  ;;  %4198 = vmatprep.mubr.msk.f32.mxu1 %vm656_vm0, %v3810_v4 }
 0x31f   : > { %v3333_v36 = vadd.f32 %v3332_v58, %v3248_v6  ;;  %v3702_v58 = vpop.permute.xlu0 %3701 }
 0x320   : > { %v3334_v59 = vpop.f32.mrf.mxu1  ;;  %v3252_v41 = vpop.f32.mrf.mxu0 }
 0x321   : > { %v3253_v55 = vadd.f32 %v3252_v41, %v3168_v26  ;;  %v3697_v41 = vpop.permute.xlu1 %3696 }
 0x322   : > { %v3337_v52 = vpop.f32.mrf.mxu1  ;;  %v3254_v2 = vpop.f32.mrf.mxu0 }
 0x323   : > { %v3338_v0 = vadd.f32 %v3337_v52, %v3253_v55 }
 0x324   : > { %v3339_v57 = vpop.f32.mrf.mxu1  ;;  %v3407_v63 = vpop.f32.mrf.mxu0 }
 0x325   : > { %v3408_v23 = vadd.f32 %v3407_v63, %v3323_v46  ;;  %v3692_v57 = vpop.permute.xlu0 %3691 }
 0x326   : > { %v3492_v53 = vpop.f32.mrf.mxu1  ;;  %v3409_v5 = vpop.f32.mrf.mxu0 }
 0x327   : > { %v3493_v42 = vadd.f32 %v3492_v53, %v3408_v23 }
 0x328   : > { %v3494_v8 = vpop.f32.mrf.mxu1 }
 0x329   : > { %v3822_v8 = vpop.permute.xlu0 %3821 }
 0x32d   : > { %v3412_v25 = vpop.f32.mrf.mxu0 }
 0x32e   : > { %v3413_v32 = vadd.f32 %v3412_v25, %v3328_v18  ;;  %v3684_v18 = vld [vmem:[%s6885_s24 + $0x18] sm:$0xff] }
 0x32f   : > { %v3414_v34 = vpop.f32.mrf.mxu0 }
 0x330   : > { %v3817_v34 = vpop.permute.xlu1 %3816 }
 0x331   : > { %v3497_v35 = vpop.f32.mrf.mxu1 }
 0x332   : > { %v3498_v50 = vadd.f32 %v3497_v35, %v3413_v32 }
 0x333   : > { %v3499_v13 = vpop.f32.mrf.mxu1 }
 0x33c   : > { %v3417_v12 = vpop.f32.mrf.mxu0 }
 0x33d   : > { %v3418_v47 = vadd.f32 %v3417_v12, %v3333_v36 }
 0x33e   : > { %v3502_v29 = vpop.f32.mrf.mxu1  ;;  %v3419_v51 = vpop.f32.mrf.mxu0 }
 0x33f   : > { %v3503_v1 = vadd.f32 %v3502_v29, %v3418_v47 }
 0x340   : > { %v3504_v43 = vpop.f32.mrf.mxu1 }
 0x346   : > { %v3422_v15 = vpop.f32.mrf.mxu0 }
 0x347   : > { %v3423_v16 = vadd.f32 %v3422_v15, %v3338_v0 }
 0x348   : > { %v3424_v27 = vpop.f32.mrf.mxu0 }
 0x349   : > { %v3507_v11 = vpop.f32.mrf.mxu1 }
 0x34a   : > { %v3508_v21 = vadd.f32 %v3507_v11, %v3423_v16 }
 0x34b   : > { %v3509_v39 = vpop.f32.mrf.mxu1 }
 0x355   : > { %v3577_v30 = vpop.f32.mrf.mxu0 }
 0x356   : > { %v3578_v46 = vadd.f32 %v3577_v30, %v3493_v42  ;;  %v3811_v42 = vld [vmem:[%s553_s26 + $0x8] sm:$0xff] }
 0x357   : > { %v3579_v49 = vpop.f32.mrf.mxu0 }
 0x35a   : > { %v3662_v28 = vpop.f32.mrf.mxu1 }
 0x35b   : > { %v3663_v40 = vadd.f32 %v3662_v28, %v3578_v46 }
 0x35c   : > { %v3664_v14 = vpop.f32.mrf.mxu1 }
 0x362   : > { %v3582_v44 = vpop.f32.mrf.mxu0 }
 0x363   : > { %v3583_v17 = vadd.f32 %v3582_v44, %v3498_v50 }
 0x364   : > { %v3584_v10 = vpop.f32.mrf.mxu0 }
 0x365   : > { %v3667_v48 = vpop.f32.mrf.mxu1 }
 0x366   : > { %v3668_v33 = vadd.f32 %v3667_v48, %v3583_v17 }
 0x367   : > { %v3669_v19 = vpop.f32.mrf.mxu1 }
 0x36d   : > { %v3587_v22 = vpop.f32.mrf.mxu0 }
 0x36e   : > { %v3588_v54 = vadd.f32 %v3587_v22, %v3503_v1 }
 0x36f   : > { %v3589_v62 = vpop.f32.mrf.mxu0 }
 0x371   : > { %v3672_v60 = vpop.f32.mrf.mxu1 }
 0x372   : > { %v3673_v37 = vadd.f32 %v3672_v60, %v3588_v54 }
 0x373   : > { %v3674_v7 = vpop.f32.mrf.mxu1 }
 0x37a   : > { %v3592_v31 = vpop.f32.mrf.mxu0 }
 0x37b   : > { %v3593_v26 = vadd.f32 %v3592_v31, %v3508_v21 }
 0x37c   : > { %v3594_v61 = vpop.f32.mrf.mxu0 }
 0x37f   : > { %v3677_v56 = vpop.f32.mrf.mxu1 }
 0x380   : > { %v3678_v38 = vadd.f32 %v3677_v56, %v3593_v26 }
 0x381   : > { %v3679_v20 = vpop.f32.mrf.mxu1 }
 0x382   : > { %4176 = vmatprep.subr.mxu0 %v3678_v38 }
 0x383   : > { %4177 = vmatpush3.msra.mxu0 %v3678_v38 }
 0x384   : > { %4178 = vmatprep.subr.mxu0 %v3673_v37 }
 0x385   : > { %4179 = vmatpush3.msra.mxu0 %v3673_v37 }
 0x386   : > { %4180 = vmatprep.subr.mxu0 %v3668_v33 }
 0x387   : > { %4181 = vmatpush3.msra.mxu0 %v3668_v33 }
 0x388   : > { %4182 = vmatprep.subr.mxu0 %v3663_v40 }
 0x389   : > { %4183 = vmatpush3.msra.mxu0 %v3663_v40 }
 0x38a   : > { %4185 = vmatmul.mubr.msk.f32.vlgmr.msra.gmra.mxu0 %vm656_vm0, %v3682_v45 }
 0x38b   : > { %4187 = vmatprep.mubr.msk.f32.mxu0 %vm656_vm0, %v3683_v3 }
 0x38e   : > { %4188 = vmatmul.mubr.msk.f32.gmra.mxu0 %vm656_vm0, %v3684_v18 }
 0x44a   : > { %v4186_v6 = vpop.f32.mrf.mxu0 }
 0x44b   : > { %v3793_v52 = vadd.f32 %v4186_v6, %v3697_v41 }
 0x44c   : > { %v3787_v24 = vpop.f32.mrf.mxu0 }
 0x44d   : > { %v3788_v63 = vadd.f32 %v3787_v24, %v3692_v57  ;;  %v3807_v53 = vmax.f32 %v3793_v52, 0.0 }
 0x44e   : > { %v4189_v36 = vpop.f32.mrf.mxu0 }
 0x44f   : > { %v3803_v59 = vadd.f32 %v4189_v36, %v3707_v9  ;;  %v3806_v5 = vmax.f32 %v3788_v63, 0.0 }
 0x450   : > { %v3797_v55 = vpop.f32.mrf.mxu0 }
 0x451   : > { %v3809_v2 = vmax.f32 %v3803_v59, 0.0  ;;  %v3798_v0 = vadd.f32 %v3797_v55, %v3702_v58 }
 0x453   : > { %v3808_v23 = vmax.f32 %v3798_v0, 0.0  ;;  %4190 = vmatprep.subr.mxu1 %v3809_v2 }
 0x454   : > { %4191 = vmatpush3.msra.mxu1 %v3809_v2 }
 0x455   : > { %4192 = vmatprep.subr.mxu1 %v3808_v23 }
 0x456   : > { %4193 = vmatpush3.msra.mxu1 %v3808_v23 }
 0x457   : > { %4194 = vmatprep.subr.mxu1 %v3807_v53 }
 0x458   : > { %4195 = vmatpush3.msra.mxu1 %v3807_v53 }
 0x459   : > { %4196 = vmatprep.subr.mxu1 %v3806_v5 }
 0x45a   : > { %4197 = vmatpush3.msra.mxu1 %v3806_v5 }
 0x45b   : > { %4199 = vmatmul.mubr.msk.f32.vlgmr.msra.gmra.mxu1 %vm656_vm0, %v3811_v42 }
 0x51b   : > { %v4200_v25 = vpop.f32.mrf.mxu1 }
 0x51c   : > { %v3902_v32 = vadd.f32 %v4200_v25, %v3822_v8 }
 0x51d   : > { %v3896_v35 = vpop.f32.mrf.mxu1 }
 0x51e   : > { %v3906_v50 = vmul.f32 %v3902_v32, %v3902_v32  ;;  %v3897_v13 = vadd.f32 %v3896_v35, %v3817_v34 }
 0x520   : > { %v3905_v12 = vmul.f32 %v3897_v13, %v3897_v13  ;;  %v3909_v47 = vsel %vm3907_vm2, %v3906_v50, 0.0 }
 0x522   : > { %v3908_v29 = vsel %vm3907_vm2, %v3905_v12, 0.0 }
 0x523   : > { %v3910_v51 = vadd.f32 %v3909_v47, %v3908_v29 }
 0x525   : > { %v3911_v1 = vrot.slane %v3910_v51, 4 }
 0x527   : > { %v3912_v43 = vadd.f32 %v3911_v1, %v3910_v51 }
 0x529   : > { %v3913_v15 = vrot.slane %v3912_v43, 2 }
 0x52b   : > { %v3914_v27 = vadd.f32 %v3913_v15, %v3912_v43 }
 0x52d   : > { %v3915_v11 = vrot.slane %v3914_v27, 1 }
 0x52f   : > { %v3916_v39 = vadd.f32 %v3915_v11, %v3914_v27 }
 0x531   : > { %v3917_v30 = vmax.f32 %v3916_v39, 1e-24 }
 0x533   : > { %4352 = vrsqrt.f32 %v3917_v30 }
 0x540   : > { %v4353_v49 = vpop.eup %4352 }
 0x541   : > { %v3919_v28 = vmul.f32 %v4353_v49, %v3897_v13  ;;  %v3920_v14 = vmul.f32 %v4353_v49, %v3902_v32 }
 0x543   : > { %3921 = vst.msk [vmem:[%s563_s12] sm:$0xff] %vm3907_vm2, %v3919_v28  ;;  %3922 = vst.msk [vmem:[%s563_s12 + $0x8] sm:$0xff] %vm3907_vm2, %v3920_v14 }
 0x544 PF: > { %s21_s17 = sadd.s32 1, %s4362_s17  }
 0x545   : > { %p18_p4 = scmp.ge.s32.totalorder %s21_s17, 4  }
 0x547   :  { %20 = sbr.rel (!%p18_p4) target bundleno = 1 (0x1), region = 121 }

// kernel: ucdir_forward.3
= control target key start
LH: loop header
LB: loop body
LE: loop exit
PB: predicated region body
PF: predicated region fallthrough
CT: control target
= control target key end

     0   :  { %14 = vsyncpa [#allocation3], 0  ;;  %vm76_vm0 = vcmask 1043456   ;;  %vm43_vm1 = vcmask 31744   ;;  %s4709_s0 = inlined_call_operand.vmem [shape: f32[2,4,16], index: 0, kind: input, shape index: {}]   ;;  %s4710_s1 = inlined_call_operand.vmem [shape: f32[2,4,16], index: 1, kind: input, shape index: {}]   ;;  %s4711_s2 = inlined_call_operand.vmem [shape: f32[2,32,16], index: 2, kind: input, shape index: {}]   ;;  %s4712_s3 = inlined_call_operand.vmem [shape: f32[2,8,16], index: 3, kind: input, shape index: {}]   ;;  %s4713_s4 = inlined_call_operand.vmem [shape: f32[2,1,8], index: 4, kind: input, shape index: {}]   ;;  %s4714_s5 = inlined_call_operand.vmem [shape: f32[2,4,32], index: 5, kind: input, shape index: {}]   ;;  %s4715_s6 = inlined_call_operand.vmem [shape: f32[2,32,4], index: 6, kind: input, shape index: {}]   ;;  %s4716_s7 = inlined_call_operand.hbm [shape: f32[1,1], index: 7, kind: output, shape index: {0}]   ;;  %s4717_s8 = inlined_call_operand.hbm [shape: f32[1,1], index: 8, kind: output, shape index: {1}]  }
   0x1   :  { %v3825_v0 = vld [vmem:[%s4710_s1] sm:$0xf]  ;;  %v40_v2 = vld [vmem:[%s4715_s6 + $0x8] sm:$0xff]  ;;  %v41_v3 = vld [vmem:[%s4715_s6 + $0x10] sm:$0xff] }
   0x2   :  { %v39_v1 = vld [vmem:[%s4715_s6] sm:$0xff]  ;;  %3272 = vmatprep.subr.msk.mxu0 %vm76_vm0, %v3825_v0  ;;  %v42_v4 = vld [vmem:[%s4715_s6 + $0x18] sm:$0xff]  ;;  %v47_v5 = vsel %vm43_vm1, %v40_v2, 0.0 }
   0x3   :  { %3274 = vmatprep.mubr.msk.f32.mxu0 %vm43_vm1, %v39_v1 }
   0x4   :  { %15 = vsyncpa [#allocation5], 0  ;;  %3273 = vmatpush3.msk.msra.mxu0 %vm76_vm0, %v3825_v0  ;;  %48 = vadd.xlane.f32.xlu1 %v47_v5  ;;  %v53_v6 = vsel %vm43_vm1, %v42_v4, 0.0  ;;  %v44_v7 = vsel %vm43_vm1, %v39_v1, 0.0  ;;  %v50_v8 = vsel %vm43_vm1, %v41_v3, 0.0  ;;  %v3773_v9 = vmov 0.0  }
   0x5   :  { %3275 = vmatmul.mubr.msk.f32.vlgmr.msra.gmra.mxu0 %vm43_vm1, %v40_v2  ;;  %54 = vadd.xlane.f32.xlu0 %v53_v6  ;;  %vm3774_vm2 = vmmov 0   ;;  %v3860_v10 = vld [vmem:[%s4715_s6 + $0x30] sm:$0xff]  ;;  %v3865_v11 = vld [vmem:[%s4715_s6 + $0x38] sm:$0xff]  ;;  %v3874_v14 = vld [vmem:[%s4715_s6 + $0x20] sm:$0xff]  ;;  %vm169_vm3 = vcmask 130048   ;;  %vm456_vm4 = vcmask 64512  }
   0x6   :  { %3277 = vmatprep.mubr.msk.f32.mxu0 %vm43_vm1, %v41_v3  ;;  %3280 = vmatprep.subr.mxu1 %v3773_v9  ;;  %v1066_v12 = vsel %vm43_vm1, %v3865_v11, 0.0  ;;  %v1063_v13 = vsel %vm43_vm1, %v3860_v10, 0.0  ;;  %v3879_v15 = vld [vmem:[%s4715_s6 + $0x28] sm:$0xff]  ;;  %v1057_v17 = vsel %vm43_vm1, %v3874_v14, 0.0  ;;  %v35_v21 = vld [vmem:[%s4711_s2 + $0x18] sm:$0xff]  ;;  %v34_v27 = vld [vmem:[%s4711_s2 + $0x10] sm:$0xff] }
   0x7   :  { %3291 = vmatprep.subr.mxu0 %v3773_v9  ;;  %3288 = vmatprep.mubr.msk.f32.mxu1 %vm3774_vm2, %v3773_v9  ;;  %v1060_v16 = vsel %vm43_vm1, %v3879_v15, 0.0  ;;  %v33_v33 = vld [vmem:[%s4711_s2 + $0x8] sm:$0xff]  ;;  %v32_v38 = vld [vmem:[%s4711_s2] sm:$0xff]  ;;  %v3130_v63 = vld [vmem:[%s4711_s2 + $0x38] sm:$0xff]  ;;  %vm668_vm5 = vcmask 261120   ;;  %vm255_vm6 = vcmask 257024  }
   0x8   :  { %45 = vadd.xlane.f32.xlu1 %v44_v7  ;;  %v36_v42 = vld [vmem:[%s4712_s3] sm:$0xff]  ;;  %v3129_v6 = vld [vmem:[%s4711_s2 + $0x30] sm:$0xff]  ;;  %vm742_vm9 = vcmask 60416  }
   0x9   :  { %3278 = vmatmul.mubr.msk.f32.gmra.mxu0 %vm43_vm1, %v42_v4  ;;  %51 = vadd.xlane.f32.xlu0 %v50_v8  ;;  %v30_v43 = vld [vmem:[%s4709_s0] sm:$0xf]  ;;  %v3947_v44 = vld [vmem:[%s4710_s1 + $0x4] sm:$0xf] }
   0xa   :  { %3299 = vmatprep.mubr.msk.f32.mxu0 %vm3774_vm2, %v3773_v9 }
   0xc   :  { %1064 = vadd.xlane.f32.xlu1 %v1063_v13  ;;  %v3128_v13 = vld [vmem:[%s4711_s2 + $0x28] sm:$0xff] }
   0xd   :  { %1067 = vadd.xlane.f32.xlu0 %v1066_v12 }
  0x10   :  { %1058 = vadd.xlane.f32.xlu1 %v1057_v17 }
  0x11   :  { %1061 = vadd.xlane.f32.xlu0 %v1060_v16 }
  0x8d   :  { %v49_v22 = vpop.xlane.xlu1 %48 }
  0x8e   :  { %v55_v18 = vpop.xlane.xlu0 %54  ;;  %v57_v29 = vsub.f32 1.0, %v49_v22  ;;  %v3131_v22 = vld [vmem:[%s4712_s3 + $0x8] sm:$0xff] }
  0x8f   :  { %v59_v19 = vsub.f32 1.0, %v55_v18  ;;  %v3127_v18 = vld [vmem:[%s4711_s2 + $0x20] sm:$0xff] }
  0x90   :  { %v61_v36 = vmul.f32 %v57_v29, %v33_v33 }
  0x91   :  { %v63_v25 = vmul.f32 %v59_v19, %v35_v21  ;;  %v46_v32 = vpop.xlane.xlu1 %45 }
  0x92   :  { %v52_v20 = vpop.xlane.xlu0 %51  ;;  %v56_v35 = vsub.f32 1.0, %v46_v32 }
  0x93   :  { %v58_v24 = vsub.f32 1.0, %v52_v20 }
  0x94   :  { %v60_v40 = vmul.f32 %v56_v35, %v32_v38 }
  0x95   :  { %v62_v31 = vmul.f32 %v58_v24, %v34_v27 }
  0x96   :  { %v1068_v58 = vpop.xlane.xlu0 %1067 }
  0x97   :  { %v1072_v60 = vsub.f32 1.0, %v1068_v58 }
  0x99   :  { %v1076_v3 = vmul.f32 %v3130_v63, %v1072_v60 }
  0x9a   :  { %v1062_v4 = vpop.xlane.xlu0 %1061 }
  0x9b   :  { %v1070_v8 = vsub.f32 1.0, %v1062_v4 }
  0x9d   :  { %v1074_v16 = vmul.f32 %v3128_v13, %v1070_v8 }
  0xc5   :  { %v3276_v23 = vpop.f32.mrf.mxu0 }
  0xc6   :  { %v3913_v39 = vadd.f32 %v3276_v23, %v61_v36  ;;  %v3125_v23 = vld [vmem:[%s4709_s0 + $0x4] sm:$0xf] }
  0xc7   :  { %v146_v26 = vpop.f32.mrf.mxu0 }
  0xc8   :  { %v3921_v41 = vadd.f32 %v146_v26, %v60_v40 }
  0xc9   :  { %v3279_v28 = vpop.f32.mrf.mxu0 }
  0xca   :  { %v3891_v30 = vadd.f32 %v3279_v28, %v63_v25 }
  0xcb   :  { %v156_v34 = vpop.f32.mrf.mxu0 }
  0xcc   :  { %3281 = vmatpush3.xpose.msk.msra.mxu1 %vm169_vm3, %v3891_v30  ;;  %3292 = vmatpush3.xpose.msk.msra.mxu0 %vm169_vm3, %v3891_v30  ;;  %v3902_v37 = vadd.f32 %v156_v34, %v62_v31 }
  0xcd   :  { %3282 = vmatprep.subr.mxu1 %v3773_v9  ;;  %3293 = vmatprep.subr.mxu0 %v3773_v9 }
  0xd0   :  { %3283 = vmatpush3.xpose.msk.msra.mxu1 %vm169_vm3, %v3902_v37  ;;  %3294 = vmatpush3.xpose.msk.msra.mxu0 %vm169_vm3, %v3902_v37 }
  0xd1   :  { %3284 = vmatprep.subr.mxu1 %v3773_v9  ;;  %3295 = vmatprep.subr.mxu0 %v3773_v9 }
  0xd4   :  { %3285 = vmatpush3.xpose.msk.msra.mxu1 %vm169_vm3, %v3913_v39  ;;  %3296 = vmatpush3.xpose.msk.msra.mxu0 %vm169_vm3, %v3913_v39 }
  0xd5   :  { %3286 = vmatprep.subr.mxu1 %v3773_v9  ;;  %3297 = vmatprep.subr.mxu0 %v3773_v9 }
  0xd8   :  { %3287 = vmatpush3.xpose.msk.msra.mxu1 %vm169_vm3, %v3921_v41  ;;  %3298 = vmatpush3.xpose.msk.msra.mxu0 %vm169_vm3, %v3921_v41 }
  0xd9   :  { %3302 = vmatprep.subr.msk.mxu1 %vm169_vm3, %v36_v42  ;;  %3310 = vmatprep.subr.mxu0 %v3773_v9 }
  0xdb   :  { %3289 = vmatmul.mubr.msk.f32.vlgmr.msra.gmra.mxu1 %vm169_vm3, %v3825_v0  ;;  %3300 = vmatmul.mubr.msk.f32.vlgmr.msra.gmra.mxu0 %vm169_vm3, %v30_v43  ;;  %v1065_v0 = vpop.xlane.xlu1 %1064 }
  0xdc   :  { %3303 = vmatpush3.xpose.msk.msra.mxu1 %vm169_vm3, %v36_v42  ;;  %3304 = vmatprep.mubr.msk.f32.mxu1 %vm169_vm3, %v3921_v41  ;;  %v1071_v2 = vsub.f32 1.0, %v1065_v0 }
  0xdd   :  { %3321 = vmatprep.subr.mxu1 %v3773_v9  ;;  %3318 = vmatprep.mubr.msk.f32.mxu0 %vm3774_vm2, %v3773_v9 }
  0xdf   :  { %3305 = vmatmul.mubr.msk.f32.vlgmr.msra.gmra.mxu1 %vm169_vm3, %v3913_v39  ;;  %v1059_v12 = vpop.xlane.xlu1 %1058 }
  0xe0   :  { %3307 = vmatprep.mubr.msk.f32.mxu1 %vm169_vm3, %v3902_v37  ;;  %3322 = vmatpush3.xpose.msk.msra.mxu1 %vm169_vm3, %v36_v42 }
  0xe1   :  { %3337 = vmatprep.subr.msk.mxu1 %vm76_vm0, %v3947_v44 }
  0xe3   :  { %3308 = vmatmul.mubr.msk.f32.gmra.mxu1 %vm169_vm3, %v3891_v30 }
  0xe4   :  { %3323 = vmatprep.mubr.msk.f32.mxu1 %vm3774_vm2, %v3773_v9 }
  0xe7   :  { %3324 = vmatmul.mubr.msk.f32.vlgmr.msra.gmra.mxu1 %vm169_vm3, %v30_v43 }
  0xe8   :  { %3338 = vmatpush3.msk.msra.mxu1 %vm76_vm0, %v3947_v44  ;;  %3339 = vmatprep.mubr.msk.f32.mxu1 %vm43_vm1, %v3874_v14 }
  0xe9   :  { %3345 = vmatprep.subr.mxu1 %v3773_v9 }
  0xeb   :  { %3340 = vmatmul.mubr.msk.f32.vlgmr.msra.gmra.mxu1 %vm43_vm1, %v3879_v15  ;;  %v1069_v15 = vsub.f32 1.0, %v1059_v12 }
  0xec   :  { %3342 = vmatprep.mubr.msk.f32.mxu1 %vm43_vm1, %v3860_v10 }
  0xed   :  { %v1073_v20 = vmul.f32 %v3127_v18, %v1069_v15 }
  0xef   :  { %3343 = vmatmul.mubr.msk.f32.gmra.mxu1 %vm43_vm1, %v3865_v11  ;;  %v1075_v11 = vmul.f32 %v3129_v6, %v1071_v2 }
  0xf0   :  { %3353 = vmatprep.mubr.msk.f32.mxu1 %vm3774_vm2, %v3773_v9 }
 0x19b   :  { %v3974_v45 = vpop.f32.mrf.mxu1 }
 0x19d   :  { %v3290_v46 = vpop.f32.mrf.mxu1 }
 0x19f   :  { %v3976_v47 = vpop.f32.mrf.mxu1 }
 0x1a0   :  { %v453_v48 = vmul.f32 %v3976_v47, %v3976_v47 }
 0x1a1   :  { %v3980_v49 = vpop.f32.mrf.mxu1 }
 0x1a2   :  { %v452_v50 = vmul.f32 %v3980_v49, %v3980_v49  ;;  %v460_v51 = vsel %vm456_vm4, %v453_v48, 0.0 }
 0x1a3   :  { %461 = vadd.xlane.f32.xlu1 %v460_v51  ;;  %v3985_v52 = vpop.f32.mrf.mxu1 }
 0x1a4   :  { %v455_v53 = vmul.f32 %v3985_v52, %v3985_v52  ;;  %v457_v54 = vsel %vm456_vm4, %v452_v50, 0.0 }
 0x1a5   :  { %458 = vadd.xlane.f32.xlu0 %v457_v54  ;;  %v3990_v55 = vpop.f32.mrf.mxu1 }
 0x1a6   :  { %v454_v56 = vmul.f32 %v3990_v55, %v3990_v55  ;;  %v466_v57 = vsel %vm456_vm4, %v455_v53, 0.0 }
 0x1a7   :  { %467 = vadd.xlane.f32.xlu1 %v466_v57  ;;  %v3995_v59 = vpop.f32.mrf.mxu1 }
 0x1a8   :  { %v463_v61 = vsel %vm456_vm4, %v454_v56, 0.0 }
 0x1a9   :  { %464 = vadd.xlane.f32.xlu0 %v463_v61  ;;  %v3325_v62 = vpop.f32.mrf.mxu1 }
 0x1ab   :  { %v3341_v1 = vpop.f32.mrf.mxu1 }
 0x1ac   :  { %v4020_v19 = vadd.f32 %v3341_v1, %v1074_v16 }
 0x1ad   :  { %v1158_v5 = vpop.f32.mrf.mxu1 }
 0x1ae   :  { %v4025_v21 = vadd.f32 %v1158_v5, %v1073_v20 }
 0x1af   :  { %v3344_v7 = vpop.f32.mrf.mxu1 }
 0x1b0   :  { %v4004_v10 = vadd.f32 %v3344_v7, %v1076_v3 }
 0x1b1   :  { %v1168_v14 = vpop.f32.mrf.mxu1 }
 0x1b2   :  { %3346 = vmatpush3.xpose.msk.msra.mxu1 %vm169_vm3, %v4004_v10  ;;  %v4012_v17 = vadd.f32 %v1168_v14, %v1075_v11 }
 0x1b3   :  { %3347 = vmatprep.subr.mxu1 %v3773_v9 }
 0x1b6   :  { %3348 = vmatpush3.xpose.msk.msra.mxu1 %vm169_vm3, %v4012_v17 }
 0x1b7   :  { %3349 = vmatprep.subr.mxu1 %v3773_v9 }
 0x1ba   :  { %3350 = vmatpush3.xpose.msk.msra.mxu1 %vm169_vm3, %v4020_v19 }
 0x1bb   :  { %3351 = vmatprep.subr.mxu1 %v3773_v9 }
 0x1be   :  { %3352 = vmatpush3.xpose.msk.msra.mxu1 %vm169_vm3, %v4025_v21 }
 0x1bf   :  { %3367 = vmatprep.subr.msk.mxu1 %vm169_vm3, %v3131_v22 }
 0x1c1   :  { %3354 = vmatmul.mubr.msk.f32.vlgmr.msra.gmra.mxu1 %vm169_vm3, %v3947_v44 }
 0x1c2   :  { %3368 = vmatpush3.xpose.msk.msra.mxu1 %vm169_vm3, %v3131_v22  ;;  %3369 = vmatprep.mubr.msk.f32.mxu1 %vm169_vm3, %v4025_v21 }
 0x1c3   :  { %3386 = vmatprep.subr.mxu1 %v3773_v9 }
 0x1c5   :  { %3370 = vmatmul.mubr.msk.f32.vlgmr.msra.gmra.mxu1 %vm169_vm3, %v4020_v19 }
 0x1c6   :  { %3372 = vmatprep.mubr.msk.f32.mxu1 %vm169_vm3, %v4012_v17  ;;  %3387 = vmatpush3.xpose.msk.msra.mxu1 %vm169_vm3, %v3131_v22 }
 0x1c9   :  { %3373 = vmatmul.mubr.msk.f32.gmra.mxu1 %vm169_vm3, %v4004_v10 }
 0x1ca   :  { %3388 = vmatprep.mubr.msk.f32.mxu1 %vm3774_vm2, %v3773_v9 }
 0x1cd   :  { %3389 = vmatmul.mubr.msk.f32.vlgmr.msra.gmra.mxu1 %vm169_vm3, %v3125_v23 }
 0x1ce   :  { %3404 = vmatprep.mubr.msk.f32.mxu1 %vm169_vm3, %v3921_v41 }
 0x22c   :  { %v462_v24 = vpop.xlane.xlu1 %461 }
 0x22d   :  { %v470_v25 = vmax.f32 %v462_v24, 1e-24 }
 0x22e   :  { %v459_v26 = vpop.xlane.xlu0 %458 }
 0x22f   :  { %v469_v27 = vmax.f32 %v459_v26, 1e-24  ;;  %3470 = vrsqrt.f32 %v470_v25 }
 0x230   :  { %v468_v28 = vpop.xlane.xlu1 %467 }
 0x231   :  { %3472 = vrsqrt.f32 %v469_v27  ;;  %v472_v29 = vmax.f32 %v468_v28, 1e-24 }
 0x232   :  { %v465_v31 = vpop.xlane.xlu0 %464 }
 0x233   :  { %3474 = vrsqrt.f32 %v472_v29  ;;  %v471_v32 = vmax.f32 %v465_v31, 1e-24 }
 0x235   :  { %3476 = vrsqrt.f32 %v471_v32 }
 0x23c   :  { %v3471_v33 = vpop.eup %3470 }
 0x23d   :  { %v478_v38 = vmul.f32 %v3471_v33, %v3976_v47 }
 0x23e   :  { %v3473_v34 = vpop.eup %3472 }
 0x23f   :  { %v477_v35 = vmul.f32 %v3473_v34, %v3980_v49  ;;  %v482_v46 = vsel %vm456_vm4, %v478_v38, -inf }
 0x240   :  { %v3475_v36 = vpop.eup %3474 }
 0x241   :  { %v480_v40 = vmul.f32 %v3475_v36, %v3985_v52  ;;  %v481_v44 = vsel %vm456_vm4, %v477_v35, -inf }
 0x242   :  { %v3477_v42 = vpop.eup %3476  ;;  %v485_v51 = vmax.f32 %v481_v44, %v482_v46 }
 0x243   :  { %v479_v43 = vmul.f32 %v3477_v42, %v3990_v55  ;;  %v484_v50 = vsel %vm456_vm4, %v480_v40, -inf }
 0x245   :  { %v483_v48 = vsel %vm456_vm4, %v479_v43, -inf }
 0x246   :  { %v486_v53 = vmax.f32 %v483_v48, %v484_v50 }
 0x248   :  { %v487_v54 = vmax.f32 %v485_v51, %v486_v53 }
 0x24a   :  { %488 = vmax.xlane.f32.xlu0 %v487_v54 }
 0x281   :  { %v4062_v49 = vpop.f32.mrf.mxu1 }
 0x283   :  { %v3355_v47 = vpop.f32.mrf.mxu1 }
 0x285   :  { %v4064_v56 = vpop.f32.mrf.mxu1 }
 0x286   :  { %v1461_v52 = vmul.f32 %v4064_v56, %v4064_v56 }
 0x287   :  { %v1441_v55 = vpop.f32.mrf.mxu1 }
 0x288   :  { %v1460_v57 = vmul.f32 %v1441_v55, %v1441_v55  ;;  %v1467_v58 = vsel %vm456_vm4, %v1461_v52, 0.0 }
 0x289   :  { %1468 = vadd.xlane.f32.xlu0 %v1467_v58  ;;  %v4069_v60 = vpop.f32.mrf.mxu1 }
 0x28a   :  { %v1463_v61 = vmul.f32 %v4069_v60, %v4069_v60  ;;  %v1464_v62 = vsel %vm456_vm4, %v1460_v57, 0.0 }
 0x28b   :  { %1465 = vadd.xlane.f32.xlu1 %v1464_v62  ;;  %v1451_v63 = vpop.f32.mrf.mxu1 }
 0x28c   :  { %v1462_v0 = vmul.f32 %v1451_v63, %v1451_v63  ;;  %v1473_v1 = vsel %vm456_vm4, %v1463_v61, 0.0 }
 0x28d   :  { %1474 = vadd.xlane.f32.xlu0 %v1473_v1 }
 0x28e   :  { %v1470_v2 = vsel %vm456_vm4, %v1462_v0, 0.0 }
 0x28f   :  { %1471 = vadd.xlane.f32.xlu1 %v1470_v2 }
 0x2d3   :  { %v489_v3 = vpop.xlane.xlu0 %488 }
 0x2d4   :  { %v490_v4 = vrot.slane %v489_v3, 4 }
 0x2d6   :  { %v491_v5 = vmax.f32 %v489_v3, %v490_v4 }
 0x2d8   :  { %v492_v6 = vrot.slane %v491_v5, 2 }
 0x2da   :  { %v493_v7 = vmax.f32 %v491_v5, %v492_v6 }
 0x2dc   :  { %v494_v8 = vrot.slane %v493_v7, 1 }
 0x2de   :  { %v495_v11 = vmax.f32 %v493_v7, %v494_v8 }
 0x2e0   :  { %3450 = vpush %v495_v11 }
 0x311   :  { %s3451_s24 = spop %3450 }
 0x312   :  { %v497_v12 = vstv %s3451_s24  ;;  %v1469_v13 = vpop.xlane.xlu0 %1468 }
 0x313   :  { %v498_v14 = vsub.f32 %v477_v35, %v497_v12  ;;  %v499_v15 = vsub.f32 %v478_v38, %v497_v12  ;;  %v500_v16 = vsub.f32 %v479_v43, %v497_v12  ;;  %v501_v18 = vsub.f32 %v480_v40, %v497_v12 }
 0x314   :  { %v1477_v20 = vmax.f32 %v1469_v13, 1e-24  ;;  %v1466_v22 = vpop.xlane.xlu1 %1465 }
 0x315   :  { %v502_v23 = vmul.f32 20.0, %v498_v14  ;;  %v503_v24 = vmul.f32 20.0, %v499_v15  ;;  %v504_v25 = vmul.f32 20.0, %v500_v16  ;;  %v505_v26 = vmul.f32 20.0, %v501_v18 }
 0x316   :  { %v1476_v27 = vmax.f32 %v1466_v22, 1e-24  ;;  %v1475_v28 = vpop.xlane.xlu0 %1474  ;;  %3478 = vrsqrt.f32 %v1477_v20 }
 0x317   :  { %v506_v29 = vmul.f32 1.442695, %v502_v23  ;;  %v508_v31 = vmul.f32 1.442695, %v503_v24  ;;  %v510_v32 = vmul.f32 1.442695, %v504_v25 }
 0x318   :  { %v512_v33 = vmul.f32 1.442695, %v505_v26  ;;  %3480 = vrsqrt.f32 %v1476_v27  ;;  %v1472_v34 = vpop.xlane.xlu1 %1471  ;;  %v1479_v35 = vmax.f32 %v1475_v28, 1e-24 }
 0x319   :  { %3482 = vpow2.f32 %v506_v29  ;;  %v1478_v36 = vmax.f32 %v1472_v34, 1e-24 }
 0x31a   :  { %3484 = vpow2.f32 %v508_v31 }
 0x31b   :  { %3486 = vpow2.f32 %v510_v32 }
 0x31c   :  { %3488 = vpow2.f32 %v512_v33 }
 0x31d   :  { %3490 = vrsqrt.f32 %v1479_v35 }
 0x31e   :  { %3492 = vrsqrt.f32 %v1478_v36 }
 0x323   :  { %v3479_v38 = vpop.eup %3478 }
 0x324   :  { %v1485_v52 = vmul.f32 %v3479_v38, %v4064_v56 }
 0x325   :  { %v3481_v40 = vpop.eup %3480 }
 0x326   :  { %v4076_v42 = vpop.eup %3482  ;;  %v1484_v50 = vmul.f32 %v3481_v40, %v1441_v55  ;;  %v1489_v55 = vsel %vm456_vm4, %v1485_v52, -inf }
 0x327   :  { %v4078_v43 = vpop.eup %3484  ;;  %v514_v44 = vsel %vm456_vm4, %v4076_v42, 0.0 }
 0x328   :  { %v4082_v46 = vpop.eup %3486  ;;  %v515_v48 = vsel %vm456_vm4, %v4078_v43, 0.0  ;;  %v1488_v1 = vsel %vm456_vm4, %v1484_v50, -inf }
 0x329   :  { %v3489_v51 = vpop.eup %3488  ;;  %v516_v53 = vadd.f32 %v515_v48, %v514_v44  ;;  %v517_v47 = vsel %vm456_vm4, %v4082_v46, 0.0  ;;  %v1492_v5 = vmax.f32 %v1488_v1, %v1489_v55 }
 0x32a   :  { %v3491_v54 = vpop.eup %3490  ;;  %v519_v62 = vsel %vm456_vm4, %v3489_v51, 0.0 }
 0x32b   :  { %v3493_v57 = vpop.eup %3492  ;;  %v518_v58 = vadd.f32 %v517_v47, %v516_v53  ;;  %v1487_v61 = vmul.f32 %v3491_v54, %v4069_v60 }
 0x32c   :  { %v1486_v0 = vmul.f32 %v3493_v57, %v1451_v63 }
 0x32d   :  { %v520_v2 = vadd.f32 %v519_v62, %v518_v58  ;;  %v1491_v4 = vsel %vm456_vm4, %v1487_v61, -inf }
 0x32e   :  { %v1490_v3 = vsel %vm456_vm4, %v1486_v0, -inf }
 0x32f   :  { %521 = vadd.xlane.f32.xlu1 %v520_v2  ;;  %v1493_v6 = vmax.f32 %v1490_v3, %v1491_v4 }
 0x331   :  { %v1494_v56 = vmax.f32 %v1492_v5, %v1493_v6 }
 0x333   :  { %1495 = vmax.xlane.f32.xlu0 %v1494_v56 }
 0x3b8   :  { %v522_v7 = vpop.xlane.xlu1 %521 }
 0x3b9   :  { %v523_v8 = vrot.slane %v522_v7, 4 }
 0x3bb   :  { %v524_v60 = vadd.f32 %v523_v8, %v522_v7 }
 0x3bc   :  { %v1496_v11 = vpop.xlane.xlu0 %1495 }
 0x3bd   :  { %v1497_v12 = vrot.slane %v1496_v11, 4  ;;  %v525_v63 = vrot.slane %v524_v60, 2 }
 0x3bf   :  { %v1498_v13 = vmax.f32 %v1496_v11, %v1497_v12  ;;  %v526_v14 = vadd.f32 %v525_v63, %v524_v60 }
 0x3c1   :  { %v527_v15 = vrot.slane %v526_v14, 1  ;;  %v1499_v16 = vrot.slane %v1498_v13, 2 }
 0x3c3   :  { %v528_v18 = vadd.f32 %v527_v15, %v526_v14  ;;  %v1500_v20 = vmax.f32 %v1498_v13, %v1499_v16  ;;  %v4121_v13 = vld [vmem:[%s4713_s4] ss:$0 sm:$0xff] }
 0x3c5   :  { %3452 = vpush %v528_v18  ;;  %v1501_v22 = vrot.slane %v1500_v20, 1 }
 0x3c7   :  { %v1502_v23 = vmax.f32 %v1500_v20, %v1501_v22 }
 0x3c9   :  { %3454 = vpush %v1502_v23 }
 0x3f6   :  { %s3453_s6 = spop %3452 }
 0x3f7   :  { %v530_v24 = vstv %s3453_s6 }
 0x3f8   :  { %3494 = vrcp.f32 %v530_v24 }
 0x3fa   :  { %s3455_s25 = spop %3454 }
 0x3fb   :  { %v1504_v25 = vstv %s3455_s25 }
 0x3fc   :  { %v1505_v26 = vsub.f32 %v1484_v50, %v1504_v25  ;;  %v1506_v27 = vsub.f32 %v1485_v52, %v1504_v25  ;;  %v1507_v28 = vsub.f32 %v1486_v0, %v1504_v25  ;;  %v1508_v29 = vsub.f32 %v1487_v61, %v1504_v25 }
 0x3fe   :  { %v1509_v31 = vmul.f32 20.0, %v1505_v26  ;;  %v1510_v32 = vmul.f32 20.0, %v1506_v27  ;;  %v1511_v33 = vmul.f32 20.0, %v1507_v28  ;;  %v1512_v34 = vmul.f32 20.0, %v1508_v29 }
 0x400   :  { %v1513_v35 = vmul.f32 1.442695, %v1509_v31  ;;  %v1515_v36 = vmul.f32 1.442695, %v1510_v32  ;;  %v1517_v38 = vmul.f32 1.442695, %v1511_v33 }
 0x401   :  { %v1519_v40 = vmul.f32 1.442695, %v1512_v34 }
 0x402   :  { %3496 = vpow2.f32 %v1513_v35 }
 0x403   :  { %3498 = vpow2.f32 %v1515_v36 }
 0x404   :  { %3500 = vpow2.f32 %v1517_v38 }
 0x405   :  { %v3495_v44 = vpop.eup %3494  ;;  %3502 = vpow2.f32 %v1519_v40 }
 0x406   :  { %v532_v48 = vmul.f32 %v3495_v44, %v4076_v42  ;;  %v533_v50 = vmul.f32 %v3495_v44, %v4078_v43  ;;  %v534_v53 = vmul.f32 %v3495_v44, %v4082_v46  ;;  %v535_v54 = vmul.f32 %v3495_v44, %v3489_v51 }
 0x408   :  { %v536_v47 = vsel %vm456_vm4, %v532_v48, 0.0  ;;  %v537_v52 = vsel %vm456_vm4, %v533_v50, 0.0  ;;  %v539_v58 = vsel %vm456_vm4, %v534_v53, 0.0  ;;  %v541_v62 = vsel %vm456_vm4, %v535_v54, 0.0 }
 0x409   :  { %v538_v57 = vadd.f32 %v537_v52, %v536_v47 }
 0x40b   :  { %v540_v61 = vadd.f32 %v539_v58, %v538_v57 }
 0x40d   :  { %v542_v0 = vadd.f32 %v541_v62, %v540_v61 }
 0x40f   :  { %v4102_v1 = vpop.eup %3496  ;;  %v543_v2 = vrot.slane %v542_v0, 4 }
 0x410   :  { %v4104_v42 = vpop.eup %3498  ;;  %v1521_v43 = vsel %vm456_vm4, %v4102_v1, 0.0 }
 0x411   :  { %v4108_v46 = vpop.eup %3500  ;;  %v1522_v51 = vsel %vm456_vm4, %v4104_v42, 0.0  ;;  %v544_v55 = vadd.f32 %v543_v2, %v542_v0 }
 0x412   :  { %v4112_v3 = vpop.eup %3502  ;;  %v1523_v4 = vadd.f32 %v1522_v51, %v1521_v43  ;;  %v1524_v5 = vsel %vm456_vm4, %v4108_v46, 0.0 }
 0x413   :  { %v545_v6 = vrot.slane %v544_v55, 2  ;;  %v1526_v7 = vsel %vm456_vm4, %v4112_v3, 0.0 }
 0x414   :  { %v1525_v56 = vadd.f32 %v1524_v5, %v1523_v4 }
 0x415   :  { %v546_v8 = vadd.f32 %v545_v6, %v544_v55 }
 0x416   :  { %v1527_v60 = vadd.f32 %v1526_v7, %v1525_v56 }
 0x417   :  { %v547_v11 = vrot.slane %v546_v8, 1 }
 0x418   :  { %1528 = vadd.xlane.f32.xlu1 %v1527_v60 }
 0x419   :  { %v548_v12 = vadd.f32 %v547_v11, %v546_v8 }
 0x41b   :  { %3504 = vrcp.f32 %v548_v12 }
 0x428   :  { %v3505_v63 = vpop.eup %3504 }
 0x429   :  { %v551_v14 = vmul.f32 %v3505_v63, %v533_v50  ;;  %v550_v15 = vmul.f32 %v3505_v63, %v532_v48  ;;  %v553_v16 = vmul.f32 %v3505_v63, %v535_v54  ;;  %v552_v18 = vmul.f32 %v3505_v63, %v534_v53 }
 0x42b   :  { %v561_v20 = vmul.f32 %v4121_v13, %v551_v14  ;;  %v560_v22 = vmul.f32 %v4121_v13, %v550_v15  ;;  %v563_v25 = vmul.f32 %v4121_v13, %v553_v16  ;;  %v562_v26 = vmul.f32 %v4121_v13, %v552_v18 }
 0x42d   :  { %v567_v23 = vsel %vm456_vm4, %v561_v20, 0.0  ;;  %v564_v24 = vsel %vm456_vm4, %v560_v22, 0.0  ;;  %v573_v27 = vsel %vm456_vm4, %v563_v25, 0.0  ;;  %v570_v28 = vsel %vm456_vm4, %v562_v26, 0.0 }
 0x42e   :  { %568 = vadd.xlane.f32.xlu1 %v567_v23  ;;  %565 = vadd.xlane.f32.xlu0 %v564_v24 }
 0x432   :  { %574 = vadd.xlane.f32.xlu1 %v573_v27  ;;  %571 = vadd.xlane.f32.xlu0 %v570_v28 }
 0x4a1   :  { %v1529_v29 = vpop.xlane.xlu1 %1528 }
 0x4a2   :  { %v1530_v31 = vrot.slane %v1529_v29, 4 }
 0x4a4   :  { %v1531_v32 = vadd.f32 %v1530_v31, %v1529_v29  ;;  %v4146_v31 = vld [vmem:[%s4713_s4 + $0x1] ss:$0 sm:$0xff] }
 0x4a6   :  { %v1532_v33 = vrot.slane %v1531_v32, 2 }
 0x4a8   :  { %v1533_v34 = vadd.f32 %v1532_v33, %v1531_v32 }
 0x4aa   :  { %v1534_v35 = vrot.slane %v1533_v34, 1 }
 0x4ac   :  { %v1535_v36 = vadd.f32 %v1534_v35, %v1533_v34 }
 0x4ae   :  { %3456 = vpush %v1535_v36 }
 0x4b7   :  { %v566_v38 = vpop.xlane.xlu0 %565  ;;  %v569_v40 = vpop.xlane.xlu1 %568 }
 0x4b8   :  { %3506 = vrcp.f32 %v569_v40 }
 0x4b9   :  { %3508 = vrcp.f32 %v566_v38 }
 0x4bb   :  { %v572_v44 = vpop.xlane.xlu0 %571  ;;  %v575_v48 = vpop.xlane.xlu1 %574 }
 0x4bc   :  { %3510 = vrcp.f32 %v572_v44 }
 0x4bd   :  { %3512 = vrcp.f32 %v575_v48 }
 0x4c5   :  { %v3507_v50 = vpop.eup %3506 }
 0x4c6   :  { %v3509_v53 = vpop.eup %3508  ;;  %v579_v52 = vmul.f32 %v3507_v50, %v561_v20 }
 0x4c7   :  { %v577_v47 = vmul.f32 %v3509_v53, %v560_v22 }
 0x4c8   :  { %v585_v62 = vsel %vm456_vm4, %v579_v52, 0.0 }
 0x4c9   :  { %v3511_v54 = vpop.eup %3510  ;;  %v584_v61 = vsel %vm456_vm4, %v577_v47, 0.0 }
 0x4ca   :  { %v581_v57 = vmul.f32 %v3511_v54, %v562_v26  ;;  %v3513_v0 = vpop.eup %3512  ;;  %v586_v43 = vadd.f32 %v585_v62, %v584_v61 }
 0x4cb   :  { %v583_v51 = vmul.f32 %v3513_v0, %v563_v25 }
 0x4cc   :  { %v587_v2 = vsel %vm456_vm4, %v581_v57, 0.0 }
 0x4cd   :  { %v588_v55 = vadd.f32 %v587_v2, %v586_v43  ;;  %v589_v4 = vsel %vm456_vm4, %v583_v51, 0.0 }
 0x4cf   :  { %v590_v5 = vadd.f32 %v589_v4, %v588_v55 }
 0x4d1   :  { %v591_v6 = vrot.slane %v590_v5, 4 }
 0x4d3   :  { %v592_v14 = vadd.f32 %v591_v6, %v590_v5 }
 0x4d5   :  { %v593_v22 = vrot.slane %v592_v14, 2 }
 0x4d7   :  { %v594_v24 = vadd.f32 %v593_v22, %v592_v14 }
 0x4df   :  { %s3457_s28 = spop %3456 }
 0x4e0   :  { %v1537_v58 = vstv %s3457_s28 }
 0x4e1   :  { %3514 = vrcp.f32 %v1537_v58 }
 0x4ee   :  { %v3515_v56 = vpop.eup %3514 }
 0x4ef   :  { %v1539_v7 = vmul.f32 %v3515_v56, %v4102_v1  ;;  %v1540_v8 = vmul.f32 %v3515_v56, %v4104_v42  ;;  %v1541_v60 = vmul.f32 %v3515_v56, %v4108_v46  ;;  %v1542_v11 = vmul.f32 %v3515_v56, %v4112_v3 }
 0x4f0   :  { %v595_v46 = vrot.slane %v594_v24, 1 }
 0x4f1   :  { %v1543_v12 = vsel %vm456_vm4, %v1539_v7, 0.0  ;;  %v1544_v63 = vsel %vm456_vm4, %v1540_v8, 0.0  ;;  %v1546_v16 = vsel %vm456_vm4, %v1541_v60, 0.0  ;;  %v1548_v20 = vsel %vm456_vm4, %v1542_v11, 0.0 }
 0x4f2   :  { %v1545_v15 = vadd.f32 %v1544_v63, %v1543_v12  ;;  %v596_v27 = vadd.f32 %v595_v46, %v594_v24 }
 0x4f4   :  { %v1547_v18 = vadd.f32 %v1546_v16, %v1545_v15 }
 0x4f6   :  { %v1549_v23 = vadd.f32 %v1548_v20, %v1547_v18 }
 0x4f8   :  { %v1550_v1 = vrot.slane %v1549_v23, 4 }
 0x4fa   :  { %v1551_v42 = vadd.f32 %v1550_v1, %v1549_v23 }
 0x4fc   :  { %v1552_v25 = vrot.slane %v1551_v42, 2 }
 0x4fe   :  { %v1553_v26 = vadd.f32 %v1552_v25, %v1551_v42 }
 0x500   :  { %v1554_v3 = vrot.slane %v1553_v26, 1 }
 0x502   :  { %v1555_v28 = vadd.f32 %v1554_v3, %v1553_v26 }
 0x504   :  { %3516 = vrcp.f32 %v1555_v28 }
 0x505   :  { %3518 = vrcp.f32 %v596_v27 }
 0x511   :  { %v3517_v29 = vpop.eup %3516 }
 0x512   :  { %v3519_v32 = vpop.eup %3518  ;;  %v1558_v33 = vmul.f32 %v3517_v29, %v1540_v8  ;;  %v1557_v34 = vmul.f32 %v3517_v29, %v1539_v7  ;;  %v1560_v35 = vmul.f32 %v3517_v29, %v1542_v11  ;;  %v1559_v36 = vmul.f32 %v3517_v29, %v1541_v60 }
 0x513   :  { %v599_v44 = vmul.f32 %v3519_v32, %v579_v52  ;;  %v598_v48 = vmul.f32 %v3519_v32, %v577_v47  ;;  %v601_v61 = vmul.f32 %v3519_v32, %v583_v51  ;;  %v600_v62 = vmul.f32 %v3519_v32, %v581_v57 }
 0x514   :  { %v1568_v38 = vmul.f32 %v4146_v31, %v1558_v33  ;;  %v1567_v40 = vmul.f32 %v4146_v31, %v1557_v34  ;;  %v1570_v54 = vmul.f32 %v4146_v31, %v1560_v35  ;;  %v1569_v58 = vmul.f32 %v4146_v31, %v1559_v36 }
 0x515   :  { %v603_v43 = vmul.f32 %v4121_v13, %v599_v44  ;;  %v602_v47 = vmul.f32 %v4121_v13, %v598_v48  ;;  %v605_v4 = vmul.f32 %v4121_v13, %v601_v61  ;;  %v604_v5 = vmul.f32 %v4121_v13, %v600_v62 }
 0x516   :  { %v1574_v50 = vsel %vm456_vm4, %v1568_v38, 0.0  ;;  %v1571_v53 = vsel %vm456_vm4, %v1567_v40, 0.0  ;;  %v1580_v0 = vsel %vm456_vm4, %v1570_v54, 0.0  ;;  %v1577_v2 = vsel %vm456_vm4, %v1569_v58, 0.0 }
 0x517   :  { %1575 = vadd.xlane.f32.xlu1 %v1574_v50  ;;  %1572 = vadd.xlane.f32.xlu0 %v1571_v53  ;;  %v609_v52 = vsel %vm456_vm4, %v603_v43, 0.0  ;;  %v606_v55 = vsel %vm456_vm4, %v602_v47, 0.0  ;;  %v615_v57 = vsel %vm456_vm4, %v605_v4, 0.0  ;;  %v612_v51 = vsel %vm456_vm4, %v604_v5, 0.0 }
 0x51b   :  { %1581 = vadd.xlane.f32.xlu1 %v1580_v0  ;;  %1578 = vadd.xlane.f32.xlu0 %v1577_v2 }
 0x51f   :  { %610 = vadd.xlane.f32.xlu1 %v609_v52  ;;  %607 = vadd.xlane.f32.xlu0 %v606_v55 }
 0x523   :  { %616 = vadd.xlane.f32.xlu1 %v615_v57  ;;  %613 = vadd.xlane.f32.xlu0 %v612_v51 }
 0x5a0   :  { %v1576_v6 = vpop.xlane.xlu1 %1575  ;;  %v1573_v56 = vpop.xlane.xlu0 %1572 }
 0x5a1   :  { %3520 = vrcp.f32 %v1576_v6 }
 0x5a2   :  { %3522 = vrcp.f32 %v1573_v56 }
 0x5a4   :  { %v1582_v7 = vpop.xlane.xlu1 %1581  ;;  %v1579_v8 = vpop.xlane.xlu0 %1578 }
 0x5a5   :  { %3524 = vrcp.f32 %v1582_v7 }
 0x5a6   :  { %3526 = vrcp.f32 %v1579_v8 }
 0x5a8   :  { %v611_v60 = vpop.xlane.xlu1 %610  ;;  %v608_v11 = vpop.xlane.xlu0 %607 }
 0x5a9   :  { %3528 = vrcp.f32 %v611_v60 }
 0x5aa   :  { %3530 = vrcp.f32 %v608_v11 }
 0x5ac   :  { %v617_v12 = vpop.xlane.xlu1 %616  ;;  %v614_v63 = vpop.xlane.xlu0 %613 }
 0x5ad   :  { %3532 = vrcp.f32 %v617_v12 }
 0x5ae   :  { %v3521_v14 = vpop.eup %3520  ;;  %3534 = vrcp.f32 %v614_v63 }
 0x5af   :  { %v3523_v15 = vpop.eup %3522  ;;  %v1586_v16 = vmul.f32 %v3521_v14, %v1568_v38 }
 0x5b0   :  { %v1584_v18 = vmul.f32 %v3523_v15, %v1567_v40 }
 0x5b1   :  { %v1592_v23 = vsel %vm456_vm4, %v1586_v16, 0.0 }
 0x5b2   :  { %v3525_v20 = vpop.eup %3524  ;;  %v1591_v22 = vsel %vm456_vm4, %v1584_v18, 0.0 }
 0x5b3   :  { %v3527_v1 = vpop.eup %3526  ;;  %v1590_v24 = vmul.f32 %v3525_v20, %v1570_v54  ;;  %v1593_v25 = vadd.f32 %v1592_v23, %v1591_v22 }
 0x5b4   :  { %v1588_v42 = vmul.f32 %v3527_v1, %v1569_v58 }
 0x5b5   :  { %v1596_v29 = vsel %vm456_vm4, %v1590_v24, 0.0 }
 0x5b6   :  { %v3529_v46 = vpop.eup %3528  ;;  %v1594_v26 = vsel %vm456_vm4, %v1588_v42, 0.0 }
 0x5b7   :  { %v3531_v3 = vpop.eup %3530  ;;  %v1595_v27 = vadd.f32 %v1594_v26, %v1593_v25  ;;  %v621_v28 = vmul.f32 %v3529_v46, %v603_v43 }
 0x5b8   :  { %v619_v32 = vmul.f32 %v3531_v3, %v602_v47 }
 0x5b9   :  { %v1597_v33 = vadd.f32 %v1596_v29, %v1595_v27  ;;  %v627_v36 = vsel %vm456_vm4, %v621_v28, 0.0 }
 0x5ba   :  { %v3533_v34 = vpop.eup %3532  ;;  %v626_v35 = vsel %vm456_vm4, %v619_v32, 0.0 }
 0x5bb   :  { %v3535_v38 = vpop.eup %3534  ;;  %v1598_v40 = vrot.slane %v1597_v33, 4  ;;  %v625_v44 = vmul.f32 %v3533_v34, %v605_v4  ;;  %v628_v53 = vadd.f32 %v627_v36, %v626_v35 }
 0x5bc   :  { %v623_v48 = vmul.f32 %v3535_v38, %v604_v5 }
 0x5bd   :  { %v1599_v50 = vadd.f32 %v1598_v40, %v1597_v33  ;;  %v631_v62 = vsel %vm456_vm4, %v625_v44, 0.0 }
 0x5be   :  { %v629_v54 = vsel %vm456_vm4, %v623_v48, 0.0 }
 0x5bf   :  { %v1600_v58 = vrot.slane %v1599_v50, 2  ;;  %v630_v61 = vadd.f32 %v629_v54, %v628_v53 }
 0x5c1   :  { %v1601_v0 = vadd.f32 %v1600_v58, %v1599_v50  ;;  %v632_v2 = vadd.f32 %v631_v62, %v630_v61 }
 0x5c3   :  { %v1602_v43 = vrot.slane %v1601_v0, 1  ;;  %v633_v47 = vrot.slane %v632_v2, 4 }
 0x5c5   :  { %v1603_v52 = vadd.f32 %v1602_v43, %v1601_v0  ;;  %v634_v55 = vadd.f32 %v633_v47, %v632_v2 }
 0x5c7   :  { %3536 = vrcp.f32 %v1603_v52  ;;  %v635_v57 = vrot.slane %v634_v55, 2 }
 0x5c9   :  { %v636_v51 = vadd.f32 %v635_v57, %v634_v55 }
 0x5cb   :  { %v637_v6 = vrot.slane %v636_v51, 1 }
 0x5cd   :  { %v638_v4 = vadd.f32 %v637_v6, %v636_v51 }
 0x5cf   :  { %3538 = vrcp.f32 %v638_v4 }
 0x5d4   :  { %v3537_v5 = vpop.eup %3536 }
 0x5d5   :  { %v1606_v56 = vmul.f32 %v3537_v5, %v1586_v16  ;;  %v1605_v7 = vmul.f32 %v3537_v5, %v1584_v18  ;;  %v1608_v8 = vmul.f32 %v3537_v5, %v1590_v24  ;;  %v1607_v60 = vmul.f32 %v3537_v5, %v1588_v42 }
 0x5d7   :  { %v1610_v11 = vmul.f32 %v4146_v31, %v1606_v56  ;;  %v1609_v12 = vmul.f32 %v4146_v31, %v1605_v7  ;;  %v1612_v63 = vmul.f32 %v4146_v31, %v1608_v8  ;;  %v1611_v14 = vmul.f32 %v4146_v31, %v1607_v60 }
 0x5d9   :  { %v1616_v15 = vsel %vm456_vm4, %v1610_v11, 0.0  ;;  %v1613_v20 = vsel %vm456_vm4, %v1609_v12, 0.0  ;;  %v1622_v16 = vsel %vm456_vm4, %v1612_v63, 0.0  ;;  %v1619_v18 = vsel %vm456_vm4, %v1611_v14, 0.0 }
 0x5da   :  { %1617 = vadd.xlane.f32.xlu1 %v1616_v15  ;;  %1614 = vadd.xlane.f32.xlu0 %v1613_v20  ;;  %v38_v15 = vld [vmem:[%s4714_s5] sm:$0xf] }
 0x5dc   :  { %v3539_v22 = vpop.eup %3538 }
 0x5dd   :  { %v641_v23 = vmul.f32 %v3539_v22, %v621_v28  ;;  %v640_v1 = vmul.f32 %v3539_v22, %v619_v32  ;;  %v643_v24 = vmul.f32 %v3539_v22, %v625_v44  ;;  %v642_v42 = vmul.f32 %v3539_v22, %v623_v48 }
 0x5de   :  { %1623 = vadd.xlane.f32.xlu1 %v1622_v16  ;;  %1620 = vadd.xlane.f32.xlu0 %v1619_v18 }
 0x5df   :  { %v645_v25 = vmul.f32 %v4121_v13, %v641_v23  ;;  %v644_v46 = vmul.f32 %v4121_v13, %v640_v1  ;;  %v647_v27 = vmul.f32 %v4121_v13, %v643_v24  ;;  %v646_v29 = vmul.f32 %v4121_v13, %v642_v42 }
 0x5e1   :  { %v651_v26 = vsel %vm456_vm4, %v645_v25, 0.0  ;;  %v648_v3 = vsel %vm456_vm4, %v644_v46, 0.0  ;;  %v657_v28 = vsel %vm456_vm4, %v647_v27, 0.0  ;;  %v654_v32 = vsel %vm456_vm4, %v646_v29, 0.0 }
 0x5e2   :  { %652 = vadd.xlane.f32.xlu1 %v651_v26  ;;  %649 = vadd.xlane.f32.xlu0 %v648_v3 }
 0x5e6   :  { %658 = vadd.xlane.f32.xlu1 %v657_v28  ;;  %655 = vadd.xlane.f32.xlu0 %v654_v32 }
 0x663   :  { %v1618_v33 = vpop.xlane.xlu1 %1617  ;;  %v1615_v34 = vpop.xlane.xlu0 %1614 }
 0x664   :  { %3540 = vrcp.f32 %v1618_v33 }
 0x665   :  { %3542 = vrcp.f32 %v1615_v34 }
 0x667   :  { %v1624_v35 = vpop.xlane.xlu1 %1623  ;;  %v1621_v36 = vpop.xlane.xlu0 %1620 }
 0x668   :  { %3544 = vrcp.f32 %v1624_v35 }
 0x669   :  { %3546 = vrcp.f32 %v1621_v36  ;;  %v4218_v36 = vpop.f32.mrf.mxu0 }
 0x66b   :  { %v653_v38 = vpop.xlane.xlu1 %652  ;;  %v650_v40 = vpop.xlane.xlu0 %649 }
 0x66f   :  { %v659_v44 = vpop.xlane.xlu1 %658  ;;  %v656_v13 = vpop.xlane.xlu0 %655 }
 0x670   :  { %3548 = vrcp.f32 %v659_v44  ;;  %v3301_v44 = vpop.f32.mrf.mxu0 }
 0x671   :  { %v3541_v48 = vpop.eup %3540  ;;  %3550 = vrcp.f32 %v656_v13 }
 0x672   :  { %v3543_v50 = vpop.eup %3542  ;;  %3552 = vrcp.f32 %v653_v38  ;;  %v1628_v53 = vmul.f32 %v3541_v48, %v1610_v11 }
 0x673   :  { %v1626_v54 = vmul.f32 %v3543_v50, %v1609_v12  ;;  %3554 = vrcp.f32 %v650_v40 }
 0x674   :  { %v1634_v62 = vsel %vm456_vm4, %v1628_v53, 0.0 }
 0x675   :  { %v3545_v58 = vpop.eup %3544  ;;  %v1633_v61 = vsel %vm456_vm4, %v1626_v54, 0.0 }
 0x676   :  { %v3547_v0 = vpop.eup %3546  ;;  %v1632_v2 = vmul.f32 %v3545_v58, %v1612_v63  ;;  %v1635_v47 = vadd.f32 %v1634_v62, %v1633_v61 }
 0x677   :  { %v1630_v43 = vmul.f32 %v3547_v0, %v1611_v14  ;;  %v3722_v0 = vld [vmem:[%s4709_s0 + $0x4] sm:$0xf] }
 0x678   :  { %v1638_v57 = vsel %vm456_vm4, %v1632_v2, 0.0 }
 0x679   :  { %v1636_v52 = vsel %vm456_vm4, %v1630_v43, 0.0 }
 0x67a   :  { %v1637_v55 = vadd.f32 %v1636_v52, %v1635_v47 }
 0x67c   :  { %v1639_v51 = vadd.f32 %v1638_v57, %v1637_v55 }
 0x67d   :  { %v3549_v6 = vpop.eup %3548 }
 0x67e   :  { %v3551_v4 = vpop.eup %3550  ;;  %v667_v5 = vmul.f32 %v3549_v6, %v647_v27  ;;  %v1640_v56 = vrot.slane %v1639_v51, 4 }
 0x67f   :  { %v3553_v7 = vpop.eup %3552  ;;  %v665_v8 = vmul.f32 %v3551_v4, %v646_v29 }
 0x680   :  { %3311 = vmatpush3.msra.mxu0 %v667_v5  ;;  %v1641_v60 = vadd.f32 %v1640_v56, %v1639_v51  ;;  %v3555_v11 = vpop.eup %3554  ;;  %v663_v12 = vmul.f32 %v3553_v7, %v645_v25 }
 0x681   :  { %3312 = vmatprep.subr.mxu0 %v3773_v9  ;;  %v661_v14 = vmul.f32 %v3555_v11, %v644_v46  ;;  %v4270_v11 = vpop.f32.mrf.mxu1 }
 0x682   :  { %3313 = vmatpush3.msra.mxu0 %v665_v8  ;;  %v1642_v63 = vrot.slane %v1641_v60, 2 }
 0x683   :  { %3314 = vmatprep.subr.mxu0 %v3773_v9 }
 0x684   :  { %3315 = vmatpush3.msra.mxu0 %v663_v12  ;;  %v1643_v20 = vadd.f32 %v1642_v63, %v1641_v60 }
 0x685   :  { %3316 = vmatprep.subr.mxu0 %v3773_v9 }
 0x686   :  { %3317 = vmatpush3.msra.mxu0 %v661_v14  ;;  %v1644_v22 = vrot.slane %v1643_v20, 1 }
 0x687   :  { %3326 = vmatprep.subr.mxu0 %v3773_v9  ;;  %3319 = vmatmul.mubr.msk.f32.vlgmr.msra.gmra.mxu0 %vm668_vm5, %v38_v15 }
 0x688   :  { %3327 = vmatpush3.msra.mxu0 %v3891_v30  ;;  %v1645_v16 = vadd.f32 %v1644_v22, %v1643_v20  ;;  %3334 = vmatprep.mubr.msk.f32.mxu0 %vm3774_vm2, %v3773_v9 }
 0x689   :  { %3328 = vmatprep.subr.mxu0 %v3773_v9 }
 0x68a   :  { %3329 = vmatpush3.msra.mxu0 %v3902_v37  ;;  %3556 = vrcp.f32 %v1645_v16 }
 0x68b   :  { %3330 = vmatprep.subr.mxu0 %v3773_v9 }
 0x68c   :  { %3331 = vmatpush3.msra.mxu0 %v3913_v39 }
 0x68d   :  { %3332 = vmatprep.subr.mxu0 %v3773_v9 }
 0x68e   :  { %3333 = vmatpush3.msra.mxu0 %v3921_v41 }
 0x68f   :  { %3356 = vmatprep.subr.mxu0 %v3773_v9 }
 0x697   :  { %v3557_v18 = vpop.eup %3556 }
 0x698   :  { %v1648_v23 = vmul.f32 %v3557_v18, %v1628_v53  ;;  %v1647_v1 = vmul.f32 %v3557_v18, %v1626_v54  ;;  %v1650_v24 = vmul.f32 %v3557_v18, %v1632_v2  ;;  %v1649_v42 = vmul.f32 %v3557_v18, %v1630_v43  ;;  %v3133_v2 = vld [vmem:[%s4714_s5 + $0x4] sm:$0xf] }
 0x69a   :  { %v1652_v25 = vmul.f32 %v4146_v31, %v1648_v23  ;;  %v1651_v46 = vmul.f32 %v4146_v31, %v1647_v1  ;;  %v1654_v27 = vmul.f32 %v4146_v31, %v1650_v24  ;;  %v1653_v29 = vmul.f32 %v4146_v31, %v1649_v42  ;;  %v2043_v1 = vld [vmem:[%s4709_s0] sm:$0xf] }
 0x69c   :  { %v1658_v26 = vsel %vm456_vm4, %v1652_v25, 0.0  ;;  %v1655_v3 = vsel %vm456_vm4, %v1651_v46, 0.0  ;;  %v1664_v41 = vsel %vm456_vm4, %v1654_v27, 0.0  ;;  %v1661_v28 = vsel %vm456_vm4, %v1653_v29, 0.0 }
 0x69d   :  { %1659 = vadd.xlane.f32.xlu1 %v1658_v26  ;;  %1656 = vadd.xlane.f32.xlu0 %v1655_v3 }
 0x6a1   :  { %1665 = vadd.xlane.f32.xlu1 %v1664_v41  ;;  %1662 = vadd.xlane.f32.xlu0 %v1661_v28 }
 0x6ce   :  { %925 = vxpose.xlu0.b32.start [1/4] (short) (narrow) %v661_v14, 8 }
 0x6d2   :  { %926 = vxpose.xlu0.b32.cont [2/4] (short) (narrow) %v663_v12, 8  ;;  %v3390_v12 = vpop.f32.mrf.mxu1 }
 0x6d6   :  { %927 = vxpose.xlu0.b32.cont [3/4] (short) (narrow) %v665_v8, 8 }
 0x6da   :  { %928 = vxpose.xlu0.b32.end [4/4] (short) (narrow) %v667_v5, 8 }
 0x726   :  { %v1657_v32 = vpop.xlane.xlu0 %1656  ;;  %v1660_v33 = vpop.xlane.xlu1 %1659 }
 0x727   :  { %3558 = vrcp.f32 %v1657_v32 }
 0x728   :  { %3560 = vrcp.f32 %v1660_v33 }
 0x72a   :  { %v1663_v34 = vpop.xlane.xlu0 %1662  ;;  %v1666_v35 = vpop.xlane.xlu1 %1665 }
 0x72b   :  { %3562 = vrcp.f32 %v1663_v34 }
 0x72c   :  { %3564 = vrcp.f32 %v1666_v35 }
 0x734   :  { %v3559_v31 = vpop.eup %3558 }
 0x735   :  { %v1668_v38 = vmul.f32 %v3559_v31, %v1651_v46  ;;  %v3561_v40 = vpop.eup %3560 }
 0x736   :  { %v1670_v13 = vmul.f32 %v3561_v40, %v1652_v25 }
 0x737   :  { %1929 = vxpose.xlu1.b32.start [1/4] (short) (narrow) %v1668_v38, 8 }
 0x738   :  { %v3563_v48 = vpop.eup %3562 }
 0x739   :  { %v1672_v50 = vmul.f32 %v3563_v48, %v1653_v29  ;;  %v3565_v53 = vpop.eup %3564 }
 0x73a   :  { %v1674_v54 = vmul.f32 %v3565_v53, %v1654_v27 }
 0x73b   :  { %1930 = vxpose.xlu1.b32.cont [2/4] (short) (narrow) %v1670_v13, 8 }
 0x73f   :  { %1931 = vxpose.xlu1.b32.cont [3/4] (short) (narrow) %v1672_v50, 8 }
 0x743   :  { %1932 = vxpose.xlu1.b32.end [4/4] (short) (narrow) %v1674_v54, 8 }
 0x747   :  { %v4220_v58 = vpop.f32.mrf.mxu0 }
 0x749   :  { %v3320_v61 = vpop.f32.mrf.mxu0 }
 0x74a   :  { %v941_v62 = vpop.trf.xlu0 }
 0x74b   :  { %3335 = vmatmul.mubr.msk.f32.vlgmr.msra.gmra.mxu0 %vm668_vm5, %v941_v62 }
 0x74c   :  { %3357 = vmatpush3.xpose.msk.msra.mxu0 %vm169_vm3, %v4004_v10  ;;  %3364 = vmatprep.mubr.msk.f32.mxu0 %vm3774_vm2, %v3773_v9 }
 0x74d   :  { %3358 = vmatprep.subr.mxu0 %v3773_v9 }
 0x750   :  { %3359 = vmatpush3.xpose.msk.msra.mxu0 %vm169_vm3, %v4012_v17 }
 0x751   :  { %3360 = vmatprep.subr.mxu0 %v3773_v9 }
 0x754   :  { %3361 = vmatpush3.xpose.msk.msra.mxu0 %vm169_vm3, %v4020_v19 }
 0x755   :  { %3362 = vmatprep.subr.mxu0 %v3773_v9 }
 0x758   :  { %3363 = vmatpush3.xpose.msk.msra.mxu0 %vm169_vm3, %v4025_v21 }
 0x759   :  { %3375 = vmatprep.subr.mxu0 %v3773_v9 }
 0x75b   :  { %3365 = vmatmul.mubr.msk.f32.vlgmr.msra.gmra.mxu0 %vm169_vm3, %v3722_v0 }
 0x75c   :  { %3376 = vmatpush3.msra.mxu0 %v1674_v54  ;;  %3383 = vmatprep.mubr.msk.f32.mxu0 %vm3774_vm2, %v3773_v9 }
 0x75d   :  { %3377 = vmatprep.subr.mxu0 %v3773_v9 }
 0x75e   :  { %3378 = vmatpush3.msra.mxu0 %v1672_v50 }
 0x75f   :  { %3379 = vmatprep.subr.mxu0 %v3773_v9 }
 0x760   :  { %3380 = vmatpush3.msra.mxu0 %v1670_v13 }
 0x761   :  { %3381 = vmatprep.subr.mxu0 %v3773_v9 }
 0x762   :  { %3382 = vmatpush3.msra.mxu0 %v1668_v38 }
 0x763   :  { %3391 = vmatprep.subr.mxu0 %v3773_v9  ;;  %3384 = vmatmul.mubr.msk.f32.vlgmr.msra.gmra.mxu0 %vm668_vm5, %v3133_v2 }
 0x764   :  { %3392 = vmatpush3.msra.mxu0 %v4004_v10  ;;  %3399 = vmatprep.mubr.msk.f32.mxu0 %vm3774_vm2, %v3773_v9 }
 0x765   :  { %3393 = vmatprep.subr.mxu0 %v3773_v9 }
 0x766   :  { %3394 = vmatpush3.msra.mxu0 %v4012_v17 }
 0x767   :  { %3395 = vmatprep.subr.mxu0 %v3773_v9 }
 0x768   :  { %3396 = vmatpush3.msra.mxu0 %v4020_v19 }
 0x769   :  { %3397 = vmatprep.subr.mxu0 %v3773_v9 }
 0x76a   :  { %3398 = vmatpush3.msra.mxu0 %v4025_v21 }
 0x76b   :  { %3421 = vmatprep.subr.mxu0 %v3773_v9 }
 0x7b3   :  { %v1945_v43 = vpop.trf.xlu1 }
 0x7b4   :  { %3400 = vmatmul.mubr.msk.f32.vlgmr.msra.gmra.mxu0 %vm668_vm5, %v1945_v43 }
 0x7b5   :  { %3423 = vmatprep.mubr.msk.f32.mxu0 %vm3774_vm2, %v3773_v9 }
 0x80b   :  { %v1026_v47 = vpop.f32.mrf.mxu0 }
 0x80c   :  { %v1030_v52 = vmul.f32 %v1026_v47, %v1026_v47 }
 0x80d   :  { %v3336_v55 = vpop.f32.mrf.mxu0 }
 0x80e   :  { %v1031_v57 = vsel %vm169_vm3, %v1030_v52, 0.0 }
 0x80f   :  { %1032 = vadd.xlane.f32.xlu1 %v1031_v57 }
 0x81b   :  { %v4265_v51 = vpop.f32.mrf.mxu0 }
 0x81d   :  { %v3366_v6 = vpop.f32.mrf.mxu0 }
 0x823   :  { %v4267_v4 = vpop.f32.mrf.mxu0 }
 0x825   :  { %v3385_v5 = vpop.f32.mrf.mxu0 }
 0x874   :  { %v2030_v56 = vpop.f32.mrf.mxu0 }
 0x875   :  { %v2034_v7 = vmul.f32 %v2030_v56, %v2030_v56 }
 0x876   :  { %v3401_v8 = vpop.f32.mrf.mxu0 }
 0x877   :  { %v2035_v60 = vsel %vm169_vm3, %v2034_v7, 0.0 }
 0x878   :  { %2036 = vadd.xlane.f32.xlu0 %v2035_v60 }
 0x898   :  { %v1033_v63 = vpop.xlane.xlu1 %1032 }
 0x899   :  { %v1034_v14 = vmax.f32 %v1033_v63, 1e-24 }
 0x89b   :  { %3566 = vrsqrt.f32 %v1034_v14 }
 0x8a8   :  { %v3567_v22 = vpop.eup %3566 }
 0x8a9   :  { %v1036_v23 = vmul.f32 %v3567_v22, %v1026_v47 }
 0x901   :  { %v2037_v15 = vpop.xlane.xlu0 %2036 }
 0x902   :  { %v2038_v20 = vmax.f32 %v2037_v15, 1e-24 }
 0x904   :  { %3568 = vrsqrt.f32 %v2038_v20 }
 0x911   :  { %v3569_v16 = vpop.eup %3568 }
 0x912   :  { %v2040_v18 = vmul.f32 %v3569_v16, %v2030_v56 }
 0x914   :  { %3402 = vmatprep.subr.msk.mxu1 %vm169_vm3, %v2040_v18  ;;  %3422 = vmatpush3.xpose.msk.msra.mxu0 %vm169_vm3, %v2040_v18 }
 0x915   :  { %3403 = vmatpush3.xpose.msk.msra.mxu1 %vm169_vm3, %v2040_v18  ;;  %3426 = vmatprep.subr.msk.mxu0 %vm169_vm3, %v1036_v23 }
 0x916   :  { %3410 = vmatprep.subr.mxu1 %v3773_v9 }
 0x917   :  { %3424 = vmatmul.mubr.msk.f32.vlgmr.msra.gmra.mxu0 %vm169_vm3, %v2043_v1 }
 0x918   :  { %3405 = vmatmul.mubr.msk.f32.vlgmr.msra.gmra.mxu1 %vm169_vm3, %v3913_v39  ;;  %3427 = vmatpush3.xpose.msk.msra.mxu0 %vm169_vm3, %v1036_v23 }
 0x919   :  { %3428 = vmatprep.mubr.msk.f32.mxu0 %vm169_vm3, %v4025_v21  ;;  %3407 = vmatprep.mubr.msk.f32.mxu1 %vm169_vm3, %v3902_v37 }
 0x91a   :  { %3445 = vmatprep.subr.mxu0 %v3773_v9 }
 0x91b   :  { %3429 = vmatmul.mubr.msk.f32.vlgmr.msra.gmra.mxu0 %vm169_vm3, %v4020_v19 }
 0x91c   :  { %3408 = vmatmul.mubr.msk.f32.gmra.mxu1 %vm169_vm3, %v3891_v30  ;;  %3431 = vmatprep.mubr.msk.f32.mxu0 %vm169_vm3, %v4012_v17 }
 0x91d   :  { %3446 = vmatpush3.xpose.msk.msra.mxu0 %vm169_vm3, %v1036_v23  ;;  %3418 = vmatprep.mubr.msk.f32.mxu1 %vm3774_vm2, %v3773_v9 }
 0x91f   :  { %3432 = vmatmul.mubr.msk.f32.gmra.mxu0 %vm169_vm3, %v4004_v10 }
 0x920   :  { %3447 = vmatprep.mubr.msk.f32.mxu0 %vm3774_vm2, %v3773_v9 }
 0x9d7   :  { %v4302_v37 = vpop.f32.mrf.mxu0 }
 0x9d8   :  { %v3406_v39 = vpop.f32.mrf.mxu1 }
 0x9d9   :  { %v2135_v19 = vmul.f32 %v3406_v39, %v3406_v39  ;;  %v3425_v21 = vpop.f32.mrf.mxu0 }
 0x9da   :  { %v2115_v30 = vpop.f32.mrf.mxu1 }
 0x9db   :  { %v2134_v24 = vmul.f32 %v2115_v30, %v2115_v30  ;;  %v4304_v42 = vpop.f32.mrf.mxu0  ;;  %v2141_v17 = vsel %vm456_vm4, %v2135_v19, 0.0 }
 0x9dc   :  { %2142 = vadd.xlane.f32.xlu1 %v2141_v17  ;;  %v3409_v25 = vpop.f32.mrf.mxu1  ;;  %v2649_v12 = vmul.f32 %v4304_v42, %v4304_v42 }
 0x9dd   :  { %v2137_v46 = vmul.f32 %v3409_v25, %v3409_v25  ;;  %v4307_v26 = vpop.f32.mrf.mxu0  ;;  %v2138_v10 = vsel %vm456_vm4, %v2134_v24, 0.0 }
 0x9de   :  { %2139 = vadd.xlane.f32.xlu0 %v2138_v10  ;;  %v2125_v3 = vpop.f32.mrf.mxu1  ;;  %v2648_v27 = vmul.f32 %v4307_v26, %v4307_v26  ;;  %v2655_v14 = vsel %vm456_vm4, %v2649_v12, 0.0 }
 0x9df   :  { %v2136_v29 = vmul.f32 %v2125_v3, %v2125_v3  ;;  %v4312_v41 = vpop.f32.mrf.mxu0  ;;  %v2147_v28 = vsel %vm456_vm4, %v2137_v46, 0.0 }
 0x9e0   :  { %2148 = vadd.xlane.f32.xlu1 %v2147_v28  ;;  %v2652_v35 = vsel %vm456_vm4, %v2648_v27, 0.0  ;;  %v2651_v63 = vmul.f32 %v4312_v41, %v4312_v41 }
 0x9e1   :  { %v4315_v32 = vpop.f32.mrf.mxu0  ;;  %v2144_v33 = vsel %vm456_vm4, %v2136_v29, 0.0 }
 0x9e2   :  { %2145 = vadd.xlane.f32.xlu0 %v2144_v33  ;;  %v2650_v34 = vmul.f32 %v4315_v32, %v4315_v32  ;;  %v2661_v15 = vsel %vm456_vm4, %v2651_v63, 0.0 }
 0x9e4   :  { %2653 = vadd.xlane.f32.xlu1 %v2652_v35  ;;  %v2658_v31 = vsel %vm456_vm4, %v2650_v34, 0.0 }
 0x9e8   :  { %2659 = vadd.xlane.f32.xlu1 %v2658_v31 }
 0xa65   :  { %v2143_v38 = vpop.xlane.xlu1 %2142 }
 0xa66   :  { %v2151_v40 = vmax.f32 %v2143_v38, 1e-24 }
 0xa67   :  { %v2140_v44 = vpop.xlane.xlu0 %2139 }
 0xa68   :  { %v2150_v13 = vmax.f32 %v2140_v44, 1e-24  ;;  %3570 = vrsqrt.f32 %v2151_v40 }
 0xa69   :  { %v2149_v48 = vpop.xlane.xlu1 %2148 }
 0xa6a   :  { %3572 = vrsqrt.f32 %v2150_v13  ;;  %v2153_v50 = vmax.f32 %v2149_v48, 1e-24 }
 0xa6b   :  { %v2146_v53 = vpop.xlane.xlu0 %2145 }
 0xa6c   :  { %3574 = vrsqrt.f32 %v2153_v50  ;;  %v2152_v54 = vmax.f32 %v2146_v53, 1e-24 }
 0xa6d   :  { %v2654_v20 = vpop.xlane.xlu1 %2653 }
 0xa6e   :  { %3576 = vrsqrt.f32 %v2152_v54  ;;  %v2664_v18 = vmax.f32 %v2654_v20, 1e-24 }
 0xa70   :  { %3578 = vrsqrt.f32 %v2664_v18 }
 0xa71   :  { %v2660_v22 = vpop.xlane.xlu1 %2659 }
 0xa72   :  { %v2666_v1 = vmax.f32 %v2660_v22, 1e-24 }
 0xa74   :  { %3580 = vrsqrt.f32 %v2666_v1 }
 0xa75   :  { %v3571_v61 = vpop.eup %3570 }
 0xa76   :  { %v2159_v43 = vmul.f32 %v3571_v61, %v3406_v39 }
 0xa77   :  { %v3573_v62 = vpop.eup %3572 }
 0xa78   :  { %v2158_v0 = vmul.f32 %v3573_v62, %v2115_v30  ;;  %v2163_v6 = vsel %vm456_vm4, %v2159_v43, -inf }
 0xa79   :  { %v3575_v2 = vpop.eup %3574 }
 0xa7a   :  { %v2161_v47 = vmul.f32 %v3575_v2, %v3409_v25  ;;  %v2162_v57 = vsel %vm456_vm4, %v2158_v0, -inf }
 0xa7b   :  { %v3577_v52 = vpop.eup %3576  ;;  %v2166_v7 = vmax.f32 %v2162_v57, %v2163_v6 }
 0xa7c   :  { %v2160_v55 = vmul.f32 %v3577_v52, %v2125_v3  ;;  %v2165_v56 = vsel %vm456_vm4, %v2161_v47, -inf }
 0xa7d   :  { %v3579_v3 = vpop.eup %3578 }
 0xa7e   :  { %v2164_v5 = vsel %vm456_vm4, %v2160_v55, -inf  ;;  %v4336_v33 = vmul.f32 %v3579_v3, %v4307_v26 }
 0xa7f   :  { %v2167_v8 = vmax.f32 %v2164_v5, %v2165_v56 }
 0xa80   :  { %v2676_v40 = vsel %vm456_vm4, %v4336_v33, -inf }
 0xa81   :  { %v2168_v60 = vmax.f32 %v2166_v7, %v2167_v8  ;;  %v3581_v27 = vpop.eup %3580 }
 0xa82   :  { %v4339_v34 = vmul.f32 %v3581_v27, %v4315_v32 }
 0xa83   :  { %2169 = vmax.xlane.f32.xlu0 %v2168_v60 }
 0xa87   :  { %2656 = vadd.xlane.f32.xlu0 %v2655_v14 }
 0xa8b   :  { %2662 = vadd.xlane.f32.xlu0 %v2661_v15 }
 0xb0c   :  { %v2170_v16 = vpop.xlane.xlu0 %2169 }
 0xb0d   :  { %v2171_v23 = vrot.slane %v2170_v16, 4 }
 0xb0f   :  { %v2172_v39 = vmax.f32 %v2170_v16, %v2171_v23 }
 0xb10   :  { %v2657_v19 = vpop.xlane.xlu0 %2656 }
 0xb11   :  { %v2173_v21 = vrot.slane %v2172_v39, 2  ;;  %v2665_v30 = vmax.f32 %v2657_v19, 1e-24 }
 0xb13   :  { %3582 = vrsqrt.f32 %v2665_v30  ;;  %v2174_v24 = vmax.f32 %v2172_v39, %v2173_v21 }
 0xb14   :  { %v2663_v17 = vpop.xlane.xlu0 %2662 }
 0xb15   :  { %v2667_v25 = vmax.f32 %v2663_v17, 1e-24  ;;  %v2175_v46 = vrot.slane %v2174_v24, 1 }
 0xb17   :  { %3584 = vrsqrt.f32 %v2667_v25  ;;  %v2176_v10 = vmax.f32 %v2174_v24, %v2175_v46 }
 0xb19   :  { %3458 = vpush %v2176_v10 }
 0xb20   :  { %v3583_v29 = vpop.eup %3582 }
 0xb21   :  { %v4333_v28 = vmul.f32 %v3583_v29, %v4304_v42  ;;  %v2678_v42 = vsel %vm456_vm4, %v4339_v34, -inf }
 0xb23   :  { %v2677_v38 = vsel %vm456_vm4, %v4333_v28, -inf }
 0xb24   :  { %v3585_v35 = vpop.eup %3584  ;;  %v2680_v44 = vmax.f32 %v2676_v40, %v2677_v38 }
 0xb25   :  { %v4342_v31 = vmul.f32 %v3585_v35, %v4312_v41 }
 0xb27   :  { %v2679_v26 = vsel %vm456_vm4, %v4342_v31, -inf }
 0xb28   :  { %v2681_v13 = vmax.f32 %v2678_v42, %v2679_v26 }
 0xb2a   :  { %v2682_v32 = vmax.f32 %v2680_v44, %v2681_v13 }
 0xb2c   :  { %2683 = vmax.xlane.f32.xlu0 %v2682_v32 }
 0xb4a   :  { %s3459_s17 = spop %3458 }
 0xb4b   :  { %v2178_v48 = vstv %s3459_s17 }
 0xb4c   :  { %v2179_v41 = vsub.f32 %v2158_v0, %v2178_v48  ;;  %v2180_v50 = vsub.f32 %v2159_v43, %v2178_v48  ;;  %v2181_v53 = vsub.f32 %v2160_v55, %v2178_v48  ;;  %v2182_v54 = vsub.f32 %v2161_v47, %v2178_v48 }
 0xb4e   :  { %v2183_v61 = vmul.f32 20.0, %v2179_v41  ;;  %v2184_v62 = vmul.f32 20.0, %v2180_v50  ;;  %v2185_v2 = vmul.f32 20.0, %v2181_v53  ;;  %v2186_v52 = vmul.f32 20.0, %v2182_v54 }
 0xb50   :  { %v2187_v57 = vmul.f32 1.442695, %v2183_v61  ;;  %v2189_v6 = vmul.f32 1.442695, %v2184_v62  ;;  %v2191_v5 = vmul.f32 1.442695, %v2185_v2 }
 0xb51   :  { %v2193_v56 = vmul.f32 1.442695, %v2186_v52 }
 0xb52   :  { %3586 = vpow2.f32 %v2187_v57 }
 0xb53   :  { %3588 = vpow2.f32 %v2189_v6 }
 0xb54   :  { %3590 = vpow2.f32 %v2191_v5 }
 0xb55   :  { %3592 = vpow2.f32 %v2193_v56 }
 0xb5f   :  { %v3587_v7 = vpop.eup %3586 }
 0xb60   :  { %v3589_v8 = vpop.eup %3588  ;;  %v2195_v60 = vsel %vm456_vm4, %v3587_v7, 0.0 }
 0xb61   :  { %v3591_v0 = vpop.eup %3590  ;;  %v2196_v43 = vsel %vm456_vm4, %v3589_v8, 0.0 }
 0xb62   :  { %v3593_v47 = vpop.eup %3592  ;;  %v2197_v55 = vadd.f32 %v2196_v43, %v2195_v60  ;;  %v2198_v12 = vsel %vm456_vm4, %v3591_v0, 0.0 }
 0xb63   :  { %v2200_v14 = vsel %vm456_vm4, %v3593_v47, 0.0 }
 0xb64   :  { %v2199_v63 = vadd.f32 %v2198_v12, %v2197_v55 }
 0xb66   :  { %v2201_v15 = vadd.f32 %v2200_v14, %v2199_v63 }
 0xb68   :  { %2202 = vadd.xlane.f32.xlu1 %v2201_v15 }
 0xbb5   :  { %v2684_v20 = vpop.xlane.xlu0 %2683 }
 0xbb6   :  { %v2685_v22 = vrot.slane %v2684_v20, 4 }
 0xbb8   :  { %v2686_v16 = vmax.f32 %v2684_v20, %v2685_v22 }
 0xbba   :  { %v2687_v18 = vrot.slane %v2686_v16, 2 }
 0xbbc   :  { %v2688_v19 = vmax.f32 %v2686_v16, %v2687_v18 }
 0xbbe   :  { %v2689_v24 = vrot.slane %v2688_v19, 1 }
 0xbc0   :  { %v2690_v46 = vmax.f32 %v2688_v19, %v2689_v24 }
 0xbf1   :  { %v2203_v23 = vpop.xlane.xlu1 %2202 }
 0xbf2   :  { %v2204_v1 = vrot.slane %v2203_v23, 4 }
 0xbf4   :  { %v2205_v39 = vadd.f32 %v2204_v1, %v2203_v23  ;;  %v4383_v23 = vld [vmem:[%s4713_s4] ss:$0 sm:$0xff] }
 0xbf6   :  { %v2206_v21 = vrot.slane %v2205_v39, 2 }
 0xbf8   :  { %v2207_v30 = vadd.f32 %v2206_v21, %v2205_v39 }
 0xbfa   :  { %v2208_v17 = vrot.slane %v2207_v30, 1 }
 0xbfc   :  { %v2209_v25 = vadd.f32 %v2208_v17, %v2207_v30 }
 0xbfe   :  { %3460 = vpush %v2209_v25 }
 0xbff   :  { %3462 = vpush %v2690_v46 }
 0xc2f   :  { %s3461_s18 = spop %3460 }
 0xc30   :  { %v2211_v10 = vstv %s3461_s18  ;;  %s3463_s19 = spop %3462 }
 0xc31   :  { %3594 = vrcp.f32 %v2211_v10  ;;  %v2692_v3 = vstv %s3463_s19 }
 0xc32   :  { %v2693_v27 = vsub.f32 %v4336_v33, %v2692_v3  ;;  %v2694_v29 = vsub.f32 %v4333_v28, %v2692_v3  ;;  %v2695_v35 = vsub.f32 %v4339_v34, %v2692_v3  ;;  %v2696_v38 = vsub.f32 %v4342_v31, %v2692_v3 }
 0xc34   :  { %v2697_v40 = vmul.f32 20.0, %v2693_v27  ;;  %v2698_v42 = vmul.f32 20.0, %v2694_v29  ;;  %v2699_v26 = vmul.f32 20.0, %v2695_v35  ;;  %v2700_v44 = vmul.f32 20.0, %v2696_v38 }
 0xc36   :  { %v2701_v13 = vmul.f32 1.442695, %v2697_v40  ;;  %v2703_v32 = vmul.f32 1.442695, %v2698_v42  ;;  %v2705_v48 = vmul.f32 1.442695, %v2699_v26 }
 0xc37   :  { %v2707_v41 = vmul.f32 1.442695, %v2700_v44 }
 0xc38   :  { %3596 = vpow2.f32 %v2701_v13 }
 0xc39   :  { %3598 = vpow2.f32 %v2703_v32 }
 0xc3a   :  { %3600 = vpow2.f32 %v2705_v48 }
 0xc3b   :  { %3602 = vpow2.f32 %v2707_v41 }
 0xc3e   :  { %v3595_v50 = vpop.eup %3594 }
 0xc3f   :  { %v2213_v33 = vmul.f32 %v3595_v50, %v3587_v7  ;;  %v2214_v53 = vmul.f32 %v3595_v50, %v3589_v8  ;;  %v2215_v28 = vmul.f32 %v3595_v50, %v3591_v0  ;;  %v2216_v54 = vmul.f32 %v3595_v50, %v3593_v47 }
 0xc41   :  { %v2217_v34 = vsel %vm456_vm4, %v2213_v33, 0.0  ;;  %v2218_v31 = vsel %vm456_vm4, %v2214_v53, 0.0  ;;  %v2220_v62 = vsel %vm456_vm4, %v2215_v28, 0.0  ;;  %v2222_v57 = vsel %vm456_vm4, %v2216_v54, 0.0 }
 0xc42   :  { %v2219_v61 = vadd.f32 %v2218_v31, %v2217_v34 }
 0xc44   :  { %v2221_v2 = vadd.f32 %v2220_v62, %v2219_v61 }
 0xc45   :  { %v4363_v52 = vpop.eup %3596 }
 0xc46   :  { %v4366_v6 = vpop.eup %3598  ;;  %v2709_v5 = vsel %vm456_vm4, %v4363_v52, 0.0  ;;  %v2223_v56 = vadd.f32 %v2222_v57, %v2221_v2 }
 0xc47   :  { %v4370_v7 = vpop.eup %3600  ;;  %v2710_v8 = vsel %vm456_vm4, %v4366_v6, 0.0 }
 0xc48   :  { %v4374_v60 = vpop.eup %3602  ;;  %v2711_v0 = vadd.f32 %v2710_v8, %v2709_v5  ;;  %v2224_v43 = vrot.slane %v2223_v56, 4  ;;  %v2712_v47 = vsel %vm456_vm4, %v4370_v7, 0.0 }
 0xc49   :  { %v2714_v63 = vsel %vm456_vm4, %v4374_v60, 0.0 }
 0xc4a   :  { %v2713_v55 = vadd.f32 %v2712_v47, %v2711_v0  ;;  %v2225_v12 = vadd.f32 %v2224_v43, %v2223_v56 }
 0xc4c   :  { %v2715_v14 = vadd.f32 %v2714_v63, %v2713_v55  ;;  %v2226_v15 = vrot.slane %v2225_v12, 2 }
 0xc4e   :  { %2716 = vadd.xlane.f32.xlu1 %v2715_v14  ;;  %v2227_v20 = vadd.f32 %v2226_v15, %v2225_v12 }
 0xc50   :  { %v2228_v22 = vrot.slane %v2227_v20, 1 }
 0xc52   :  { %v2229_v16 = vadd.f32 %v2228_v22, %v2227_v20 }
 0xc54   :  { %3604 = vrcp.f32 %v2229_v16 }
 0xc61   :  { %v3605_v18 = vpop.eup %3604 }
 0xc62   :  { %v2232_v1 = vmul.f32 %v3605_v18, %v2214_v53  ;;  %v2231_v39 = vmul.f32 %v3605_v18, %v2213_v33  ;;  %v2234_v19 = vmul.f32 %v3605_v18, %v2216_v54  ;;  %v2233_v21 = vmul.f32 %v3605_v18, %v2215_v28 }
 0xc64   :  { %v2242_v30 = vmul.f32 %v4383_v23, %v2232_v1  ;;  %v2241_v24 = vmul.f32 %v4383_v23, %v2231_v39  ;;  %v2244_v46 = vmul.f32 %v4383_v23, %v2234_v19  ;;  %v2243_v10 = vmul.f32 %v4383_v23, %v2233_v21 }
 0xc66   :  { %v2248_v17 = vsel %vm456_vm4, %v2242_v30, 0.0  ;;  %v2245_v25 = vsel %vm456_vm4, %v2241_v24, 0.0  ;;  %v2254_v3 = vsel %vm456_vm4, %v2244_v46, 0.0  ;;  %v2251_v27 = vsel %vm456_vm4, %v2243_v10, 0.0 }
 0xc67   :  { %2249 = vadd.xlane.f32.xlu1 %v2248_v17  ;;  %2246 = vadd.xlane.f32.xlu0 %v2245_v25 }
 0xc6b   :  { %2255 = vadd.xlane.f32.xlu1 %v2254_v3  ;;  %2252 = vadd.xlane.f32.xlu0 %v2251_v27  ;;  %v4408_v27 = vld [vmem:[%s4713_s4 + $0x1] ss:$0 sm:$0xff] }
 0xcd7   :  { %v2717_v29 = vpop.xlane.xlu1 %2716 }
 0xcd8   :  { %v2718_v35 = vrot.slane %v2717_v29, 4 }
 0xcda   :  { %v2719_v38 = vadd.f32 %v2718_v35, %v2717_v29 }
 0xcdc   :  { %v2720_v40 = vrot.slane %v2719_v38, 2 }
 0xcde   :  { %v2721_v42 = vadd.f32 %v2720_v40, %v2719_v38 }
 0xce0   :  { %v2722_v26 = vrot.slane %v2721_v42, 1 }
 0xce2   :  { %v2723_v44 = vadd.f32 %v2722_v26, %v2721_v42 }
 0xce4   :  { %3464 = vpush %v2723_v44 }
 0xcf0   :  { %v2247_v13 = vpop.xlane.xlu0 %2246  ;;  %v2250_v32 = vpop.xlane.xlu1 %2249 }
 0xcf1   :  { %3606 = vrcp.f32 %v2250_v32 }
 0xcf2   :  { %3608 = vrcp.f32 %v2247_v13 }
 0xcf4   :  { %v2253_v48 = vpop.xlane.xlu0 %2252  ;;  %v2256_v41 = vpop.xlane.xlu1 %2255 }
 0xcf5   :  { %3610 = vrcp.f32 %v2253_v48 }
 0xcf6   :  { %3612 = vrcp.f32 %v2256_v41 }
 0xcfe   :  { %v3607_v50 = vpop.eup %3606 }
 0xcff   :  { %v3609_v33 = vpop.eup %3608  ;;  %v2260_v54 = vmul.f32 %v3607_v50, %v2242_v30 }
 0xd00   :  { %v2258_v28 = vmul.f32 %v3609_v33, %v2241_v24 }
 0xd01   :  { %v2266_v62 = vsel %vm456_vm4, %v2260_v54, 0.0 }
 0xd02   :  { %v3611_v53 = vpop.eup %3610  ;;  %v2265_v61 = vsel %vm456_vm4, %v2258_v28, 0.0 }
 0xd03   :  { %v2262_v34 = vmul.f32 %v3611_v53, %v2243_v10  ;;  %v3613_v2 = vpop.eup %3612  ;;  %v2267_v5 = vadd.f32 %v2266_v62, %v2265_v61 }
 0xd04   :  { %v2264_v56 = vmul.f32 %v3613_v2, %v2244_v46 }
 0xd05   :  { %v2268_v57 = vsel %vm456_vm4, %v2262_v34, 0.0 }
 0xd06   :  { %v2269_v8 = vadd.f32 %v2268_v57, %v2267_v5  ;;  %v2270_v0 = vsel %vm456_vm4, %v2264_v56, 0.0 }
 0xd08   :  { %v2271_v43 = vadd.f32 %v2270_v0, %v2269_v8 }
 0xd0a   :  { %v2272_v47 = vrot.slane %v2271_v43, 4 }
 0xd0c   :  { %v2273_v16 = vadd.f32 %v2272_v47, %v2271_v43 }
 0xd0e   :  { %v2274_v21 = vrot.slane %v2273_v16, 2 }
 0xd10   :  { %v2275_v24 = vadd.f32 %v2274_v21, %v2273_v16 }
 0xd15   :  { %s3465_s22 = spop %3464 }
 0xd16   :  { %v2725_v31 = vstv %s3465_s22 }
 0xd17   :  { %3614 = vrcp.f32 %v2725_v31 }
 0xd24   :  { %v3615_v55 = vpop.eup %3614 }
 0xd25   :  { %v2727_v12 = vmul.f32 %v3615_v55, %v4363_v52  ;;  %v2728_v63 = vmul.f32 %v3615_v55, %v4366_v6  ;;  %v2729_v14 = vmul.f32 %v3615_v55, %v4370_v7  ;;  %v2730_v15 = vmul.f32 %v3615_v55, %v4374_v60 }
 0xd26   :  { %v2276_v7 = vrot.slane %v2275_v24, 1 }
 0xd27   :  { %v2731_v20 = vsel %vm456_vm4, %v2727_v12, 0.0  ;;  %v2732_v22 = vsel %vm456_vm4, %v2728_v63, 0.0  ;;  %v2734_v1 = vsel %vm456_vm4, %v2729_v14, 0.0  ;;  %v2736_v19 = vsel %vm456_vm4, %v2730_v15, 0.0 }
 0xd28   :  { %v2733_v18 = vadd.f32 %v2732_v22, %v2731_v20  ;;  %v2277_v46 = vadd.f32 %v2276_v7, %v2275_v24 }
 0xd2a   :  { %v2735_v39 = vadd.f32 %v2734_v1, %v2733_v18 }
 0xd2c   :  { %v2737_v30 = vadd.f32 %v2736_v19, %v2735_v39 }
 0xd2e   :  { %v2738_v52 = vrot.slane %v2737_v30, 4 }
 0xd30   :  { %v2739_v6 = vadd.f32 %v2738_v52, %v2737_v30 }
 0xd32   :  { %v2740_v17 = vrot.slane %v2739_v6, 2 }
 0xd34   :  { %v2741_v25 = vadd.f32 %v2740_v17, %v2739_v6 }
 0xd36   :  { %v2742_v60 = vrot.slane %v2741_v25, 1 }
 0xd38   :  { %v2743_v10 = vadd.f32 %v2742_v60, %v2741_v25 }
 0xd3a   :  { %3616 = vrcp.f32 %v2743_v10 }
 0xd3b   :  { %3618 = vrcp.f32 %v2277_v46 }
 0xd47   :  { %v3617_v3 = vpop.eup %3616 }
 0xd48   :  { %v3619_v29 = vpop.eup %3618  ;;  %v2746_v35 = vmul.f32 %v3617_v3, %v2728_v63  ;;  %v2745_v38 = vmul.f32 %v3617_v3, %v2727_v12  ;;  %v2748_v40 = vmul.f32 %v3617_v3, %v2730_v15  ;;  %v2747_v42 = vmul.f32 %v3617_v3, %v2729_v14 }
 0xd49   :  { %v2280_v13 = vmul.f32 %v3619_v29, %v2260_v54  ;;  %v2279_v32 = vmul.f32 %v3619_v29, %v2258_v28  ;;  %v2282_v53 = vmul.f32 %v3619_v29, %v2264_v56  ;;  %v2281_v31 = vmul.f32 %v3619_v29, %v2262_v34 }
 0xd4a   :  { %v2756_v26 = vmul.f32 %v4408_v27, %v2746_v35  ;;  %v2755_v44 = vmul.f32 %v4408_v27, %v2745_v38  ;;  %v2758_v50 = vmul.f32 %v4408_v27, %v2748_v40  ;;  %v2757_v33 = vmul.f32 %v4408_v27, %v2747_v42 }
 0xd4b   :  { %v2284_v2 = vmul.f32 %v4383_v23, %v2280_v13  ;;  %v2283_v28 = vmul.f32 %v4383_v23, %v2279_v32  ;;  %v2286_v5 = vmul.f32 %v4383_v23, %v2282_v53  ;;  %v2285_v8 = vmul.f32 %v4383_v23, %v2281_v31 }
 0xd4c   :  { %v2762_v48 = vsel %vm456_vm4, %v2756_v26, 0.0  ;;  %v2759_v41 = vsel %vm456_vm4, %v2755_v44, 0.0  ;;  %v2768_v61 = vsel %vm456_vm4, %v2758_v50, 0.0  ;;  %v2765_v62 = vsel %vm456_vm4, %v2757_v33, 0.0 }
 0xd4d   :  { %2763 = vadd.xlane.f32.xlu1 %v2762_v48  ;;  %2760 = vadd.xlane.f32.xlu0 %v2759_v41  ;;  %v2290_v54 = vsel %vm456_vm4, %v2284_v2, 0.0  ;;  %v2287_v57 = vsel %vm456_vm4, %v2283_v28, 0.0  ;;  %v2296_v34 = vsel %vm456_vm4, %v2286_v5, 0.0  ;;  %v2293_v56 = vsel %vm456_vm4, %v2285_v8, 0.0 }
 0xd51   :  { %2769 = vadd.xlane.f32.xlu1 %v2768_v61  ;;  %2766 = vadd.xlane.f32.xlu0 %v2765_v62 }
 0xd55   :  { %2291 = vadd.xlane.f32.xlu1 %v2290_v54  ;;  %2288 = vadd.xlane.f32.xlu0 %v2287_v57 }
 0xd59   :  { %2297 = vadd.xlane.f32.xlu1 %v2296_v34  ;;  %2294 = vadd.xlane.f32.xlu0 %v2293_v56 }
 0xdd6   :  { %v2764_v0 = vpop.xlane.xlu1 %2763  ;;  %v2761_v43 = vpop.xlane.xlu0 %2760 }
 0xdd7   :  { %3620 = vrcp.f32 %v2764_v0 }
 0xdd8   :  { %3622 = vrcp.f32 %v2761_v43 }
 0xdda   :  { %v2770_v47 = vpop.xlane.xlu1 %2769  ;;  %v2767_v55 = vpop.xlane.xlu0 %2766 }
 0xddb   :  { %3624 = vrcp.f32 %v2770_v47 }
 0xddc   :  { %3626 = vrcp.f32 %v2767_v55 }
 0xdde   :  { %v2292_v12 = vpop.xlane.xlu1 %2291  ;;  %v2289_v63 = vpop.xlane.xlu0 %2288 }
 0xddf   :  { %3628 = vrcp.f32 %v2292_v12 }
 0xde0   :  { %3630 = vrcp.f32 %v2289_v63 }
 0xde2   :  { %v2298_v14 = vpop.xlane.xlu1 %2297  ;;  %v2295_v15 = vpop.xlane.xlu0 %2294 }
 0xde3   :  { %3632 = vrcp.f32 %v2298_v14 }
 0xde4   :  { %v3621_v20 = vpop.eup %3620  ;;  %3634 = vrcp.f32 %v2295_v15 }
 0xde5   :  { %v3623_v22 = vpop.eup %3622  ;;  %v2774_v16 = vmul.f32 %v3621_v20, %v2756_v26 }
 0xde6   :  { %v2772_v18 = vmul.f32 %v3623_v22, %v2755_v44 }
 0xde7   :  { %v2780_v19 = vsel %vm456_vm4, %v2774_v16, 0.0 }
 0xde8   :  { %v3625_v1 = vpop.eup %3624  ;;  %v2779_v39 = vsel %vm456_vm4, %v2772_v18, 0.0 }
 0xde9   :  { %v3627_v21 = vpop.eup %3626  ;;  %v2778_v30 = vmul.f32 %v3625_v1, %v2758_v50  ;;  %v2781_v24 = vadd.f32 %v2780_v19, %v2779_v39 }
 0xdea   :  { %v2776_v52 = vmul.f32 %v3627_v21, %v2757_v33 }
 0xdeb   :  { %v2784_v10 = vsel %vm456_vm4, %v2778_v30, 0.0 }
 0xdec   :  { %v3629_v6 = vpop.eup %3628  ;;  %v2782_v17 = vsel %vm456_vm4, %v2776_v52, 0.0 }
 0xded   :  { %v3631_v7 = vpop.eup %3630  ;;  %v2302_v25 = vmul.f32 %v3629_v6, %v2284_v2  ;;  %v2783_v60 = vadd.f32 %v2782_v17, %v2781_v24 }
 0xdee   :  { %v2300_v46 = vmul.f32 %v3631_v7, %v2283_v28 }
 0xdef   :  { %v2785_v3 = vadd.f32 %v2784_v10, %v2783_v60  ;;  %v2308_v38 = vsel %vm456_vm4, %v2302_v25, 0.0 }
 0xdf0   :  { %v3633_v29 = vpop.eup %3632  ;;  %v2307_v35 = vsel %vm456_vm4, %v2300_v46, 0.0 }
 0xdf1   :  { %v3635_v40 = vpop.eup %3634  ;;  %v2786_v42 = vrot.slane %v2785_v3, 4  ;;  %v2306_v44 = vmul.f32 %v3633_v29, %v2286_v5  ;;  %v2309_v32 = vadd.f32 %v2308_v38, %v2307_v35 }
 0xdf2   :  { %v2304_v26 = vmul.f32 %v3635_v40, %v2285_v8 }
 0xdf3   :  { %v2787_v13 = vadd.f32 %v2786_v42, %v2785_v3  ;;  %v2312_v33 = vsel %vm456_vm4, %v2306_v44, 0.0 }
 0xdf4   :  { %v2310_v48 = vsel %vm456_vm4, %v2304_v26, 0.0 }
 0xdf5   :  { %v2788_v41 = vrot.slane %v2787_v13, 2  ;;  %v2311_v50 = vadd.f32 %v2310_v48, %v2309_v32 }
 0xdf7   :  { %v2789_v53 = vadd.f32 %v2788_v41, %v2787_v13  ;;  %v2313_v31 = vadd.f32 %v2312_v33, %v2311_v50 }
 0xdf9   :  { %v2790_v61 = vrot.slane %v2789_v53, 1  ;;  %v2314_v62 = vrot.slane %v2313_v31, 4 }
 0xdfb   :  { %v2791_v2 = vadd.f32 %v2790_v61, %v2789_v53  ;;  %v2315_v28 = vadd.f32 %v2314_v62, %v2313_v31 }
 0xdfd   :  { %3636 = vrcp.f32 %v2791_v2  ;;  %v2316_v54 = vrot.slane %v2315_v28, 2 }
 0xdff   :  { %v2317_v57 = vadd.f32 %v2316_v54, %v2315_v28 }
 0xe01   :  { %v2318_v34 = vrot.slane %v2317_v57, 1 }
 0xe03   :  { %v2319_v8 = vadd.f32 %v2318_v34, %v2317_v57 }
 0xe05   :  { %3638 = vrcp.f32 %v2319_v8 }
 0xe0a   :  { %v3637_v5 = vpop.eup %3636 }
 0xe0b   :  { %v2794_v56 = vmul.f32 %v3637_v5, %v2774_v16  ;;  %v2793_v0 = vmul.f32 %v3637_v5, %v2772_v18  ;;  %v2796_v43 = vmul.f32 %v3637_v5, %v2778_v30  ;;  %v2795_v47 = vmul.f32 %v3637_v5, %v2776_v52 }
 0xe0d   :  { %v2798_v55 = vmul.f32 %v4408_v27, %v2794_v56  ;;  %v2797_v12 = vmul.f32 %v4408_v27, %v2793_v0  ;;  %v2800_v63 = vmul.f32 %v4408_v27, %v2796_v43  ;;  %v2799_v14 = vmul.f32 %v4408_v27, %v2795_v47 }
 0xe0f   :  { %v2804_v15 = vsel %vm456_vm4, %v2798_v55, 0.0  ;;  %v2801_v20 = vsel %vm456_vm4, %v2797_v12, 0.0  ;;  %v2810_v16 = vsel %vm456_vm4, %v2800_v63, 0.0  ;;  %v2807_v18 = vsel %vm456_vm4, %v2799_v14, 0.0 }
 0xe10   :  { %2805 = vadd.xlane.f32.xlu1 %v2804_v15  ;;  %2802 = vadd.xlane.f32.xlu0 %v2801_v20 }
 0xe12   :  { %v3639_v22 = vpop.eup %3638 }
 0xe13   :  { %v2324_v1 = vmul.f32 %v3639_v22, %v2306_v44  ;;  %v2323_v39 = vmul.f32 %v3639_v22, %v2304_v26  ;;  %v2322_v19 = vmul.f32 %v3639_v22, %v2302_v25  ;;  %v2321_v21 = vmul.f32 %v3639_v22, %v2300_v46 }
 0xe14   :  { %2811 = vadd.xlane.f32.xlu1 %v2810_v16  ;;  %2808 = vadd.xlane.f32.xlu0 %v2807_v18 }
 0xe15   :  { %v2328_v30 = vmul.f32 %v4383_v23, %v2324_v1  ;;  %v2327_v52 = vmul.f32 %v4383_v23, %v2323_v39  ;;  %v2326_v17 = vmul.f32 %v4383_v23, %v2322_v19  ;;  %v2325_v7 = vmul.f32 %v4383_v23, %v2321_v21 }
 0xe17   :  { %v2338_v24 = vsel %vm456_vm4, %v2328_v30, 0.0  ;;  %v2335_v6 = vsel %vm456_vm4, %v2327_v52, 0.0  ;;  %v2332_v60 = vsel %vm456_vm4, %v2326_v17, 0.0  ;;  %v2329_v25 = vsel %vm456_vm4, %v2325_v7, 0.0 }
 0xe18   :  { %2339 = vadd.xlane.f32.xlu0 %v2338_v24  ;;  %2336 = vadd.xlane.f32.xlu1 %v2335_v6 }
 0xe1c   :  { %2333 = vadd.xlane.f32.xlu0 %v2332_v60  ;;  %2330 = vadd.xlane.f32.xlu1 %v2329_v25 }
 0xe99   :  { %v2806_v46 = vpop.xlane.xlu1 %2805  ;;  %v2803_v10 = vpop.xlane.xlu0 %2802 }
 0xe9a   :  { %3640 = vrcp.f32 %v2806_v46 }
 0xe9b   :  { %3642 = vrcp.f32 %v2803_v10 }
 0xe9d   :  { %v2812_v3 = vpop.xlane.xlu1 %2811  ;;  %v2809_v29 = vpop.xlane.xlu0 %2808 }
 0xe9e   :  { %3644 = vrcp.f32 %v2812_v3 }
 0xe9f   :  { %3646 = vrcp.f32 %v2809_v29 }
 0xea1   :  { %v2337_v35 = vpop.xlane.xlu1 %2336  ;;  %v2340_v38 = vpop.xlane.xlu0 %2339 }
 0xea2   :  { %3648 = vrcp.f32 %v2337_v35 }
 0xea3   :  { %3650 = vrcp.f32 %v2340_v38 }
 0xea5   :  { %v2331_v23 = vpop.xlane.xlu1 %2330  ;;  %v2334_v40 = vpop.xlane.xlu0 %2333 }
 0xea6   :  { %3652 = vrcp.f32 %v2331_v23 }
 0xea7   :  { %v3641_v42 = vpop.eup %3640  ;;  %3654 = vrcp.f32 %v2334_v40 }
 0xea8   :  { %v3643_v26 = vpop.eup %3642  ;;  %v2816_v44 = vmul.f32 %v3641_v42, %v2798_v55 }
 0xea9   :  { %v2814_v13 = vmul.f32 %v3643_v26, %v2797_v12  ;;  %v2045_v12 = vld [vmem:[%s4714_s5] sm:$0xf] }
 0xeaa   :  { %v2822_v41 = vsel %vm456_vm4, %v2816_v44, 0.0 }
 0xeab   :  { %v3645_v32 = vpop.eup %3644  ;;  %v2821_v48 = vsel %vm456_vm4, %v2814_v13, 0.0 }
 0xeac   :  { %v3647_v50 = vpop.eup %3646  ;;  %v2820_v53 = vmul.f32 %v3645_v32, %v2800_v63  ;;  %v2823_v31 = vadd.f32 %v2822_v41, %v2821_v48 }
 0xead   :  { %v2818_v33 = vmul.f32 %v3647_v50, %v2799_v14 }
 0xeae   :  { %v2826_v57 = vsel %vm456_vm4, %v2820_v53, 0.0 }
 0xeaf   :  { %v3649_v61 = vpop.eup %3648  ;;  %v2824_v62 = vsel %vm456_vm4, %v2818_v33, 0.0 }
 0xeb0   :  { %v3651_v2 = vpop.eup %3650  ;;  %v2825_v28 = vadd.f32 %v2824_v62, %v2823_v31  ;;  %v2346_v5 = vmul.f32 %v3649_v61, %v2327_v52  ;;  %v3723_v61 = vld [vmem:[%s4714_s5 + $0x4] sm:$0xf] }
 0xeb1   :  { %v2348_v54 = vmul.f32 %v3651_v2, %v2328_v30  ;;  %vm1272_vm7 = vcmp.gt.f32.partialorder %v3723_v61, 0.5 }
 0xeb2   :  { %v2827_v34 = vadd.f32 %v2826_v57, %v2825_v28  ;;  %v3724_v28 = vld [vmem:[%s4714_s5] sm:$0xf] }
 0xeb3   :  { %v3653_v8 = vpop.eup %3652  ;;  %3411 = vmatpush3.msra.mxu1 %v2348_v54  ;;  %vm262_vm8 = vcmp.gt.f32.partialorder %v3724_v28, 0.5 }
 0xeb4   :  { %v3655_v56 = vpop.eup %3654  ;;  %3412 = vmatprep.subr.mxu1 %v3773_v9  ;;  %v2828_v0 = vrot.slane %v2827_v34, 4  ;;  %v2342_v55 = vmul.f32 %v3653_v8, %v2325_v7  ;;  %v1265_v7 = vmul.f32 %v4062_v49, %v4062_v49 }
 0xeb5   :  { %3413 = vmatpush3.msra.mxu1 %v2346_v5  ;;  %v2344_v43 = vmul.f32 %v3655_v56, %v2326_v17  ;;  %v254_v17 = vmul.f32 %v3974_v45, %v3974_v45 }
 0xeb6   :  { %3414 = vmatprep.subr.mxu1 %v3773_v9  ;;  %v2829_v47 = vadd.f32 %v2828_v0, %v2827_v34  ;;  %v1266_v10 = vsel %vm255_vm6, %v1265_v7, 0.0  ;;  %v743_v0 = vsel %vm742_vm9, %v4220_v58, -inf }
 0xeb7   :  { %3415 = vmatpush3.msra.mxu1 %v2344_v43  ;;  %v256_v46 = vsel %vm255_vm6, %v254_v17, 0.0  ;;  %v3172_v43 = vld [vmem:[%s4709_s0 + $0x4] sm:$0xf] }
 0xeb8   :  { %3416 = vmatprep.subr.mxu1 %v3773_v9  ;;  %v2830_v63 = vrot.slane %v2829_v47, 2  ;;  %3448 = vmatmul.mubr.msk.f32.vlgmr.msra.gmra.mxu0 %vm169_vm3, %v3172_v43 }
 0xeb9   :  { %3417 = vmatpush3.msra.mxu1 %v2342_v55 }
 0xeba   :  { %3419 = vmatmul.mubr.msk.f32.vlgmr.msra.gmra.mxu1 %vm668_vm5, %v2045_v12  ;;  %v2831_v14 = vadd.f32 %v2830_v63, %v2829_v47  ;;  %3434 = vmatprep.subr.mxu1 %v3773_v9  ;;  %v264_v47 = vlaneseq }
 0xebb   :  { %3442 = vmatprep.mubr.msk.f32.mxu1 %vm3774_vm2, %v3773_v9 }
 0xebc   :  { %v2832_v15 = vrot.slane %v2831_v14, 1  ;;  %v4504_v55 = vand.u32 127, %v264_v47 }
 0xebe   :  { %v2833_v20 = vadd.f32 %v2832_v15, %v2831_v14 }
 0xec0   :  { %3656 = vrcp.f32 %v2833_v20 }
 0xecd   :  { %v3657_v22 = vpop.eup %3656 }
 0xece   :  { %v2838_v16 = vmul.f32 %v3657_v22, %v2820_v53  ;;  %v2837_v18 = vmul.f32 %v3657_v22, %v2818_v33  ;;  %v2836_v1 = vmul.f32 %v3657_v22, %v2816_v44  ;;  %v2835_v39 = vmul.f32 %v3657_v22, %v2814_v13  ;;  %v3174_v53 = vld [vmem:[%s4714_s5 + $0x4] sm:$0xf] }
 0xed0   :  { %v2842_v19 = vmul.f32 %v4408_v27, %v2838_v16  ;;  %v2841_v21 = vmul.f32 %v4408_v27, %v2837_v18  ;;  %v2840_v24 = vmul.f32 %v4408_v27, %v2836_v1  ;;  %v2839_v6 = vmul.f32 %v4408_v27, %v2835_v39 }
 0xed2   :  { %v2852_v30 = vsel %vm456_vm4, %v2842_v19, 0.0  ;;  %v2849_v52 = vsel %vm456_vm4, %v2841_v21, 0.0  ;;  %v2846_v60 = vsel %vm456_vm4, %v2840_v24, 0.0  ;;  %v2843_v25 = vsel %vm456_vm4, %v2839_v6, 0.0 }
 0xed3   :  { %2853 = vadd.xlane.f32.xlu0 %v2852_v30  ;;  %2850 = vadd.xlane.f32.xlu1 %v2849_v52 }
 0xed7   :  { %2847 = vadd.xlane.f32.xlu0 %v2846_v60  ;;  %2844 = vadd.xlane.f32.xlu1 %v2843_v25 }
 0xedb   :  { %257 = vadd.xlane.f32.xlu0 %v256_v46  ;;  %1267 = vadd.xlane.f32.xlu1 %v1266_v10 }
 0xf5c   :  { %v2851_v27 = vpop.xlane.xlu1 %2850  ;;  %v2854_v3 = vpop.xlane.xlu0 %2853 }
 0xf5d   :  { %3658 = vrcp.f32 %v2851_v27 }
 0xf5e   :  { %3660 = vrcp.f32 %v2854_v3 }
 0xf60   :  { %v2845_v29 = vpop.xlane.xlu1 %2844  ;;  %v2848_v35 = vpop.xlane.xlu0 %2847 }
 0xf61   :  { %3662 = vrcp.f32 %v2845_v29 }
 0xf62   :  { %3664 = vrcp.f32 %v2848_v35 }
 0xf64   :  { %v1268_v38 = vpop.xlane.xlu1 %1267  ;;  %v258_v23 = vpop.xlane.xlu0 %257 }
 0xf65   :  { %v1269_v40 = vmax.f32 %v1268_v38, 1e-24  ;;  %v259_v42 = vmax.f32 %v258_v23, 1e-24 }
 0xf67   :  { %3666 = vrsqrt.f32 %v1269_v40 }
 0xf68   :  { %3668 = vrsqrt.f32 %v259_v42 }
 0xf6a   :  { %v3659_v26 = vpop.eup %3658 }
 0xf6b   :  { %v3661_v44 = vpop.eup %3660  ;;  %v2860_v48 = vmul.f32 %v3659_v26, %v2841_v21 }
 0xf6c   :  { %v2862_v13 = vmul.f32 %v3661_v44, %v2842_v19 }
 0xf6e   :  { %v3663_v32 = vpop.eup %3662  ;;  %3435 = vmatpush3.msra.mxu1 %v2862_v13 }
 0xf6f   :  { %v3665_v41 = vpop.eup %3664  ;;  %3436 = vmatprep.subr.mxu1 %v3773_v9  ;;  %v2856_v33 = vmul.f32 %v3663_v32, %v2839_v6 }
 0xf70   :  { %3437 = vmatpush3.msra.mxu1 %v2860_v48  ;;  %v2858_v50 = vmul.f32 %v3665_v41, %v2840_v24 }
 0xf71   :  { %3438 = vmatprep.subr.mxu1 %v3773_v9 }
 0xf72   :  { %3439 = vmatpush3.msra.mxu1 %v2858_v50 }
 0xf73   :  { %3440 = vmatprep.subr.mxu1 %v3773_v9 }
 0xf74   :  { %v3667_v31 = vpop.eup %3666  ;;  %3441 = vmatpush3.msra.mxu1 %v2856_v33 }
 0xf75   :  { %v3669_v62 = vpop.eup %3668  ;;  %3443 = vmatmul.mubr.msk.f32.vlgmr.msra.gmra.mxu1 %vm668_vm5, %v3174_v53  ;;  %v1271_v2 = vmul.f32 %v3667_v31, %v4062_v49  ;;  %v1748_v49 = vsel %vm742_vm9, %v4267_v4, -inf }
 0xf76   :  { %v261_v54 = vmul.f32 %v3669_v62, %v3974_v45 }
 0xf77   :  { %v1273_v9 = vsel %vm1272_vm7, -1000.0, %v1271_v2 }
 0xf78   :  { %v1274_v57 = vsel %vm255_vm6, %v1273_v9, -inf  ;;  %v263_v34 = vsel %vm262_vm8, -1000.0, %v261_v54  ;;  %v4522_v42 = vpop.f32.mrf.mxu0 }
 0xf79   :  { %1275 = vmax.xlane.f32.xlu1 %v1274_v57  ;;  %v266_v8 = vsel %vm255_vm6, %v263_v34, -inf  ;;  %v3034_v57 = vmul.f32 %v4522_v42, %v4522_v42 }
 0xf7a   :  { %267 = vmax.xlane.f32.xlu0 %v266_v8  ;;  %v2418_v5 = vpop.f32.mrf.mxu1 }
 0xf7b   :  { %v2422_v45 = vsel %vm742_vm9, %v2418_v5, -inf }
 0xf7c   :  { %v3420_v56 = vpop.f32.mrf.mxu1 }
 0xf7d   :  { %1749 = vmax.xlane.f32.xlu1 %v1748_v49  ;;  %v3035_v49 = vsel %vm742_vm9, %v3034_v57, 0.0 }
 0xf7e   :  { %744 = vmax.xlane.f32.xlu0 %v743_v0 }
 0xf82   :  { %2423 = vmax.xlane.f32.xlu0 %v2422_v45 }
0x1002   :  { %v1276_v17 = vpop.xlane.xlu1 %1275 }
0x1003   :  { %v268_v12 = vpop.xlane.xlu0 %267  ;;  %vm1277_vm13 = vcmp.eq.f32.partialorder %v1273_v9, %v1276_v17 }
0x1004   :  { %vm269_vm10 = vcmp.eq.f32.partialorder %v263_v34, %v268_v12  ;;  %v1278_v60 = vsel %vm1277_vm13, %v4504_v55, 32 }
0x1005   :  { %v270_v63 = vsel %vm269_vm10, %v4504_v55, 32  ;;  %v1279_v25 = vsel %vm255_vm6, %v1278_v60, 2147483647  ;;  %vm839_vm10 = vcmask 125952  }
0x1006   :  { %v271_v14 = vsel %vm255_vm6, %v270_v63, 2147483647  ;;  %v1750_v7 = vpop.xlane.xlu1 %1749  ;;  %v1281_v27 = vshra.s32 %v1279_v25, 16 }
0x1007   :  { %v745_v15 = vpop.xlane.xlu0 %744  ;;  %v273_v20 = vshra.s32 %v271_v14, 16  ;;  %vm1751_vm14 = vcmp.eq.f32.partialorder %v4267_v4, %v1750_v7  ;;  %v3449_v4 = vpop.f32.mrf.mxu0  ;;  %v272_v26 = vand.u32 65535, %v271_v14  ;;  %v843_v7 = vmul.f32 5.0, %v3995_v59 }
0x1008   :  { %vm746_vm11 = vcmp.eq.f32.partialorder %v4220_v58, %v745_v15  ;;  %v2520_v58 = vmul.f32 %v4302_v37, %v4302_v37  ;;  %v1752_v46 = vsel %vm1751_vm14, %v4504_v55, 8  ;;  %v1283_v38 = vcvt.s32.f32 %v1281_v27  ;;  %v3725_v27 = vld [vmem:[%s4710_s1 + $0x4] sm:$0xf] }
0x1009   :  { %v747_v22 = vsel %vm746_vm11, %v4504_v55, 8  ;;  %v275_v16 = vcvt.s32.f32 %v273_v20  ;;  %v1753_v3 = vsel %vm742_vm9, %v1752_v46, 2147483647  ;;  %v274_v32 = vcvt.s32.f32 %v272_v26 }
0x100a   :  { %v748_v18 = vsel %vm742_vm9, %v747_v22, 2147483647  ;;  %v2521_v6 = vsel %vm742_vm9, %v2520_v58, 0.0  ;;  %v1755_v23 = vshra.s32 %v1753_v3, 16  ;;  %v1754_v56 = vand.u32 65535, %v1753_v3 }
0x100b   :  { %276 = vmin.xlane.f32.xlu0 %v275_v16  ;;  %v2424_v1 = vpop.xlane.xlu0 %2423  ;;  %v750_v39 = vshra.s32 %v748_v18, 16  ;;  %v749_v44 = vand.u32 65535, %v748_v18  ;;  %v3726_v3 = vld [vmem:[%s4709_s0 + $0x4] sm:$0xf] }
0x100c   :  { %vm2425_vm12 = vcmp.eq.f32.partialorder %v2418_v5, %v2424_v1  ;;  %v1757_v40 = vcvt.s32.f32 %v1755_v23  ;;  %v1280_v5 = vand.u32 65535, %v1279_v25  ;;  %v1756_v47 = vcvt.s32.f32 %v1754_v56 }
0x100d   :  { %v2426_v19 = vsel %vm2425_vm12, %v4504_v55, 8  ;;  %v752_v21 = vcvt.s32.f32 %v750_v39  ;;  %v751_v33 = vcvt.s32.f32 %v749_v44 }
0x100e   :  { %v2427_v30 = vsel %vm742_vm9, %v2426_v19, 2147483647  ;;  %v1282_v45 = vcvt.s32.f32 %v1280_v5 }
0x100f   :  { %753 = vmin.xlane.f32.xlu0 %v752_v21  ;;  %v2429_v52 = vshra.s32 %v2427_v30, 16  ;;  %v2428_v41 = vand.u32 65535, %v2427_v30 }
0x1011   :  { %v2431_v24 = vcvt.s32.f32 %v2429_v52  ;;  %v2430_v61 = vcvt.s32.f32 %v2428_v41 }
0x1013   :  { %2432 = vmin.xlane.f32.xlu0 %v2431_v24 }
0x1017   :  { %2522 = vadd.xlane.f32.xlu0 %v2521_v6 }
0x1035   :  { %v2932_v10 = vpop.f32.mrf.mxu1 }
0x1036   :  { %v2936_v29 = vsel %vm742_vm9, %v2932_v10, -inf }
0x1037   :  { %2937 = vmax.xlane.f32.xlu1 %v2936_v29  ;;  %v3444_v35 = vpop.f32.mrf.mxu1  ;;  %v1843_v29 = vmul.f32 %v3726_v3, %v3725_v27 }
0x103b   :  { %1284 = vmin.xlane.f32.xlu1 %v1283_v38 }
0x103f   :  { %1758 = vmin.xlane.f32.xlu1 %v1757_v40 }
0x1094   :  { %v277_v13 = vpop.xlane.xlu0 %276 }
0x1095   :  { %vm278_vm15 = vcmp.eq.f32.partialorder %v275_v16, %v277_v13  ;;  %v283_v14 = vcvt.f32.s32 %v277_v13 }
0x1096   :  { %v279_v48 = vsel %vm278_vm15, %v274_v32, inf }
0x1097   :  { %280 = vmin.xlane.f32.xlu0 %v279_v48  ;;  %v284_v22 = vshll.u32 %v283_v14, 16 }
0x1098   :  { %v754_v50 = vpop.xlane.xlu0 %753 }
0x1099   :  { %vm755_vm1 = vcmp.eq.f32.partialorder %v752_v21, %v754_v50  ;;  %v760_v16 = vcvt.f32.s32 %v754_v50 }
0x109a   :  { %v756_v53 = vsel %vm755_vm1, %v751_v33, inf }
0x109b   :  { %757 = vmin.xlane.f32.xlu0 %v756_v53  ;;  %v761_v19 = vshll.u32 %v760_v16, 16 }
0x109c   :  { %v2433_v31 = vpop.xlane.xlu0 %2432 }
0x109d   :  { %vm2434_vm2 = vcmp.eq.f32.partialorder %v2431_v24, %v2433_v31  ;;  %v2439_v52 = vcvt.f32.s32 %v2433_v31 }
0x109e   :  { %v2435_v62 = vsel %vm2434_vm2, %v2430_v61, inf }
0x109f   :  { %2436 = vmin.xlane.f32.xlu0 %v2435_v62  ;;  %v2440_v25 = vshll.u32 %v2439_v52, 16 }
0x10a0   :  { %v2523_v63 = vpop.xlane.xlu0 %2522 }
0x10a1   :  { %v2524_v15 = vmax.f32 %v2523_v63, 1e-24 }
0x10a3   :  { %3670 = vrsqrt.f32 %v2524_v15 }
0x10b0   :  { %v3671_v35 = vpop.eup %3670 }
0x10b1   :  { %v2526_v23 = vmul.f32 %v3671_v35, %v4302_v37 }
0x10b3   :  { %v2527_v4 = vmul.f32 5.0, %v2526_v23 }
0x10c0   :  { %v2938_v2 = vpop.xlane.xlu1 %2937 }
0x10c1   :  { %vm2939_vm3 = vcmp.eq.f32.partialorder %v2932_v10, %v2938_v2 }
0x10c2   :  { %v2940_v28 = vsel %vm2939_vm3, %v4504_v55, 8 }
0x10c3   :  { %v4526_v54 = vsel %vm742_vm9, %v2940_v28, 2147483647 }
0x10c4   :  { %v2943_v9 = vshra.s32 %v4526_v54, 16  ;;  %v4533_v8 = vpop.xlane.xlu1 %1284  ;;  %v2942_v32 = vand.u32 65535, %v4526_v54  ;;  %v3727_v54 = vld [vmem:[%s4710_s1] sm:$0xf] }
0x10c5   :  { %vm1286_vm4 = vcmp.eq.f32.partialorder %v1283_v38, %v4533_v8  ;;  %v1844_v38 = vsel %vm839_vm10, %v1843_v29, 0.0 }
0x10c6   :  { %v4531_v34 = vcvt.s32.f32 %v2943_v9  ;;  %v1287_v43 = vsel %vm1286_vm4, %v1282_v45, inf  ;;  %v2944_v41 = vcvt.s32.f32 %v2942_v32 }
0x10c8   :  { %2946 = vmin.xlane.f32.xlu1 %v4531_v34  ;;  %v4538_v0 = vpop.xlane.xlu1 %1758 }
0x10c9   :  { %vm1760_vm5 = vcmp.eq.f32.partialorder %v1757_v40, %v4538_v0  ;;  %v1765_v61 = vcvt.f32.s32 %v4538_v0 }
0x10ca   :  { %v1761_v12 = vsel %vm1760_vm5, %v1756_v47, inf }
0x10cb   :  { %v1766_v9 = vshll.u32 %v1765_v61, 16 }
0x10cc   :  { %3036 = vadd.xlane.f32.xlu1 %v3035_v49 }
0x10d0   :  { %1288 = vmin.xlane.f32.xlu1 %v1287_v43  ;;  %v1847_v43 = vmul.f32 5.0, %v4270_v11 }
0x10d4   :  { %1762 = vmin.xlane.f32.xlu1 %v1761_v12 }
0x1120   :  { %v281_v20 = vpop.xlane.xlu0 %280 }
0x1121   :  { %v282_v18 = vcvt.f32.s32 %v281_v20 }
0x1123   :  { %v285_v1 = vadd.s32 %v284_v22, %v282_v18 }
0x1124   :  { %v758_v39 = vpop.xlane.xlu0 %757 }
0x1125   :  { %v759_v21 = vcvt.f32.s32 %v758_v39  ;;  %vm286_vm7 = vcmp.eq.s32.totalorder %v4504_v55, %v285_v1 }
0x1126   :  { %v360_v30 = vsel %vm286_vm7, %v4218_v36, 0.0 }
0x1127   :  { %v762_v24 = vadd.s32 %v761_v19, %v759_v21  ;;  %v361_v58 = vsel %vm255_vm6, %v360_v30, 0.0 }
0x1128   :  { %362 = vadd.xlane.f32.xlu0 %v361_v58  ;;  %v2437_v6 = vpop.xlane.xlu0 %2436 }
0x1129   :  { %v2438_v17 = vcvt.f32.s32 %v2437_v6  ;;  %vm763_vm8 = vcmp.eq.s32.totalorder %v4504_v55, %v762_v24 }
0x112a   :  { %v834_v60 = vsel %vm763_vm8, %v3995_v59, 0.0  ;;  %v4548_v10 = vsel %vm763_vm8, -1e+30, %v843_v7 }
0x112b   :  { %v835_v46 = vsel %vm742_vm9, %v834_v60, 0.0  ;;  %v2441_v36 = vadd.s32 %v2440_v25, %v2438_v17  ;;  %v846_v59 = vsel %vm742_vm9, %v4548_v10, -inf }
0x112c   :  { %836 = vadd.xlane.f32.xlu0 %v835_v46 }
0x112d   :  { %vm2442_vm11 = vcmp.eq.s32.totalorder %v4504_v55, %v2441_v36 }
0x112e   :  { %v2516_v40 = vsel %vm2442_vm11, %v4302_v37, 0.0  ;;  %v4563_v44 = vsel %vm2442_vm11, -1e+30, %v2527_v4  ;;  %v1291_v37 = vcvt.f32.s32 %v4533_v8 }
0x112f   :  { %v2517_v26 = vsel %vm742_vm9, %v2516_v40, 0.0  ;;  %v2530_v13 = vsel %vm742_vm9, %v4563_v44, -inf }
0x1130   :  { %847 = vmax.xlane.f32.xlu0 %v846_v59  ;;  %v1292_v31 = vshll.u32 %v1291_v37, 16 }
0x1134   :  { %1845 = vadd.xlane.f32.xlu0 %v1844_v38 }
0x1138   :  { %2518 = vadd.xlane.f32.xlu0 %v2517_v26 }
0x113c   :  { %2531 = vmax.xlane.f32.xlu0 %v2530_v13 }
0x1151   :  { %v2947_v48 = vpop.xlane.xlu1 %2946 }
0x1152   :  { %vm2948_vm12 = vcmp.eq.f32.partialorder %v4531_v34, %v2947_v48  ;;  %v3728_v34 = vld [vmem:[%s4709_s0] sm:$0xf]  ;;  %v2953_v21 = vcvt.f32.s32 %v2947_v48  ;;  %s3775_s0 = smov [#allocation2]  }
0x1153   :  { %v2949_v50 = vsel %vm2948_vm12, %v2944_v41, inf  ;;  %v838_v8 = vmul.f32 %v3728_v34, %v3727_v54  ;;  %s3078_s1 = sshll.u32 %s3775_s0, 4  ;;  %s3079_s1 = int_to_ptr.vmem [resolvable:$true] %s3078_s1 }
0x1154   :  { %2950 = vmin.xlane.f32.xlu1 %v2949_v50  ;;  %v2954_v24 = vshll.u32 %v2953_v21, 16  ;;  %s3729_s16 = scalar_lea.vmem %s3079_s1, 16  ;;  %s3733_s17 = scalar_lea.vmem %s3079_s1, 32 }
0x1155   :  { %v3037_v33 = vpop.xlane.xlu1 %3036  ;;  %v840_v0 = vsel %vm839_vm10, %v838_v8, 0.0  ;;  %p3730_p0 = scmp.ne.s32.totalorder %s3079_s1, %s3729_s16  ;;  %p3734_p1 = scmp.lt.s32.totalorder %s3079_s1, %s3079_s1 }
0x1156   :  { %v3038_v18 = vmax.f32 %v3037_v33, 1e-24  ;;  %p3735_p2 = scmp.lt.s32.totalorder %s3733_s17, %s3729_s16 }
0x1158   :  { %p3736_p3 = por %p3735_p2, %p3734_p1 }
0x1159   :  { %v1289_v53 = vpop.xlane.xlu1 %1288 }
0x115a   :  { %v1290_v62 = vcvt.f32.s32 %v1289_v53  ;;  %p3737_p4 = pnand %p3736_p3, %p3730_p0 }
0x115c   :  { %v1293_v2 = vadd.s32 %v1292_v31, %v1290_v62 }
0x115d   :  { %v1763_v28 = vpop.xlane.xlu1 %1762 }
0x115e   :  { %v1764_v57 = vcvt.f32.s32 %v1763_v28  ;;  %vm1294_vm13 = vcmp.eq.s32.totalorder %v4504_v55, %v1293_v2 }
0x115f   :  { %v1368_v5 = vsel %vm1294_vm13, %v4265_v51, 0.0 }
0x1160   :  { %v1767_v49 = vadd.s32 %v1766_v9, %v1764_v57  ;;  %v1369_v56 = vsel %vm255_vm6, %v1368_v5, 0.0 }
0x1161   :  { %1370 = vadd.xlane.f32.xlu1 %v1369_v56 }
0x1162   :  { %vm1768_vm14 = vcmp.eq.s32.totalorder %v4504_v55, %v1767_v49 }
0x1163   :  { %v1839_v45 = vsel %vm1768_vm14, %v4270_v11, 0.0  ;;  %v4585_v12 = vsel %vm1768_vm14, -1e+30, %v1847_v43 }
0x1164   :  { %v1840_v47 = vsel %vm742_vm9, %v1839_v45, 0.0  ;;  %v1850_v51 = vsel %vm742_vm9, %v4585_v12, -inf }
0x1165   :  { %841 = vadd.xlane.f32.xlu1 %v840_v0 }
0x1169   :  { %1841 = vadd.xlane.f32.xlu1 %v1840_v47 }
0x116d   :  { %1851 = vmax.xlane.f32.xlu1 %v1850_v51 }
0x11b1   :  { %v363_v63 = vpop.xlane.xlu0 %362 }
0x11b2   :  { %v4589_v15 = vmul.f32 5.0, %v363_v63 }
0x11b5   :  { %v837_v14 = vpop.xlane.xlu0 %836 }
0x11b6   :  { %v4619_v26 = vmul.f32 5.0, %v837_v14 }
0x11b9   :  { %v848_v20 = vpop.xlane.xlu0 %847 }
0x11ba   :  { %v4592_v22 = vmax.f32 %v4589_v15, %v848_v20  ;;  %v4624_v48 = vmax.f32 %v4619_v26, %v848_v20 }
0x11bc   :  { %v877_v11 = vsub.f32 %v4548_v10, %v4592_v22  ;;  %v903_v62 = vsub.f32 %v4548_v10, %v4624_v48  ;;  %v874_v14 = vsub.f32 %v4589_v15, %v4592_v22 }
0x11bd   :  { %v1846_v25 = vpop.xlane.xlu0 %1845 }
0x11be   :  { %v878_v16 = vmul.f32 1.442695, %v877_v11  ;;  %v4612_v23 = vmul.f32 5.0, %v1846_v25  ;;  %v904_v57 = vmul.f32 1.442695, %v903_v62 }
0x11c0   :  { %3672 = vpow2.f32 %v878_v16  ;;  %v875_v16 = vmul.f32 1.442695, %v874_v14 }
0x11c1   :  { %3674 = vrsqrt.f32 %v3038_v18  ;;  %v2519_v27 = vpop.xlane.xlu0 %2518 }
0x11c2   :  { %v4607_v38 = vmul.f32 5.0, %v2519_v27 }
0x11c5   :  { %v2532_v59 = vpop.xlane.xlu0 %2531 }
0x11c6   :  { %v4615_v40 = vmax.f32 %v4607_v38, %v2532_v59 }
0x11c8   :  { %v2537_v50 = vsub.f32 %v4563_v44, %v4615_v40 }
0x11ca   :  { %v2538_v2 = vmul.f32 1.442695, %v2537_v50 }
0x11cd   :  { %v3673_v1 = vpop.eup %3672 }
0x11ce   :  { %v880_v39 = vsel %vm742_vm9, %v3673_v1, 0.0  ;;  %v3675_v19 = vpop.eup %3674 }
0x11cf   :  { %881 = vadd.xlane.f32.xlu0 %v880_v39  ;;  %v3040_v52 = vmul.f32 %v3675_v19, %v4522_v42 }
0x11d1   :  { %v3041_v17 = vmul.f32 5.0, %v3040_v52 }
0x11dd   :  { %v2951_v30 = vpop.xlane.xlu1 %2950 }
0x11de   :  { %v2952_v58 = vcvt.f32.s32 %v2951_v30 }
0x11e0   :  { %v2955_v6 = vadd.s32 %v2954_v24, %v2952_v58 }
0x11e2   :  { %vm2956_vm6 = vcmp.eq.s32.totalorder %v4504_v55, %v2955_v6 }
0x11e3   :  { %v3030_v7 = vsel %vm2956_vm6, %v4522_v42, 0.0  ;;  %v4600_v60 = vsel %vm2956_vm6, -1e+30, %v3041_v17 }
0x11e4   :  { %v3031_v46 = vsel %vm742_vm9, %v3030_v7, 0.0  ;;  %v3044_v36 = vsel %vm742_vm9, %v4600_v60, -inf }
0x11e5   :  { %3032 = vadd.xlane.f32.xlu1 %v3031_v46 }
0x11e9   :  { %3045 = vmax.xlane.f32.xlu1 %v3044_v36 }
0x11ea   :  { %v1371_v3 = vpop.xlane.xlu1 %1370 }
0x11eb   :  { %v4621_v13 = vmul.f32 5.0, %v1371_v3 }
0x11ee   :  { %v842_v29 = vpop.xlane.xlu1 %841 }
0x11ef   :  { %v4605_v35 = vmul.f32 5.0, %v842_v29 }
0x11f1   :  { %v4610_v55 = vmax.f32 %v4605_v35, %v848_v20 }
0x11f2   :  { %v1842_v42 = vpop.xlane.xlu1 %1841 }
0x11f3   :  { %v853_v4 = vsub.f32 %v4548_v10, %v4610_v55  ;;  %v4634_v53 = vmul.f32 5.0, %v1842_v42  ;;  %v850_v21 = vsub.f32 %v4605_v35, %v4610_v55 }
0x11f5   :  { %v854_v32 = vmul.f32 1.442695, %v853_v4  ;;  %v851_v30 = vmul.f32 1.442695, %v850_v21 }
0x11f6   :  { %v1852_v41 = vpop.xlane.xlu1 %1851 }
0x11f7   :  { %v4629_v33 = vmax.f32 %v4612_v23, %v1852_v41  ;;  %v4632_v37 = vmax.f32 %v4621_v13, %v1852_v41  ;;  %3676 = vpow2.f32 %v854_v32  ;;  %v4643_v44 = vmax.f32 %v4634_v53, %v1852_v41 }
0x11f9   :  { %v1857_v31 = vsub.f32 %v4585_v12, %v4629_v33  ;;  %v1881_v61 = vsub.f32 %v4585_v12, %v4632_v37  ;;  %v1907_v54 = vsub.f32 %v4585_v12, %v4643_v44  ;;  %v1854_v52 = vsub.f32 %v4612_v23, %v4629_v33 }
0x11fa   :  { %v1878_v6 = vsub.f32 %v4621_v13, %v4632_v37  ;;  %v1904_v27 = vsub.f32 %v4634_v53, %v4643_v44 }
0x11fb   :  { %v1858_v28 = vmul.f32 1.442695, %v1857_v31  ;;  %v1882_v9 = vmul.f32 1.442695, %v1881_v61  ;;  %v1908_v34 = vmul.f32 1.442695, %v1907_v54 }
0x11fc   :  { %v1855_v7 = vmul.f32 1.442695, %v1854_v52  ;;  %v1879_v46 = vmul.f32 1.442695, %v1878_v6  ;;  %v1905_v29 = vmul.f32 1.442695, %v1904_v27 }
0x11fd   :  { %3678 = vpow2.f32 %v1858_v28 }
0x11fe   :  { %3680 = vpow2.f32 %v2538_v2 }
0x11ff   :  { %3682 = vpow2.f32 %v1882_v9 }
0x1200   :  { %3684 = vpow2.f32 %v904_v57 }
0x1201   :  { %3686 = vpow2.f32 %v1908_v34 }
0x1202   :  { %3688 = vpow2.f32 %v875_v16 }
0x1204   :  { %v3677_v8 = vpop.eup %3676 }
0x1205   :  { %v856_v5 = vsel %vm742_vm9, %v3677_v8, 0.0 }
0x1206   :  { %857 = vadd.xlane.f32.xlu0 %v856_v5 }
0x120a   :  { %v3679_v10 = vpop.eup %3678 }
0x120b   :  { %v3681_v49 = vpop.eup %3680  ;;  %v1860_v56 = vsel %vm742_vm9, %v3679_v10, 0.0 }
0x120c   :  { %v3683_v0 = vpop.eup %3682  ;;  %1861 = vadd.xlane.f32.xlu0 %v1860_v56  ;;  %v2540_v47 = vsel %vm742_vm9, %v3681_v49, 0.0 }
0x120d   :  { %v1884_v45 = vsel %vm742_vm9, %v3683_v0, 0.0  ;;  %v3685_v43 = vpop.eup %3684 }
0x120e   :  { %1885 = vadd.xlane.f32.xlu1 %v1884_v45  ;;  %v906_v12 = vsel %vm742_vm9, %v3685_v43, 0.0  ;;  %v3687_v51 = vpop.eup %3686 }
0x120f   :  { %v1910_v63 = vsel %vm742_vm9, %v3687_v51, 0.0  ;;  %v3689_v58 = vpop.eup %3688 }
0x1210   :  { %2541 = vadd.xlane.f32.xlu0 %v2540_v47 }
0x1212   :  { %907 = vadd.xlane.f32.xlu1 %v906_v12 }
0x1216   :  { %1911 = vadd.xlane.f32.xlu1 %v1910_v63 }
0x1258   :  { %v882_v24 = vpop.xlane.xlu0 %881 }
0x1259   :  { %v883_v17 = vadd.f32 %v3689_v58, %v882_v24 }
0x126e   :  { %v3033_v20 = vpop.xlane.xlu1 %3032 }
0x126f   :  { %v4655_v11 = vmul.f32 5.0, %v3033_v20 }
0x1272   :  { %v3046_v18 = vpop.xlane.xlu1 %3045 }
0x1273   :  { %v4658_v1 = vmax.f32 %v4655_v11, %v3046_v18 }
0x1275   :  { %v3051_v39 = vsub.f32 %v4600_v60, %v4658_v1  ;;  %v900_v60 = vsub.f32 %v4619_v26, %v4624_v48 }
0x1277   :  { %v3052_v19 = vmul.f32 1.442695, %v3051_v39  ;;  %v901_v3 = vmul.f32 1.442695, %v900_v60 }
0x1279   :  { %3690 = vpow2.f32 %v3052_v19 }
0x127a   :  { %3692 = vpow2.f32 %v851_v30 }
0x127b   :  { %3694 = vlog2.f32 %v883_v17 }
0x127c   :  { %3696 = vpow2.f32 %v1855_v7 }
0x127d   :  { %3698 = vpow2.f32 %v1879_v46 }
0x127e   :  { %3700 = vpow2.f32 %v901_v3 }
0x127f   :  { %3702 = vpow2.f32 %v1905_v29 }
0x1286   :  { %v3691_v25 = vpop.eup %3690 }
0x1287   :  { %v3054_v36 = vsel %vm742_vm9, %v3691_v25, 0.0  ;;  %v3693_v59 = vpop.eup %3692  ;;  %vm2041_vm9 = vcmask 0  }
0x1288   :  { %3055 = vadd.xlane.f32.xlu1 %v3054_v36  ;;  %v3695_v32 = vpop.eup %3694 }
0x1289   :  { %v3697_v41 = vpop.eup %3696  ;;  %v885_v62 = vmul.f32 0.6931472, %v3695_v32 }
0x128a   :  { %v3699_v61 = vpop.eup %3698 }
0x128b   :  { %v3701_v9 = vpop.eup %3700  ;;  %v886_v57 = vadd.f32 %v885_v62, %v4592_v22 }
0x128c   :  { %v3703_v8 = vpop.eup %3702 }
0x128d   :  { %v887_v10 = vsub.f32 %v886_v57, %v4589_v15 }
0x128f   :  { %v858_v42 = vpop.xlane.xlu0 %857  ;;  %v888_v43 = vsel %vm76_vm0, %v887_v10, 0.0 }
0x1290   :  { %v859_v4 = vadd.f32 %v3693_v59, %v858_v42  ;;  %v889_v51 = vrot.slane %v888_v43, 4 }
0x1292   :  { %3704 = vlog2.f32 %v859_v4  ;;  %v890_v18 = vadd.f32 %v889_v51, %v888_v43 }
0x1294   :  { %v891_v17 = vrot.slane %v890_v18, 2 }
0x1295   :  { %v1862_v50 = vpop.xlane.xlu0 %1861 }
0x1296   :  { %v1863_v31 = vadd.f32 %v3697_v41, %v1862_v50  ;;  %v892_v27 = vadd.f32 %v891_v17, %v890_v18 }
0x1297   :  { %v1886_v2 = vpop.xlane.xlu1 %1885 }
0x1298   :  { %v1887_v28 = vadd.f32 %v3699_v61, %v1886_v2  ;;  %3706 = vlog2.f32 %v1863_v31  ;;  %v893_v50 = vrot.slane %v892_v27, 1 }
0x129a   :  { %3708 = vlog2.f32 %v1887_v28  ;;  %v894_v57 = vadd.f32 %v893_v50, %v892_v27 }
0x129b   :  { %v908_v54 = vpop.xlane.xlu1 %907 }
0x129c   :  { %v909_v34 = vadd.f32 %v3701_v9, %v908_v54 }
0x129e   :  { %3710 = vlog2.f32 %v909_v34 }
0x129f   :  { %v3705_v5 = vpop.eup %3704  ;;  %v1912_v49 = vpop.xlane.xlu1 %1911 }
0x12a0   :  { %v861_v56 = vmul.f32 0.6931472, %v3705_v5  ;;  %v1913_v0 = vadd.f32 %v3703_v8, %v1912_v49 }
0x12a2   :  { %v862_v45 = vadd.f32 %v861_v56, %v4610_v55  ;;  %3712 = vlog2.f32 %v1913_v0  ;;  %v895_v56 = vmul.f32 0.25, %v894_v57 }
0x12a4   :  { %v863_v47 = vsub.f32 %v862_v45, %v4605_v35 }
0x12a5   :  { %v3707_v12 = vpop.eup %3706 }
0x12a6   :  { %v864_v22 = vsel %vm76_vm0, %v863_v47, 0.0  ;;  %v1865_v63 = vmul.f32 0.6931472, %v3707_v12 }
0x12a7   :  { %v3709_v14 = vpop.eup %3708  ;;  %v865_v15 = vrot.slane %v864_v22, 4 }
0x12a8   :  { %v1889_v20 = vmul.f32 0.6931472, %v3709_v14  ;;  %v1866_v16 = vadd.f32 %v1865_v63, %v4629_v33 }
0x12a9   :  { %v866_v52 = vadd.f32 %v865_v15, %v864_v22  ;;  %v896_v22 = vmul.f32 0.5, %v895_v56 }
0x12aa   :  { %v1890_v39 = vadd.f32 %v1889_v20, %v4632_v37  ;;  %v1867_v55 = vsub.f32 %v1866_v16, %v4612_v23 }
0x12ab   :  { %v3711_v19 = vpop.eup %3710  ;;  %v867_v46 = vrot.slane %v866_v52, 2 }
0x12ac   :  { %v1891_v21 = vsub.f32 %v1890_v39, %v4621_v13  ;;  %v1868_v35 = vsel %vm76_vm0, %v1867_v55, 0.0  ;;  %v911_v30 = vmul.f32 0.6931472, %v3711_v19 }
0x12ad   :  { %v1869_v24 = vrot.slane %v1868_v35, 4 }
0x12ae   :  { %v1892_v58 = vsel %vm76_vm0, %v1891_v21, 0.0  ;;  %v912_v6 = vadd.f32 %v911_v30, %v4624_v48  ;;  %v868_v48 = vadd.f32 %v867_v46, %v866_v52 }
0x12af   :  { %v3713_v33 = vpop.eup %3712  ;;  %v1893_v7 = vrot.slane %v1892_v58, 4  ;;  %v1870_v25 = vadd.f32 %v1869_v24, %v1868_v35 }
0x12b0   :  { %v913_v37 = vsub.f32 %v912_v6, %v4619_v26  ;;  %v1915_v60 = vmul.f32 0.6931472, %v3713_v33  ;;  %v869_v2 = vrot.slane %v868_v48, 1 }
0x12b1   :  { %v1894_v23 = vadd.f32 %v1893_v7, %v1892_v58  ;;  %v1871_v29 = vrot.slane %v1870_v25, 2 }
0x12b2   :  { %v914_v13 = vsel %vm76_vm0, %v913_v37, 0.0  ;;  %v1916_v36 = vadd.f32 %v1915_v60, %v4643_v44  ;;  %v870_v5 = vadd.f32 %v869_v2, %v868_v48 }
0x12b3   :  { %v915_v3 = vrot.slane %v914_v13, 4  ;;  %v1895_v59 = vrot.slane %v1894_v23, 2  ;;  %v1872_v61 = vadd.f32 %v1871_v29, %v1870_v25 }
0x12b4   :  { %v1917_v42 = vsub.f32 %v1916_v36, %v4634_v53  ;;  %v871_v47 = vmul.f32 0.25, %v870_v5 }
0x12b5   :  { %v916_v4 = vadd.f32 %v915_v3, %v914_v13  ;;  %v1896_v32 = vadd.f32 %v1895_v59, %v1894_v23  ;;  %v1873_v34 = vrot.slane %v1872_v61, 1 }
0x12b6   :  { %v1918_v41 = vsel %vm76_vm0, %v1917_v42, 0.0  ;;  %v897_v16 = vadd.f32 %v896_v22, %v871_v47 }
0x12b7   :  { %v1919_v26 = vrot.slane %v1918_v41, 4  ;;  %v917_v31 = vrot.slane %v916_v4, 2  ;;  %v1897_v62 = vrot.slane %v1896_v32, 1  ;;  %v1874_v45 = vadd.f32 %v1873_v34, %v1872_v61 }
0x12b9   :  { %v918_v28 = vadd.f32 %v917_v31, %v916_v4  ;;  %v1898_v9 = vadd.f32 %v1897_v62, %v1896_v32  ;;  %v1920_v44 = vadd.f32 %v1919_v26, %v1918_v41  ;;  %v1875_v14 = vmul.f32 0.25, %v1874_v45 }
0x12bb   :  { %v919_v54 = vrot.slane %v918_v28, 1  ;;  %v1921_v8 = vrot.slane %v1920_v44, 2  ;;  %v1899_v10 = vmul.f32 0.25, %v1898_v9 }
0x12bd   :  { %v920_v53 = vadd.f32 %v919_v54, %v918_v28  ;;  %v1922_v49 = vadd.f32 %v1921_v8, %v1920_v44  ;;  %v1900_v12 = vmul.f32 0.5, %v1899_v10 }
0x12bf   :  { %v921_v0 = vmul.f32 0.25, %v920_v53  ;;  %v1923_v43 = vrot.slane %v1922_v49, 1  ;;  %v1901_v15 = vadd.f32 %v1900_v12, %v1875_v14 }
0x12c1   :  { %v1924_v51 = vadd.f32 %v1923_v43, %v1922_v49  ;;  %v922_v63 = vmul.f32 0.1, %v921_v0 }
0x12c3   :  { %v1925_v20 = vmul.f32 0.25, %v1924_v51  ;;  %v923_v39 = vadd.f32 %v922_v63, %v897_v16 }
0x12c5   :  { %v1926_v18 = vmul.f32 0.1, %v1925_v20 }
0x12c7   :  { %v1927_v55 = vadd.f32 %v1926_v18, %v1901_v15 }
0x12c9   :  { %v1928_v19 = vadd.f32 %v1927_v55, %v923_v39 }
0x12cb   :  { %2042 = vst.msk [vmem:[#allocation2] sm:$0x1] %vm2041_vm9, %v1928_v19 }
0x12cc   :  { %3740 = shalt.err (!%p3737_p4)
}
0x12cd   :  { %3081 = dma.vmem_to_hbm [thread:$0]  %s3079_s1, 16, %s4716_s7, [#allocation3]   ;;  %v2534_v21 = vsub.f32 %v4607_v38, %v4615_v40  ;;  %v2542_v30 = vpop.xlane.xlu0 %2541  ;;  %v3048_v58 = vsub.f32 %v4655_v11, %v4658_v1 }
0x12ce   :  { %s3776_s7 = smov [#allocation4]  }
0x12cf   :  { %v2535_v35 = vmul.f32 1.442695, %v2534_v21  ;;  %v3049_v6 = vmul.f32 1.442695, %v3048_v58  ;;  %s3088_s20 = sshll.u32 %s3776_s7, 4  ;;  %s3089_s20 = int_to_ptr.vmem [resolvable:$true] %s3088_s20 }
0x12d0   :  { %s3749_s21 = scalar_lea.vmem %s3089_s20, 16  ;;  %s3753_s22 = scalar_lea.vmem %s3089_s20, 32 }
0x12d1   :  { %3714 = vpow2.f32 %v2535_v35  ;;  %p3750_p5 = scmp.ne.s32.totalorder %s3089_s20, %s3749_s21  ;;  %p3754_p6 = scmp.lt.s32.totalorder %s3089_s20, %s3089_s20 }
0x12d2   :  { %p3755_p7 = scmp.lt.s32.totalorder %s3753_s22, %s3749_s21 }
0x12d4   :  { %p3756_p8 = por %p3755_p7, %p3754_p6 }
0x12d6   :  { %p3757_p9 = pnand %p3756_p8, %p3750_p5 }
0x12de   :  { %v3715_v52 = vpop.eup %3714 }
0x12df   :  { %v2543_v24 = vadd.f32 %v3715_v52, %v2542_v30 }
0x12e1   :  { %3716 = vlog2.f32 %v2543_v24 }
0x12e2   :  { %3718 = vpow2.f32 %v3049_v6 }
0x12ee   :  { %v3717_v17 = vpop.eup %3716 }
0x12ef   :  { %v2545_v33 = vmul.f32 0.6931472, %v3717_v17  ;;  %v3719_v7 = vpop.eup %3718 }
0x12f1   :  { %v2546_v37 = vadd.f32 %v2545_v33, %v4615_v40 }
0x12f3   :  { %v2547_v23 = vsub.f32 %v2546_v37, %v4607_v38 }
0x12f5   :  { %v2548_v46 = vsel %vm76_vm0, %v2547_v23, 0.0 }
0x12f6   :  { %v2549_v13 = vrot.slane %v2548_v46, 4 }
0x12f8   :  { %v2550_v27 = vadd.f32 %v2549_v13, %v2548_v46 }
0x12fa   :  { %v2551_v59 = vrot.slane %v2550_v27, 2 }
0x12fc   :  { %v2552_v32 = vadd.f32 %v2551_v59, %v2550_v27 }
0x12fe   :  { %v2553_v41 = vrot.slane %v2552_v32, 1 }
0x1300   :  { %v2554_v38 = vadd.f32 %v2553_v41, %v2552_v32 }
0x1302   :  { %v2555_v62 = vmul.f32 0.25, %v2554_v38 }
0x1311   :  { %v3056_v25 = vpop.xlane.xlu1 %3055 }
0x1312   :  { %v3057_v60 = vadd.f32 %v3719_v7, %v3056_v25 }
0x1314   :  { %3720 = vlog2.f32 %v3057_v60 }
0x1321   :  { %v3721_v36 = vpop.eup %3720 }
0x1322   :  { %v3059_v3 = vmul.f32 0.6931472, %v3721_v36 }
0x1324   :  { %v3060_v29 = vadd.f32 %v3059_v3, %v4658_v1 }
0x1326   :  { %v3061_v42 = vsub.f32 %v3060_v29, %v4655_v11 }
0x1328   :  { %v3062_v48 = vsel %vm76_vm0, %v3061_v42, 0.0 }
0x1329   :  { %v3063_v4 = vrot.slane %v3062_v48, 4 }
0x132b   :  { %v3064_v40 = vadd.f32 %v3063_v4, %v3062_v48 }
0x132d   :  { %v3065_v50 = vrot.slane %v3064_v40, 2 }
0x132f   :  { %v3066_v26 = vadd.f32 %v3065_v50, %v3064_v40 }
0x1331   :  { %v3067_v31 = vrot.slane %v3066_v26, 1 }
0x1333   :  { %v3068_v61 = vadd.f32 %v3067_v31, %v3066_v26 }
0x1335   :  { %v3069_v2 = vmul.f32 0.25, %v3068_v61 }
0x1337   :  { %v3070_v28 = vadd.f32 %v3069_v2, %v2555_v62 }
0x1339   :  { %3071 = vst.msk [vmem:[#allocation4] sm:$0x1] %vm2041_vm9, %v3070_v28 }
0x133a   :  { %3760 = shalt.err (!%p3757_p9)
}
0x133b   :  { %3091 = dma.vmem_to_hbm [thread:$0]  %s3089_s20, 16, %s4717_s8, [#allocation5]  }
0x133c   :  { %3769 = dma.done.wait [#allocation3], 16  }
0x133d   :  { %3770 = vsyncadd [#allocation3], 4294967280 }
0x133e   :  { %3771 = dma.done.wait [#allocation5], 16  }
0x133f   :  { %3772 = vsyncadd [#allocation5], 4294967280 }
0x1340   :  { %3098 = vsyncpa [#allocation3], 1 }
0x1341   :  { %3099 = vsyncpa [#allocation5], 1 }

</bundles_post_ra>
